<compile_context>
chip_gen: v7x
topology: tpu7x:2x2x1
jax: 0.10.0
libtpu: 0.0.40
codegen_flags: <defaults>
</compile_context>

<pallas_src>
import functools

import numpy as np

import jax
import jax.numpy as jnp
from jax import lax
from jax.experimental import pallas as pl
from jax.experimental.pallas import tpu as pltpu


# ------------------------------ fused kernel --------------------------------

def kf_fused_kernel(x_ref, tap1_ref, cb1_ref, tap2_ref, cb2_ref,
                    w1_hbm, b1_ref, w2_hbm, b2_ref,
                    o_ref,
                    w1_vmem, w2_vmem, h2_vmem, flat_ref, dma_sem,
                    *, C, k):
    """Fused forward pass.

    x_ref:    (N, H, C*C*W) f32 VMEM  input channel replicated into C*C lane blocks
    tap1_ref: (k*k, L1B)    f32 VMEM  conv1 taps, pre-broadcast per lane block
    cb1_ref:  (1, L1B)      f32 VMEM
    tap2_ref: (C*k*k, L2B)  f32 VMEM  conv2 taps, pre-broadcast per output block
    cb2_ref:  (1, C*Wo2)    f32 VMEM
    w1_hbm:   (D, Hdn)      bf16 ANY  FC1 weights, rows in kernel (i, co, j) order
    b1_ref:   (1, Hdn)      f32 VMEM
    w2_hbm:   (Hdn, 128)    bf16 ANY  FC2 weights, class dim padded to 128
    b2_ref:   (1, 128)      f32 VMEM  padded entries are -1e30 (-> prob 0)
    o_ref:    (N, 128)      f32 VMEM  softmax probabilities (lane-dense)
    """
    # Kick off the FC weight DMAs first so they overlap all conv/flatten compute.
    cp_w1 = pltpu.make_async_copy(w1_hbm, w1_vmem, dma_sem.at[0])
    cp_w1.start()
    cp_w2 = pltpu.make_async_copy(w2_hbm, w2_vmem, dma_sem.at[1])
    cp_w2.start()

    N, H, WR = x_ref.shape
    R = C * C                          # input replicas (one per (co, ci) pair)
    S1 = WR // R                       # lane stride of input blocks (= image width W)
    Ho1, Wo1 = H - k + 1, S1 - k + 1
    Ho2, Wo2 = Ho1 - k + 1, Wo1 - k + 1
    L1B = (R - 1) * S1 + Wo1           # conv1 folded output lane width
    S2 = C * S1                        # conv2 output-channel block stride
    L2B = (C - 1) * S2 + Wo2           # conv2 folded output lane width
    L2 = C * Wo2                       # compact conv2 row width

    x_t = x_ref[...]                   # (N, H, R*S1)

    # ---- conv1 + ReLU (channels folded into lanes; block b = co*C+ci holds ch ci) ----
    acc1 = jnp.zeros((N, Ho1, L1B), jnp.float32)
    for di in range(k):
        row = x_t[:, di:di + Ho1, :]
        for dj in range(k):
            t = di * k + dj
            acc1 = acc1 + row[:, :, dj:dj + L1B] * tap1_ref[t:t + 1, :]
    h1 = jnp.maximum(acc1 + cb1_ref[...], 0.0)            # (N, Ho1, L1B)

    # ---- conv2 (output channel co folded at lane block co*S2) ----
    acc2 = jnp.zeros((N, Ho2, L2B), jnp.float32)
    for di in range(k):
        row = h1[:, di:di + Ho2, :]
        for ci in range(C):
            for dj in range(k):
                t = (ci * k + di) * k + dj
                off = ci * S1 + dj
                acc2 = acc2 + row[:, :, off:off + L2B] * tap2_ref[t:t + 1, :]

    # Compact the C output blocks into a dense (N, Ho2, C*Wo2) slab, then bias+ReLU.
    for co in range(C):
        h2_vmem[:, :, co * Wo2:(co + 1) * Wo2] = acc2[:, :, co * S2:co * S2 + Wo2]
    h2 = jnp.maximum(h2_vmem[...] + cb2_ref[...], 0.0)     # (N, Ho2, C*Wo2)

    # ---- flatten: lane-dense bf16 slab in (i, co, j) order (w1 rows match it) ----
    for i in range(Ho2):
        flat_ref[:, i * L2:(i + 1) * L2] = h2[:, i, :].astype(flat_ref.dtype)

    # ---- fc1 + ReLU + fc2: bf16 weights on the MXU, f32 accumulation ----
    cp_w1.wait()
    h = jnp.dot(flat_ref[...], w1_vmem[...], preferred_element_type=jnp.float32)
    h = jnp.maximum(h + b1_ref[...], 0.0)
    cp_w2.wait()
    logits = jnp.dot(h.astype(w2_vmem.dtype), w2_vmem[...],
                     preferred_element_type=jnp.float32) + b2_ref[...]

    # ---- softmax over the padded 128-wide class dim (padded biases -> prob 0) ----
    m = jnp.max(logits, axis=-1, keepdims=True)
    e = jnp.exp(logits - m)
    s = jnp.sum(e, axis=-1, keepdims=True)
    o_ref[...] = e / s


# -------------------------------- wrappers ----------------------------------

def prepare_params(pt_params, image_dim):
    """PyTorch-layout params -> kernel-layout params.

    - conv taps become pre-broadcast per-lane rows matching the channel-folded
      layout used inside the kernel,
    - FC1 weights are transposed, row-permuted to the kernel's flatten order
      (i, co, j) and cast to bf16,
    - FC2 weights/bias are padded to 128 classes (zeros / -1e30) and cast.
    """
    cw1, cb1, cw2, cb2, fc1_w, fc1_b, fc2_w, fc2_b = [np.asarray(p, np.float32)
                                                      for p in pt_params]
    C, _, k, _ = cw1.shape
    H, W = image_dim
    Ho1, Wo1 = H - k + 1, W - k + 1
    Ho2, Wo2 = Ho1 - k + 1, Wo1 - k + 1
    S1 = W
    R = C * C
    L1B = (R - 1) * S1 + Wo1
    S2 = C * S1
    L2B = (C - 1) * S2 + Wo2
    L2 = C * Wo2
    D = C * Ho2 * Wo2
    hidden = fc1_w.shape[0]
    NC = fc2_w.shape[0]
    NCP = max(128, ((NC + 127) // 128) * 128)

    # conv1: lane block b = co*C + ci holds the input replica -> output channel ci.
    tap1 = np.zeros((k * k, L1B), np.float32)
    cb1_row = np.zeros((1, L1B), np.float32)
    for b in range(R):
        ci = b % C
        sl = slice(b * S1, b * S1 + Wo1)
        cb1_row[0, sl] = cb1[ci]
        for di in range(k):
            for dj in range(k):
                tap1[di * k + dj, sl] = cw1[ci, 0, di, dj]

    # conv2: output channel co lives at lane block co*S2 (valid width Wo2).
    tap2 = np.zeros((C * k * k, L2B), np.float32)
    cb2_row = np.zeros((1, L2), np.float32)
    for co in range(C):
        osl = slice(co * S2, co * S2 + Wo2)
        cb2_row[0, co * Wo2:(co + 1) * Wo2] = cb2[co]
        for ci in range(C):
            for di in range(k):
                for dj in range(k):
                    tap2[(ci * k + di) * k + dj, osl] = cw2[co, ci, di, dj]

    # fc1: PyTorch NCHW-flatten row order (co, i, j) -> kernel flatten order (i, co, j)
    w1 = fc1_w.T.reshape(C, Ho2, Wo2, hidden).transpose(1, 0, 2, 3).reshape(D, hidden)
    b1 = fc1_b.reshape(1, hidden)

    # fc2: pad class dim to a lane-dense 128 (zero weights, -1e30 bias -> prob 0)
    w2 = np.zeros((hidden, NCP), np.float32)
    w2[:, :NC] = fc2_w.T
    b2 = np.full((1, NCP), -1e30, np.float32)
    b2[0, :NC] = fc2_b

    return (jnp.asarray(tap1), jnp.asarray(cb1_row),
            jnp.asarray(tap2), jnp.asarray(cb2_row),
            jnp.asarray(w1).astype(jnp.bfloat16), jnp.asarray(b1),
            jnp.asarray(w2).astype(jnp.bfloat16), jnp.asarray(b2))


@functools.partial(jax.jit, static_argnames=("num_classes",))
def kf_forward(x, kernel_params, num_classes):
    """x: (N, 1, H, W) float32 NCHW. Returns (N, num_classes) softmax probs."""
    tap1, cb1r, tap2, cb2r, w1, b1, w2, b2 = kernel_params
    N, _, H, W = x.shape
    kk = tap1.shape[0]
    k = int(round(kk ** 0.5))
    C = tap2.shape[0] // kk
    Ho1, Wo1 = H - k + 1, W - k + 1
    Ho2, Wo2 = Ho1 - k + 1, Wo1 - k + 1
    D = C * Ho2 * Wo2
    hidden = b1.shape[1]
    NCP = b2.shape[1]
    assert D == w1.shape[0] and hidden == w1.shape[1] and NCP == w2.shape[1]

    # Replicate the single input channel into C*C lane blocks (tiny; done by XLA).
    x_t = jnp.tile(x[:, 0, :, :], (1, 1, C * C))           # (N, H, C*C*W)

    vmem = pl.BlockSpec(memory_space=pltpu.MemorySpace.VMEM)
    anyspace = pl.BlockSpec(memory_space=pl.ANY)            # raw HBM ref; manual DMA

    flops = 2 * N * (Ho1 * Wo1 * C * k * k + Ho2 * Wo2 * C * C * k * k
                     + D * hidden + hidden * NCP)
    bytes_accessed = (x_t.size * 4 + tap1.size * 4 + cb1r.size * 4 + tap2.size * 4
                      + cb2r.size * 4 + w1.size * 2 + b1.size * 4 + w2.size * 2
                      + b2.size * 4 + N * NCP * 4)

    out = pl.pallas_call(
        functools.partial(kf_fused_kernel, C=C, k=k),
        out_shape=jax.ShapeDtypeStruct((N, NCP), jnp.float32),
        in_specs=[vmem, vmem, vmem, vmem, vmem, anyspace, vmem, anyspace, vmem],
        out_specs=vmem,
        scratch_shapes=[
            pltpu.VMEM((D, hidden), jnp.bfloat16),        # fc1 weights (async DMA dst)
            pltpu.VMEM((hidden, NCP), jnp.bfloat16),      # fc2 weights (async DMA dst)
            pltpu.VMEM((N, Ho2, C * Wo2), jnp.float32),   # compacted conv2 output
            pltpu.VMEM((N, D), jnp.bfloat16),             # lane-dense flattened acts
            pltpu.SemaphoreType.DMA((2,)),
        ],
        cost_estimate=pl.CostEstimate(flops=flops, transcendentals=N * NCP,
                                      bytes_accessed=bytes_accessed),
    )(x_t, tap1, cb1r, tap2, cb2r, w1, b1, w2, b2)
    return out[:, :num_classes]


def init_params(key, conv_slices, kernel_size, num_classes, image_dim):
    """Deterministic synthetic init in PyTorch layouts (uniform(-1/sqrt(fan_in), +)).

    # TODO(synk): original module copies fixed KF_Layer filters into the conv weights;
    # KF_Layer isn't provided, so conv weights use this random init (forward math unchanged).
    """
    H, W = image_dim
    k, C = kernel_size, conv_slices
    Ho2, Wo2 = H - 2 * (k - 1), W - 2 * (k - 1)
    D = C * Ho2 * Wo2

    ks = jax.random.split(key, 8)

    def u(kk, shape, fan_in):
        b = 1.0 / jnp.sqrt(jnp.float32(fan_in))
        return jax.random.uniform(kk, shape, jnp.float32, -b, b)

    cw1 = u(ks[0], (C, 1, k, k), 1 * k * k)
    cb1 = u(ks[1], (C,), 1 * k * k)
    cw2 = u(ks[2], (C, C, k, k), C * k * k)
    cb2 = u(ks[3], (C,), C * k * k)
    fc1_w = u(ks[4], (512, D), D)
    fc1_b = u(ks[5], (512,), D)
    fc2_w = u(ks[6], (num_classes, 512), 512)
    fc2_b = u(ks[7], (num_classes,), 512)
    return (cw1, cb1, cw2, cb2, fc1_w, fc1_b, fc2_w, fc2_b)


def reference_forward(x, pt_params):
    """Pure-JAX reference with PyTorch semantics (eval mode)."""
    cw1, cb1, cw2, cb2, fc1_w, fc1_b, fc2_w, fc2_b = pt_params
    dn = ('NCHW', 'OIHW', 'NCHW')
    y = lax.conv_general_dilated(x, cw1, (1, 1), 'VALID', dimension_numbers=dn)
    y = jnp.maximum(y + cb1[None, :, None, None], 0.0)
    y = lax.conv_general_dilated(y, cw2, (1, 1), 'VALID', dimension_numbers=dn)
    y = jnp.maximum(y + cb2[None, :, None, None], 0.0)
    flat = y.reshape(x.shape[0], -1)
    h = jnp.maximum(flat @ fc1_w.T + fc1_b, 0.0)
    logits = h @ fc2_w.T + fc2_b
    return jax.nn.softmax(logits, axis=-1)


# ---------------------------------- main -------------------------------------

if __name__ == "__main__":
    conv_slices = 4
    kernel_size = 3
    num_classes = 10
    image_dim = (16, 16)
    batch = 2

    key = jax.random.PRNGKey(0)
    k_params, k_x = jax.random.split(key)

    pt_params = init_params(k_params, conv_slices, kernel_size, num_classes, image_dim)
    x = jax.random.normal(k_x, (batch, 1, image_dim[0], image_dim[1]), jnp.float32)

    kernel_params = prepare_params(pt_params, image_dim)
    out = jax.block_until_ready(kf_forward(x, kernel_params, num_classes))

    assert out.shape == (batch, num_classes)
    # Eval-mode softmax rows should sum to ~1 (padded classes contribute exactly 0).
    assert bool(jnp.all(jnp.abs(jnp.sum(out, axis=1) - 1.0) < 5e-3))

    # Compare against a pure-JAX reference using the same bf16-rounded FC weights.
    ref_params = list(pt_params)
    ref_params[4] = pt_params[4].astype(jnp.bfloat16).astype(jnp.float32)
    ref_params[6] = pt_params[6].astype(jnp.bfloat16).astype(jnp.float32)
    ref = jax.block_until_ready(reference_forward(x, tuple(ref_params)))
    assert bool(jnp.max(jnp.abs(out - ref)) < 5e-3)

    print("KERNEL_OK")
</pallas_src>

<mosaic_0001>
module attributes {stable_mosaic.version = 11 : i64} {
  func.func @kf_fused_kernel(%arg0: memref<2x16x256xf32, #tpu.memory_space<vmem>>, %arg1: memref<9x254xf32, #tpu.memory_space<vmem>>, %arg2: memref<1x254xf32, #tpu.memory_space<vmem>>, %arg3: memref<36x204xf32, #tpu.memory_space<vmem>>, %arg4: memref<1x48xf32, #tpu.memory_space<vmem>>, %arg5: memref<576x512xbf16, #tpu.memory_space<any>>, %arg6: memref<1x512xf32, #tpu.memory_space<vmem>>, %arg7: memref<512x128xbf16, #tpu.memory_space<any>>, %arg8: memref<1x128xf32, #tpu.memory_space<vmem>>, %arg9: memref<2x128xf32, #tpu.memory_space<vmem>>, %arg10: memref<576x512xbf16, #tpu.memory_space<vmem>>, %arg11: memref<512x128xbf16, #tpu.memory_space<vmem>>, %arg12: memref<2x12x48xf32, #tpu.memory_space<vmem>>, %arg13: memref<2x576xbf16, #tpu.memory_space<vmem>>, %arg14: memref<2x!tpu.dma_semaphore, #tpu.memory_space<semaphore_mem>>) attributes {dimension_semantics = [], scalar_prefetch = 0 : i64, scratch_operands = 5 : i64, tpu.core_type = #tpu.core_type<tc>} {
    %c0_i32 = arith.constant 0 : i32
    %0 = tpu.memref_slice %arg14[%c0_i32] : memref<2x!tpu.dma_semaphore, #tpu.memory_space<semaphore_mem>> -> memref<1x!tpu.dma_semaphore, #tpu.memory_space<semaphore_mem>>
    %1 = tpu.memref_squeeze %0 : memref<1x!tpu.dma_semaphore, #tpu.memory_space<semaphore_mem>> -> memref<!tpu.dma_semaphore, #tpu.memory_space<semaphore_mem>>
    tpu.enqueue_dma source(%arg5 : memref<576x512xbf16, #tpu.memory_space<any>>) target(%arg10 : memref<576x512xbf16, #tpu.memory_space<vmem>>) target_semaphore(%1 : memref<!tpu.dma_semaphore, #tpu.memory_space<semaphore_mem>>)
    %c1_i32 = arith.constant 1 : i32
    %2 = tpu.memref_slice %arg14[%c1_i32] : memref<2x!tpu.dma_semaphore, #tpu.memory_space<semaphore_mem>> -> memref<1x!tpu.dma_semaphore, #tpu.memory_space<semaphore_mem>>
    %3 = tpu.memref_squeeze %2 : memref<1x!tpu.dma_semaphore, #tpu.memory_space<semaphore_mem>> -> memref<!tpu.dma_semaphore, #tpu.memory_space<semaphore_mem>>
    tpu.enqueue_dma source(%arg7 : memref<512x128xbf16, #tpu.memory_space<any>>) target(%arg11 : memref<512x128xbf16, #tpu.memory_space<vmem>>) target_semaphore(%3 : memref<!tpu.dma_semaphore, #tpu.memory_space<semaphore_mem>>)
    %c0 = arith.constant 0 : index
    %c0_0 = arith.constant 0 : index
    %c0_1 = arith.constant 0 : index
    %4 = vector.load %arg0[%c0, %c0_0, %c0_1] : memref<2x16x256xf32, #tpu.memory_space<vmem>>, vector<2x16x256xf32>
    %cst = arith.constant 0.000000e+00 : f32
    %5 = vector.broadcast %cst : f32 to vector<2x14x254xf32>
    %6 = vector.extract_strided_slice %4 {offsets = [0, 0, 0], sizes = [2, 14, 256], strides = [1, 1, 1]} : vector<2x16x256xf32> to vector<2x14x256xf32>
    %7 = vector.extract_strided_slice %6 {offsets = [0, 0, 0], sizes = [2, 14, 254], strides = [1, 1, 1]} : vector<2x14x256xf32> to vector<2x14x254xf32>
    %c0_2 = arith.constant 0 : index
    %c0_3 = arith.constant 0 : index
    %8 = vector.load %arg1[%c0_2, %c0_3] : memref<9x254xf32, #tpu.memory_space<vmem>>, vector<1x254xf32>
    %9 = vector.shape_cast %8 : vector<1x254xf32> to vector<1x1x254xf32>
    %10 = vector.broadcast %9 : vector<1x1x254xf32> to vector<2x14x254xf32>
    %11 = arith.mulf %7, %10 : vector<2x14x254xf32>
    %12 = arith.addf %5, %11 : vector<2x14x254xf32>
    %13 = vector.extract_strided_slice %6 {offsets = [0, 0, 1], sizes = [2, 14, 254], strides = [1, 1, 1]} : vector<2x14x256xf32> to vector<2x14x254xf32>
    %c1 = arith.constant 1 : index
    %c0_4 = arith.constant 0 : index
    %14 = vector.load %arg1[%c1, %c0_4] : memref<9x254xf32, #tpu.memory_space<vmem>>, vector<1x254xf32>
    %15 = vector.shape_cast %14 : vector<1x254xf32> to vector<1x1x254xf32>
    %16 = vector.broadcast %15 : vector<1x1x254xf32> to vector<2x14x254xf32>
    %17 = arith.mulf %13, %16 : vector<2x14x254xf32>
    %18 = arith.addf %12, %17 : vector<2x14x254xf32>
    %19 = vector.extract_strided_slice %6 {offsets = [0, 0, 2], sizes = [2, 14, 254], strides = [1, 1, 1]} : vector<2x14x256xf32> to vector<2x14x254xf32>
    %c2 = arith.constant 2 : index
    %c0_5 = arith.constant 0 : index
    %20 = vector.load %arg1[%c2, %c0_5] : memref<9x254xf32, #tpu.memory_space<vmem>>, vector<1x254xf32>
    %21 = vector.shape_cast %20 : vector<1x254xf32> to vector<1x1x254xf32>
    %22 = vector.broadcast %21 : vector<1x1x254xf32> to vector<2x14x254xf32>
    %23 = arith.mulf %19, %22 : vector<2x14x254xf32>
    %24 = arith.addf %18, %23 : vector<2x14x254xf32>
    %25 = vector.extract_strided_slice %4 {offsets = [0, 1, 0], sizes = [2, 14, 256], strides = [1, 1, 1]} : vector<2x16x256xf32> to vector<2x14x256xf32>
    %26 = vector.extract_strided_slice %25 {offsets = [0, 0, 0], sizes = [2, 14, 254], strides = [1, 1, 1]} : vector<2x14x256xf32> to vector<2x14x254xf32>
    %c3 = arith.constant 3 : index
    %c0_6 = arith.constant 0 : index
    %27 = vector.load %arg1[%c3, %c0_6] : memref<9x254xf32, #tpu.memory_space<vmem>>, vector<1x254xf32>
    %28 = vector.shape_cast %27 : vector<1x254xf32> to vector<1x1x254xf32>
    %29 = vector.broadcast %28 : vector<1x1x254xf32> to vector<2x14x254xf32>
    %30 = arith.mulf %26, %29 : vector<2x14x254xf32>
    %31 = arith.addf %24, %30 : vector<2x14x254xf32>
    %32 = vector.extract_strided_slice %25 {offsets = [0, 0, 1], sizes = [2, 14, 254], strides = [1, 1, 1]} : vector<2x14x256xf32> to vector<2x14x254xf32>
    %c4 = arith.constant 4 : index
    %c0_7 = arith.constant 0 : index
    %33 = vector.load %arg1[%c4, %c0_7] : memref<9x254xf32, #tpu.memory_space<vmem>>, vector<1x254xf32>
    %34 = vector.shape_cast %33 : vector<1x254xf32> to vector<1x1x254xf32>
    %35 = vector.broadcast %34 : vector<1x1x254xf32> to vector<2x14x254xf32>
    %36 = arith.mulf %32, %35 : vector<2x14x254xf32>
    %37 = arith.addf %31, %36 : vector<2x14x254xf32>
    %38 = vector.extract_strided_slice %25 {offsets = [0, 0, 2], sizes = [2, 14, 254], strides = [1, 1, 1]} : vector<2x14x256xf32> to vector<2x14x254xf32>
    %c5 = arith.constant 5 : index
    %c0_8 = arith.constant 0 : index
    %39 = vector.load %arg1[%c5, %c0_8] : memref<9x254xf32, #tpu.memory_space<vmem>>, vector<1x254xf32>
    %40 = vector.shape_cast %39 : vector<1x254xf32> to vector<1x1x254xf32>
    %41 = vector.broadcast %40 : vector<1x1x254xf32> to vector<2x14x254xf32>
    %42 = arith.mulf %38, %41 : vector<2x14x254xf32>
    %43 = arith.addf %37, %42 : vector<2x14x254xf32>
    %44 = vector.extract_strided_slice %4 {offsets = [0, 2, 0], sizes = [2, 14, 256], strides = [1, 1, 1]} : vector<2x16x256xf32> to vector<2x14x256xf32>
    %45 = vector.extract_strided_slice %44 {offsets = [0, 0, 0], sizes = [2, 14, 254], strides = [1, 1, 1]} : vector<2x14x256xf32> to vector<2x14x254xf32>
    %c6 = arith.constant 6 : index
    %c0_9 = arith.constant 0 : index
    %46 = vector.load %arg1[%c6, %c0_9] : memref<9x254xf32, #tpu.memory_space<vmem>>, vector<1x254xf32>
    %47 = vector.shape_cast %46 : vector<1x254xf32> to vector<1x1x254xf32>
    %48 = vector.broadcast %47 : vector<1x1x254xf32> to vector<2x14x254xf32>
    %49 = arith.mulf %45, %48 : vector<2x14x254xf32>
    %50 = arith.addf %43, %49 : vector<2x14x254xf32>
    %51 = vector.extract_strided_slice %44 {offsets = [0, 0, 1], sizes = [2, 14, 254], strides = [1, 1, 1]} : vector<2x14x256xf32> to vector<2x14x254xf32>
    %c7 = arith.constant 7 : index
    %c0_10 = arith.constant 0 : index
    %52 = vector.load %arg1[%c7, %c0_10] : memref<9x254xf32, #tpu.memory_space<vmem>>, vector<1x254xf32>
    %53 = vector.shape_cast %52 : vector<1x254xf32> to vector<1x1x254xf32>
    %54 = vector.broadcast %53 : vector<1x1x254xf32> to vector<2x14x254xf32>
    %55 = arith.mulf %51, %54 : vector<2x14x254xf32>
    %56 = arith.addf %50, %55 : vector<2x14x254xf32>
    %57 = vector.extract_strided_slice %44 {offsets = [0, 0, 2], sizes = [2, 14, 254], strides = [1, 1, 1]} : vector<2x14x256xf32> to vector<2x14x254xf32>
    %c8 = arith.constant 8 : index
    %c0_11 = arith.constant 0 : index
    %58 = vector.load %arg1[%c8, %c0_11] : memref<9x254xf32, #tpu.memory_space<vmem>>, vector<1x254xf32>
    %59 = vector.shape_cast %58 : vector<1x254xf32> to vector<1x1x254xf32>
    %60 = vector.broadcast %59 : vector<1x1x254xf32> to vector<2x14x254xf32>
    %61 = arith.mulf %57, %60 : vector<2x14x254xf32>
    %62 = arith.addf %56, %61 : vector<2x14x254xf32>
    %c0_12 = arith.constant 0 : index
    %c0_13 = arith.constant 0 : index
    %63 = vector.load %arg2[%c0_12, %c0_13] : memref<1x254xf32, #tpu.memory_space<vmem>>, vector<1x254xf32>
    %64 = vector.shape_cast %63 : vector<1x254xf32> to vector<1x1x254xf32>
    %65 = vector.broadcast %64 : vector<1x1x254xf32> to vector<2x14x254xf32>
    %66 = arith.addf %62, %65 : vector<2x14x254xf32>
    %cst_14 = arith.constant 0.000000e+00 : f32
    %67 = vector.broadcast %cst_14 : f32 to vector<2x14x254xf32>
    %68 = arith.maximumf %66, %67 : vector<2x14x254xf32>
    %cst_15 = arith.constant 0.000000e+00 : f32
    %69 = vector.broadcast %cst_15 : f32 to vector<2x12x204xf32>
    %70 = vector.extract_strided_slice %68 {offsets = [0, 0, 0], sizes = [2, 12, 254], strides = [1, 1, 1]} : vector<2x14x254xf32> to vector<2x12x254xf32>
    %71 = vector.extract_strided_slice %70 {offsets = [0, 0, 0], sizes = [2, 12, 204], strides = [1, 1, 1]} : vector<2x12x254xf32> to vector<2x12x204xf32>
    %c0_16 = arith.constant 0 : index
    %c0_17 = arith.constant 0 : index
    %72 = vector.load %arg3[%c0_16, %c0_17] : memref<36x204xf32, #tpu.memory_space<vmem>>, vector<1x204xf32>
    %73 = vector.shape_cast %72 : vector<1x204xf32> to vector<1x1x204xf32>
    %74 = vector.broadcast %73 : vector<1x1x204xf32> to vector<2x12x204xf32>
    %75 = arith.mulf %71, %74 : vector<2x12x204xf32>
    %76 = arith.addf %69, %75 : vector<2x12x204xf32>
    %77 = vector.extract_strided_slice %70 {offsets = [0, 0, 1], sizes = [2, 12, 204], strides = [1, 1, 1]} : vector<2x12x254xf32> to vector<2x12x204xf32>
    %c1_18 = arith.constant 1 : index
    %c0_19 = arith.constant 0 : index
    %78 = vector.load %arg3[%c1_18, %c0_19] : memref<36x204xf32, #tpu.memory_space<vmem>>, vector<1x204xf32>
    %79 = vector.shape_cast %78 : vector<1x204xf32> to vector<1x1x204xf32>
    %80 = vector.broadcast %79 : vector<1x1x204xf32> to vector<2x12x204xf32>
    %81 = arith.mulf %77, %80 : vector<2x12x204xf32>
    %82 = arith.addf %76, %81 : vector<2x12x204xf32>
    %83 = vector.extract_strided_slice %70 {offsets = [0, 0, 2], sizes = [2, 12, 204], strides = [1, 1, 1]} : vector<2x12x254xf32> to vector<2x12x204xf32>
    %c2_20 = arith.constant 2 : index
    %c0_21 = arith.constant 0 : index
    %84 = vector.load %arg3[%c2_20, %c0_21] : memref<36x204xf32, #tpu.memory_space<vmem>>, vector<1x204xf32>
    %85 = vector.shape_cast %84 : vector<1x204xf32> to vector<1x1x204xf32>
    %86 = vector.broadcast %85 : vector<1x1x204xf32> to vector<2x12x204xf32>
    %87 = arith.mulf %83, %86 : vector<2x12x204xf32>
    %88 = arith.addf %82, %87 : vector<2x12x204xf32>
    %89 = vector.extract_strided_slice %70 {offsets = [0, 0, 16], sizes = [2, 12, 204], strides = [1, 1, 1]} : vector<2x12x254xf32> to vector<2x12x204xf32>
    %c9 = arith.constant 9 : index
    %c0_22 = arith.constant 0 : index
    %90 = vector.load %arg3[%c9, %c0_22] : memref<36x204xf32, #tpu.memory_space<vmem>>, vector<1x204xf32>
    %91 = vector.shape_cast %90 : vector<1x204xf32> to vector<1x1x204xf32>
    %92 = vector.broadcast %91 : vector<1x1x204xf32> to vector<2x12x204xf32>
    %93 = arith.mulf %89, %92 : vector<2x12x204xf32>
    %94 = arith.addf %88, %93 : vector<2x12x204xf32>
    %95 = vector.extract_strided_slice %70 {offsets = [0, 0, 17], sizes = [2, 12, 204], strides = [1, 1, 1]} : vector<2x12x254xf32> to vector<2x12x204xf32>
    %c10 = arith.constant 10 : index
    %c0_23 = arith.constant 0 : index
    %96 = vector.load %arg3[%c10, %c0_23] : memref<36x204xf32, #tpu.memory_space<vmem>>, vector<1x204xf32>
    %97 = vector.shape_cast %96 : vector<1x204xf32> to vector<1x1x204xf32>
    %98 = vector.broadcast %97 : vector<1x1x204xf32> to vector<2x12x204xf32>
    %99 = arith.mulf %95, %98 : vector<2x12x204xf32>
    %100 = arith.addf %94, %99 : vector<2x12x204xf32>
    %101 = vector.extract_strided_slice %70 {offsets = [0, 0, 18], sizes = [2, 12, 204], strides = [1, 1, 1]} : vector<2x12x254xf32> to vector<2x12x204xf32>
    %c11 = arith.constant 11 : index
    %c0_24 = arith.constant 0 : index
    %102 = vector.load %arg3[%c11, %c0_24] : memref<36x204xf32, #tpu.memory_space<vmem>>, vector<1x204xf32>
    %103 = vector.shape_cast %102 : vector<1x204xf32> to vector<1x1x204xf32>
    %104 = vector.broadcast %103 : vector<1x1x204xf32> to vector<2x12x204xf32>
    %105 = arith.mulf %101, %104 : vector<2x12x204xf32>
    %106 = arith.addf %100, %105 : vector<2x12x204xf32>
    %107 = vector.extract_strided_slice %70 {offsets = [0, 0, 32], sizes = [2, 12, 204], strides = [1, 1, 1]} : vector<2x12x254xf32> to vector<2x12x204xf32>
    %c18 = arith.constant 18 : index
    %c0_25 = arith.constant 0 : index
    %108 = vector.load %arg3[%c18, %c0_25] : memref<36x204xf32, #tpu.memory_space<vmem>>, vector<1x204xf32>
    %109 = vector.shape_cast %108 : vector<1x204xf32> to vector<1x1x204xf32>
    %110 = vector.broadcast %109 : vector<1x1x204xf32> to vector<2x12x204xf32>
    %111 = arith.mulf %107, %110 : vector<2x12x204xf32>
    %112 = arith.addf %106, %111 : vector<2x12x204xf32>
    %113 = vector.extract_strided_slice %70 {offsets = [0, 0, 33], sizes = [2, 12, 204], strides = [1, 1, 1]} : vector<2x12x254xf32> to vector<2x12x204xf32>
    %c19 = arith.constant 19 : index
    %c0_26 = arith.constant 0 : index
    %114 = vector.load %arg3[%c19, %c0_26] : memref<36x204xf32, #tpu.memory_space<vmem>>, vector<1x204xf32>
    %115 = vector.shape_cast %114 : vector<1x204xf32> to vector<1x1x204xf32>
    %116 = vector.broadcast %115 : vector<1x1x204xf32> to vector<2x12x204xf32>
    %117 = arith.mulf %113, %116 : vector<2x12x204xf32>
    %118 = arith.addf %112, %117 : vector<2x12x204xf32>
    %119 = vector.extract_strided_slice %70 {offsets = [0, 0, 34], sizes = [2, 12, 204], strides = [1, 1, 1]} : vector<2x12x254xf32> to vector<2x12x204xf32>
    %c20 = arith.constant 20 : index
    %c0_27 = arith.constant 0 : index
    %120 = vector.load %arg3[%c20, %c0_27] : memref<36x204xf32, #tpu.memory_space<vmem>>, vector<1x204xf32>
    %121 = vector.shape_cast %120 : vector<1x204xf32> to vector<1x1x204xf32>
    %122 = vector.broadcast %121 : vector<1x1x204xf32> to vector<2x12x204xf32>
    %123 = arith.mulf %119, %122 : vector<2x12x204xf32>
    %124 = arith.addf %118, %123 : vector<2x12x204xf32>
    %125 = vector.extract_strided_slice %70 {offsets = [0, 0, 48], sizes = [2, 12, 204], strides = [1, 1, 1]} : vector<2x12x254xf32> to vector<2x12x204xf32>
    %c27 = arith.constant 27 : index
    %c0_28 = arith.constant 0 : index
    %126 = vector.load %arg3[%c27, %c0_28] : memref<36x204xf32, #tpu.memory_space<vmem>>, vector<1x204xf32>
    %127 = vector.shape_cast %126 : vector<1x204xf32> to vector<1x1x204xf32>
    %128 = vector.broadcast %127 : vector<1x1x204xf32> to vector<2x12x204xf32>
    %129 = arith.mulf %125, %128 : vector<2x12x204xf32>
    %130 = arith.addf %124, %129 : vector<2x12x204xf32>
    %131 = vector.extract_strided_slice %70 {offsets = [0, 0, 49], sizes = [2, 12, 204], strides = [1, 1, 1]} : vector<2x12x254xf32> to vector<2x12x204xf32>
    %c28 = arith.constant 28 : index
    %c0_29 = arith.constant 0 : index
    %132 = vector.load %arg3[%c28, %c0_29] : memref<36x204xf32, #tpu.memory_space<vmem>>, vector<1x204xf32>
    %133 = vector.shape_cast %132 : vector<1x204xf32> to vector<1x1x204xf32>
    %134 = vector.broadcast %133 : vector<1x1x204xf32> to vector<2x12x204xf32>
    %135 = arith.mulf %131, %134 : vector<2x12x204xf32>
    %136 = arith.addf %130, %135 : vector<2x12x204xf32>
    %137 = vector.extract_strided_slice %70 {offsets = [0, 0, 50], sizes = [2, 12, 204], strides = [1, 1, 1]} : vector<2x12x254xf32> to vector<2x12x204xf32>
    %c29 = arith.constant 29 : index
    %c0_30 = arith.constant 0 : index
    %138 = vector.load %arg3[%c29, %c0_30] : memref<36x204xf32, #tpu.memory_space<vmem>>, vector<1x204xf32>
    %139 = vector.shape_cast %138 : vector<1x204xf32> to vector<1x1x204xf32>
    %140 = vector.broadcast %139 : vector<1x1x204xf32> to vector<2x12x204xf32>
    %141 = arith.mulf %137, %140 : vector<2x12x204xf32>
    %142 = arith.addf %136, %141 : vector<2x12x204xf32>
    %143 = vector.extract_strided_slice %68 {offsets = [0, 1, 0], sizes = [2, 12, 254], strides = [1, 1, 1]} : vector<2x14x254xf32> to vector<2x12x254xf32>
    %144 = vector.extract_strided_slice %143 {offsets = [0, 0, 0], sizes = [2, 12, 204], strides = [1, 1, 1]} : vector<2x12x254xf32> to vector<2x12x204xf32>
    %c3_31 = arith.constant 3 : index
    %c0_32 = arith.constant 0 : index
    %145 = vector.load %arg3[%c3_31, %c0_32] : memref<36x204xf32, #tpu.memory_space<vmem>>, vector<1x204xf32>
    %146 = vector.shape_cast %145 : vector<1x204xf32> to vector<1x1x204xf32>
    %147 = vector.broadcast %146 : vector<1x1x204xf32> to vector<2x12x204xf32>
    %148 = arith.mulf %144, %147 : vector<2x12x204xf32>
    %149 = arith.addf %142, %148 : vector<2x12x204xf32>
    %150 = vector.extract_strided_slice %143 {offsets = [0, 0, 1], sizes = [2, 12, 204], strides = [1, 1, 1]} : vector<2x12x254xf32> to vector<2x12x204xf32>
    %c4_33 = arith.constant 4 : index
    %c0_34 = arith.constant 0 : index
    %151 = vector.load %arg3[%c4_33, %c0_34] : memref<36x204xf32, #tpu.memory_space<vmem>>, vector<1x204xf32>
    %152 = vector.shape_cast %151 : vector<1x204xf32> to vector<1x1x204xf32>
    %153 = vector.broadcast %152 : vector<1x1x204xf32> to vector<2x12x204xf32>
    %154 = arith.mulf %150, %153 : vector<2x12x204xf32>
    %155 = arith.addf %149, %154 : vector<2x12x204xf32>
    %156 = vector.extract_strided_slice %143 {offsets = [0, 0, 2], sizes = [2, 12, 204], strides = [1, 1, 1]} : vector<2x12x254xf32> to vector<2x12x204xf32>
    %c5_35 = arith.constant 5 : index
    %c0_36 = arith.constant 0 : index
    %157 = vector.load %arg3[%c5_35, %c0_36] : memref<36x204xf32, #tpu.memory_space<vmem>>, vector<1x204xf32>
    %158 = vector.shape_cast %157 : vector<1x204xf32> to vector<1x1x204xf32>
    %159 = vector.broadcast %158 : vector<1x1x204xf32> to vector<2x12x204xf32>
    %160 = arith.mulf %156, %159 : vector<2x12x204xf32>
    %161 = arith.addf %155, %160 : vector<2x12x204xf32>
    %162 = vector.extract_strided_slice %143 {offsets = [0, 0, 16], sizes = [2, 12, 204], strides = [1, 1, 1]} : vector<2x12x254xf32> to vector<2x12x204xf32>
    %c12 = arith.constant 12 : index
    %c0_37 = arith.constant 0 : index
    %163 = vector.load %arg3[%c12, %c0_37] : memref<36x204xf32, #tpu.memory_space<vmem>>, vector<1x204xf32>
    %164 = vector.shape_cast %163 : vector<1x204xf32> to vector<1x1x204xf32>
    %165 = vector.broadcast %164 : vector<1x1x204xf32> to vector<2x12x204xf32>
    %166 = arith.mulf %162, %165 : vector<2x12x204xf32>
    %167 = arith.addf %161, %166 : vector<2x12x204xf32>
    %168 = vector.extract_strided_slice %143 {offsets = [0, 0, 17], sizes = [2, 12, 204], strides = [1, 1, 1]} : vector<2x12x254xf32> to vector<2x12x204xf32>
    %c13 = arith.constant 13 : index
    %c0_38 = arith.constant 0 : index
    %169 = vector.load %arg3[%c13, %c0_38] : memref<36x204xf32, #tpu.memory_space<vmem>>, vector<1x204xf32>
    %170 = vector.shape_cast %169 : vector<1x204xf32> to vector<1x1x204xf32>
    %171 = vector.broadcast %170 : vector<1x1x204xf32> to vector<2x12x204xf32>
    %172 = arith.mulf %168, %171 : vector<2x12x204xf32>
    %173 = arith.addf %167, %172 : vector<2x12x204xf32>
    %174 = vector.extract_strided_slice %143 {offsets = [0, 0, 18], sizes = [2, 12, 204], strides = [1, 1, 1]} : vector<2x12x254xf32> to vector<2x12x204xf32>
    %c14 = arith.constant 14 : index
    %c0_39 = arith.constant 0 : index
    %175 = vector.load %arg3[%c14, %c0_39] : memref<36x204xf32, #tpu.memory_space<vmem>>, vector<1x204xf32>
    %176 = vector.shape_cast %175 : vector<1x204xf32> to vector<1x1x204xf32>
    %177 = vector.broadcast %176 : vector<1x1x204xf32> to vector<2x12x204xf32>
    %178 = arith.mulf %174, %177 : vector<2x12x204xf32>
    %179 = arith.addf %173, %178 : vector<2x12x204xf32>
    %180 = vector.extract_strided_slice %143 {offsets = [0, 0, 32], sizes = [2, 12, 204], strides = [1, 1, 1]} : vector<2x12x254xf32> to vector<2x12x204xf32>
    %c21 = arith.constant 21 : index
    %c0_40 = arith.constant 0 : index
    %181 = vector.load %arg3[%c21, %c0_40] : memref<36x204xf32, #tpu.memory_space<vmem>>, vector<1x204xf32>
    %182 = vector.shape_cast %181 : vector<1x204xf32> to vector<1x1x204xf32>
    %183 = vector.broadcast %182 : vector<1x1x204xf32> to vector<2x12x204xf32>
    %184 = arith.mulf %180, %183 : vector<2x12x204xf32>
    %185 = arith.addf %179, %184 : vector<2x12x204xf32>
    %186 = vector.extract_strided_slice %143 {offsets = [0, 0, 33], sizes = [2, 12, 204], strides = [1, 1, 1]} : vector<2x12x254xf32> to vector<2x12x204xf32>
    %c22 = arith.constant 22 : index
    %c0_41 = arith.constant 0 : index
    %187 = vector.load %arg3[%c22, %c0_41] : memref<36x204xf32, #tpu.memory_space<vmem>>, vector<1x204xf32>
    %188 = vector.shape_cast %187 : vector<1x204xf32> to vector<1x1x204xf32>
    %189 = vector.broadcast %188 : vector<1x1x204xf32> to vector<2x12x204xf32>
    %190 = arith.mulf %186, %189 : vector<2x12x204xf32>
    %191 = arith.addf %185, %190 : vector<2x12x204xf32>
    %192 = vector.extract_strided_slice %143 {offsets = [0, 0, 34], sizes = [2, 12, 204], strides = [1, 1, 1]} : vector<2x12x254xf32> to vector<2x12x204xf32>
    %c23 = arith.constant 23 : index
    %c0_42 = arith.constant 0 : index
    %193 = vector.load %arg3[%c23, %c0_42] : memref<36x204xf32, #tpu.memory_space<vmem>>, vector<1x204xf32>
    %194 = vector.shape_cast %193 : vector<1x204xf32> to vector<1x1x204xf32>
    %195 = vector.broadcast %194 : vector<1x1x204xf32> to vector<2x12x204xf32>
    %196 = arith.mulf %192, %195 : vector<2x12x204xf32>
    %197 = arith.addf %191, %196 : vector<2x12x204xf32>
    %198 = vector.extract_strided_slice %143 {offsets = [0, 0, 48], sizes = [2, 12, 204], strides = [1, 1, 1]} : vector<2x12x254xf32> to vector<2x12x204xf32>
    %c30 = arith.constant 30 : index
    %c0_43 = arith.constant 0 : index
    %199 = vector.load %arg3[%c30, %c0_43] : memref<36x204xf32, #tpu.memory_space<vmem>>, vector<1x204xf32>
    %200 = vector.shape_cast %199 : vector<1x204xf32> to vector<1x1x204xf32>
    %201 = vector.broadcast %200 : vector<1x1x204xf32> to vector<2x12x204xf32>
    %202 = arith.mulf %198, %201 : vector<2x12x204xf32>
    %203 = arith.addf %197, %202 : vector<2x12x204xf32>
    %204 = vector.extract_strided_slice %143 {offsets = [0, 0, 49], sizes = [2, 12, 204], strides = [1, 1, 1]} : vector<2x12x254xf32> to vector<2x12x204xf32>
    %c31 = arith.constant 31 : index
    %c0_44 = arith.constant 0 : index
    %205 = vector.load %arg3[%c31, %c0_44] : memref<36x204xf32, #tpu.memory_space<vmem>>, vector<1x204xf32>
    %206 = vector.shape_cast %205 : vector<1x204xf32> to vector<1x1x204xf32>
    %207 = vector.broadcast %206 : vector<1x1x204xf32> to vector<2x12x204xf32>
    %208 = arith.mulf %204, %207 : vector<2x12x204xf32>
    %209 = arith.addf %203, %208 : vector<2x12x204xf32>
    %210 = vector.extract_strided_slice %143 {offsets = [0, 0, 50], sizes = [2, 12, 204], strides = [1, 1, 1]} : vector<2x12x254xf32> to vector<2x12x204xf32>
    %c32 = arith.constant 32 : index
    %c0_45 = arith.constant 0 : index
    %211 = vector.load %arg3[%c32, %c0_45] : memref<36x204xf32, #tpu.memory_space<vmem>>, vector<1x204xf32>
    %212 = vector.shape_cast %211 : vector<1x204xf32> to vector<1x1x204xf32>
    %213 = vector.broadcast %212 : vector<1x1x204xf32> to vector<2x12x204xf32>
    %214 = arith.mulf %210, %213 : vector<2x12x204xf32>
    %215 = arith.addf %209, %214 : vector<2x12x204xf32>
    %216 = vector.extract_strided_slice %68 {offsets = [0, 2, 0], sizes = [2, 12, 254], strides = [1, 1, 1]} : vector<2x14x254xf32> to vector<2x12x254xf32>
    %217 = vector.extract_strided_slice %216 {offsets = [0, 0, 0], sizes = [2, 12, 204], strides = [1, 1, 1]} : vector<2x12x254xf32> to vector<2x12x204xf32>
    %c6_46 = arith.constant 6 : index
    %c0_47 = arith.constant 0 : index
    %218 = vector.load %arg3[%c6_46, %c0_47] : memref<36x204xf32, #tpu.memory_space<vmem>>, vector<1x204xf32>
    %219 = vector.shape_cast %218 : vector<1x204xf32> to vector<1x1x204xf32>
    %220 = vector.broadcast %219 : vector<1x1x204xf32> to vector<2x12x204xf32>
    %221 = arith.mulf %217, %220 : vector<2x12x204xf32>
    %222 = arith.addf %215, %221 : vector<2x12x204xf32>
    %223 = vector.extract_strided_slice %216 {offsets = [0, 0, 1], sizes = [2, 12, 204], strides = [1, 1, 1]} : vector<2x12x254xf32> to vector<2x12x204xf32>
    %c7_48 = arith.constant 7 : index
    %c0_49 = arith.constant 0 : index
    %224 = vector.load %arg3[%c7_48, %c0_49] : memref<36x204xf32, #tpu.memory_space<vmem>>, vector<1x204xf32>
    %225 = vector.shape_cast %224 : vector<1x204xf32> to vector<1x1x204xf32>
    %226 = vector.broadcast %225 : vector<1x1x204xf32> to vector<2x12x204xf32>
    %227 = arith.mulf %223, %226 : vector<2x12x204xf32>
    %228 = arith.addf %222, %227 : vector<2x12x204xf32>
    %229 = vector.extract_strided_slice %216 {offsets = [0, 0, 2], sizes = [2, 12, 204], strides = [1, 1, 1]} : vector<2x12x254xf32> to vector<2x12x204xf32>
    %c8_50 = arith.constant 8 : index
    %c0_51 = arith.constant 0 : index
    %230 = vector.load %arg3[%c8_50, %c0_51] : memref<36x204xf32, #tpu.memory_space<vmem>>, vector<1x204xf32>
    %231 = vector.shape_cast %230 : vector<1x204xf32> to vector<1x1x204xf32>
    %232 = vector.broadcast %231 : vector<1x1x204xf32> to vector<2x12x204xf32>
    %233 = arith.mulf %229, %232 : vector<2x12x204xf32>
    %234 = arith.addf %228, %233 : vector<2x12x204xf32>
    %235 = vector.extract_strided_slice %216 {offsets = [0, 0, 16], sizes = [2, 12, 204], strides = [1, 1, 1]} : vector<2x12x254xf32> to vector<2x12x204xf32>
    %c15 = arith.constant 15 : index
    %c0_52 = arith.constant 0 : index
    %236 = vector.load %arg3[%c15, %c0_52] : memref<36x204xf32, #tpu.memory_space<vmem>>, vector<1x204xf32>
    %237 = vector.shape_cast %236 : vector<1x204xf32> to vector<1x1x204xf32>
    %238 = vector.broadcast %237 : vector<1x1x204xf32> to vector<2x12x204xf32>
    %239 = arith.mulf %235, %238 : vector<2x12x204xf32>
    %240 = arith.addf %234, %239 : vector<2x12x204xf32>
    %241 = vector.extract_strided_slice %216 {offsets = [0, 0, 17], sizes = [2, 12, 204], strides = [1, 1, 1]} : vector<2x12x254xf32> to vector<2x12x204xf32>
    %c16 = arith.constant 16 : index
    %c0_53 = arith.constant 0 : index
    %242 = vector.load %arg3[%c16, %c0_53] : memref<36x204xf32, #tpu.memory_space<vmem>>, vector<1x204xf32>
    %243 = vector.shape_cast %242 : vector<1x204xf32> to vector<1x1x204xf32>
    %244 = vector.broadcast %243 : vector<1x1x204xf32> to vector<2x12x204xf32>
    %245 = arith.mulf %241, %244 : vector<2x12x204xf32>
    %246 = arith.addf %240, %245 : vector<2x12x204xf32>
    %247 = vector.extract_strided_slice %216 {offsets = [0, 0, 18], sizes = [2, 12, 204], strides = [1, 1, 1]} : vector<2x12x254xf32> to vector<2x12x204xf32>
    %c17 = arith.constant 17 : index
    %c0_54 = arith.constant 0 : index
    %248 = vector.load %arg3[%c17, %c0_54] : memref<36x204xf32, #tpu.memory_space<vmem>>, vector<1x204xf32>
    %249 = vector.shape_cast %248 : vector<1x204xf32> to vector<1x1x204xf32>
    %250 = vector.broadcast %249 : vector<1x1x204xf32> to vector<2x12x204xf32>
    %251 = arith.mulf %247, %250 : vector<2x12x204xf32>
    %252 = arith.addf %246, %251 : vector<2x12x204xf32>
    %253 = vector.extract_strided_slice %216 {offsets = [0, 0, 32], sizes = [2, 12, 204], strides = [1, 1, 1]} : vector<2x12x254xf32> to vector<2x12x204xf32>
    %c24 = arith.constant 24 : index
    %c0_55 = arith.constant 0 : index
    %254 = vector.load %arg3[%c24, %c0_55] : memref<36x204xf32, #tpu.memory_space<vmem>>, vector<1x204xf32>
    %255 = vector.shape_cast %254 : vector<1x204xf32> to vector<1x1x204xf32>
    %256 = vector.broadcast %255 : vector<1x1x204xf32> to vector<2x12x204xf32>
    %257 = arith.mulf %253, %256 : vector<2x12x204xf32>
    %258 = arith.addf %252, %257 : vector<2x12x204xf32>
    %259 = vector.extract_strided_slice %216 {offsets = [0, 0, 33], sizes = [2, 12, 204], strides = [1, 1, 1]} : vector<2x12x254xf32> to vector<2x12x204xf32>
    %c25 = arith.constant 25 : index
    %c0_56 = arith.constant 0 : index
    %260 = vector.load %arg3[%c25, %c0_56] : memref<36x204xf32, #tpu.memory_space<vmem>>, vector<1x204xf32>
    %261 = vector.shape_cast %260 : vector<1x204xf32> to vector<1x1x204xf32>
    %262 = vector.broadcast %261 : vector<1x1x204xf32> to vector<2x12x204xf32>
    %263 = arith.mulf %259, %262 : vector<2x12x204xf32>
    %264 = arith.addf %258, %263 : vector<2x12x204xf32>
    %265 = vector.extract_strided_slice %216 {offsets = [0, 0, 34], sizes = [2, 12, 204], strides = [1, 1, 1]} : vector<2x12x254xf32> to vector<2x12x204xf32>
    %c26 = arith.constant 26 : index
    %c0_57 = arith.constant 0 : index
    %266 = vector.load %arg3[%c26, %c0_57] : memref<36x204xf32, #tpu.memory_space<vmem>>, vector<1x204xf32>
    %267 = vector.shape_cast %266 : vector<1x204xf32> to vector<1x1x204xf32>
    %268 = vector.broadcast %267 : vector<1x1x204xf32> to vector<2x12x204xf32>
    %269 = arith.mulf %265, %268 : vector<2x12x204xf32>
    %270 = arith.addf %264, %269 : vector<2x12x204xf32>
    %271 = vector.extract_strided_slice %216 {offsets = [0, 0, 48], sizes = [2, 12, 204], strides = [1, 1, 1]} : vector<2x12x254xf32> to vector<2x12x204xf32>
    %c33 = arith.constant 33 : index
    %c0_58 = arith.constant 0 : index
    %272 = vector.load %arg3[%c33, %c0_58] : memref<36x204xf32, #tpu.memory_space<vmem>>, vector<1x204xf32>
    %273 = vector.shape_cast %272 : vector<1x204xf32> to vector<1x1x204xf32>
    %274 = vector.broadcast %273 : vector<1x1x204xf32> to vector<2x12x204xf32>
    %275 = arith.mulf %271, %274 : vector<2x12x204xf32>
    %276 = arith.addf %270, %275 : vector<2x12x204xf32>
    %277 = vector.extract_strided_slice %216 {offsets = [0, 0, 49], sizes = [2, 12, 204], strides = [1, 1, 1]} : vector<2x12x254xf32> to vector<2x12x204xf32>
    %c34 = arith.constant 34 : index
    %c0_59 = arith.constant 0 : index
    %278 = vector.load %arg3[%c34, %c0_59] : memref<36x204xf32, #tpu.memory_space<vmem>>, vector<1x204xf32>
    %279 = vector.shape_cast %278 : vector<1x204xf32> to vector<1x1x204xf32>
    %280 = vector.broadcast %279 : vector<1x1x204xf32> to vector<2x12x204xf32>
    %281 = arith.mulf %277, %280 : vector<2x12x204xf32>
    %282 = arith.addf %276, %281 : vector<2x12x204xf32>
    %283 = vector.extract_strided_slice %216 {offsets = [0, 0, 50], sizes = [2, 12, 204], strides = [1, 1, 1]} : vector<2x12x254xf32> to vector<2x12x204xf32>
    %c35 = arith.constant 35 : index
    %c0_60 = arith.constant 0 : index
    %284 = vector.load %arg3[%c35, %c0_60] : memref<36x204xf32, #tpu.memory_space<vmem>>, vector<1x204xf32>
    %285 = vector.shape_cast %284 : vector<1x204xf32> to vector<1x1x204xf32>
    %286 = vector.broadcast %285 : vector<1x1x204xf32> to vector<2x12x204xf32>
    %287 = arith.mulf %283, %286 : vector<2x12x204xf32>
    %288 = arith.addf %282, %287 : vector<2x12x204xf32>
    %289 = vector.extract_strided_slice %288 {offsets = [0, 0, 0], sizes = [2, 12, 12], strides = [1, 1, 1]} : vector<2x12x204xf32> to vector<2x12x12xf32>
    %c0_61 = arith.constant 0 : index
    %c0_62 = arith.constant 0 : index
    %c0_63 = arith.constant 0 : index
    %290 = vector.load %arg12[%c0_61, %c0_62, %c0_63] : memref<2x12x48xf32, #tpu.memory_space<vmem>>, vector<2x12x12xf32>
    tpu.vector_store %arg12[%c0_61, %c0_62, %c0_63], %289 {strides = array<i32>} : memref<2x12x48xf32, #tpu.memory_space<vmem>>, vector<2x12x12xf32>,
    %291 = vector.extract_strided_slice %288 {offsets = [0, 0, 64], sizes = [2, 12, 12], strides = [1, 1, 1]} : vector<2x12x204xf32> to vector<2x12x12xf32>
    %c0_64 = arith.constant 0 : index
    %c0_65 = arith.constant 0 : index
    %c12_66 = arith.constant 12 : index
    %292 = vector.load %arg12[%c0_64, %c0_65, %c12_66] : memref<2x12x48xf32, #tpu.memory_space<vmem>>, vector<2x12x12xf32>
    tpu.vector_store %arg12[%c0_64, %c0_65, %c12_66], %291 {strides = array<i32>} : memref<2x12x48xf32, #tpu.memory_space<vmem>>, vector<2x12x12xf32>,
    %293 = vector.extract_strided_slice %288 {offsets = [0, 0, 128], sizes = [2, 12, 12], strides = [1, 1, 1]} : vector<2x12x204xf32> to vector<2x12x12xf32>
    %c0_67 = arith.constant 0 : index
    %c0_68 = arith.constant 0 : index
    %c24_69 = arith.constant 24 : index
    %294 = vector.load %arg12[%c0_67, %c0_68, %c24_69] : memref<2x12x48xf32, #tpu.memory_space<vmem>>, vector<2x12x12xf32>
    tpu.vector_store %arg12[%c0_67, %c0_68, %c24_69], %293 {strides = array<i32>} : memref<2x12x48xf32, #tpu.memory_space<vmem>>, vector<2x12x12xf32>,
    %295 = vector.extract_strided_slice %288 {offsets = [0, 0, 192], sizes = [2, 12, 12], strides = [1, 1, 1]} : vector<2x12x204xf32> to vector<2x12x12xf32>
    %c0_70 = arith.constant 0 : index
    %c0_71 = arith.constant 0 : index
    %c36 = arith.constant 36 : index
    %296 = vector.load %arg12[%c0_70, %c0_71, %c36] : memref<2x12x48xf32, #tpu.memory_space<vmem>>, vector<2x12x12xf32>
    tpu.vector_store %arg12[%c0_70, %c0_71, %c36], %295 {strides = array<i32>} : memref<2x12x48xf32, #tpu.memory_space<vmem>>, vector<2x12x12xf32>,
    %c0_72 = arith.constant 0 : index
    %c0_73 = arith.constant 0 : index
    %c0_74 = arith.constant 0 : index
    %297 = vector.load %arg12[%c0_72, %c0_73, %c0_74] : memref<2x12x48xf32, #tpu.memory_space<vmem>>, vector<2x12x48xf32>
    %c0_75 = arith.constant 0 : index
    %c0_76 = arith.constant 0 : index
    %298 = vector.load %arg4[%c0_75, %c0_76] : memref<1x48xf32, #tpu.memory_space<vmem>>, vector<1x48xf32>
    %299 = vector.shape_cast %298 : vector<1x48xf32> to vector<1x1x48xf32>
    %300 = vector.broadcast %299 : vector<1x1x48xf32> to vector<2x12x48xf32>
    %301 = arith.addf %297, %300 : vector<2x12x48xf32>
    %cst_77 = arith.constant 0.000000e+00 : f32
    %302 = vector.broadcast %cst_77 : f32 to vector<2x12x48xf32>
    %303 = arith.maximumf %301, %302 : vector<2x12x48xf32>
    %304 = vector.extract_strided_slice %303 {offsets = [0, 0, 0], sizes = [2, 1, 48], strides = [1, 1, 1]} : vector<2x12x48xf32> to vector<2x1x48xf32>
    %305 = vector.shape_cast %304 : vector<2x1x48xf32> to vector<2x48xf32>
    %306 = arith.truncf %305 : vector<2x48xf32> to vector<2x48xbf16>
    %c0_78 = arith.constant 0 : index
    %c0_79 = arith.constant 0 : index
    %307 = vector.load %arg13[%c0_78, %c0_79] : memref<2x576xbf16, #tpu.memory_space<vmem>>, vector<2x48xbf16>
    tpu.vector_store %arg13[%c0_78, %c0_79], %306 {strides = array<i32>} : memref<2x576xbf16, #tpu.memory_space<vmem>>, vector<2x48xbf16>,
    %308 = vector.extract_strided_slice %303 {offsets = [0, 1, 0], sizes = [2, 1, 48], strides = [1, 1, 1]} : vector<2x12x48xf32> to vector<2x1x48xf32>
    %309 = vector.shape_cast %308 : vector<2x1x48xf32> to vector<2x48xf32>
    %310 = arith.truncf %309 : vector<2x48xf32> to vector<2x48xbf16>
    %c0_80 = arith.constant 0 : index
    %c48 = arith.constant 48 : index
    %311 = vector.load %arg13[%c0_80, %c48] : memref<2x576xbf16, #tpu.memory_space<vmem>>, vector<2x48xbf16>
    tpu.vector_store %arg13[%c0_80, %c48], %310 {strides = array<i32>} : memref<2x576xbf16, #tpu.memory_space<vmem>>, vector<2x48xbf16>,
    %312 = vector.extract_strided_slice %303 {offsets = [0, 2, 0], sizes = [2, 1, 48], strides = [1, 1, 1]} : vector<2x12x48xf32> to vector<2x1x48xf32>
    %313 = vector.shape_cast %312 : vector<2x1x48xf32> to vector<2x48xf32>
    %314 = arith.truncf %313 : vector<2x48xf32> to vector<2x48xbf16>
    %c0_81 = arith.constant 0 : index
    %c96 = arith.constant 96 : index
    %315 = vector.load %arg13[%c0_81, %c96] : memref<2x576xbf16, #tpu.memory_space<vmem>>, vector<2x48xbf16>
    tpu.vector_store %arg13[%c0_81, %c96], %314 {strides = array<i32>} : memref<2x576xbf16, #tpu.memory_space<vmem>>, vector<2x48xbf16>,
    %316 = vector.extract_strided_slice %303 {offsets = [0, 3, 0], sizes = [2, 1, 48], strides = [1, 1, 1]} : vector<2x12x48xf32> to vector<2x1x48xf32>
    %317 = vector.shape_cast %316 : vector<2x1x48xf32> to vector<2x48xf32>
    %318 = arith.truncf %317 : vector<2x48xf32> to vector<2x48xbf16>
    %c0_82 = arith.constant 0 : index
    %c144 = arith.constant 144 : index
    %319 = vector.load %arg13[%c0_82, %c144] : memref<2x576xbf16, #tpu.memory_space<vmem>>, vector<2x48xbf16>
    tpu.vector_store %arg13[%c0_82, %c144], %318 {strides = array<i32>} : memref<2x576xbf16, #tpu.memory_space<vmem>>, vector<2x48xbf16>,
    %320 = vector.extract_strided_slice %303 {offsets = [0, 4, 0], sizes = [2, 1, 48], strides = [1, 1, 1]} : vector<2x12x48xf32> to vector<2x1x48xf32>
    %321 = vector.shape_cast %320 : vector<2x1x48xf32> to vector<2x48xf32>
    %322 = arith.truncf %321 : vector<2x48xf32> to vector<2x48xbf16>
    %c0_83 = arith.constant 0 : index
    %c192 = arith.constant 192 : index
    %323 = vector.load %arg13[%c0_83, %c192] : memref<2x576xbf16, #tpu.memory_space<vmem>>, vector<2x48xbf16>
    tpu.vector_store %arg13[%c0_83, %c192], %322 {strides = array<i32>} : memref<2x576xbf16, #tpu.memory_space<vmem>>, vector<2x48xbf16>,
    %324 = vector.extract_strided_slice %303 {offsets = [0, 5, 0], sizes = [2, 1, 48], strides = [1, 1, 1]} : vector<2x12x48xf32> to vector<2x1x48xf32>
    %325 = vector.shape_cast %324 : vector<2x1x48xf32> to vector<2x48xf32>
    %326 = arith.truncf %325 : vector<2x48xf32> to vector<2x48xbf16>
    %c0_84 = arith.constant 0 : index
    %c240 = arith.constant 240 : index
    %327 = vector.load %arg13[%c0_84, %c240] : memref<2x576xbf16, #tpu.memory_space<vmem>>, vector<2x48xbf16>
    tpu.vector_store %arg13[%c0_84, %c240], %326 {strides = array<i32>} : memref<2x576xbf16, #tpu.memory_space<vmem>>, vector<2x48xbf16>,
    %328 = vector.extract_strided_slice %303 {offsets = [0, 6, 0], sizes = [2, 1, 48], strides = [1, 1, 1]} : vector<2x12x48xf32> to vector<2x1x48xf32>
    %329 = vector.shape_cast %328 : vector<2x1x48xf32> to vector<2x48xf32>
    %330 = arith.truncf %329 : vector<2x48xf32> to vector<2x48xbf16>
    %c0_85 = arith.constant 0 : index
    %c288 = arith.constant 288 : index
    %331 = vector.load %arg13[%c0_85, %c288] : memref<2x576xbf16, #tpu.memory_space<vmem>>, vector<2x48xbf16>
    tpu.vector_store %arg13[%c0_85, %c288], %330 {strides = array<i32>} : memref<2x576xbf16, #tpu.memory_space<vmem>>, vector<2x48xbf16>,
    %332 = vector.extract_strided_slice %303 {offsets = [0, 7, 0], sizes = [2, 1, 48], strides = [1, 1, 1]} : vector<2x12x48xf32> to vector<2x1x48xf32>
    %333 = vector.shape_cast %332 : vector<2x1x48xf32> to vector<2x48xf32>
    %334 = arith.truncf %333 : vector<2x48xf32> to vector<2x48xbf16>
    %c0_86 = arith.constant 0 : index
    %c336 = arith.constant 336 : index
    %335 = vector.load %arg13[%c0_86, %c336] : memref<2x576xbf16, #tpu.memory_space<vmem>>, vector<2x48xbf16>
    tpu.vector_store %arg13[%c0_86, %c336], %334 {strides = array<i32>} : memref<2x576xbf16, #tpu.memory_space<vmem>>, vector<2x48xbf16>,
    %336 = vector.extract_strided_slice %303 {offsets = [0, 8, 0], sizes = [2, 1, 48], strides = [1, 1, 1]} : vector<2x12x48xf32> to vector<2x1x48xf32>
    %337 = vector.shape_cast %336 : vector<2x1x48xf32> to vector<2x48xf32>
    %338 = arith.truncf %337 : vector<2x48xf32> to vector<2x48xbf16>
    %c0_87 = arith.constant 0 : index
    %c384 = arith.constant 384 : index
    %339 = vector.load %arg13[%c0_87, %c384] : memref<2x576xbf16, #tpu.memory_space<vmem>>, vector<2x48xbf16>
    tpu.vector_store %arg13[%c0_87, %c384], %338 {strides = array<i32>} : memref<2x576xbf16, #tpu.memory_space<vmem>>, vector<2x48xbf16>,
    %340 = vector.extract_strided_slice %303 {offsets = [0, 9, 0], sizes = [2, 1, 48], strides = [1, 1, 1]} : vector<2x12x48xf32> to vector<2x1x48xf32>
    %341 = vector.shape_cast %340 : vector<2x1x48xf32> to vector<2x48xf32>
    %342 = arith.truncf %341 : vector<2x48xf32> to vector<2x48xbf16>
    %c0_88 = arith.constant 0 : index
    %c432 = arith.constant 432 : index
    %343 = vector.load %arg13[%c0_88, %c432] : memref<2x576xbf16, #tpu.memory_space<vmem>>, vector<2x48xbf16>
    tpu.vector_store %arg13[%c0_88, %c432], %342 {strides = array<i32>} : memref<2x576xbf16, #tpu.memory_space<vmem>>, vector<2x48xbf16>,
    %344 = vector.extract_strided_slice %303 {offsets = [0, 10, 0], sizes = [2, 1, 48], strides = [1, 1, 1]} : vector<2x12x48xf32> to vector<2x1x48xf32>
    %345 = vector.shape_cast %344 : vector<2x1x48xf32> to vector<2x48xf32>
    %346 = arith.truncf %345 : vector<2x48xf32> to vector<2x48xbf16>
    %c0_89 = arith.constant 0 : index
    %c480 = arith.constant 480 : index
    %347 = vector.load %arg13[%c0_89, %c480] : memref<2x576xbf16, #tpu.memory_space<vmem>>, vector<2x48xbf16>
    tpu.vector_store %arg13[%c0_89, %c480], %346 {strides = array<i32>} : memref<2x576xbf16, #tpu.memory_space<vmem>>, vector<2x48xbf16>,
    %348 = vector.extract_strided_slice %303 {offsets = [0, 11, 0], sizes = [2, 1, 48], strides = [1, 1, 1]} : vector<2x12x48xf32> to vector<2x1x48xf32>
    %349 = vector.shape_cast %348 : vector<2x1x48xf32> to vector<2x48xf32>
    %350 = arith.truncf %349 : vector<2x48xf32> to vector<2x48xbf16>
    %c0_90 = arith.constant 0 : index
    %c528 = arith.constant 528 : index
    %351 = vector.load %arg13[%c0_90, %c528] : memref<2x576xbf16, #tpu.memory_space<vmem>>, vector<2x48xbf16>
    tpu.vector_store %arg13[%c0_90, %c528], %350 {strides = array<i32>} : memref<2x576xbf16, #tpu.memory_space<vmem>>, vector<2x48xbf16>,
    %c0_i32_91 = arith.constant 0 : i32
    %352 = tpu.memref_slice %arg14[%c0_i32_91] : memref<2x!tpu.dma_semaphore, #tpu.memory_space<semaphore_mem>> -> memref<1x!tpu.dma_semaphore, #tpu.memory_space<semaphore_mem>>
    %353 = tpu.memref_squeeze %352 : memref<1x!tpu.dma_semaphore, #tpu.memory_space<semaphore_mem>> -> memref<!tpu.dma_semaphore, #tpu.memory_space<semaphore_mem>>
    tpu.wait_dma2 semaphore(%353 : memref<!tpu.dma_semaphore, #tpu.memory_space<semaphore_mem>>) src(%arg5 : memref<576x512xbf16, #tpu.memory_space<any>>) dst(%arg10 : memref<576x512xbf16, #tpu.memory_space<vmem>>)
    %c0_92 = arith.constant 0 : index
    %c0_93 = arith.constant 0 : index
    %354 = vector.load %arg13[%c0_92, %c0_93] : memref<2x576xbf16, #tpu.memory_space<vmem>>, vector<2x576xbf16>
    %c0_94 = arith.constant 0 : index
    %c0_95 = arith.constant 0 : index
    %355 = vector.load %arg10[%c0_94, %c0_95] : memref<576x512xbf16, #tpu.memory_space<vmem>>, vector<576x512xbf16>
    %cst_96 = arith.constant dense<0.000000e+00> : vector<2x512xf32>
    %356 = tpu.matmul %354, %355, %cst_96 {dimension_numbers = #tpu.dot_dimension_numbers<[1], [0], [0], [1], [0, 0, 1, 1], [], []>} : vector<2x576xbf16>, vector<576x512xbf16>, vector<2x512xf32> -> vector<2x512xf32>
    %c0_97 = arith.constant 0 : index
    %c0_98 = arith.constant 0 : index
    %357 = vector.load %arg6[%c0_97, %c0_98] : memref<1x512xf32, #tpu.memory_space<vmem>>, vector<1x512xf32>
    %358 = vector.broadcast %357 : vector<1x512xf32> to vector<2x512xf32>
    %359 = arith.addf %356, %358 : vector<2x512xf32>
    %cst_99 = arith.constant 0.000000e+00 : f32
    %360 = vector.broadcast %cst_99 : f32 to vector<2x512xf32>
    %361 = arith.maximumf %359, %360 : vector<2x512xf32>
    %c1_i32_100 = arith.constant 1 : i32
    %362 = tpu.memref_slice %arg14[%c1_i32_100] : memref<2x!tpu.dma_semaphore, #tpu.memory_space<semaphore_mem>> -> memref<1x!tpu.dma_semaphore, #tpu.memory_space<semaphore_mem>>
    %363 = tpu.memref_squeeze %362 : memref<1x!tpu.dma_semaphore, #tpu.memory_space<semaphore_mem>> -> memref<!tpu.dma_semaphore, #tpu.memory_space<semaphore_mem>>
    tpu.wait_dma2 semaphore(%363 : memref<!tpu.dma_semaphore, #tpu.memory_space<semaphore_mem>>) src(%arg7 : memref<512x128xbf16, #tpu.memory_space<any>>) dst(%arg11 : memref<512x128xbf16, #tpu.memory_space<vmem>>)
    %364 = arith.truncf %361 : vector<2x512xf32> to vector<2x512xbf16>
    %c0_101 = arith.constant 0 : index
    %c0_102 = arith.constant 0 : index
    %365 = vector.load %arg11[%c0_101, %c0_102] : memref<512x128xbf16, #tpu.memory_space<vmem>>, vector<512x128xbf16>
    %cst_103 = arith.constant dense<0.000000e+00> : vector<2x128xf32>
    %366 = tpu.matmul %364, %365, %cst_103 {dimension_numbers = #tpu.dot_dimension_numbers<[1], [0], [0], [1], [0, 0, 1, 1], [], []>} : vector<2x512xbf16>, vector<512x128xbf16>, vector<2x128xf32> -> vector<2x128xf32>
    %c0_104 = arith.constant 0 : index
    %c0_105 = arith.constant 0 : index
    %367 = vector.load %arg8[%c0_104, %c0_105] : memref<1x128xf32, #tpu.memory_space<vmem>>, vector<1x128xf32>
    %368 = vector.broadcast %367 : vector<1x128xf32> to vector<2x128xf32>
    %369 = arith.addf %366, %368 : vector<2x128xf32>
    %cst_106 = arith.constant dense<0xFF800000> : vector<2xf32>
    %370 = vector.multi_reduction <maximumf>, %369, %cst_106 [1] : vector<2x128xf32> to vector<2xf32>
    %371 = vector.shape_cast %370 : vector<2xf32> to vector<2x1xf32>
    %372 = vector.broadcast %371 : vector<2x1xf32> to vector<2x128xf32>
    %373 = arith.subf %369, %372 : vector<2x128xf32>
    %374 = math.exp %373 : vector<2x128xf32>
    %cst_107 = arith.constant dense<0.000000e+00> : vector<2xf32>
    %375 = vector.multi_reduction <add>, %374, %cst_107 [1] : vector<2x128xf32> to vector<2xf32>
    %376 = vector.shape_cast %375 : vector<2xf32> to vector<2x1xf32>
    %377 = vector.broadcast %376 : vector<2x1xf32> to vector<2x128xf32>
    %378 = arith.divf %374, %377 : vector<2x128xf32>
    %c0_108 = arith.constant 0 : index
    %c0_109 = arith.constant 0 : index
    %379 = vector.load %arg9[%c0_108, %c0_109] : memref<2x128xf32, #tpu.memory_space<vmem>>, vector<2x128xf32>
    tpu.vector_store %arg9[%c0_108, %c0_109], %378 {strides = array<i32>} : memref<2x128xf32, #tpu.memory_space<vmem>>, vector<2x128xf32>,
    return
  }
}

</mosaic_0001>

<bundles_post_ra>
// kernel: tile.7
= control target key start
LH: loop header
LB: loop body
LE: loop exit
PB: predicated region body
PF: predicated region fallthrough
CT: control target
= control target key end

     0   :  { %vm125_vm0 = vcmask 1043458   ;;  %s165_s6 = smov 3  ;;  %vm130_vm1 = vcmask 1045508   ;;  %vm135_vm2 = vcmask 1047558   ;;  %s168_s9 = smov 12  ;;  %vm4_vm3 = vcmask 1047556   ;;  %s3058_s0 = inlined_call_operand.vmem [shape: f32[2,16,16,16], index: 0, kind: input, shape index: {}]   ;;  %s3059_s1 = inlined_call_operand.vmem [shape: f32[2,16,256], index: 1, kind: output, shape index: {}]  }
   0x1   :  { %v1454_v0 = vld [vmem:[%s3058_s0 + $0xf] ss:$16 sm:%s165_s6]   ;;  %s173_s10 = smov 48  ;;  %s178_s15 = smov 192  ;;  %vm6_vm4 = vcmask 130048   ;;  %vm139_vm5 = vcmask 1048448  }
   0x2   :  { %v1455_v1 = vld [vmem:[%s3058_s0 + $0xf] ss:$16 sm:%s168_s9]   ;;  %s120_s16 = smov 3  ;;  %s123_s21 = smov 12  ;;  %vm322_vm6 = vcmask 917248   ;;  %vm505_vm7 = vcmask 786048  }
   0x3   :  { %v1456_v2 = vld [vmem:[%s3058_s0 + $0xf] ss:$16 sm:%s173_s10]   ;;  %v171_v3 = vsel %vm125_vm0, %v1455_v1, %v1454_v0  ;;  %v1445_v5 = vld [vmem:[%s3058_s0 + $0x7] ss:$16 sm:%s120_s16]   ;;  %s128_s22 = smov 48  ;;  %s133_s27 = smov 192 }
   0x4   :  { %v1457_v4 = vld [vmem:[%s3058_s0 + $0xf] ss:$16 sm:%s178_s15]   ;;  %v176_v6 = vsel %vm130_vm1, %v1456_v2, %v171_v3  ;;  %v1446_v7 = vld [vmem:[%s3058_s0 + $0x7] ss:$16 sm:%s123_s21]   ;;  %s188_s28 = smov 3  ;;  %s191_s4 = smov 12 }
   0x5   :  { %v1447_v8 = vld [vmem:[%s3058_s0 + $0x7] ss:$16 sm:%s128_s22]   ;;  %v181_v9 = vsel %vm135_vm2, %v1457_v4, %v176_v6  ;;  %v126_v10 = vsel %vm125_vm0, %v1446_v7, %v1445_v5  ;;  %v1459_v12 = vld [vmem:[%s3058_s0 + $0x10f] ss:$16 sm:%s188_s28]   ;;  %s196_s5 = smov 48  ;;  %s1725_s6 = smov 112  }
   0x6   :  { %v1448_v11 = vld [vmem:[%s3058_s0 + $0x7] ss:$16 sm:%s133_s27]   ;;  %182 = vrot.lane.b32.xlu1 %v181_v9, %s1725_s6  ;;  %v131_v13 = vsel %vm130_vm1, %v1447_v8, %v126_v10  ;;  %s201_s9 = smov 192  ;;  %s142_s10 = smov 3  ;;  %vm688_vm8 = vcmask 654848   ;;  %vm871_vm9 = vcmask 523648  }
   0x7   :  { %v1460_v14 = vld [vmem:[%s3058_s0 + $0x10f] ss:$16 sm:%s191_s4]   ;;  %v136_v15 = vsel %vm135_vm2, %v1448_v11, %v131_v13  ;;  %s145_s15 = smov 12  ;;  %s150_s16 = smov 48  ;;  %v1449_v20 = vld [vmem:[%s3058_s0 + $0x107] ss:$16 sm:%s142_s10]  }
   0x8   :  { %v194_v16 = vsel %vm125_vm0, %v1460_v14, %v1459_v12  ;;  %v1461_v17 = vld [vmem:[%s3058_s0 + $0x10f] ss:$16 sm:%s196_s5]   ;;  %137 = vrot.lane.b32.xlu0 %v136_v15, %s1725_s6  ;;  %s155_s19 = smov 192  ;;  %s234_s20 = smov 3  ;;  %vm1054_vm10 = vcmask 392448   ;;  %vm1237_vm11 = vcmask 261248  }
   0x9   :  { %v1462_v18 = vld [vmem:[%s3058_s0 + $0x10f] ss:$16 sm:%s201_s9]   ;;  %v199_v19 = vsel %vm130_vm1, %v1461_v17, %v194_v16  ;;  %v1450_v22 = vld [vmem:[%s3058_s0 + $0x107] ss:$16 sm:%s145_s15]   ;;  %s237_s25 = smov 12  ;;  %s242_s26 = smov 48 }
   0xa   :  { %v204_v21 = vsel %vm135_vm2, %v1462_v18, %v199_v19  ;;  %v1451_v23 = vld [vmem:[%s3058_s0 + $0x107] ss:$16 sm:%s150_s16]   ;;  %v148_v24 = vsel %vm125_vm0, %v1450_v22, %v1449_v20  ;;  %s247_s29 = smov 192  ;;  %s211_s30 = smov 3 }
   0xb   :  { %205 = vrot.lane.b32.xlu1 %v204_v21, %s1725_s6  ;;  %v1452_v25 = vld [vmem:[%s3058_s0 + $0x107] ss:$16 sm:%s155_s19]   ;;  %v153_v26 = vsel %vm130_vm1, %v1451_v23, %v148_v24  ;;  %s214_s7 = smov 12  ;;  %s219_s8 = smov 48 }
   0xc   :  { %v1469_v27 = vld [vmem:[%s3058_s0 + $0x187] ss:$16 sm:%s234_s20]   ;;  %v158_v29 = vsel %vm135_vm2, %v1452_v25, %v153_v26  ;;  %s224_s13 = smov 192  ;;  %s280_s16 = smov 3 }
   0xd   :  { %v1470_v28 = vld [vmem:[%s3058_s0 + $0x187] ss:$16 sm:%s237_s25]   ;;  %159 = vrot.lane.b32.xlu0 %v158_v29, %s1725_s6  ;;  %s283_s17 = smov 12  ;;  %s288_s22 = smov 48 }
   0xe   :  { %v240_v30 = vsel %vm125_vm0, %v1470_v28, %v1469_v27  ;;  %v1471_v31 = vld [vmem:[%s3058_s0 + $0x187] ss:$16 sm:%s242_s26]   ;;  %s293_s23 = smov 192  ;;  %s257_s26 = smov 3  ;;  %v1479_v41 = vld [vmem:[%s3058_s0 + $0x18f] ss:$16 sm:%s280_s16]  }
   0xf   :  { %v1472_v32 = vld [vmem:[%s3058_s0 + $0x187] ss:$16 sm:%s247_s29]   ;;  %v245_v33 = vsel %vm130_vm1, %v1471_v31, %v240_v30  ;;  %v1480_v42 = vld [vmem:[%s3058_s0 + $0x18f] ss:$16 sm:%s283_s17]   ;;  %s260_s2 = smov 12  ;;  %s265_s3 = smov 48 }
  0x10   :  { %v1464_v34 = vld [vmem:[%s3058_s0 + $0x87] ss:$16 sm:%s211_s30]   ;;  %v250_v35 = vsel %vm135_vm2, %v1472_v32, %v245_v33  ;;  %v286_v44 = vsel %vm125_vm0, %v1480_v42, %v1479_v41  ;;  %v1481_v45 = vld [vmem:[%s3058_s0 + $0x18f] ss:$16 sm:%s288_s22]   ;;  %s270_s9 = smov 192  ;;  %s325_s12 = smov 3 }
  0x11   :  { %v1465_v36 = vld [vmem:[%s3058_s0 + $0x87] ss:$16 sm:%s214_s7]   ;;  %251 = vrot.lane.b32.xlu1 %v250_v35, %s1725_s6  ;;  %v291_v47 = vsel %vm130_vm1, %v1481_v45, %v286_v44  ;;  %s333_s18 = smov 48  ;;  %s338_s19 = smov 192 }
  0x12   :  { %v1466_v37 = vld [vmem:[%s3058_s0 + $0x87] ss:$16 sm:%s219_s8]   ;;  %v217_v38 = vsel %vm125_vm0, %v1465_v36, %v1464_v34  ;;  %v1482_v46 = vld [vmem:[%s3058_s0 + $0x18f] ss:$16 sm:%s293_s23]   ;;  %s303_s22 = smov 3  ;;  %s306_s27 = smov 12 }
  0x13   :  { %v1467_v39 = vld [vmem:[%s3058_s0 + $0x87] ss:$16 sm:%s224_s13]   ;;  %v222_v40 = vsel %vm130_vm1, %v1466_v37, %v217_v38  ;;  %v1474_v48 = vld [vmem:[%s3058_s0 + $0x8f] ss:$16 sm:%s257_s26]   ;;  %s328_s13 = smov 12  ;;  %v296_v49 = vsel %vm135_vm2, %v1482_v46, %v291_v47  ;;  %s311_s28 = smov 48 }
  0x14   :  { %v227_v43 = vsel %vm135_vm2, %v1467_v39, %v222_v40  ;;  %v1475_v50 = vld [vmem:[%s3058_s0 + $0x8f] ss:$16 sm:%s260_s2]   ;;  %v1488_v55 = vld [vmem:[%s3058_s0 + $0x106] ss:$16 sm:%s325_s12]   ;;  %s316_s4 = smov 192  ;;  %s371_s7 = smov 3 }
  0x15   :  { %228 = vrot.lane.b32.xlu0 %v227_v43, %s1725_s6  ;;  %v1476_v51 = vld [vmem:[%s3058_s0 + $0x8f] ss:$16 sm:%s265_s3]   ;;  %297 = vrot.lane.b32.xlu1 %v296_v49, %s1725_s6  ;;  %v263_v52 = vsel %vm125_vm0, %v1475_v50, %v1474_v48  ;;  %s374_s8 = smov 12  ;;  %s384_s14 = smov 192 }
  0x16   :  { %v1477_v53 = vld [vmem:[%s3058_s0 + $0x8f] ss:$16 sm:%s270_s9]   ;;  %v268_v54 = vsel %vm130_vm1, %v1476_v51, %v263_v52  ;;  %v1489_v56 = vld [vmem:[%s3058_s0 + $0x106] ss:$16 sm:%s328_s13]   ;;  %s379_s13 = smov 48  ;;  %s1726_s15 = smov 96  }
  0x17   :  { %v273_v57 = vsel %vm135_vm2, %v1477_v53, %v268_v54  ;;  %v331_v58 = vsel %vm125_vm0, %v1489_v56, %v1488_v55  ;;  %v1490_v59 = vld [vmem:[%s3058_s0 + $0x106] ss:$16 sm:%s333_s18]   ;;  %s348_s18 = smov 3  ;;  %v1498_v5 = vld [vmem:[%s3058_s0 + $0x10e] ss:$16 sm:%s371_s7]   ;;  %s351_s23 = smov 12 }
  0x18   :  { %v1491_v60 = vld [vmem:[%s3058_s0 + $0x106] ss:$16 sm:%s338_s19]   ;;  %v336_v61 = vsel %vm130_vm1, %v1490_v59, %v331_v58  ;;  %v1499_v6 = vld [vmem:[%s3058_s0 + $0x10e] ss:$16 sm:%s374_s8]   ;;  %s356_s24 = smov 48  ;;  %s361_s29 = smov 192 }
  0x19   :  { %274 = vrot.lane.b32.xlu0 %v273_v57, %s1725_s6  ;;  %v1484_v62 = vld [vmem:[%s3058_s0 + $0x6] ss:$16 sm:%s303_s22]   ;;  %v341_v63 = vsel %vm135_vm2, %v1491_v60, %v336_v61  ;;  %v377_v8 = vsel %vm125_vm0, %v1499_v6, %v1498_v5  ;;  %s417_s3 = smov 3  ;;  %s425_s9 = smov 48 }
  0x1a   :  { %v1485_v0 = vld [vmem:[%s3058_s0 + $0x6] ss:$16 sm:%s306_s27]   ;;  %342 = vrot.lane.b32.xlu1 %v341_v63, %s1726_s15  ;;  %s430_s10 = smov 192  ;;  %s397_s19 = smov 12 }
  0x1b   :  { %v1486_v1 = vld [vmem:[%s3058_s0 + $0x6] ss:$16 sm:%s311_s28]   ;;  %v309_v2 = vsel %vm125_vm0, %v1485_v0, %v1484_v62  ;;  %v1500_v9 = vld [vmem:[%s3058_s0 + $0x10e] ss:$16 sm:%s379_s13]   ;;  %s394_s13 = smov 3  ;;  %s402_s20 = smov 48 }
  0x1c   :  { %v1487_v3 = vld [vmem:[%s3058_s0 + $0x6] ss:$16 sm:%s316_s4]   ;;  %v314_v4 = vsel %vm130_vm1, %v1486_v1, %v309_v2  ;;  %v1501_v10 = vld [vmem:[%s3058_s0 + $0x10e] ss:$16 sm:%s384_s14]   ;;  %v382_v11 = vsel %vm130_vm1, %v1500_v9, %v377_v8  ;;  %s420_s4 = smov 12  ;;  %s407_s25 = smov 192 }
  0x1d   :  { %v319_v7 = vsel %vm135_vm2, %v1487_v3, %v314_v4  ;;  %v1493_v12 = vld [vmem:[%s3058_s0 + $0xe] ss:$16 sm:%s348_s18]   ;;  %v387_v13 = vsel %vm135_vm2, %v1501_v10, %v382_v11  ;;  %v1508_v19 = vld [vmem:[%s3058_s0 + $0x186] ss:$16 sm:%s417_s3]   ;;  %s463_s28 = smov 3  ;;  %s471_s6 = smov 48 }
  0x1e   :  { %320 = vrot.lane.b32.xlu0 %v319_v7, %s1726_s15  ;;  %v1494_v14 = vld [vmem:[%s3058_s0 + $0xe] ss:$16 sm:%s351_s23]   ;;  %388 = vrot.lane.b32.xlu1 %v387_v13, %s1726_s15  ;;  %s476_s5 = smov 192  ;;  %s443_s14 = smov 12 }
  0x1f   :  { %v1495_v15 = vld [vmem:[%s3058_s0 + $0xe] ss:$16 sm:%s356_s24]   ;;  %v354_v16 = vsel %vm125_vm0, %v1494_v14, %v1493_v12  ;;  %v1509_v20 = vld [vmem:[%s3058_s0 + $0x186] ss:$16 sm:%s420_s4]   ;;  %s448_s16 = smov 48  ;;  %s453_s21 = smov 192 }
  0x20   :  { %v1496_v17 = vld [vmem:[%s3058_s0 + $0xe] ss:$16 sm:%s361_s29]   ;;  %v359_v18 = vsel %vm130_vm1, %v1495_v15, %v354_v16  ;;  %v423_v22 = vsel %vm125_vm0, %v1509_v20, %v1508_v19  ;;  %v1510_v23 = vld [vmem:[%s3058_s0 + $0x186] ss:$16 sm:%s425_s9]   ;;  %s466_s29 = smov 12  ;;  %s440_s9 = smov 3 }
  0x21   :  { %v364_v21 = vsel %vm135_vm2, %v1496_v17, %v359_v18  ;;  %v1511_v24 = vld [vmem:[%s3058_s0 + $0x186] ss:$16 sm:%s430_s10]   ;;  %v428_v25 = vsel %vm130_vm1, %v1510_v23, %v423_v22  ;;  %v1518_v33 = vld [vmem:[%s3058_s0 + $0x18e] ss:$16 sm:%s463_s28]   ;;  %s508_s24 = smov 3  ;;  %s516_s30 = smov 48 }
  0x22   :  { %365 = vrot.lane.b32.xlu0 %v364_v21, %s1726_s15  ;;  %v1503_v26 = vld [vmem:[%s3058_s0 + $0x86] ss:$16 sm:%s394_s13]   ;;  %v433_v27 = vsel %vm135_vm2, %v1511_v24, %v428_v25  ;;  %s521_s2 = smov 192  ;;  %s489_s10 = smov 12 }
  0x23   :  { %v1504_v28 = vld [vmem:[%s3058_s0 + $0x86] ss:$16 sm:%s397_s19]   ;;  %434 = vrot.lane.b32.xlu1 %v433_v27, %s1726_s15  ;;  %s494_s11 = smov 48  ;;  %s499_s17 = smov 192 }
  0x24   :  { %v1505_v29 = vld [vmem:[%s3058_s0 + $0x86] ss:$16 sm:%s402_s20]   ;;  %v400_v30 = vsel %vm125_vm0, %v1504_v28, %v1503_v26  ;;  %v1519_v34 = vld [vmem:[%s3058_s0 + $0x18e] ss:$16 sm:%s466_s29]   ;;  %s554_s19 = smov 3  ;;  %s557_s20 = smov 12 }
  0x25   :  { %v1506_v31 = vld [vmem:[%s3058_s0 + $0x86] ss:$16 sm:%s407_s25]   ;;  %v405_v32 = vsel %vm130_vm1, %v1505_v29, %v400_v30  ;;  %v469_v36 = vsel %vm125_vm0, %v1519_v34, %v1518_v33  ;;  %v1520_v37 = vld [vmem:[%s3058_s0 + $0x18e] ss:$16 sm:%s471_s6]   ;;  %s511_s25 = smov 12  ;;  %s486_s6 = smov 3 }
  0x26   :  { %v410_v35 = vsel %vm135_vm2, %v1506_v31, %v405_v32  ;;  %v1521_v38 = vld [vmem:[%s3058_s0 + $0x18e] ss:$16 sm:%s476_s5]   ;;  %v474_v39 = vsel %vm130_vm1, %v1520_v37, %v469_v36  ;;  %v1527_v47 = vld [vmem:[%s3058_s0 + $0x105] ss:$16 sm:%s508_s24]   ;;  %s567_s26 = smov 192  ;;  %s1727_s27 = smov 80  }
  0x27   :  { %411 = vrot.lane.b32.xlu0 %v410_v35, %s1726_s15  ;;  %v1513_v40 = vld [vmem:[%s3058_s0 + $0x8e] ss:$16 sm:%s440_s9]   ;;  %v479_v41 = vsel %vm135_vm2, %v1521_v38, %v474_v39  ;;  %s534_s5 = smov 12  ;;  %s539_s7 = smov 48 }
  0x28   :  { %v1514_v42 = vld [vmem:[%s3058_s0 + $0x8e] ss:$16 sm:%s443_s14]   ;;  %480 = vrot.lane.b32.xlu1 %v479_v41, %s1726_s15  ;;  %s544_s12 = smov 192  ;;  %s613_s22 = smov 192 }
  0x29   :  { %v1515_v43 = vld [vmem:[%s3058_s0 + $0x8e] ss:$16 sm:%s448_s16]   ;;  %v446_v44 = vsel %vm125_vm0, %v1514_v42, %v1513_v40  ;;  %v1528_v48 = vld [vmem:[%s3058_s0 + $0x105] ss:$16 sm:%s511_s25]   ;;  %s562_s25 = smov 48  ;;  %s600_s16 = smov 3 }
  0x2a   :  { %v1516_v45 = vld [vmem:[%s3058_s0 + $0x8e] ss:$16 sm:%s453_s21]   ;;  %v451_v46 = vsel %vm130_vm1, %v1515_v43, %v446_v44  ;;  %v514_v50 = vsel %vm125_vm0, %v1528_v48, %v1527_v47  ;;  %v1529_v51 = vld [vmem:[%s3058_s0 + $0x105] ss:$16 sm:%s516_s30]   ;;  %s531_s30 = smov 3  ;;  %s608_s21 = smov 48 }
  0x2b   :  { %v456_v49 = vsel %vm135_vm2, %v1516_v45, %v451_v46  ;;  %v1530_v52 = vld [vmem:[%s3058_s0 + $0x105] ss:$16 sm:%s521_s2]   ;;  %v519_v53 = vsel %vm130_vm1, %v1529_v51, %v514_v50  ;;  %v1537_v61 = vld [vmem:[%s3058_s0 + $0x10d] ss:$16 sm:%s554_s19]   ;;  %s580_s2 = smov 12  ;;  %s585_s3 = smov 48 }
  0x2c   :  { %457 = vrot.lane.b32.xlu0 %v456_v49, %s1726_s15  ;;  %v1523_v54 = vld [vmem:[%s3058_s0 + $0x5] ss:$16 sm:%s486_s6]   ;;  %v524_v55 = vsel %vm135_vm2, %v1530_v52, %v519_v53  ;;  %s590_s8 = smov 192  ;;  %s654_s15 = smov 48 }
  0x2d   :  { %v1524_v56 = vld [vmem:[%s3058_s0 + $0x5] ss:$16 sm:%s489_s10]   ;;  %525 = vrot.lane.b32.xlu1 %v524_v55, %s1727_s27  ;;  %s659_s18 = smov 192  ;;  %s631_s28 = smov 48 }
  0x2e   :  { %v1525_v57 = vld [vmem:[%s3058_s0 + $0x5] ss:$16 sm:%s494_s11]   ;;  %v492_v58 = vsel %vm125_vm0, %v1524_v56, %v1523_v54  ;;  %v1538_v62 = vld [vmem:[%s3058_s0 + $0x10d] ss:$16 sm:%s557_s20]   ;;  %s646_s11 = smov 3  ;;  %s636_s4 = smov 192 }
  0x2f   :  { %v1526_v59 = vld [vmem:[%s3058_s0 + $0x5] ss:$16 sm:%s499_s17]   ;;  %v497_v60 = vsel %vm130_vm1, %v1525_v57, %v492_v58  ;;  %v560_v0 = vsel %vm125_vm0, %v1538_v62, %v1537_v61  ;;  %v1539_v1 = vld [vmem:[%s3058_s0 + $0x10d] ss:$16 sm:%s562_s25]   ;;  %s603_s17 = smov 12  ;;  %s577_s25 = smov 3 }
  0x30   :  { %v502_v63 = vsel %vm135_vm2, %v1526_v59, %v497_v60  ;;  %v1540_v2 = vld [vmem:[%s3058_s0 + $0x10d] ss:$16 sm:%s567_s26]   ;;  %v565_v3 = vsel %vm130_vm1, %v1539_v1, %v560_v0  ;;  %v1547_v11 = vld [vmem:[%s3058_s0 + $0x185] ss:$16 sm:%s600_s16]   ;;  %s626_s26 = smov 12  ;;  %s699_s13 = smov 48 }
  0x31   :  { %503 = vrot.lane.b32.xlu0 %v502_v63, %s1727_s27  ;;  %v1532_v4 = vld [vmem:[%s3058_s0 + $0xd] ss:$16 sm:%s531_s30]   ;;  %v570_v5 = vsel %vm135_vm2, %v1540_v2, %v565_v3  ;;  %s704_s14 = smov 192  ;;  %s677_s23 = smov 48 }
  0x32   :  { %v1533_v6 = vld [vmem:[%s3058_s0 + $0xd] ss:$16 sm:%s534_s5]   ;;  %571 = vrot.lane.b32.xlu1 %v570_v5, %s1727_s27  ;;  %s682_s29 = smov 192  ;;  %s750_s9 = smov 192 }
  0x33   :  { %v1534_v7 = vld [vmem:[%s3058_s0 + $0xd] ss:$16 sm:%s539_s7]   ;;  %v537_v8 = vsel %vm125_vm0, %v1533_v6, %v1532_v4  ;;  %v1548_v12 = vld [vmem:[%s3058_s0 + $0x185] ss:$16 sm:%s603_s17]   ;;  %s691_s7 = smov 3  ;;  %s1728_s10 = smov 64  }
  0x34   :  { %v1535_v9 = vld [vmem:[%s3058_s0 + $0xd] ss:$16 sm:%s544_s12]   ;;  %v542_v10 = vsel %vm130_vm1, %v1534_v7, %v537_v8  ;;  %v606_v14 = vsel %vm125_vm0, %v1548_v12, %v1547_v11  ;;  %v1549_v15 = vld [vmem:[%s3058_s0 + $0x185] ss:$16 sm:%s608_s21]   ;;  %s649_s12 = smov 12  ;;  %s623_s21 = smov 3 }
  0x35   :  { %v547_v13 = vsel %vm135_vm2, %v1535_v9, %v542_v10  ;;  %v1550_v16 = vld [vmem:[%s3058_s0 + $0x185] ss:$16 sm:%s613_s22]   ;;  %v611_v17 = vsel %vm130_vm1, %v1549_v15, %v606_v14  ;;  %v1557_v25 = vld [vmem:[%s3058_s0 + $0x18d] ss:$16 sm:%s646_s11]   ;;  %s672_s22 = smov 12  ;;  %s722_s19 = smov 48 }
  0x36   :  { %548 = vrot.lane.b32.xlu0 %v547_v13, %s1727_s27  ;;  %v1542_v18 = vld [vmem:[%s3058_s0 + $0x85] ss:$16 sm:%s577_s25]   ;;  %v616_v19 = vsel %vm135_vm2, %v1550_v16, %v611_v17  ;;  %s727_s24 = smov 192  ;;  %s796_s6 = smov 192 }
  0x37   :  { %v1543_v20 = vld [vmem:[%s3058_s0 + $0x85] ss:$16 sm:%s580_s2]   ;;  %617 = vrot.lane.b32.xlu1 %v616_v19, %s1727_s27  ;;  %s737_s2 = smov 3  ;;  %s768_s16 = smov 48 }
  0x38   :  { %v1544_v21 = vld [vmem:[%s3058_s0 + $0x85] ss:$16 sm:%s585_s3]   ;;  %v583_v22 = vsel %vm125_vm0, %v1543_v20, %v1542_v18  ;;  %v1558_v26 = vld [vmem:[%s3058_s0 + $0x18d] ss:$16 sm:%s649_s12]   ;;  %s740_s3 = smov 12  ;;  %s773_s20 = smov 192 }
  0x39   :  { %v1545_v23 = vld [vmem:[%s3058_s0 + $0x85] ss:$16 sm:%s590_s8]   ;;  %v588_v24 = vsel %vm130_vm1, %v1544_v21, %v583_v22  ;;  %v652_v28 = vsel %vm125_vm0, %v1558_v26, %v1557_v25  ;;  %v1559_v29 = vld [vmem:[%s3058_s0 + $0x18d] ss:$16 sm:%s654_s15]   ;;  %s694_s8 = smov 12  ;;  %s669_s15 = smov 3 }
  0x3a   :  { %v593_v27 = vsel %vm135_vm2, %v1545_v23, %v588_v24  ;;  %v1560_v30 = vld [vmem:[%s3058_s0 + $0x18d] ss:$16 sm:%s659_s18]   ;;  %v657_v31 = vsel %vm130_vm1, %v1559_v29, %v652_v28  ;;  %v1566_v39 = vld [vmem:[%s3058_s0 + $0x104] ss:$16 sm:%s691_s7]   ;;  %s717_s18 = smov 12  ;;  %s842_s30 = smov 192 }
  0x3b   :  { %594 = vrot.lane.b32.xlu0 %v593_v27, %s1727_s27  ;;  %v1552_v32 = vld [vmem:[%s3058_s0 + $0x8d] ss:$16 sm:%s623_s21]   ;;  %v662_v33 = vsel %vm135_vm2, %v1560_v30, %v657_v31  ;;  %s814_s11 = smov 48  ;;  %s819_s17 = smov 192 }
  0x3c   :  { %v1553_v34 = vld [vmem:[%s3058_s0 + $0x8d] ss:$16 sm:%s626_s26]   ;;  %663 = vrot.lane.b32.xlu1 %v662_v33, %s1727_s27  ;;  %s882_s25 = smov 48  ;;  %s887_s26 = smov 192 }
  0x3d   :  { %v1554_v35 = vld [vmem:[%s3058_s0 + $0x8d] ss:$16 sm:%s631_s28]   ;;  %v629_v36 = vsel %vm125_vm0, %v1553_v34, %v1552_v32  ;;  %v1567_v40 = vld [vmem:[%s3058_s0 + $0x104] ss:$16 sm:%s694_s8]   ;;  %s745_s8 = smov 48  ;;  %s783_s28 = smov 3 }
  0x3e   :  { %v1555_v37 = vld [vmem:[%s3058_s0 + $0x8d] ss:$16 sm:%s636_s4]   ;;  %v634_v38 = vsel %vm130_vm1, %v1554_v35, %v629_v36  ;;  %v697_v42 = vsel %vm125_vm0, %v1567_v40, %v1566_v39  ;;  %v1568_v43 = vld [vmem:[%s3058_s0 + $0x104] ss:$16 sm:%s699_s13]   ;;  %s714_s13 = smov 3  ;;  %s791_s4 = smov 48 }
  0x3f   :  { %v639_v41 = vsel %vm135_vm2, %v1555_v37, %v634_v38  ;;  %v1569_v44 = vld [vmem:[%s3058_s0 + $0x104] ss:$16 sm:%s704_s14]   ;;  %v702_v45 = vsel %vm130_vm1, %v1568_v43, %v697_v42  ;;  %v1576_v53 = vld [vmem:[%s3058_s0 + $0x10c] ss:$16 sm:%s737_s2]   ;;  %s763_s14 = smov 12  ;;  %s860_s5 = smov 48 }
  0x40   :  { %640 = vrot.lane.b32.xlu0 %v639_v41, %s1727_s27  ;;  %v1562_v46 = vld [vmem:[%s3058_s0 + $0x4] ss:$16 sm:%s669_s15]   ;;  %v707_v47 = vsel %vm135_vm2, %v1569_v44, %v702_v45  ;;  %s837_s27 = smov 48  ;;  %s865_s12 = smov 192 }
  0x41   :  { %v1563_v48 = vld [vmem:[%s3058_s0 + $0x4] ss:$16 sm:%s672_s22]   ;;  %708 = vrot.lane.b32.xlu1 %v707_v47, %s1728_s10  ;;  %s933_s21 = smov 192  ;;  %s1729_s22 = smov 48  }
  0x42   :  { %v1564_v49 = vld [vmem:[%s3058_s0 + $0x4] ss:$16 sm:%s677_s23]   ;;  %v675_v50 = vsel %vm125_vm0, %v1563_v48, %v1562_v46  ;;  %v1577_v54 = vld [vmem:[%s3058_s0 + $0x10c] ss:$16 sm:%s740_s3]   ;;  %s829_s23 = smov 3  ;;  %s905_s2 = smov 48 }
  0x43   :  { %v1565_v51 = vld [vmem:[%s3058_s0 + $0x4] ss:$16 sm:%s682_s29]   ;;  %v680_v52 = vsel %vm130_vm1, %v1564_v49, %v675_v50  ;;  %v743_v56 = vsel %vm125_vm0, %v1577_v54, %v1576_v53  ;;  %v1578_v57 = vld [vmem:[%s3058_s0 + $0x10c] ss:$16 sm:%s745_s8]   ;;  %s786_s29 = smov 12  ;;  %s760_s8 = smov 3 }
  0x44   :  { %v685_v55 = vsel %vm135_vm2, %v1565_v51, %v680_v52  ;;  %v1579_v58 = vld [vmem:[%s3058_s0 + $0x10c] ss:$16 sm:%s750_s9]   ;;  %v748_v59 = vsel %vm130_vm1, %v1578_v57, %v743_v56  ;;  %v1586_v3 = vld [vmem:[%s3058_s0 + $0x184] ss:$16 sm:%s783_s28]   ;;  %s809_s9 = smov 12  ;;  %s910_s7 = smov 192 }
  0x45   :  { %686 = vrot.lane.b32.xlu0 %v685_v55, %s1728_s10  ;;  %v1571_v60 = vld [vmem:[%s3058_s0 + $0xc] ss:$16 sm:%s714_s13]   ;;  %v753_v61 = vsel %vm135_vm2, %v1579_v58, %v748_v59  ;;  %s979_s15 = smov 192  ;;  %s951_s28 = smov 48 }
  0x46   :  { %v1572_v62 = vld [vmem:[%s3058_s0 + $0xc] ss:$16 sm:%s717_s18]   ;;  %754 = vrot.lane.b32.xlu1 %v753_v61, %s1728_s10  ;;  %s956_s3 = smov 192  ;;  %s1025_s13 = smov 192 }
  0x47   :  { %v1573_v63 = vld [vmem:[%s3058_s0 + $0xc] ss:$16 sm:%s722_s19]   ;;  %v720_v0 = vsel %vm125_vm0, %v1572_v62, %v1571_v60  ;;  %v1587_v4 = vld [vmem:[%s3058_s0 + $0x184] ss:$16 sm:%s786_s29]   ;;  %s874_s19 = smov 3  ;;  %s1002_s29 = smov 192 }
  0x48   :  { %v1574_v1 = vld [vmem:[%s3058_s0 + $0xc] ss:$16 sm:%s727_s24]   ;;  %v725_v2 = vsel %vm130_vm1, %v1573_v63, %v720_v0  ;;  %v789_v6 = vsel %vm125_vm0, %v1587_v4, %v1586_v3  ;;  %v1588_v7 = vld [vmem:[%s3058_s0 + $0x184] ss:$16 sm:%s791_s4]   ;;  %s832_s24 = smov 12  ;;  %s806_s4 = smov 3 }
  0x49   :  { %v730_v5 = vsel %vm135_vm2, %v1574_v1, %v725_v2  ;;  %v1589_v8 = vld [vmem:[%s3058_s0 + $0x184] ss:$16 sm:%s796_s6]   ;;  %v794_v9 = vsel %vm130_vm1, %v1588_v7, %v789_v6  ;;  %v1596_v17 = vld [vmem:[%s3058_s0 + $0x18c] ss:$16 sm:%s829_s23]   ;;  %s855_s6 = smov 12  ;;  %s997_s23 = smov 48 }
  0x4a   :  { %731 = vrot.lane.b32.xlu0 %v730_v5, %s1728_s10  ;;  %v1581_v10 = vld [vmem:[%s3058_s0 + $0x84] ss:$16 sm:%s760_s8]   ;;  %v799_v11 = vsel %vm135_vm2, %v1589_v8, %v794_v9  ;;  %s1065_s8 = smov 48  ;;  %s1043_s18 = smov 48 }
  0x4b   :  { %v1582_v12 = vld [vmem:[%s3058_s0 + $0x84] ss:$16 sm:%s763_s14]   ;;  %800 = vrot.lane.b32.xlu1 %v799_v11, %s1728_s10  ;;  %s920_s14 = smov 3 }
  0x4c   :  { %v1583_v13 = vld [vmem:[%s3058_s0 + $0x84] ss:$16 sm:%s768_s16]   ;;  %v766_v14 = vsel %vm125_vm0, %v1582_v12, %v1581_v10  ;;  %v1597_v18 = vld [vmem:[%s3058_s0 + $0x18c] ss:$16 sm:%s832_s24]   ;;  %s923_s16 = smov 12  ;;  %s1048_s24 = smov 192 }
  0x4d   :  { %v1584_v15 = vld [vmem:[%s3058_s0 + $0x84] ss:$16 sm:%s773_s20]   ;;  %v771_v16 = vsel %vm130_vm1, %v1583_v13, %v766_v14  ;;  %v835_v20 = vsel %vm125_vm0, %v1597_v18, %v1596_v17  ;;  %v1598_v21 = vld [vmem:[%s3058_s0 + $0x18c] ss:$16 sm:%s837_s27]   ;;  %s877_s20 = smov 12  ;;  %s852_s27 = smov 3 }
  0x4e   :  { %v776_v19 = vsel %vm135_vm2, %v1584_v15, %v771_v16  ;;  %v1599_v22 = vld [vmem:[%s3058_s0 + $0x18c] ss:$16 sm:%s842_s30]   ;;  %v840_v23 = vsel %vm130_vm1, %v1598_v21, %v835_v20  ;;  %v1605_v31 = vld [vmem:[%s3058_s0 + $0x103] ss:$16 sm:%s874_s19]   ;;  %s900_s30 = smov 12  ;;  %s1093_s19 = smov 192 }
  0x4f   :  { %777 = vrot.lane.b32.xlu0 %v776_v19, %s1728_s10  ;;  %v1591_v24 = vld [vmem:[%s3058_s0 + $0x8c] ss:$16 sm:%s806_s4]   ;;  %v845_v25 = vsel %vm135_vm2, %v1599_v22, %v840_v23  ;;  %s1116_s4 = smov 192 }
  0x50   :  { %v1592_v26 = vld [vmem:[%s3058_s0 + $0x8c] ss:$16 sm:%s809_s9]   ;;  %846 = vrot.lane.b32.xlu1 %v845_v25, %s1728_s10  ;;  %s1070_s9 = smov 192 }
  0x51   :  { %v1593_v27 = vld [vmem:[%s3058_s0 + $0x8c] ss:$16 sm:%s814_s11]   ;;  %v812_v28 = vsel %vm125_vm0, %v1592_v26, %v1591_v24  ;;  %v1606_v32 = vld [vmem:[%s3058_s0 + $0x103] ss:$16 sm:%s877_s20]   ;;  %s928_s20 = smov 48  ;;  %s966_s11 = smov 3 }
  0x52   :  { %v1594_v29 = vld [vmem:[%s3058_s0 + $0x8c] ss:$16 sm:%s819_s17]   ;;  %v817_v30 = vsel %vm130_vm1, %v1593_v27, %v812_v28  ;;  %v880_v34 = vsel %vm125_vm0, %v1606_v32, %v1605_v31  ;;  %v1607_v35 = vld [vmem:[%s3058_s0 + $0x103] ss:$16 sm:%s882_s25]   ;;  %s897_s25 = smov 3  ;;  %s974_s17 = smov 48 }
  0x53   :  { %v822_v33 = vsel %vm135_vm2, %v1594_v29, %v817_v30  ;;  %v1608_v36 = vld [vmem:[%s3058_s0 + $0x103] ss:$16 sm:%s887_s26]   ;;  %v885_v37 = vsel %vm130_vm1, %v1607_v35, %v880_v34  ;;  %v1615_v45 = vld [vmem:[%s3058_s0 + $0x10b] ss:$16 sm:%s920_s14]   ;;  %s946_s26 = smov 12  ;;  %s1088_s14 = smov 48 }
  0x54   :  { %823 = vrot.lane.b32.xlu0 %v822_v33, %s1728_s10  ;;  %v1601_v38 = vld [vmem:[%s3058_s0 + $0x3] ss:$16 sm:%s852_s27]   ;;  %v890_v39 = vsel %vm135_vm2, %v1608_v36, %v885_v37  ;;  %s1020_s10 = smov 48  ;;  %s1162_s27 = smov 192 }
  0x55   :  { %v1602_v40 = vld [vmem:[%s3058_s0 + $0x3] ss:$16 sm:%s855_s6]   ;;  %891 = vrot.lane.b32.xlu1 %v890_v39, %s1729_s22  ;;  %s1730_s6 = smov 32  }
  0x56   :  { %v1603_v41 = vld [vmem:[%s3058_s0 + $0x3] ss:$16 sm:%s860_s5]   ;;  %v858_v42 = vsel %vm125_vm0, %v1602_v40, %v1601_v38  ;;  %v1616_v46 = vld [vmem:[%s3058_s0 + $0x10b] ss:$16 sm:%s923_s16]   ;;  %s1012_s5 = smov 3  ;;  %s1139_s16 = smov 192 }
  0x57   :  { %v1604_v43 = vld [vmem:[%s3058_s0 + $0x3] ss:$16 sm:%s865_s12]   ;;  %v863_v44 = vsel %vm130_vm1, %v1603_v41, %v858_v42  ;;  %v926_v48 = vsel %vm125_vm0, %v1616_v46, %v1615_v45  ;;  %v1617_v49 = vld [vmem:[%s3058_s0 + $0x10b] ss:$16 sm:%s928_s20]   ;;  %s969_s12 = smov 12  ;;  %s943_s20 = smov 3 }
  0x58   :  { %v868_v47 = vsel %vm135_vm2, %v1604_v43, %v863_v44  ;;  %v1618_v50 = vld [vmem:[%s3058_s0 + $0x10b] ss:$16 sm:%s933_s21]   ;;  %v931_v51 = vsel %vm130_vm1, %v1617_v49, %v926_v48  ;;  %v1625_v59 = vld [vmem:[%s3058_s0 + $0x183] ss:$16 sm:%s966_s11]   ;;  %s992_s21 = smov 12  ;;  %s1134_s11 = smov 48 }
  0x59   :  { %869 = vrot.lane.b32.xlu0 %v868_v47, %s1729_s22  ;;  %v1610_v52 = vld [vmem:[%s3058_s0 + $0xb] ss:$16 sm:%s897_s25]   ;;  %v936_v53 = vsel %vm135_vm2, %v1618_v50, %v931_v51  ;;  %s1208_s25 = smov 192 }
  0x5a   :  { %v1611_v54 = vld [vmem:[%s3058_s0 + $0xb] ss:$16 sm:%s900_s30]   ;;  %937 = vrot.lane.b32.xlu1 %v936_v53, %s1729_s22  ;;  %s1276_s30 = smov 192 }
  0x5b   :  { %v1612_v55 = vld [vmem:[%s3058_s0 + $0xb] ss:$16 sm:%s905_s2]   ;;  %v903_v56 = vsel %vm125_vm0, %v1611_v54, %v1610_v52  ;;  %v1626_v60 = vld [vmem:[%s3058_s0 + $0x183] ss:$16 sm:%s969_s12]   ;;  %s1057_s2 = smov 3 }
  0x5c   :  { %v1613_v57 = vld [vmem:[%s3058_s0 + $0xb] ss:$16 sm:%s910_s7]   ;;  %v908_v58 = vsel %vm130_vm1, %v1612_v55, %v903_v56  ;;  %v972_v62 = vsel %vm125_vm0, %v1626_v60, %v1625_v59  ;;  %v1627_v63 = vld [vmem:[%s3058_s0 + $0x183] ss:$16 sm:%s974_s17]   ;;  %s1015_s7 = smov 12  ;;  %s989_s17 = smov 3 }
  0x5d   :  { %v913_v61 = vsel %vm135_vm2, %v1613_v57, %v908_v58  ;;  %v1628_v0 = vld [vmem:[%s3058_s0 + $0x183] ss:$16 sm:%s979_s15]   ;;  %v977_v1 = vsel %vm130_vm1, %v1627_v63, %v972_v62  ;;  %v1635_v9 = vld [vmem:[%s3058_s0 + $0x18b] ss:$16 sm:%s1012_s5]   ;;  %s1038_s15 = smov 12 }
  0x5e   :  { %914 = vrot.lane.b32.xlu0 %v913_v61, %s1729_s22  ;;  %v1620_v2 = vld [vmem:[%s3058_s0 + $0x83] ss:$16 sm:%s943_s20]   ;;  %v982_v3 = vsel %vm135_vm2, %v1628_v0, %v977_v1  ;;  %s1203_s20 = smov 48  ;;  %v1421_v0 = vld [vmem:[%s3058_s0 + $0x100] ss:$8 sm:$0xf]  }
  0x5f   :  { %v1621_v4 = vld [vmem:[%s3058_s0 + $0x83] ss:$16 sm:%s946_s26]   ;;  %983 = vrot.lane.b32.xlu1 %v982_v3, %s1729_s22  ;;  %s1103_s26 = smov 3 }
  0x60   :  { %v1622_v5 = vld [vmem:[%s3058_s0 + $0x83] ss:$16 sm:%s951_s28]   ;;  %v949_v6 = vsel %vm125_vm0, %v1621_v4, %v1620_v2  ;;  %v1636_v10 = vld [vmem:[%s3058_s0 + $0x18b] ss:$16 sm:%s1015_s7]   ;;  %s1106_s28 = smov 12  ;;  %s1335_s7 = smov 12 }
  0x61   :  { %v1623_v7 = vld [vmem:[%s3058_s0 + $0x83] ss:$16 sm:%s956_s3]   ;;  %v954_v8 = vsel %vm130_vm1, %v1622_v5, %v949_v6  ;;  %v1018_v12 = vsel %vm125_vm0, %v1636_v10, %v1635_v9  ;;  %v1637_v13 = vld [vmem:[%s3058_s0 + $0x18b] ss:$16 sm:%s1020_s10]   ;;  %s1060_s3 = smov 12  ;;  %s1035_s10 = smov 3 }
  0x62   :  { %v959_v11 = vsel %vm135_vm2, %v1623_v7, %v954_v8  ;;  %v1638_v14 = vld [vmem:[%s3058_s0 + $0x18b] ss:$16 sm:%s1025_s13]   ;;  %v1023_v15 = vsel %vm130_vm1, %v1637_v13, %v1018_v12  ;;  %v1644_v23 = vld [vmem:[%s3058_s0 + $0x102] ss:$16 sm:%s1057_s2]   ;;  %s1083_s13 = smov 12  ;;  %s1294_s2 = smov 48 }
  0x63   :  { %960 = vrot.lane.b32.xlu0 %v959_v11, %s1729_s22  ;;  %v1630_v16 = vld [vmem:[%s3058_s0 + $0x8b] ss:$16 sm:%s989_s17]   ;;  %v1028_v17 = vsel %vm135_vm2, %v1638_v14, %v1023_v15  ;;  %s1195_s17 = smov 3  ;;  %v1422_v10 = vld [vmem:[%s3058_s0 + $0x100] ss:$8 sm:$0xf0]  }
  0x64   :  { %v1631_v18 = vld [vmem:[%s3058_s0 + $0x8b] ss:$16 sm:%s992_s21]   ;;  %1029 = vrot.lane.b32.xlu1 %v1028_v17, %s1729_s22  ;;  %v64_v14 = vsel %vm4_vm3, %v1422_v10, %v1421_v0  ;;  %s1231_s21 = smov 192 }
  0x65   :  { %v1632_v19 = vld [vmem:[%s3058_s0 + $0x8b] ss:$16 sm:%s997_s23]   ;;  %v995_v20 = vsel %vm125_vm0, %v1631_v18, %v1630_v16  ;;  %v1645_v24 = vld [vmem:[%s3058_s0 + $0x102] ss:$16 sm:%s1060_s3]   ;;  %s1111_s3 = smov 48  ;;  %s1149_s23 = smov 3 }
  0x66   :  { %v1633_v21 = vld [vmem:[%s3058_s0 + $0x8b] ss:$16 sm:%s1002_s29]   ;;  %v1000_v22 = vsel %vm130_vm1, %v1632_v19, %v995_v20  ;;  %v1063_v26 = vsel %vm125_vm0, %v1645_v24, %v1644_v23  ;;  %v1646_v27 = vld [vmem:[%s3058_s0 + $0x102] ss:$16 sm:%s1065_s8]   ;;  %s1080_s8 = smov 3  ;;  %s1157_s29 = smov 48 }
  0x67   :  { %v1005_v25 = vsel %vm135_vm2, %v1633_v21, %v1000_v22  ;;  %v1647_v28 = vld [vmem:[%s3058_s0 + $0x102] ss:$16 sm:%s1070_s9]   ;;  %v1068_v29 = vsel %vm130_vm1, %v1646_v27, %v1063_v26  ;;  %v1654_v37 = vld [vmem:[%s3058_s0 + $0x10a] ss:$16 sm:%s1103_s26]   ;;  %s1129_s9 = smov 12  ;;  %s1172_s26 = smov 3 }
  0x68   :  { %1006 = vrot.lane.b32.xlu0 %v1005_v25, %s1729_s22  ;;  %v1640_v30 = vld [vmem:[%s3058_s0 + $0x2] ss:$16 sm:%s1035_s10]   ;;  %v1073_v31 = vsel %vm135_vm2, %v1647_v28, %v1068_v29  ;;  %s1248_s22 = smov 48  ;;  %1423 = vst.msk [vmem:[%s3059_s1 + $0x20] ss:$8 sm:$0x3] %vm6_vm4, %v64_v14  }
  0x69   :  { %v1641_v32 = vld [vmem:[%s3058_s0 + $0x2] ss:$16 sm:%s1038_s15]   ;;  %1074 = vrot.lane.b32.xlu1 %v1073_v31, %s1730_s6  ;;  %s1243_s15 = smov 12  ;;  %1424 = vst.msk [vmem:[%s3059_s1 + $0x11] ss:$8 sm:$0xc] %vm6_vm4, %v64_v14  }
  0x6a   :  { %v1642_v33 = vld [vmem:[%s3058_s0 + $0x2] ss:$16 sm:%s1043_s18]   ;;  %v1041_v34 = vsel %vm125_vm0, %v1641_v32, %v1640_v30  ;;  %v1655_v38 = vld [vmem:[%s3058_s0 + $0x10a] ss:$16 sm:%s1106_s28]   ;;  %s1355_s28 = smov 3 }
  0x6b   :  { %v1643_v35 = vld [vmem:[%s3058_s0 + $0x2] ss:$16 sm:%s1048_s24]   ;;  %v1046_v36 = vsel %vm130_vm1, %v1642_v33, %v1041_v34  ;;  %v1109_v40 = vsel %vm125_vm0, %v1655_v38, %v1654_v37  ;;  %v1656_v41 = vld [vmem:[%s3058_s0 + $0x10a] ss:$16 sm:%s1111_s3]   ;;  %s1152_s24 = smov 12  ;;  %s1126_s3 = smov 3 }
  0x6c   :  { %v1051_v39 = vsel %vm135_vm2, %v1643_v35, %v1046_v36  ;;  %v1657_v42 = vld [vmem:[%s3058_s0 + $0x10a] ss:$16 sm:%s1116_s4]   ;;  %v1114_v43 = vsel %vm130_vm1, %v1656_v41, %v1109_v40  ;;  %v1664_v51 = vld [vmem:[%s3058_s0 + $0x182] ss:$16 sm:%s1149_s23]   ;;  %s1286_s23 = smov 3  ;;  %s1731_s4 = smov 16  }
  0x6d   :  { %1052 = vrot.lane.b32.xlu0 %v1051_v39, %s1730_s6  ;;  %v1649_v44 = vld [vmem:[%s3058_s0 + $0xa] ss:$16 sm:%s1080_s8]   ;;  %v1119_v45 = vsel %vm135_vm2, %v1657_v42, %v1114_v43  ;;  %s1180_s8 = smov 48  ;;  %1425 = vst.msk [vmem:[%s3059_s1 + $0x2] ss:$8 sm:$0x30] %vm6_vm4, %v64_v14  }
  0x6e   :  { %v1650_v46 = vld [vmem:[%s3058_s0 + $0xa] ss:$16 sm:%s1083_s13]   ;;  %1120 = vrot.lane.b32.xlu1 %v1119_v45, %s1730_s6  ;;  %1426 = vst.msk [vmem:[%s3059_s1 - $0xd] ss:$8 sm:$0xc0] %vm6_vm4, %v64_v14   ;;  %s1322_s13 = smov 192 }
  0x6f   :  { %v1651_v47 = vld [vmem:[%s3058_s0 + $0xa] ss:$16 sm:%s1088_s14]   ;;  %v1086_v48 = vsel %vm125_vm0, %v1650_v46, %v1649_v44  ;;  %v1665_v52 = vld [vmem:[%s3058_s0 + $0x182] ss:$16 sm:%s1152_s24]   ;;  %s1240_s14 = smov 3  ;;  %s1271_s24 = smov 48 }
  0x70   :  { %v1652_v49 = vld [vmem:[%s3058_s0 + $0xa] ss:$16 sm:%s1093_s19]   ;;  %v1091_v50 = vsel %vm130_vm1, %v1651_v47, %v1086_v48  ;;  %v1155_v54 = vsel %vm125_vm0, %v1665_v52, %v1664_v51  ;;  %v1666_v55 = vld [vmem:[%s3058_s0 + $0x182] ss:$16 sm:%s1157_s29]   ;;  %s1198_s19 = smov 12  ;;  %s1218_s29 = smov 3 }
  0x71   :  { %v1096_v53 = vsel %vm135_vm2, %v1652_v49, %v1091_v50  ;;  %v1667_v56 = vld [vmem:[%s3058_s0 + $0x182] ss:$16 sm:%s1162_s27]   ;;  %v1160_v57 = vsel %vm130_vm1, %v1666_v55, %v1155_v54  ;;  %s1175_s27 = smov 12  ;;  %v1674_v2 = vld [vmem:[%s3058_s0 + $0x18a] ss:$16 sm:%s1195_s17]   ;;  %s1226_s17 = smov 48 }
  0x72   :  { %1097 = vrot.lane.b32.xlu0 %v1096_v53, %s1730_s6  ;;  %v1659_v58 = vld [vmem:[%s3058_s0 + $0x82] ss:$16 sm:%s1126_s3]   ;;  %v1165_v59 = vsel %vm135_vm2, %v1667_v56, %v1160_v57  ;;  %v1427_v18 = vld [vmem:[%s3058_s0 + $0x140] ss:$8 sm:$0xf]   ;;  %s1299_s3 = smov 192 }
  0x73   :  { %v1660_v60 = vld [vmem:[%s3058_s0 + $0x82] ss:$16 sm:%s1129_s9]   ;;  %1166 = vrot.lane.b32.xlu1 %v1165_v59, %s1730_s6  ;;  %s1185_s9 = smov 192  ;;  %v1428_v29 = vld [vmem:[%s3058_s0 + $0x140] ss:$8 sm:$0xf0]  }
  0x74   :  { %v1661_v61 = vld [vmem:[%s3058_s0 + $0x82] ss:$16 sm:%s1134_s11]   ;;  %v1132_v62 = vsel %vm125_vm0, %v1660_v60, %v1659_v58  ;;  %v1675_v3 = vld [vmem:[%s3058_s0 + $0x18a] ss:$16 sm:%s1198_s19]   ;;  %v79_v34 = vsel %vm4_vm3, %v1428_v29, %v1427_v18 }
  0x75   :  { %v1662_v63 = vld [vmem:[%s3058_s0 + $0x82] ss:$16 sm:%s1139_s16]   ;;  %v1137_v1 = vsel %vm130_vm1, %v1661_v61, %v1132_v62  ;;  %v1201_v5 = vsel %vm125_vm0, %v1675_v3, %v1674_v2  ;;  %v1676_v6 = vld [vmem:[%s3058_s0 + $0x18a] ss:$16 sm:%s1203_s20]   ;;  %s1221_s16 = smov 12  ;;  %s1309_s20 = smov 3 }
  0x76   :  { %v1142_v4 = vsel %vm135_vm2, %v1662_v63, %v1137_v1  ;;  %v1677_v7 = vld [vmem:[%s3058_s0 + $0x18a] ss:$16 sm:%s1208_s25]   ;;  %v1206_v8 = vsel %vm130_vm1, %v1676_v6, %v1201_v5  ;;  %s1253_s25 = smov 192  ;;  %v1683_v20 = vld [vmem:[%s3058_s0 + $0x101] ss:$16 sm:%s1240_s14]   ;;  %s1378_s14 = smov 3 }
  0x77   :  { %1143 = vrot.lane.b32.xlu0 %v1142_v4, %s1730_s6  ;;  %v1669_v9 = vld [vmem:[%s3058_s0 + $0x8a] ss:$16 sm:%s1172_s26]   ;;  %v1211_v11 = vsel %vm135_vm2, %v1677_v7, %v1206_v8  ;;  %1429 = vst.msk [vmem:[%s3059_s1 + $0x24] ss:$8 sm:$0x3] %vm6_vm4, %v79_v34  }
  0x78   :  { %v1670_v12 = vld [vmem:[%s3058_s0 + $0x8a] ss:$16 sm:%s1175_s27]   ;;  %1212 = vrot.lane.b32.xlu1 %v1211_v11, %s1730_s6  ;;  %v2514_v17 = vpop.permute.xlu1 %182   ;;  %1430 = vst.msk [vmem:[%s3059_s1 + $0x15] ss:$8 sm:$0xc] %vm6_vm4, %v79_v34  }
  0x79   :  { %v1671_v13 = vld [vmem:[%s3058_s0 + $0x8a] ss:$16 sm:%s1180_s8]   ;;  %v1178_v15 = vsel %vm125_vm0, %v1670_v12, %v1669_v9  ;;  %v1684_v21 = vld [vmem:[%s3058_s0 + $0x101] ss:$16 sm:%s1243_s15]   ;;  %s1263_s8 = smov 3  ;;  %s1345_s15 = smov 192 }
  0x7a   :  { %v1672_v16 = vld [vmem:[%s3058_s0 + $0x8a] ss:$16 sm:%s1185_s9]   ;;  %v1183_v19 = vsel %vm130_vm1, %v1671_v13, %v1178_v15  ;;  %v1246_v23 = vsel %vm125_vm0, %v1684_v21, %v1683_v20  ;;  %v1685_v24 = vld [vmem:[%s3058_s0 + $0x101] ss:$16 sm:%s1248_s22]   ;;  %v2550_v26 = vpop.permute.xlu0 %137   ;;  %s1289_s22 = smov 12 }
  0x7b   :  { %v1188_v22 = vsel %vm135_vm2, %v1672_v16, %v1183_v19  ;;  %v1686_v25 = vld [vmem:[%s3058_s0 + $0x101] ss:$16 sm:%s1253_s25]   ;;  %v1251_v27 = vsel %vm130_vm1, %v1685_v24, %v1246_v23  ;;  %1431 = vst.msk [vmem:[%s3059_s1 + $0x6] ss:$8 sm:$0x30] %vm6_vm4, %v79_v34  }
  0x7c   :  { %1189 = vrot.lane.b32.xlu0 %v1188_v22, %s1730_s6  ;;  %v1679_v28 = vld [vmem:[%s3058_s0 + $0x1] ss:$16 sm:%s1218_s29]   ;;  %v1256_v30 = vsel %vm135_vm2, %v1686_v25, %v1251_v27  ;;  %1432 = vst.msk [vmem:[%s3059_s1 - $0x9] ss:$8 sm:$0xc0] %vm6_vm4, %v79_v34   ;;  %s1266_s6 = smov 12 }
  0x7d   :  { %v1680_v31 = vld [vmem:[%s3058_s0 + $0x1] ss:$16 sm:%s1221_s16]   ;;  %v206_v33 = vpop.permute.xlu1 %205   ;;  %1257 = vrot.lane.b32.xlu1 %v1256_v30, %s1731_s4  ;;  %v2_v37 = vld [vmem:[%s3058_s0] ss:$8 sm:$0xf]   ;;  %s1358_s16 = smov 12 }
  0x7e   :  { %v1681_v32 = vld [vmem:[%s3058_s0 + $0x1] ss:$16 sm:%s1226_s17]   ;;  %v1224_v35 = vsel %vm125_vm0, %v1680_v31, %v1679_v28  ;;  %v1693_v39 = vld [vmem:[%s3058_s0 + $0x109] ss:$16 sm:%s1286_s23]   ;;  %s1340_s17 = smov 48 }
  0x7f   :  { %v1682_v36 = vld [vmem:[%s3058_s0 + $0x1] ss:$16 sm:%s1231_s21]   ;;  %v1229_v38 = vsel %vm130_vm1, %v1681_v32, %v1224_v35  ;;  %v1694_v40 = vld [vmem:[%s3058_s0 + $0x109] ss:$16 sm:%s1289_s22]   ;;  %v160_v45 = vpop.permute.xlu0 %159   ;;  %s1391_s22 = smov 192 }
  0x80   :  { %1463 = vst.msk [vmem:[%s3059_s1 + $0x28] sm:$0xff] %vm139_vm5, %v206_v33   ;;  %v1234_v41 = vsel %vm135_vm2, %v1682_v36, %v1229_v38  ;;  %v1292_v42 = vsel %vm125_vm0, %v1694_v40, %v1693_v39  ;;  %v1695_v43 = vld [vmem:[%s3058_s0 + $0x109] ss:$16 sm:%s1294_s2]   ;;  %s1332_s2 = smov 3  ;;  %1453 = vst.msk [vmem:[%s3059_s1 + $0x20] sm:$0xff] %vm139_vm5, %v160_v45  }
  0x81   :  { %v1696_v44 = vld [vmem:[%s3058_s0 + $0x109] ss:$16 sm:%s1299_s3]   ;;  %1235 = vrot.lane.b32.xlu0 %v1234_v41, %s1731_s4  ;;  %v1297_v46 = vsel %vm130_vm1, %v1695_v43, %v1292_v42  ;;  %v3_v48 = vld [vmem:[%s3058_s0] ss:$8 sm:$0xf0]  }
  0x82   :  { %v1688_v47 = vld [vmem:[%s3058_s0 + $0x9] ss:$16 sm:%s1263_s8]   ;;  %v1302_v49 = vsel %vm135_vm2, %v1696_v44, %v1297_v46  ;;  %v5_v53 = vsel %vm4_vm3, %v3_v48, %v2_v37  ;;  %v1403_v56 = vld [vmem:[%s3058_s0 + $0x40] ss:$8 sm:$0xf]   ;;  %s1317_s8 = smov 48 }
  0x83   :  { %v1689_v50 = vld [vmem:[%s3058_s0 + $0x9] ss:$16 sm:%s1266_s6]   ;;  %v2630_v52 = vpop.permute.xlu1 %251   ;;  %1303 = vrot.lane.b32.xlu1 %v1302_v49, %s1731_s4  ;;  %7 = vst.msk [vmem:[%s3059_s1] ss:$8 sm:$0x3] %vm6_vm4, %v5_v53  }
  0x84   :  { %v1690_v51 = vld [vmem:[%s3058_s0 + $0x9] ss:$16 sm:%s1271_s24]   ;;  %v1269_v54 = vsel %vm125_vm0, %v1689_v50, %v1688_v47  ;;  %1400 = vst.msk [vmem:[%s3059_s1 - $0xf] ss:$8 sm:$0xc] %vm6_vm4, %v5_v53   ;;  %s1386_s24 = smov 48 }
  0x85   :  { %v1691_v55 = vld [vmem:[%s3058_s0 + $0x9] ss:$16 sm:%s1276_s30]   ;;  %1401 = vst.msk [vmem:[%s3059_s1 - $0x1e] ss:$8 sm:$0x30] %vm6_vm4, %v5_v53   ;;  %v1274_v57 = vsel %vm130_vm1, %v1690_v51, %v1269_v54 }
  0x86   :  { %1402 = vst.msk [vmem:[%s3059_s1 - $0x2d] ss:$8 sm:$0xc0] %vm6_vm4, %v5_v53   ;;  %v1703_v58 = vld [vmem:[%s3058_s0 + $0x181] ss:$16 sm:%s1332_s2]   ;;  %v1279_v60 = vsel %vm135_vm2, %v1691_v55, %v1274_v57 }
  0x87   :  { %v1704_v59 = vld [vmem:[%s3058_s0 + $0x181] ss:$16 sm:%s1335_s7]   ;;  %s1312_s7 = smov 12  ;;  %v2672_v0 = vpop.permute.xlu0 %228   ;;  %1280 = vrot.lane.b32.xlu0 %v1279_v60, %s1731_s4  ;;  %v1404_v3 = vld [vmem:[%s3058_s0 + $0x40] ss:$8 sm:$0xf0]   ;;  %v298_v7 = vpop.permute.xlu1 %297  }
  0x88   :  { %v1338_v61 = vsel %vm125_vm0, %v1704_v59, %v1703_v58  ;;  %v1705_v62 = vld [vmem:[%s3058_s0 + $0x181] ss:$16 sm:%s1340_s17]   ;;  %v19_v8 = vsel %vm4_vm3, %v1404_v3, %v1403_v56  ;;  %v1433_v11 = vld [vmem:[%s3058_s0 + $0x180] ss:$8 sm:$0xf]   ;;  %s1363_s17 = smov 48 }
  0x89   :  { %v1706_v63 = vld [vmem:[%s3058_s0 + $0x181] ss:$16 sm:%s1345_s15]   ;;  %v1343_v1 = vsel %vm130_vm1, %v1705_v62, %v1338_v61  ;;  %s1381_s15 = smov 12  ;;  %1405 = vst.msk [vmem:[%s3059_s1 + $0x4] ss:$8 sm:$0x3] %vm6_vm4, %v19_v8  }
  0x8a   :  { %v1698_v2 = vld [vmem:[%s3058_s0 + $0x81] ss:$16 sm:%s1309_s20]   ;;  %v1348_v4 = vsel %vm135_vm2, %v1706_v63, %v1343_v1  ;;  %1406 = vst.msk [vmem:[%s3059_s1 - $0xb] ss:$8 sm:$0xc] %vm6_vm4, %v19_v8  }
  0x8b   :  { %v1699_v5 = vld [vmem:[%s3058_s0 + $0x81] ss:$16 sm:%s1312_s7]   ;;  %1349 = vrot.lane.b32.xlu1 %v1348_v4, %s1731_s4  ;;  %1407 = vst.msk [vmem:[%s3059_s1 - $0x1a] ss:$8 sm:$0x30] %vm6_vm4, %v19_v8   ;;  %v275_v19 = vpop.permute.xlu0 %274  }
  0x8c   :  { %v1700_v6 = vld [vmem:[%s3058_s0 + $0x81] ss:$16 sm:%s1317_s8]   ;;  %v1315_v9 = vsel %vm125_vm0, %v1699_v5, %v1698_v2  ;;  %1408 = vst.msk [vmem:[%s3059_s1 - $0x29] ss:$8 sm:$0xc0] %vm6_vm4, %v19_v8  }
  0x8d   :  { %v1701_v10 = vld [vmem:[%s3058_s0 + $0x81] ss:$16 sm:%s1322_s13]   ;;  %v1320_v12 = vsel %vm130_vm1, %v1700_v6, %v1315_v9  ;;  %v1713_v13 = vld [vmem:[%s3058_s0 + $0x189] ss:$16 sm:%s1378_s14]  }
  0x8e   :  { %v1714_v14 = vld [vmem:[%s3058_s0 + $0x189] ss:$16 sm:%s1381_s15]   ;;  %140 = vst.msk [vmem:[%s3059_s1] sm:$0xff] %vm139_vm5, %v2550_v26   ;;  %1458 = vst.msk [vmem:[%s3059_s1 + $0x8] sm:$0xff] %vm139_vm5, %v2514_v17   ;;  %v1325_v15 = vsel %vm135_vm2, %v1701_v10, %v1320_v12  ;;  %v343_v26 = vpop.permute.xlu1 %342  }
  0x8f   :  { %v1384_v16 = vsel %vm125_vm0, %v1714_v14, %v1713_v13  ;;  %v1715_v17 = vld [vmem:[%s3058_s0 + $0x189] ss:$16 sm:%s1386_s24]   ;;  %1326 = vrot.lane.b32.xlu0 %v1325_v15, %s1731_s4  ;;  %v1434_v22 = vld [vmem:[%s3058_s0 + $0x180] ss:$8 sm:$0xf0]  }
  0x90   :  { %v1716_v18 = vld [vmem:[%s3058_s0 + $0x189] ss:$16 sm:%s1391_s22]   ;;  %s1368_s22 = smov 192  ;;  %v1389_v20 = vsel %vm130_vm1, %v1715_v17, %v1384_v16  ;;  %v94_v27 = vsel %vm4_vm3, %v1434_v22, %v1433_v11  ;;  %1492 = vst.msk [vmem:[%s3059_s1 + $0x20] sm:$0xff] %vm322_vm6, %v343_v26   ;;  %v321_v35 = vpop.permute.xlu0 %320  }
  0x91   :  { %v1708_v21 = vld [vmem:[%s3058_s0 + $0x89] ss:$16 sm:%s1355_s28]   ;;  %v1394_v23 = vsel %vm135_vm2, %v1716_v18, %v1389_v20  ;;  %1435 = vst.msk [vmem:[%s3059_s1 + $0x30] ss:$8 sm:$0x3] %vm6_vm4, %v94_v27  }
  0x92   :  { %v1709_v24 = vld [vmem:[%s3058_s0 + $0x89] ss:$16 sm:%s1358_s16]   ;;  %1395 = vrot.lane.b32.xlu1 %v1394_v23, %s1731_s4  ;;  %1436 = vst.msk [vmem:[%s3059_s1 + $0x21] ss:$8 sm:$0xc] %vm6_vm4, %v94_v27   ;;  %v389_v41 = vpop.permute.xlu1 %388  }
  0x93   :  { %v1710_v25 = vld [vmem:[%s3058_s0 + $0x89] ss:$16 sm:%s1363_s17]   ;;  %v1361_v28 = vsel %vm125_vm0, %v1709_v24, %v1708_v21  ;;  %1437 = vst.msk [vmem:[%s3059_s1 + $0x12] ss:$8 sm:$0x30] %vm6_vm4, %v94_v27  }
  0x94   :  { %v1711_v29 = vld [vmem:[%s3058_s0 + $0x89] ss:$16 sm:%s1368_s22]   ;;  %1438 = vst.msk [vmem:[%s3059_s1 + $0x3] ss:$8 sm:$0xc0] %vm6_vm4, %v94_v27   ;;  %v1366_v31 = vsel %vm130_vm1, %v1710_v25, %v1361_v28  ;;  %v366_v43 = vpop.permute.xlu0 %365  }
  0x95   :  { %v1439_v30 = vld [vmem:[%s3058_s0 + $0x1c0] ss:$8 sm:$0xf]   ;;  %v1371_v34 = vsel %vm135_vm2, %v1711_v29, %v1366_v31  ;;  %323 = vst.msk [vmem:[%s3059_s1] sm:$0xff] %vm322_vm6, %v321_v35   ;;  %1502 = vst.msk [vmem:[%s3059_s1 + $0x28] sm:$0xff] %vm322_vm6, %v389_v41  }
  0x96   :  { %v1440_v32 = vld [vmem:[%s3058_s0 + $0x1c0] ss:$8 sm:$0xf0]   ;;  %1372 = vrot.lane.b32.xlu0 %v1371_v34, %s1731_s4  ;;  %1497 = vst.msk [vmem:[%s3059_s1 + $0x8] sm:$0xff] %vm322_vm6, %v366_v43   ;;  %v435_v44 = vpop.permute.xlu1 %434  }
  0x97   :  { %v1409_v33 = vld [vmem:[%s3058_s0 + $0x80] ss:$8 sm:$0xf]   ;;  %v109_v36 = vsel %vm4_vm3, %v1440_v32, %v1439_v30 }
  0x98   :  { %v1410_v37 = vld [vmem:[%s3058_s0 + $0x80] ss:$8 sm:$0xf0]   ;;  %1441 = vst.msk [vmem:[%s3059_s1 + $0x34] ss:$8 sm:$0x3] %vm6_vm4, %v109_v36  }
  0x99   :  { %v1415_v38 = vld [vmem:[%s3058_s0 + $0xc0] ss:$8 sm:$0xf]   ;;  %1442 = vst.msk [vmem:[%s3059_s1 + $0x25] ss:$8 sm:$0xc] %vm6_vm4, %v109_v36   ;;  %v34_v39 = vsel %vm4_vm3, %v1410_v37, %v1409_v33  ;;  %v412_v45 = vpop.permute.xlu0 %411  }
  0x9a   :  { %1443 = vst.msk [vmem:[%s3059_s1 + $0x16] ss:$8 sm:$0x30] %vm6_vm4, %v109_v36   ;;  %1444 = vst.msk [vmem:[%s3059_s1 + $0x7] ss:$8 sm:$0xc0] %vm6_vm4, %v109_v36   ;;  %v481_v46 = vpop.permute.xlu1 %480  }
  0x9b   :  { %v1416_v40 = vld [vmem:[%s3058_s0 + $0xc0] ss:$8 sm:$0xf0]   ;;  %1473 = vst.msk [vmem:[%s3059_s1 + $0x30] sm:$0xff] %vm139_vm5, %v2630_v52   ;;  %1483 = vst.msk [vmem:[%s3059_s1 + $0x38] sm:$0xff] %vm139_vm5, %v298_v7  }
  0x9c   :  { %1411 = vst.msk [vmem:[%s3059_s1 + $0x10] ss:$8 sm:$0x3] %vm6_vm4, %v34_v39   ;;  %1412 = vst.msk [vmem:[%s3059_s1 + $0x1] ss:$8 sm:$0xc] %vm6_vm4, %v34_v39   ;;  %v49_v42 = vsel %vm4_vm3, %v1416_v40, %v1415_v38 }
  0x9d   :  { %1413 = vst.msk [vmem:[%s3059_s1 - $0xe] ss:$8 sm:$0x30] %vm6_vm4, %v34_v39   ;;  %1414 = vst.msk [vmem:[%s3059_s1 - $0x1d] ss:$8 sm:$0xc0] %vm6_vm4, %v34_v39  }
  0x9e   :  { %1417 = vst.msk [vmem:[%s3059_s1 + $0x14] ss:$8 sm:$0x3] %vm6_vm4, %v49_v42   ;;  %1418 = vst.msk [vmem:[%s3059_s1 + $0x5] ss:$8 sm:$0xc] %vm6_vm4, %v49_v42   ;;  %v458_v47 = vpop.permute.xlu0 %457  }
  0x9f   :  { %1419 = vst.msk [vmem:[%s3059_s1 - $0xa] ss:$8 sm:$0x30] %vm6_vm4, %v49_v42   ;;  %1420 = vst.msk [vmem:[%s3059_s1 - $0x19] ss:$8 sm:$0xc0] %vm6_vm4, %v49_v42   ;;  %v526_v48 = vpop.permute.xlu1 %525  }
  0xa0   :  { %1468 = vst.msk [vmem:[%s3059_s1 + $0x10] sm:$0xff] %vm139_vm5, %v2672_v0   ;;  %1478 = vst.msk [vmem:[%s3059_s1 + $0x18] sm:$0xff] %vm139_vm5, %v275_v19  }
  0xa1   :  { %1512 = vst.msk [vmem:[%s3059_s1 + $0x30] sm:$0xff] %vm322_vm6, %v435_v44   ;;  %1507 = vst.msk [vmem:[%s3059_s1 + $0x10] sm:$0xff] %vm322_vm6, %v412_v45  }
  0xa2   :  { %1522 = vst.msk [vmem:[%s3059_s1 + $0x38] sm:$0xff] %vm322_vm6, %v481_v46   ;;  %1517 = vst.msk [vmem:[%s3059_s1 + $0x18] sm:$0xff] %vm322_vm6, %v458_v47  }
  0xa3   :  { %1531 = vst.msk [vmem:[%s3059_s1 + $0x20] sm:$0xff] %vm505_vm7, %v526_v48   ;;  %v504_v49 = vpop.permute.xlu0 %503  }
  0xa4   :  { %506 = vst.msk [vmem:[%s3059_s1] sm:$0xff] %vm505_vm7, %v504_v49   ;;  %v572_v50 = vpop.permute.xlu1 %571  }
  0xa5   :  { %1541 = vst.msk [vmem:[%s3059_s1 + $0x28] sm:$0xff] %vm505_vm7, %v572_v50  }
  0xa8   :  { %v549_v51 = vpop.permute.xlu0 %548  }
  0xa9   :  { %1536 = vst.msk [vmem:[%s3059_s1 + $0x8] sm:$0xff] %vm505_vm7, %v549_v51   ;;  %v618_v52 = vpop.permute.xlu1 %617  }
  0xaa   :  { %1551 = vst.msk [vmem:[%s3059_s1 + $0x30] sm:$0xff] %vm505_vm7, %v618_v52  }
  0xad   :  { %v595_v53 = vpop.permute.xlu0 %594  }
  0xae   :  { %1546 = vst.msk [vmem:[%s3059_s1 + $0x10] sm:$0xff] %vm505_vm7, %v595_v53   ;;  %v664_v54 = vpop.permute.xlu1 %663  }
  0xaf   :  { %1561 = vst.msk [vmem:[%s3059_s1 + $0x38] sm:$0xff] %vm505_vm7, %v664_v54  }
  0xb2   :  { %v641_v55 = vpop.permute.xlu0 %640  }
  0xb3   :  { %1556 = vst.msk [vmem:[%s3059_s1 + $0x18] sm:$0xff] %vm505_vm7, %v641_v55   ;;  %v709_v56 = vpop.permute.xlu1 %708  }
  0xb4   :  { %1570 = vst.msk [vmem:[%s3059_s1 + $0x20] sm:$0xff] %vm688_vm8, %v709_v56  }
  0xb7   :  { %v687_v57 = vpop.permute.xlu0 %686  }
  0xb8   :  { %689 = vst.msk [vmem:[%s3059_s1] sm:$0xff] %vm688_vm8, %v687_v57   ;;  %v755_v58 = vpop.permute.xlu1 %754  }
  0xb9   :  { %1580 = vst.msk [vmem:[%s3059_s1 + $0x28] sm:$0xff] %vm688_vm8, %v755_v58  }
  0xbc   :  { %v732_v59 = vpop.permute.xlu0 %731  }
  0xbd   :  { %1575 = vst.msk [vmem:[%s3059_s1 + $0x8] sm:$0xff] %vm688_vm8, %v732_v59   ;;  %v801_v60 = vpop.permute.xlu1 %800  }
  0xbe   :  { %1590 = vst.msk [vmem:[%s3059_s1 + $0x30] sm:$0xff] %vm688_vm8, %v801_v60  }
  0xc1   :  { %v778_v61 = vpop.permute.xlu0 %777  }
  0xc2   :  { %1585 = vst.msk [vmem:[%s3059_s1 + $0x10] sm:$0xff] %vm688_vm8, %v778_v61   ;;  %v847_v62 = vpop.permute.xlu1 %846  }
  0xc3   :  { %1600 = vst.msk [vmem:[%s3059_s1 + $0x38] sm:$0xff] %vm688_vm8, %v847_v62  }
  0xc6   :  { %v824_v63 = vpop.permute.xlu0 %823  }
  0xc7   :  { %1595 = vst.msk [vmem:[%s3059_s1 + $0x18] sm:$0xff] %vm688_vm8, %v824_v63   ;;  %v892_v0 = vpop.permute.xlu1 %891  }
  0xc8   :  { %1609 = vst.msk [vmem:[%s3059_s1 + $0x20] sm:$0xff] %vm871_vm9, %v892_v0  }
  0xcb   :  { %v870_v1 = vpop.permute.xlu0 %869  }
  0xcc   :  { %872 = vst.msk [vmem:[%s3059_s1] sm:$0xff] %vm871_vm9, %v870_v1   ;;  %v938_v2 = vpop.permute.xlu1 %937  }
  0xcd   :  { %1619 = vst.msk [vmem:[%s3059_s1 + $0x28] sm:$0xff] %vm871_vm9, %v938_v2  }
  0xd0   :  { %v915_v3 = vpop.permute.xlu0 %914  }
  0xd1   :  { %1614 = vst.msk [vmem:[%s3059_s1 + $0x8] sm:$0xff] %vm871_vm9, %v915_v3   ;;  %v984_v4 = vpop.permute.xlu1 %983  }
  0xd2   :  { %1629 = vst.msk [vmem:[%s3059_s1 + $0x30] sm:$0xff] %vm871_vm9, %v984_v4  }
  0xd5   :  { %v961_v5 = vpop.permute.xlu0 %960  }
  0xd6   :  { %1624 = vst.msk [vmem:[%s3059_s1 + $0x10] sm:$0xff] %vm871_vm9, %v961_v5   ;;  %v1030_v6 = vpop.permute.xlu1 %1029  }
  0xd7   :  { %1639 = vst.msk [vmem:[%s3059_s1 + $0x38] sm:$0xff] %vm871_vm9, %v1030_v6  }
  0xda   :  { %v1007_v7 = vpop.permute.xlu0 %1006  }
  0xdb   :  { %1634 = vst.msk [vmem:[%s3059_s1 + $0x18] sm:$0xff] %vm871_vm9, %v1007_v7   ;;  %v1075_v8 = vpop.permute.xlu1 %1074  }
  0xdc   :  { %1648 = vst.msk [vmem:[%s3059_s1 + $0x20] sm:$0xff] %vm1054_vm10, %v1075_v8  }
  0xdf   :  { %v1053_v9 = vpop.permute.xlu0 %1052  }
  0xe0   :  { %1055 = vst.msk [vmem:[%s3059_s1] sm:$0xff] %vm1054_vm10, %v1053_v9   ;;  %v1121_v10 = vpop.permute.xlu1 %1120  }
  0xe1   :  { %1658 = vst.msk [vmem:[%s3059_s1 + $0x28] sm:$0xff] %vm1054_vm10, %v1121_v10  }
  0xe4   :  { %v1098_v11 = vpop.permute.xlu0 %1097  }
  0xe5   :  { %1653 = vst.msk [vmem:[%s3059_s1 + $0x8] sm:$0xff] %vm1054_vm10, %v1098_v11   ;;  %v1167_v12 = vpop.permute.xlu1 %1166  }
  0xe6   :  { %1668 = vst.msk [vmem:[%s3059_s1 + $0x30] sm:$0xff] %vm1054_vm10, %v1167_v12  }
  0xe9   :  { %v1144_v13 = vpop.permute.xlu0 %1143  }
  0xea   :  { %1663 = vst.msk [vmem:[%s3059_s1 + $0x10] sm:$0xff] %vm1054_vm10, %v1144_v13   ;;  %v1213_v14 = vpop.permute.xlu1 %1212  }
  0xeb   :  { %1678 = vst.msk [vmem:[%s3059_s1 + $0x38] sm:$0xff] %vm1054_vm10, %v1213_v14  }
  0xee   :  { %v1190_v15 = vpop.permute.xlu0 %1189  }
  0xef   :  { %1673 = vst.msk [vmem:[%s3059_s1 + $0x18] sm:$0xff] %vm1054_vm10, %v1190_v15   ;;  %v1258_v16 = vpop.permute.xlu1 %1257  }
  0xf0   :  { %1687 = vst.msk [vmem:[%s3059_s1 + $0x20] sm:$0xff] %vm1237_vm11, %v1258_v16  }
  0xf3   :  { %v1236_v17 = vpop.permute.xlu0 %1235  }
  0xf4   :  { %1238 = vst.msk [vmem:[%s3059_s1] sm:$0xff] %vm1237_vm11, %v1236_v17  }
  0xf5   :  { %v1304_v18 = vpop.permute.xlu1 %1303  }
  0xf6   :  { %1697 = vst.msk [vmem:[%s3059_s1 + $0x28] sm:$0xff] %vm1237_vm11, %v1304_v18  }
  0xf9   :  { %v1281_v19 = vpop.permute.xlu0 %1280  }
  0xfa   :  { %1692 = vst.msk [vmem:[%s3059_s1 + $0x8] sm:$0xff] %vm1237_vm11, %v1281_v19  }
  0xfd   :  { %v1350_v20 = vpop.permute.xlu1 %1349  }
  0xfe   :  { %1707 = vst.msk [vmem:[%s3059_s1 + $0x30] sm:$0xff] %vm1237_vm11, %v1350_v20  }
 0x101   :  { %v1327_v21 = vpop.permute.xlu0 %1326  }
 0x102   :  { %1702 = vst.msk [vmem:[%s3059_s1 + $0x10] sm:$0xff] %vm1237_vm11, %v1327_v21  }
 0x104   :  { %v1396_v22 = vpop.permute.xlu1 %1395  }
 0x105   :  { %1717 = vst.msk [vmem:[%s3059_s1 + $0x38] sm:$0xff] %vm1237_vm11, %v1396_v22  }
 0x108   :  { %v1373_v23 = vpop.permute.xlu0 %1372  }
 0x109   :  { %1712 = vst.msk [vmem:[%s3059_s1 + $0x18] sm:$0xff] %vm1237_vm11, %v1373_v23  }

// kernel: kf_forward.1
= control target key start
LH: loop header
LB: loop body
LE: loop exit
PB: predicated region body
PF: predicated region fallthrough
CT: control target
= control target key end

     0   :  { %14 = vsyncpa [#allocation8], 0  ;;  %s34_s30 = sld [smem:[#allocation0]]   ;;  %s5021_s10 = smov [#allocation2]   ;;  %v180_v32 = vlaneseq  ;;  %s8506_s0 = inlined_call_operand.vmem [shape: f32[2,16,256], index: 0, kind: input, shape index: {}]   ;;  %s8507_s1 = inlined_call_operand.vmem [shape: f32[9,254], index: 1, kind: input, shape index: {}]   ;;  %s8508_s2 = inlined_call_operand.vmem [shape: f32[1,254], index: 2, kind: input, shape index: {}]   ;;  %s8509_s3 = inlined_call_operand.vmem [shape: f32[36,204], index: 3, kind: input, shape index: {}]   ;;  %s8510_s4 = inlined_call_operand.vmem [shape: f32[1,48], index: 4, kind: input, shape index: {}]   ;;  %s8511_s5 = inlined_call_operand.hbm [shape: bf16[576,512], index: 5, kind: input, shape index: {}]   ;;  %s8512_s6 = inlined_call_operand.vmem [shape: f32[1,512], index: 6, kind: input, shape index: {}]   ;;  %s8513_s7 = inlined_call_operand.vmem [shape: bf16[512,128], index: 7, kind: input, shape index: {}]   ;;  %s8514_s8 = inlined_call_operand.vmem [shape: f32[1,128], index: 8, kind: input, shape index: {}]   ;;  %s8515_s9 = inlined_call_operand.hbm [shape: f32[2,128], index: 9, kind: output, shape index: {}]  }
   0x1   :  { %s42_s11 = sshll.u32 %s5021_s10, 4  ;;  %s5022_s12 = smov 512   ;;  %s43_s11 = int_to_ptr.vmem [resolvable:$true] %s42_s11 }
   0x2   :  { %46 = sst [smem:[#allocation10]] %s5022_s12  ;;  %s5023_s13 = smov 4   ;;  %v5274_v33 = vshrl.u32 %v180_v32, 7 }
   0x3   :  { %48 = sst [smem:[#allocation10 + $0x1]] %s5022_s12  ;;  %s8597_s14 = smov 64  }
   0x4   :  { %50 = sst [smem:[#allocation10 + $0x2]] %s5023_s13  ;;  %s5025_s16 = smov 128   ;;  %v5280_v35 = vsub.s32 0, %v5274_v33  ;;  %v5283_v36 = vsub.s32 1, %v5274_v33 }
   0x5   :  { %52 = sst [smem:[#allocation10 + $0x3]] %s8597_s14  ;;  %s5026_s18 = smov 2  }
   0x6   :  { %s4836_s15 = sshll.u32 %s34_s30, 26  ;;  %54 = sst [smem:[#allocation10 + $0x4]] %s5025_s16 }
   0x7   :  { %s4837_s17 = sadd.s32 134217728, %s4836_s15  ;;  %56 = sst [smem:[#allocation10 + $0x5]] %s5026_s18 }
   0x8   :  { %s5027_s19 = smov 256   ;;  %60 = sst [smem:[#allocation10 + $0x7]] %s8597_s14 }
   0x9   :  { %58 = sst [smem:[#allocation10 + $0x6]] %s5027_s19  ;;  %s5028_s20 = smov [#allocation6]  }
   0xa   :  { %62 = sst [smem:[#allocation10 + $0x8]] %s5023_s13  ;;  %s5029_s21 = smov [#allocation9]  }
   0xb   :  { %64 = dma.general %s8511_s5, 18432, %s43_s11, %s5028_s20, %s5029_s21, [#allocation10], %s4837_s17, 0  }
   0xc   :  { %v5117_v0 = vld [vmem:[%s8513_s7] sm:$0xff]  ;;  %v5122_v1 = vld [vmem:[%s8513_s7 + $0x8] sm:$0xff]  ;;  %v5127_v2 = vld [vmem:[%s8513_s7 + $0x10] sm:$0xff]  ;;  %8686 = vst [vmem:[#allocation47_spill] sm:$0xff] %v5274_v33  ;;  %s5030_s11 = smov 1  }
   0xd   :  { %8654 = vst [vmem:[#allocation15_spill] sm:$0xff] %v5117_v0  ;;  %8655 = vst [vmem:[#allocation16_spill] sm:$0xff] %v5122_v1  ;;  %v5132_v3 = vld [vmem:[%s8513_s7 + $0x18] sm:$0xff]  ;;  %v5137_v4 = vld [vmem:[%s8513_s7 + $0x20] sm:$0xff] }
   0xe   :  { %8656 = vst [vmem:[#allocation17_spill] sm:$0xff] %v5127_v2  ;;  %8657 = vst [vmem:[#allocation18_spill] sm:$0xff] %v5132_v3  ;;  %v5142_v5 = vld [vmem:[%s8513_s7 + $0x28] sm:$0xff]  ;;  %v5147_v6 = vld [vmem:[%s8513_s7 + $0x30] sm:$0xff] }
   0xf   :  { %8658 = vst [vmem:[#allocation19_spill] sm:$0xff] %v5137_v4  ;;  %8659 = vst [vmem:[#allocation20_spill] sm:$0xff] %v5142_v5  ;;  %v5152_v7 = vld [vmem:[%s8513_s7 + $0x38] sm:$0xff]  ;;  %v5157_v8 = vld [vmem:[%s8513_s7 + $0x40] sm:$0xff] }
  0x10   :  { %8660 = vst [vmem:[#allocation21_spill] sm:$0xff] %v5147_v6  ;;  %8661 = vst [vmem:[#allocation22_spill] sm:$0xff] %v5152_v7  ;;  %v5162_v9 = vld [vmem:[%s8513_s7 + $0x48] sm:$0xff]  ;;  %v5167_v10 = vld [vmem:[%s8513_s7 + $0x50] sm:$0xff] }
  0x11   :  { %8662 = vst [vmem:[#allocation23_spill] sm:$0xff] %v5157_v8  ;;  %8663 = vst [vmem:[#allocation24_spill] sm:$0xff] %v5162_v9  ;;  %v5172_v11 = vld [vmem:[%s8513_s7 + $0x58] sm:$0xff]  ;;  %v5177_v12 = vld [vmem:[%s8513_s7 + $0x60] sm:$0xff] }
  0x12   :  { %8664 = vst [vmem:[#allocation25_spill] sm:$0xff] %v5167_v10  ;;  %8665 = vst [vmem:[#allocation26_spill] sm:$0xff] %v5172_v11  ;;  %v5182_v13 = vld [vmem:[%s8513_s7 + $0x68] sm:$0xff]  ;;  %v5187_v14 = vld [vmem:[%s8513_s7 + $0x70] sm:$0xff] }
  0x13   :  { %8666 = vst [vmem:[#allocation27_spill] sm:$0xff] %v5177_v12  ;;  %8667 = vst [vmem:[#allocation28_spill] sm:$0xff] %v5182_v13  ;;  %v5192_v15 = vld [vmem:[%s8513_s7 + $0x78] sm:$0xff]  ;;  %v5197_v16 = vld [vmem:[%s8513_s7 + $0x80] sm:$0xff] }
  0x14   :  { %8668 = vst [vmem:[#allocation29_spill] sm:$0xff] %v5187_v14  ;;  %8669 = vst [vmem:[#allocation30_spill] sm:$0xff] %v5192_v15  ;;  %v5202_v17 = vld [vmem:[%s8513_s7 + $0x88] sm:$0xff]  ;;  %v5207_v18 = vld [vmem:[%s8513_s7 + $0x90] sm:$0xff] }
  0x15   :  { %8670 = vst [vmem:[#allocation31_spill] sm:$0xff] %v5197_v16  ;;  %8671 = vst [vmem:[#allocation32_spill] sm:$0xff] %v5202_v17  ;;  %v5212_v19 = vld [vmem:[%s8513_s7 + $0x98] sm:$0xff]  ;;  %v5217_v20 = vld [vmem:[%s8513_s7 + $0xa0] sm:$0xff] }
  0x16   :  { %8672 = vst [vmem:[#allocation33_spill] sm:$0xff] %v5207_v18  ;;  %8673 = vst [vmem:[#allocation34_spill] sm:$0xff] %v5212_v19  ;;  %v5222_v21 = vld [vmem:[%s8513_s7 + $0xa8] sm:$0xff]  ;;  %v5227_v22 = vld [vmem:[%s8513_s7 + $0xb0] sm:$0xff] }
  0x17   :  { %8674 = vst [vmem:[#allocation35_spill] sm:$0xff] %v5217_v20  ;;  %8675 = vst [vmem:[#allocation36_spill] sm:$0xff] %v5222_v21  ;;  %v5232_v23 = vld [vmem:[%s8513_s7 + $0xb8] sm:$0xff]  ;;  %v5237_v24 = vld [vmem:[%s8513_s7 + $0xc0] sm:$0xff] }
  0x18   :  { %8676 = vst [vmem:[#allocation37_spill] sm:$0xff] %v5227_v22  ;;  %8677 = vst [vmem:[#allocation38_spill] sm:$0xff] %v5232_v23  ;;  %v5242_v25 = vld [vmem:[%s8513_s7 + $0xc8] sm:$0xff]  ;;  %v5247_v26 = vld [vmem:[%s8513_s7 + $0xd0] sm:$0xff] }
  0x19   :  { %8678 = vst [vmem:[#allocation39_spill] sm:$0xff] %v5237_v24  ;;  %8679 = vst [vmem:[#allocation40_spill] sm:$0xff] %v5242_v25  ;;  %v5252_v27 = vld [vmem:[%s8513_s7 + $0xd8] sm:$0xff]  ;;  %v5257_v28 = vld [vmem:[%s8513_s7 + $0xe0] sm:$0xff] }
  0x1a   :  { %8680 = vst [vmem:[#allocation41_spill] sm:$0xff] %v5247_v26  ;;  %8681 = vst [vmem:[#allocation42_spill] sm:$0xff] %v5252_v27  ;;  %v5262_v29 = vld [vmem:[%s8513_s7 + $0xe8] sm:$0xff]  ;;  %v5267_v30 = vld [vmem:[%s8513_s7 + $0xf0] sm:$0xff] }
  0x1b   :  { %8682 = vst [vmem:[#allocation43_spill] sm:$0xff] %v5257_v28  ;;  %8683 = vst [vmem:[#allocation44_spill] sm:$0xff] %v5262_v29  ;;  %v5272_v31 = vld [vmem:[%s8513_s7 + $0xf8] sm:$0xff]  ;;  %v4838_v34 = vld [vmem:[%s8507_s1 + $0x1] ss:$8 sm:$0x3] }
  0x1c   :  { %8684 = vst [vmem:[#allocation45_spill] sm:$0xff] %v5267_v30  ;;  %8685 = vst [vmem:[#allocation46_spill] sm:$0xff] %v5272_v31  ;;  %v4839_v37 = vld [vmem:[%s8507_s1 + $0x2] ss:$8 sm:$0x3]  ;;  %v212_v38 = vrot.slane %v4838_v34, %v5280_v35  ;;  %v216_v41 = vrot.slane %v4838_v34, %v5283_v36 }
  0x1d   :  { %8687 = vst [vmem:[#allocation48_spill] sm:$0xff] %v5280_v35  ;;  %8688 = vst [vmem:[#allocation49_spill] sm:$0xff] %v5283_v36  ;;  %v288_v39 = vrot.slane %v4839_v37, %v5283_v36  ;;  %v4841_v40 = vld [vmem:[%s8507_s1 + $0x4] ss:$8 sm:$0x3] }
  0x1e   :  { %217 = vrot.lane.b32.xlu0 %v212_v38, %s5030_s11  ;;  %v418_v42 = vrot.slane %v4841_v40, %v5283_v36 }
  0x1f   :  { %291 = vrot.lane.b32.xlu1 %v288_v39, %s5026_s18 }
  0x20   :  { %169 = vsyncadd [#allocation6 + $0x1], 4096  ;;  %v4842_v43 = vld [vmem:[%s8507_s1 + $0x5] ss:$8 sm:$0x3]  ;;  %v284_v44 = vrot.slane %v4839_v37, %v5280_v35  ;;  %v414_v47 = vrot.slane %v4841_v40, %v5280_v35  ;;  %s5031_s26 = smov 16  }
  0x21   :  { %v500_v45 = vrot.slane %v4842_v43, %v5283_v36  ;;  %v4844_v46 = vld [vmem:[%s8507_s1 + $0x7] ss:$8 sm:$0x3]  ;;  %v4845_v49 = vld [vmem:[%s8507_s1 + $0x10] ss:$8 sm:$0x3]  ;;  %v496_v50 = vrot.slane %v4842_v43, %v5280_v35 }
  0x22   :  { %219 = vrot.lane.b32.xlu0 %v216_v41, %s5030_s11  ;;  %v640_v48 = vrot.slane %v4844_v46, %v5283_v36  ;;  %v722_v51 = vrot.slane %v4845_v49, %v5283_v36  ;;  %v4846_v52 = vld [vmem:[%s8509_s3 + $0x1] ss:$8 sm:$0x3]  ;;  %v636_v53 = vrot.slane %v4844_v46, %v5280_v35  ;;  %v4847_v55 = vld [vmem:[%s8509_s3 + $0x2] ss:$8 sm:$0x3]  ;;  %v718_v56 = vrot.slane %v4845_v49, %v5280_v35 }
  0x23   :  { %421 = vrot.lane.b32.xlu1 %v418_v42, %s5030_s11  ;;  %v860_v54 = vrot.slane %v4846_v52, %v5283_v36  ;;  %v930_v57 = vrot.slane %v4847_v55, %v5283_v36  ;;  %v4848_v58 = vld [vmem:[%s8509_s3 + $0x11] ss:$8 sm:$0x3]  ;;  %v856_v59 = vrot.slane %v4846_v52, %v5280_v35  ;;  %v926_v61 = vrot.slane %v4847_v55, %v5280_v35  ;;  %v5353_v32 = vld [vmem:[%s8506_s0] sm:$0xff]  ;;  %s5032_s5 = smov 127   ;;  %v5367_v40 = vld [vmem:[%s8506_s0 + $0x8] sm:$0xff] }
  0x24   :  { %v1000_v60 = vrot.slane %v4848_v58, %v5283_v36  ;;  %v996_v62 = vrot.slane %v4848_v58, %v5280_v35  ;;  %v5348_v63 = vld [vmem:[%s8506_s0 + $0x10] sm:$0xff]  ;;  %vm221_vm0 = vcmask 7168   ;;  %v5360_v39 = vld [vmem:[%s8506_s0 + $0x20] sm:$0xff]  ;;  %v5381_v46 = vld [vmem:[%s8506_s0 + $0x18] sm:$0xff]  ;;  %vm293_vm1 = vcmask 15360   ;;  %s5033_s22 = smov 126  }
  0x25   :  { %v5400_v55 = vld [vmem:[%s8506_s0 + $0x38] sm:$0xff]  ;;  %vm379_vm2 = vcmask 1046528   ;;  %vm601_vm3 = vcmask 1045504   ;;  %s5034_s29 = smov 17   ;;  %s5035_s7 = smov 18   ;;  %vm257_vm4 = vcmask 1039360  }
  0x26   :  { %289 = vrot.lane.b32.xlu0 %v284_v44, %s5026_s18  ;;  %s5036_s15 = smov 32   ;;  %s5037_s19 = smov 33   ;;  %v4840_v4 = vld [vmem:[%s8507_s1 + $0x3] ss:$8 sm:$0x3]  ;;  %vm329_vm5 = vcmask 1031168  }
  0x27   :  { %503 = vrot.lane.b32.xlu1 %v500_v45, %s5026_s18  ;;  %v5375_v45 = vld [vmem:[%s8506_s0 + $0x30] sm:$0xff]  ;;  %s5038_s20 = smov 34   ;;  %v178_v12 = vld [vmem:[%s8507_s1] ss:$8 sm:$0x3]  ;;  %v356_v3 = vrot.slane %v4840_v4, %v5280_v35  ;;  %v360_v27 = vrot.slane %v4840_v4, %v5283_v36  ;;  %vm1005_vm6 = vcmask 130048  }
  0x28   :  { %v187_v11 = vrot.slane %v178_v12, %v5283_v36  ;;  %v183_v2 = vrot.slane %v178_v12, %v5280_v35  ;;  %v4843_v26 = vld [vmem:[%s8507_s1 + $0x6] ss:$8 sm:$0x3]  ;;  %vm1077_vm7 = vcmask 138240   ;;  %s5040_s30 = smov 111   ;;  %vm1149_vm8 = vcmask 146432  }
  0x29   :  { %v5792_v17 = vmul.f32 %v356_v3, %v5348_v63  ;;  %v5795_v1 = vmul.f32 %v360_v27, %v5381_v46  ;;  %v363_v4 = vmul.f32 %v356_v3, %v5353_v32  ;;  %v364_v25 = vmul.f32 %v360_v27, %v5367_v40  ;;  %s5041_s10 = smov 110   ;;  %s5042_s12 = smov 96  }
  0x2a   :  { %419 = vrot.lane.b32.xlu0 %v414_v47, %s5030_s11  ;;  %v191_v9 = vmul.f32 %v187_v11, %v5367_v40  ;;  %v5801_v12 = vrot.slane %v4843_v26, %v5280_v35  ;;  %v582_v16 = vrot.slane %v4843_v26, %v5283_v36  ;;  %v190_v24 = vmul.f32 %v183_v2, %v5353_v32  ;;  %s5043_s13 = smov 95   ;;  %s5044_s16 = smov 94  }
  0x2b   :  { %643 = vrot.lane.b32.xlu1 %v640_v48, %s5030_s11  ;;  %v192_v8 = vmul.f32 %v183_v2, %v5348_v63  ;;  %v193_v33 = vmul.f32 %v187_v11, %v5381_v46  ;;  %v5820_v26 = vmul.f32 %v360_v27, %v5400_v55  ;;  %vm1221_vm9 = vcmask 261120   ;;  %s5045_s23 = smov 48   ;;  %s5046_s24 = smov 80  }
  0x2c   :  { %vm1293_vm10 = vcmask 269312   ;;  %vm1365_vm11 = vcmask 277504   ;;  %vm1437_vm12 = vcmask 392192   ;;  %s5047_s27 = smov 49   ;;  %vm1509_vm13 = vcmask 400384   ;;  %s5048_s1 = smov 79  }
  0x2d   :  { %s5049_s21 = smov 50   ;;  %vm1581_vm14 = vcmask 408576   ;;  %vm1041_vm15 = vcmask 916480  }
  0x2e   :  { %501 = vrot.lane.b32.xlu0 %v496_v50, %s5026_s18 }
  0x2f   :  { %725 = vrot.lane.b32.xlu1 %v722_v51, %s5026_s18  ;;  %v5391_v51 = vld [vmem:[%s8506_s0 + $0x28] sm:$0xff]  ;;  %s5050_s0 = smov 78  }
  0x32   :  { %641 = vrot.lane.b32.xlu0 %v636_v53, %s5030_s11 }
  0x33   :  { %863 = vrot.lane.b32.xlu1 %v860_v54, %s5030_s11 }
  0x36   :  { %723 = vrot.lane.b32.xlu0 %v718_v56, %s5026_s18 }
  0x37   :  { %933 = vrot.lane.b32.xlu1 %v930_v57, %s5026_s18 }
  0x3a   :  { %861 = vrot.lane.b32.xlu0 %v856_v59, %s5030_s11 }
  0x3b   :  { %1003 = vrot.lane.b32.xlu1 %v1000_v60, %s5031_s26 }
  0x3e   :  { %931 = vrot.lane.b32.xlu0 %v926_v61, %s5026_s18 }
  0x42   :  { %1001 = vrot.lane.b32.xlu0 %v996_v62, %s5031_s26 }
  0x90   :  { %v218_v34 = vpop.permute.xlu0 %217 }
  0x91   :  { %v227_v37 = vmul.f32 %v218_v34, %v5348_v63  ;;  %v225_v38 = vmul.f32 %v218_v34, %v5353_v32  ;;  %v229_v43 = vmul.f32 %v218_v34, %v5360_v39  ;;  %v231_v48 = vmul.f32 %v218_v34, %v5375_v45  ;;  %v292_v53 = vpop.permute.xlu1 %291 }
  0x93   :  { %245 = vrot.lane.b32.xlu0 %v227_v37, %s5032_s5  ;;  %241 = vrot.lane.b32.xlu1 %v225_v38, %s5032_s5 }
  0x94   :  { %v220_v41 = vpop.permute.xlu0 %219 }
  0x95   :  { %v222_v42 = vsel %vm221_vm0, %v218_v34, %v220_v41  ;;  %v422_v37 = vpop.permute.xlu1 %421 }
  0x96   :  { %v226_v44 = vmul.f32 %v222_v42, %v5367_v40  ;;  %v228_v49 = vmul.f32 %v222_v42, %v5381_v46  ;;  %v230_v52 = vmul.f32 %v222_v42, %v5391_v51  ;;  %v232_v57 = vmul.f32 %v222_v42, %v5400_v55 }
  0x97   :  { %249 = vrot.lane.b32.xlu0 %v229_v43, %s5032_s5 }
  0x98   :  { %243 = vrot.lane.b32.xlu1 %v226_v44, %s5032_s5  ;;  %v290_v47 = vpop.permute.xlu0 %289 }
  0x99   :  { %v297_v50 = vmul.f32 %v290_v47, %v5353_v32  ;;  %v299_v54 = vmul.f32 %v290_v47, %v5348_v63  ;;  %v294_v56 = vsel %vm293_vm1, %v290_v47, %v292_v53  ;;  %v301_v58 = vmul.f32 %v290_v47, %v5360_v39 }
  0x9a   :  { %v298_v59 = vmul.f32 %v294_v56, %v5367_v40  ;;  %v303_v62 = vmul.f32 %v290_v47, %v5375_v45  ;;  %v300_v34 = vmul.f32 %v294_v56, %v5381_v46  ;;  %v302_v44 = vmul.f32 %v294_v56, %v5391_v51 }
  0x9b   :  { %253 = vrot.lane.b32.xlu0 %v231_v48, %s5032_s5 }
  0x9c   :  { %247 = vrot.lane.b32.xlu1 %v228_v49, %s5032_s5  ;;  %v5409_v60 = vpop.permute.xlu0 %419 }
  0x9d   :  { %v5414_v61 = vmul.f32 %v5409_v60, %v5348_v63  ;;  %v5423_v41 = vmul.f32 %v5409_v60, %v5375_v45  ;;  %v5430_v43 = vsel %vm221_vm0, %v5409_v60, %v422_v37  ;;  %v430_v21 = vmul.f32 %v5409_v60, %v5360_v39 }
  0x9e   :  { %v5444_v49 = vmul.f32 %v5430_v43, %v5381_v46  ;;  %v431_v13 = vmul.f32 %v5430_v43, %v5391_v51 }
  0x9f   :  { %313 = vrot.lane.b32.xlu0 %v297_v50, %s5033_s22  ;;  %v8519_v38 = vrot.slane %v5414_v61, 1  ;;  %v8518_v47 = vrot.slane %v5423_v41, 1  ;;  %v304_v50 = vmul.f32 %v294_v56, %v5400_v55  ;;  %v448_v29 = vrot.slane %v430_v21, 1 }
  0xa0   :  { %251 = vrot.lane.b32.xlu1 %v230_v52, %s5032_s5  ;;  %v5426_v42 = vpop.permute.xlu0 %501  ;;  %v504_v52 = vpop.permute.xlu1 %503 }
  0xa1   :  { %v5439_v48 = vmul.f32 %v5426_v42, %v5348_v63  ;;  %v5461_v56 = vsel %vm293_vm1, %v5426_v42, %v504_v52 }
  0xa2   :  { %v5480_v37 = vmul.f32 %v5461_v56, %v5381_v46 }
  0xa3   :  { %317 = vrot.lane.b32.xlu0 %v299_v54, %s5033_s22  ;;  %v8516_v53 = vrot.slane %v5439_v48, 1  ;;  %v5453_v54 = vmul.f32 %v5426_v42, %v5375_v45 }
  0xa4   :  { %255 = vrot.lane.b32.xlu1 %v232_v57, %s5032_s5  ;;  %v8517_v57 = vrot.slane %v5444_v49, 1 }
  0xa7   :  { %321 = vrot.lane.b32.xlu0 %v301_v58, %s5033_s22  ;;  %v5457_v58 = vpop.permute.xlu0 %641 }
  0xa8   :  { %315 = vrot.lane.b32.xlu1 %v298_v59, %s5033_s22  ;;  %v5465_v59 = vmul.f32 %v5430_v43, %v5400_v55 }
  0xab   :  { %325 = vrot.lane.b32.xlu0 %v303_v62, %s5033_s22  ;;  %v8520_v62 = vrot.slane %v5453_v54, 1 }
  0xac   :  { %319 = vrot.lane.b32.xlu1 %v300_v34, %s5033_s22  ;;  %v5473_v34 = vmul.f32 %v5457_v58, %v5348_v63 }
  0xae   :  { %v8522_v52 = vrot.slane %v5473_v34, 2 }
  0xaf   :  { %458 = vrot.lane.b32.xlu0 %v8519_v38, %s5032_s5 }
  0xb0   :  { %323 = vrot.lane.b32.xlu1 %v302_v44, %s5033_s22  ;;  %v8521_v44 = vrot.slane %v5465_v59, 1 }
  0xb3   :  { %466 = vrot.lane.b32.xlu0 %v8518_v47, %s5032_s5  ;;  %v5495_v47 = vpop.permute.xlu0 %723 }
  0xb4   :  { %327 = vrot.lane.b32.xlu1 %v304_v50, %s5033_s22  ;;  %v644_v50 = vpop.permute.xlu1 %643  ;;  %v5527_v15 = vmul.f32 %v5495_v47, %v5375_v45 }
  0xb5   :  { %v5499_v38 = vsel %vm221_vm0, %v5457_v58, %v644_v50 }
  0xb6   :  { %v5518_v50 = vmul.f32 %v5499_v38, %v5381_v46  ;;  %v5539_v6 = vmul.f32 %v5499_v38, %v5400_v55  ;;  %v8528_v30 = vrot.slane %v5527_v15, 2 }
  0xb7   :  { %540 = vrot.lane.b32.xlu0 %v8516_v53, %s5033_s22  ;;  %v5489_v53 = vmul.f32 %v5457_v58, %v5375_v45 }
  0xb8   :  { %460 = vrot.lane.b32.xlu1 %v8517_v57, %s5032_s5  ;;  %v8523_v57 = vrot.slane %v5480_v37, 1  ;;  %v726_v31 = vpop.permute.xlu1 %725 }
  0xb9   :  { %v8524_v23 = vrot.slane %v5489_v53, 2  ;;  %v5535_v22 = vsel %vm293_vm1, %v5495_v47, %v726_v31 }
  0xba   :  { %v5552_v31 = vmul.f32 %v5535_v22, %v5381_v46 }
  0xbb   :  { %548 = vrot.lane.b32.xlu0 %v8520_v62, %s5033_s22  ;;  %v5503_v62 = vmul.f32 %v5461_v56, %v5400_v55 }
  0xbc   :  { %468 = vrot.lane.b32.xlu1 %v8521_v44, %s5032_s5  ;;  %v5511_v44 = vmul.f32 %v5495_v47, %v5348_v63 }
  0xbd   :  { %v8525_v7 = vrot.slane %v5503_v62, 1 }
  0xbf   :  { %680 = vrot.lane.b32.xlu0 %v8522_v52, %s5032_s5  ;;  %v8527_v52 = vrot.slane %v5511_v44, 2 }
  0xc0   :  { %542 = vrot.lane.b32.xlu1 %v8523_v57, %s5033_s22  ;;  %v8526_v57 = vrot.slane %v5518_v50, 2 }
  0xc3   :  { %688 = vrot.lane.b32.xlu0 %v8524_v23, %s5032_s5  ;;  %v426_v23 = vmul.f32 %v5409_v60, %v5353_v32  ;;  %v508_v60 = vmul.f32 %v5426_v42, %v5353_v32 }
  0xc4   :  { %550 = vrot.lane.b32.xlu1 %v8525_v7, %s5033_s22  ;;  %v8529_v7 = vrot.slane %v5539_v6, 2 }
  0xc5   :  { %v442_v14 = vrot.slane %v426_v23, 1  ;;  %v5569_v23 = vmul.f32 %v5535_v22, %v5400_v55 }
  0xc7   :  { %762 = vrot.lane.b32.xlu0 %v8527_v52, %s5033_s22  ;;  %v8689_v52 = vrot.slane %v5414_v61, 1  ;;  %v8690_v61 = vrot.slane %v5423_v41, 1  ;;  %v8530_v21 = vrot.slane %v5569_v23, 2  ;;  %v8691_v41 = vrot.slane %v5439_v48, 1 }
  0xc8   :  { %682 = vrot.lane.b32.xlu1 %v8526_v57, %s5032_s5  ;;  %v750_v57 = vrot.slane %v5552_v31, 2  ;;  %v8693_v48 = vrot.slane %v5453_v54, 1  ;;  %v8695_v54 = vrot.slane %v5473_v34, 2  ;;  %v8697_v34 = vrot.slane %v5489_v53, 2 }
  0xc9   :  { %v444_v5 = vsel %vm379_vm2, %v442_v14, %v8689_v52  ;;  %v450_v14 = vsel %vm379_vm2, %v448_v29, %v8690_v61  ;;  %v524_v52 = vrot.slane %v508_v60, 1  ;;  %v648_v60 = vmul.f32 %v5457_v58, %v5353_v32 }
  0xca   :  { %v8699_v53 = vrot.slane %v5511_v44, 2  ;;  %v8701_v44 = vrot.slane %v5527_v15, 2  ;;  %v4850_v15 = vld [vmem:[%s8509_s3 + $0x13] ss:$8 sm:$0x3] }
  0xcb   :  { %770 = vrot.lane.b32.xlu0 %v8528_v30, %s5033_s22  ;;  %v427_v30 = vmul.f32 %v5430_v43, %v5367_v40  ;;  %v526_v29 = vsel %vm379_vm2, %v524_v52, %v8691_v41  ;;  %v8692_v43 = vrot.slane %v5444_v49, 1  ;;  %v652_v41 = vmul.f32 %v5457_v58, %v5360_v39 }
  0xcc   :  { %690 = vrot.lane.b32.xlu1 %v8529_v7, %s5032_s5  ;;  %v512_v7 = vmul.f32 %v5426_v42, %v5360_v39  ;;  %v509_v42 = vmul.f32 %v5461_v56, %v5367_v40  ;;  %v8694_v49 = vrot.slane %v5465_v59, 1  ;;  %v730_v58 = vmul.f32 %v5495_v47, %v5353_v32 }
  0xcd   :  { %v8696_v59 = vrot.slane %v5480_v37, 1  ;;  %v8698_v37 = vrot.slane %v5503_v62, 1 }
  0xce   :  { %v530_v61 = vrot.slane %v512_v7, 1  ;;  %v664_v7 = vrot.slane %v648_v60, 2 }
  0xcf   :  { %454 = vrot.lane.b32.xlu0 %v444_v5, %s5032_s5  ;;  %v445_v5 = vrot.slane %v427_v30, 1 }
  0xd0   :  { %764 = vrot.lane.b32.xlu1 %v750_v57, %s5033_s22  ;;  %v532_v52 = vsel %vm379_vm2, %v530_v61, %v8693_v48  ;;  %v670_v61 = vrot.slane %v652_v41, 2  ;;  %v653_v48 = vmul.f32 %v5499_v38, %v5391_v51 }
  0xd1   :  { %v447_v30 = vsel %vm379_vm2, %v445_v5, %v8692_v43 }
  0xd2   :  { %v672_v43 = vsel %vm601_vm3, %v670_v61, %v8697_v34  ;;  %v673_v62 = vrot.slane %v653_v48, 2  ;;  %v5680_v34 = vpop.permute.xlu1 %863  ;;  %v4853_v48 = vld [vmem:[%s8509_s3 + $0x24] ss:$8 sm:$0x3] }
  0xd3   :  { %462 = vrot.lane.b32.xlu0 %v450_v14, %s5032_s5  ;;  %v451_v14 = vrot.slane %v431_v13, 1  ;;  %v527_v13 = vrot.slane %v509_v42, 1  ;;  %8704 = vst [vmem:[#allocation50_spill] sm:$0xff] %v5680_v34  ;;  %v380_v34 = vrot.slane %v363_v4, 1  ;;  %v196_v4 = vmul.f32 %v183_v2, %v5375_v45 }
  0xd4   :  { %772 = vrot.lane.b32.xlu1 %v8530_v21, %s5033_s22  ;;  %v513_v21 = vmul.f32 %v5461_v56, %v5391_v51  ;;  %v649_v56 = vmul.f32 %v5499_v38, %v5367_v40  ;;  %v8700_v38 = vrot.slane %v5518_v50, 2  ;;  %v8702_v50 = vrot.slane %v5539_v6, 2 }
  0xd5   :  { %v453_v5 = vsel %vm379_vm2, %v451_v14, %v8694_v49  ;;  %v529_v60 = vsel %vm379_vm2, %v527_v13, %v8696_v59  ;;  %v734_v14 = vmul.f32 %v5495_v47, %v5360_v39  ;;  %v731_v47 = vmul.f32 %v5535_v22, %v5367_v40  ;;  %v4851_v59 = vld [vmem:[%s8509_s3 + $0x22] ss:$8 sm:$0x3] }
  0xd6   :  { %v533_v42 = vrot.slane %v513_v21, 1  ;;  %v667_v21 = vrot.slane %v649_v56, 2  ;;  %v1140_v6 = vrot.slane %v4850_v15, %v5280_v35  ;;  %v1212_v31 = vrot.slane %v4851_v59, %v5280_v35 }
  0xd7   :  { %536 = vrot.lane.b32.xlu0 %v526_v29, %s5033_s22  ;;  %v666_v29 = vsel %vm601_vm3, %v664_v7, %v8695_v54  ;;  %v752_v41 = vrot.slane %v734_v14, 2  ;;  %v735_v54 = vmul.f32 %v5535_v22, %v5391_v51  ;;  %v1144_v14 = vrot.slane %v4850_v15, %v5283_v36 }
  0xd8   :  { %456 = vrot.lane.b32.xlu1 %v447_v30, %s5032_s5  ;;  %v746_v30 = vrot.slane %v730_v58, 2  ;;  %v669_v49 = vsel %vm601_vm3, %v667_v21, %v8700_v38  ;;  %v749_v58 = vrot.slane %v731_v47, 2  ;;  %v1356_v21 = vrot.slane %v4853_v48, %v5280_v35 }
  0xd9   :  { %v754_v13 = vsel %vm601_vm3, %v752_v41, %v8701_v44  ;;  %v755_v56 = vrot.slane %v735_v54, 2  ;;  %v1360_v38 = vrot.slane %v4853_v48, %v5283_v36 }
  0xda   :  { %v748_v7 = vsel %vm601_vm3, %v746_v30, %v8699_v53  ;;  %v751_v22 = vsel %vm601_vm3, %v749_v58, %v750_v57  ;;  %v5682_v57 = vpop.permute.xlu0 %861  ;;  %v4852_v30 = vld [vmem:[%s8509_s3 + $0x23] ss:$8 sm:$0x3]  ;;  %v1216_v53 = vrot.slane %v4851_v59, %v5283_v36 }
  0xdb   :  { %544 = vrot.lane.b32.xlu0 %v532_v52, %s5033_s22  ;;  %v535_v52 = vsel %vm379_vm2, %v533_v42, %v8698_v37  ;;  %8705 = vst [vmem:[#allocation51_spill] sm:$0xff] %v5682_v57  ;;  %v5696_v37 = vpop.permute.xlu1 %933  ;;  %v1288_v47 = vrot.slane %v4852_v30, %v5283_v36  ;;  %v5817_v57 = vmul.f32 %v356_v3, %v5375_v45 }
  0xdc   :  { %464 = vrot.lane.b32.xlu1 %v453_v5, %s5032_s5  ;;  %v4849_v5 = vld [vmem:[%s8509_s3 + $0x12] ss:$8 sm:$0x3]  ;;  %8706 = vst [vmem:[#allocation52_spill] sm:$0xff] %v5696_v37  ;;  %v384_v37 = vrot.slane %v5795_v1, 1  ;;  %v5830_v1 = vmul.f32 %v582_v16, %v5381_v46  ;;  %v197_v46 = vmul.f32 %v187_v11, %v5400_v55 }
  0xdd   :  { %v1068_v61 = vrot.slane %v4849_v5, %v5280_v35 }
  0xdf   :  { %676 = vrot.lane.b32.xlu0 %v666_v29, %s5032_s5  ;;  %v675_v29 = vsel %vm601_vm3, %v673_v62, %v8702_v50 }
  0xe0   :  { %538 = vrot.lane.b32.xlu1 %v529_v60, %s5033_s22  ;;  %v8703_v60 = vrot.slane %v5569_v23, 2  ;;  %v1284_v23 = vrot.slane %v4852_v30, %v5280_v35  ;;  %v195_v35 = vmul.f32 %v187_v11, %v5391_v51  ;;  %v606_v11 = vrot.slane %v5830_v1, 2 }
  0xe2   :  { %v757_v42 = vsel %vm601_vm3, %v755_v56, %v8703_v60 }
  0xe3   :  { %684 = vrot.lane.b32.xlu0 %v672_v43, %s5032_s5  ;;  %v1072_v43 = vrot.slane %v4849_v5, %v5283_v36  ;;  %v586_v36 = vmul.f32 %v582_v16, %v5367_v40  ;;  %v8721_v40 = vrot.slane %v5817_v57, 1 }
  0xe4   :  { %546 = vrot.lane.b32.xlu1 %v535_v52, %s5033_s22  ;;  %v5698_v52 = vpop.permute.xlu0 %931 }
  0xe5   :  { %8707 = vst [vmem:[#allocation53_spill] sm:$0xff] %v5698_v52 }
  0xe7   :  { %758 = vrot.lane.b32.xlu0 %v748_v7, %s5033_s22  ;;  %v5705_v7 = vpop.permute.xlu1 %1003 }
  0xe8   :  { %678 = vrot.lane.b32.xlu1 %v669_v49, %s5032_s5  ;;  %8708 = vst [vmem:[#allocation54_spill] sm:$0xff] %v5705_v7  ;;  %v5707_v41 = vpop.permute.xlu0 %1001 }
  0xe9   :  { %8709 = vst [vmem:[#allocation55_spill] sm:$0xff] %v5707_v41  ;;  %v5810_v41 = vmul.f32 %v183_v2, %v5360_v39  ;;  %v8720_v2 = vrot.slane %v5792_v17, 1 }
  0xeb   :  { %766 = vrot.lane.b32.xlu0 %v754_v13, %s5033_s22 }
  0xec   :  { %686 = vrot.lane.b32.xlu1 %v675_v29, %s5032_s5 }
  0xef   :  { %1073 = vrot.lane.b32.xlu0 %v1068_v61, %s5034_s29 }
  0xf0   :  { %760 = vrot.lane.b32.xlu1 %v751_v22, %s5033_s22 }
  0xf3   :  { %1145 = vrot.lane.b32.xlu0 %v1140_v6, %s5035_s7 }
  0xf4   :  { %768 = vrot.lane.b32.xlu1 %v757_v42, %s5033_s22 }
  0xf7   :  { %1217 = vrot.lane.b32.xlu0 %v1212_v31, %s5036_s15 }
  0xf8   :  { %1075 = vrot.lane.b32.xlu1 %v1072_v43, %s5034_s29 }
  0xfb   :  { %1289 = vrot.lane.b32.xlu0 %v1284_v23, %s5037_s19 }
  0xfc   :  { %1147 = vrot.lane.b32.xlu1 %v1144_v14, %s5035_s7 }
  0xff   :  { %1361 = vrot.lane.b32.xlu0 %v1356_v21, %s5038_s20 }
 0x100   :  { %1219 = vrot.lane.b32.xlu1 %v1216_v53, %s5036_s15 }
 0x104   :  { %1291 = vrot.lane.b32.xlu1 %v1288_v47, %s5037_s19 }
 0x105   :  { %v5713_v49 = vpop.permute.xlu0 %245  ;;  %v5715_v62 = vpop.permute.xlu1 %241 }
 0x108   :  { %1363 = vrot.lane.b32.xlu1 %v1360_v38, %s5038_s20 }
 0x109   :  { %v5718_v5 = vpop.permute.xlu0 %249 }
 0x10a   :  { %v5720_v44 = vpop.permute.xlu1 %243 }
 0x10d   :  { %v5722_v13 = vpop.permute.xlu0 %253 }
 0x10e   :  { %v5724_v54 = vpop.permute.xlu1 %247 }
 0x111   :  { %v5726_v50 = vpop.permute.xlu0 %313 }
 0x112   :  { %v5728_v29 = vpop.permute.xlu1 %251 }
 0x115   :  { %v5730_v61 = vpop.permute.xlu0 %317 }
 0x116   :  { %v5732_v58 = vpop.permute.xlu1 %255 }
 0x119   :  { %v5734_v15 = vpop.permute.xlu0 %321 }
 0x11a   :  { %v5736_v22 = vpop.permute.xlu1 %315 }
 0x11d   :  { %v5738_v6 = vpop.permute.xlu0 %325 }
 0x11e   :  { %v5740_v56 = vpop.permute.xlu1 %319 }
 0x121   :  { %v5742_v59 = vpop.permute.xlu0 %458 }
 0x122   :  { %v5744_v60 = vpop.permute.xlu1 %323 }
 0x125   :  { %v5746_v42 = vpop.permute.xlu0 %466 }
 0x126   :  { %v5748_v31 = vpop.permute.xlu1 %327 }
 0x129   :  { %v5750_v43 = vpop.permute.xlu0 %540 }
 0x12a   :  { %v5752_v30 = vpop.permute.xlu1 %460 }
 0x12d   :  { %v5754_v23 = vpop.permute.xlu0 %548 }
 0x12e   :  { %8710 = vst [vmem:[#allocation56_spill] sm:$0xff] %v5754_v23  ;;  %v5756_v14 = vpop.permute.xlu1 %468  ;;  %v259_v23 = vsel %vm257_vm4, %v5713_v49, %v5724_v54  ;;  %v258_v49 = vsel %vm257_vm4, %v5715_v62, %v5720_v44  ;;  %v330_v62 = vsel %vm329_vm5, %v5726_v50, %v5736_v22  ;;  %v277_v50 = vadd.f32 %v5732_v58, %v197_v46 }
 0x131   :  { %v5758_v48 = vpop.permute.xlu0 %680 }
 0x132   :  { %8711 = vst [vmem:[#allocation57_spill] sm:$0xff] %v5758_v48  ;;  %v5760_v21 = vpop.permute.xlu1 %542 }
 0x135   :  { %v5762_v53 = vpop.permute.xlu0 %688 }
 0x136   :  { %8712 = vst [vmem:[#allocation58_spill] sm:$0xff] %v5762_v53  ;;  %v5764_v47 = vpop.permute.xlu1 %550  ;;  %v367_v53 = vmul.f32 %v356_v3, %v5360_v39  ;;  %v5838_v3 = vmul.f32 %v5801_v12, %v5375_v45  ;;  %v382_v45 = vsel %vm379_vm2, %v380_v34, %v8720_v2 }
 0x137   :  { %8713 = vst [vmem:[#allocation59_spill] sm:$0xff] %v5764_v47 }
 0x138   :  { %v386_v48 = vrot.slane %v367_v53, 1  ;;  %v271_v53 = vadd.f32 %v5720_v44, %v191_v9  ;;  %v261_v9 = vsel %vm257_vm4, %v5722_v13, %v5732_v58  ;;  %v260_v44 = vsel %vm257_vm4, %v5718_v5, %v5728_v29 }
 0x139   :  { %v5766_v38 = vpop.permute.xlu0 %762  ;;  %v275_v58 = vadd.f32 %v5728_v29, %v195_v35  ;;  %v553_v35 = vsel %vm329_vm5, %v5750_v43, %v5760_v21 }
 0x13a   :  { %8714 = vst [vmem:[#allocation60_spill] sm:$0xff] %v5766_v38  ;;  %v5768_v20 = vpop.permute.xlu1 %682  ;;  %v273_v38 = vadd.f32 %v5724_v54, %v193_v33  ;;  %v590_v33 = vmul.f32 %v582_v16, %v5391_v51  ;;  %v272_v54 = vadd.f32 %v259_v23, %v192_v8  ;;  %v388_v47 = vsel %vm379_vm2, %v386_v48, %v8721_v40 }
 0x13b   :  { %8715 = vst [vmem:[#allocation61_spill] sm:$0xff] %v5768_v20  ;;  %v343_v8 = vadd.f32 %v5736_v22, %v271_v53  ;;  %v333_v22 = vsel %vm329_vm5, %v5738_v6, %v5748_v31  ;;  %v276_v48 = vadd.f32 %v261_v9, %v196_v4  ;;  %v471_v6 = vsel %vm257_vm4, %v5742_v59, %v5752_v30 }
 0x13c   :  { %v345_v2 = vadd.f32 %v5740_v56, %v273_v38  ;;  %v611_v23 = vrot.slane %v590_v33, 2  ;;  %v332_v38 = vsel %vm329_vm5, %v5734_v15, %v5744_v60  ;;  %v8724_v4 = vrot.slane %v5792_v17, 1 }
 0x13d   :  { %v5773_v28 = vpop.permute.xlu0 %770 }
 0x13e   :  { %8716 = vst [vmem:[#allocation62_spill] sm:$0xff] %v5773_v28  ;;  %v5778_v19 = vpop.permute.xlu1 %690  ;;  %v383_v28 = vrot.slane %v364_v25, 1  ;;  %v5841_v25 = vmul.f32 %v582_v16, %v5400_v55  ;;  %v605_v55 = vrot.slane %v586_v36, 2  ;;  %v331_v36 = vsel %vm329_vm5, %v5730_v61, %v5740_v56 }
 0x13f   :  { %8717 = vst [vmem:[#allocation63_spill] sm:$0xff] %v5778_v19  ;;  %v368_v19 = vmul.f32 %v360_v27, %v5391_v51  ;;  %v270_v51 = vadd.f32 %v258_v49, %v190_v24  ;;  %v5905_v24 = vmul.f32 %v5801_v12, %v5360_v39  ;;  %v403_v40 = vadd.f32 %v384_v37, %v345_v2 }
 0x140   :  { %v607_v16 = vsel %vm601_vm3, %v605_v55, %v606_v11  ;;  %v348_v39 = vadd.f32 %v333_v22, %v276_v48  ;;  %v8725_v43 = vrot.slane %v5841_v25, 2 }
 0x141   :  { %v5783_v18 = vpop.permute.xlu0 %454  ;;  %v389_v20 = vrot.slane %v368_v19, 1  ;;  %v342_v5 = vadd.f32 %v330_v62, %v270_v51  ;;  %v485_v53 = vadd.f32 %v5752_v30, %v403_v40  ;;  %v608_v17 = vrot.slane %v5905_v24, 2  ;;  %v8731_v24 = vld [vmem:[#allocation57_spill] sm:$0xff]  ;;  %v8734_v40 = vld [vmem:[#allocation60_spill] sm:$0xff] }
 0x142   :  { %v5789_v10 = vpop.permute.xlu1 %764  ;;  %v613_v33 = vsel %vm601_vm3, %v611_v23, %v8725_v43  ;;  %v8730_v22 = vld [vmem:[#allocation61_spill] sm:$0xff]  ;;  %v794_v23 = vld [vmem:[%s8508_s2] sm:$0x3]  ;;  %s5039_s2 = smov 112  }
 0x143   :  { %8718 = vst [vmem:[#allocation64_spill] sm:$0xff] %v5789_v10  ;;  %v385_v10 = vsel %vm379_vm2, %v383_v28, %v384_v37  ;;  %v567_v29 = vadd.f32 %v5760_v21, %v485_v53  ;;  %v400_v59 = vadd.f32 %v382_v45, %v342_v5 }
 0x144   :  { %v401_v46 = vadd.f32 %v385_v10, %v343_v8 }
 0x145   :  { %v5804_v0 = vpop.permute.xlu0 %462 }
 0x146   :  { %v5812_v7 = vpop.permute.xlu1 %772 }
 0x147   :  { %8719 = vst [vmem:[#allocation65_spill] sm:$0xff] %v5812_v7  ;;  %v5827_v7 = vmul.f32 %v5801_v12, %v5348_v63  ;;  %v585_v63 = vmul.f32 %v5801_v12, %v5353_v32  ;;  %v349_v12 = vadd.f32 %v5748_v31, %v277_v50  ;;  %v473_v31 = vsel %vm257_vm4, %v5746_v42, %v5756_v14 }
 0x149   :  { %v5832_v52 = vpop.permute.xlu0 %536  ;;  %v602_v19 = vrot.slane %v585_v63, 2  ;;  %v8722_v63 = vrot.slane %v5820_v26, 1  ;;  %v8723_v56 = vrot.slane %v5827_v7, 2  ;;  %v8728_v26 = vld [vmem:[#allocation59_spill] sm:$0xff] }
 0x14a   :  { %v5843_v27 = vpop.permute.xlu1 %456 }
 0x14b   :  { %v391_v32 = vsel %vm379_vm2, %v389_v20, %v8722_v63  ;;  %v344_v20 = vadd.f32 %v331_v36, %v272_v54  ;;  %v5897_v13 = vsel %vm601_vm3, %v602_v19, %v8723_v56  ;;  %v274_v19 = vadd.f32 %v260_v44, %v5810_v41  ;;  %v8729_v56 = vld [vmem:[#allocation56_spill] sm:$0xff] }
 0x14c   :  { %v347_v36 = vadd.f32 %v5744_v60, %v275_v58  ;;  %v470_v10 = vsel %vm257_vm4, %v5783_v18, %v5843_v27  ;;  %v483_v60 = vadd.f32 %v5843_v27, %v401_v46  ;;  %v8726_v18 = vrot.slane %v5817_v57, 1 }
 0x14d   :  { %v5862_v34 = vpop.permute.xlu0 %544  ;;  %v402_v49 = vadd.f32 %v8724_v4, %v344_v20  ;;  %v346_v37 = vadd.f32 %v332_v38, %v274_v19  ;;  %v8727_v21 = vmov %v8722_v63  ;;  %v482_v63 = vadd.f32 %v470_v10, %v400_v59  ;;  %v8733_v38 = vld [vmem:[#allocation64_spill] sm:$0xff]  ;;  %v8735_v4 = vld [vmem:[#allocation49_spill] sm:$0xff] }
 0x14e   :  { %v5864_v28 = vpop.permute.xlu1 %464  ;;  %v406_v54 = vadd.f32 %v8726_v18, %v348_v39  ;;  %v407_v45 = vadd.f32 %v8727_v21, %v349_v12  ;;  %v405_v8 = vadd.f32 %v391_v32, %v347_v36  ;;  %v625_v57 = vadd.f32 %v606_v11, %v567_v29  ;;  %v8737_v10 = vld [vmem:[#allocation48_spill] sm:$0xff] }
 0x14f   :  { %v484_v41 = vadd.f32 %v471_v6, %v402_v49  ;;  %v404_v42 = vadd.f32 %v388_v47, %v346_v37  ;;  %v555_v50 = vsel %vm329_vm5, %v8729_v56, %v8728_v26  ;;  %v693_v47 = vsel %vm257_vm4, %v8731_v24, %v8730_v22  ;;  %v8743_v24 = vld [vmem:[#allocation50_spill] sm:$0xff] }
 0x150   :  { %v488_v51 = vadd.f32 %v473_v31, %v406_v54  ;;  %v489_v44 = vadd.f32 %v5756_v14, %v407_v45  ;;  %v487_v32 = vadd.f32 %v5864_v28, %v405_v8  ;;  %v8732_v14 = vrot.slane %v5827_v7, 2  ;;  %v8740_v45 = vld [vmem:[#allocation58_spill] sm:$0xff] }
 0x151   :  { %v677_v55 = vpop.permute.xlu0 %676  ;;  %v566_v2 = vadd.f32 %v553_v35, %v484_v41  ;;  %v707_v11 = vadd.f32 %v8730_v22, %v625_v57  ;;  %v803_v49 = vrot.slane %v794_v23, %v8735_v4  ;;  %v8736_v36 = vrot.slane %v5838_v3, 2 }
 0x152   :  { %v539_v61 = vpop.permute.xlu1 %538  ;;  %v570_v6 = vadd.f32 %v555_v50, %v488_v51  ;;  %v8741_v51 = vld [vmem:[#allocation65_spill] sm:$0xff] }
 0x153   :  { %v552_v30 = vsel %vm329_vm5, %v5832_v52, %v539_v61  ;;  %v472_v52 = vsel %vm257_vm4, %v5804_v0, %v5864_v28  ;;  %v565_v27 = vadd.f32 %v539_v61, %v483_v60  ;;  %v571_v61 = vadd.f32 %v8728_v26, %v489_v44  ;;  %v8742_v44 = vld [vmem:[#allocation62_spill] sm:$0xff] }
 0x154   :  { %v564_v20 = vadd.f32 %v552_v30, %v482_v63  ;;  %v624_v1 = vadd.f32 %v8732_v14, %v566_v2  ;;  %v486_v48 = vadd.f32 %v472_v52, %v404_v42  ;;  %v775_v28 = vsel %vm329_vm5, %v8734_v40, %v8733_v38 }
 0x155   :  { %v685_v9 = vpop.permute.xlu0 %684  ;;  %v623_v58 = vadd.f32 %v607_v16, %v565_v27  ;;  %v789_v53 = vadd.f32 %v8733_v38, %v707_v11  ;;  %v610_v35 = vsel %vm601_vm3, %v608_v17, %v8736_v36  ;;  %v8738_v60 = vmov %v8736_v36  ;;  %v8739_v17 = vld [vmem:[#allocation63_spill] sm:$0xff] }
 0x156   :  { %v547_v15 = vpop.permute.xlu1 %546  ;;  %v706_v46 = vadd.f32 %v693_v47, %v624_v1  ;;  %v622_v12 = vadd.f32 %v5897_v13, %v564_v20  ;;  %v628_v30 = vadd.f32 %v8738_v60, %v570_v6  ;;  %v629_v18 = vadd.f32 %v8725_v43, %v571_v61  ;;  %v8744_v47 = vld [vmem:[#allocation51_spill] sm:$0xff] }
 0x157   :  { %v554_v0 = vsel %vm329_vm5, %v5862_v34, %v547_v15  ;;  %v569_v19 = vadd.f32 %v547_v15, %v487_v32  ;;  %v799_v15 = vrot.slane %v794_v23, %v8737_v10  ;;  %v695_v2 = vsel %vm257_vm4, %v8740_v45, %v8739_v17  ;;  %v8748_v60 = vld [vmem:[#allocation55_spill] sm:$0xff] }
 0x158   :  { %v568_v7 = vadd.f32 %v554_v0, %v486_v48  ;;  %v788_v16 = vadd.f32 %v775_v28, %v706_v46  ;;  %v809_v63 = vadd.f32 %v803_v49, %v789_v53  ;;  %v777_v25 = vsel %vm329_vm5, %v8742_v44, %v8741_v51  ;;  %v8745_v53 = vld [vmem:[#allocation52_spill] sm:$0xff] }
 0x159   :  { %v759_v39 = vpop.permute.xlu0 %758  ;;  %v627_v29 = vadd.f32 %v613_v33, %v569_v19  ;;  %v710_v56 = vadd.f32 %v695_v2, %v628_v30  ;;  %v865_v32 = vsel %vm221_vm0, %v8744_v47, %v8743_v24 }
 0x15a   :  { %v679_v62 = vpop.permute.xlu1 %678  ;;  %v626_v54 = vadd.f32 %v610_v35, %v568_v7  ;;  %v808_v42 = vadd.f32 %v799_v15, %v788_v16  ;;  %v5995_v0 = vmax.f32 %v809_v63, 0.0 }
 0x15b   :  { %v692_v34 = vsel %vm257_vm4, %v677_v55, %v679_v62  ;;  %v705_v37 = vadd.f32 %v679_v62, %v623_v58  ;;  %v792_v23 = vadd.f32 %v777_v25, %v710_v56 }
 0x15c   :  { %v704_v41 = vadd.f32 %v692_v34, %v622_v12  ;;  %v5999_v11 = vmax.f32 %v808_v42, 0.0  ;;  %v871_v28 = vmul.f32 %v865_v32, %v5995_v0 }
 0x15d   :  { %v767_v8 = vpop.permute.xlu0 %766  ;;  %v812_v19 = vadd.f32 %v799_v15, %v792_v23 }
 0x15e   :  { %v687_v5 = vpop.permute.xlu1 %686  ;;  %v870_v34 = vmul.f32 %v8744_v47, %v5999_v11 }
 0x15f   :  { %v694_v59 = vsel %vm257_vm4, %v685_v9, %v687_v5  ;;  %v709_v62 = vadd.f32 %v687_v5, %v627_v29  ;;  %v711_v9 = vadd.f32 %v8739_v17, %v629_v18  ;;  %v6017_v7 = vmax.f32 %v812_v19, 0.0 }
 0x160   :  { %v708_v52 = vadd.f32 %v694_v59, %v626_v54 }
 0x161   :  { %v793_v61 = vadd.f32 %v8741_v51, %v711_v9  ;;  %v1074_v63 = vpop.permute.xlu0 %1073  ;;  %v1015_v9 = vmul.f32 %v8748_v60, %v6017_v7 }
 0x162   :  { %v761_v55 = vpop.permute.xlu1 %760  ;;  %v1087_v56 = vmul.f32 %v1074_v63, %v6017_v7 }
 0x163   :  { %v774_v31 = vsel %vm329_vm5, %v759_v39, %v761_v55  ;;  %v787_v13 = vadd.f32 %v761_v55, %v705_v37  ;;  %v813_v38 = vadd.f32 %v803_v49, %v793_v61  ;;  %v8746_v37 = vld [vmem:[#allocation53_spill] sm:$0xff] }
 0x164   :  { %v786_v21 = vadd.f32 %v774_v31, %v704_v41  ;;  %v935_v36 = vsel %vm293_vm1, %v8746_v37, %v8745_v53  ;;  %v940_v41 = vmul.f32 %v8746_v37, %v5999_v11  ;;  %v944_v31 = vmul.f32 %v8746_v37, %v6017_v7 }
 0x165   :  { %v807_v33 = vadd.f32 %v803_v49, %v787_v13  ;;  %v6014_v6 = vmax.f32 %v813_v38, 0.0  ;;  %v941_v16 = vmul.f32 %v935_v36, %v5995_v0  ;;  %v8747_v13 = vld [vmem:[#allocation54_spill] sm:$0xff]  ;;  %v1146_v25 = vpop.permute.xlu0 %1145 }
 0x166   :  { %v806_v27 = vadd.f32 %v799_v15, %v786_v21  ;;  %v769_v3 = vpop.permute.xlu1 %768  ;;  %v1006_v30 = vsel %vm1005_vm6, %v8748_v60, %v8747_v13  ;;  %v1011_v21 = vmul.f32 %v8748_v60, %v5999_v11  ;;  %v1159_v38 = vmul.f32 %v1146_v25, %v6017_v7 }
 0x167   :  { %v5987_v57 = vmax.f32 %v807_v33, 0.0  ;;  %v776_v20 = vsel %vm329_vm5, %v767_v8, %v769_v3  ;;  %v791_v26 = vadd.f32 %v769_v3, %v709_v62  ;;  %v875_v12 = vmul.f32 %v865_v32, %v6014_v6 }
 0x168   :  { %v5990_v50 = vmax.f32 %v806_v27, 0.0  ;;  %v790_v22 = vadd.f32 %v776_v20, %v708_v52  ;;  %v945_v59 = vmul.f32 %v935_v36, %v6014_v6  ;;  %v1012_v54 = vmul.f32 %v1006_v30, %v5995_v0 }
 0x169   :  { %v811_v14 = vadd.f32 %v803_v49, %v791_v26  ;;  %v869_v1 = vmul.f32 %v865_v32, %v5987_v57  ;;  %v874_v49 = vmul.f32 %v8744_v47, %v6017_v7  ;;  %v939_v35 = vmul.f32 %v935_v36, %v5987_v57  ;;  %v1218_v23 = vpop.permute.xlu0 %1217 }
 0x16a   :  { %v810_v48 = vadd.f32 %v799_v15, %v790_v22  ;;  %v868_v5 = vmul.f32 %v8744_v47, %v5990_v50  ;;  %v938_v15 = vmul.f32 %v8746_v37, %v5990_v50  ;;  %v1010_v43 = vmul.f32 %v1006_v30, %v5987_v57  ;;  %v1076_v2 = vpop.permute.xlu1 %1075 }
 0x16b   :  { %886 = vrot.lane.b32.xlu1 %v869_v1, %s5032_s5  ;;  %v6005_v40 = vmax.f32 %v811_v14, 0.0  ;;  %v1009_v18 = vmul.f32 %v8748_v60, %v5990_v50  ;;  %v1016_v62 = vmul.f32 %v1006_v30, %v6014_v6  ;;  %v1078_v33 = vsel %vm1077_vm7, %v1074_v63, %v1076_v2 }
 0x16c   :  { %884 = vrot.lane.b32.xlu0 %v868_v5, %s5032_s5  ;;  %v6008_v58 = vmax.f32 %v810_v48, 0.0  ;;  %v1082_v42 = vmul.f32 %v1078_v33, %v5987_v57  ;;  %v1081_v8 = vmul.f32 %v1074_v63, %v5990_v50  ;;  %v1084_v52 = vmul.f32 %v1078_v33, %v5995_v0 }
 0x16d   :  { %v873_v46 = vmul.f32 %v865_v32, %v6005_v40  ;;  %v943_v55 = vmul.f32 %v935_v36, %v6005_v40  ;;  %v1014_v17 = vmul.f32 %v1006_v30, %v6005_v40  ;;  %v1083_v27 = vmul.f32 %v1074_v63, %v5999_v11  ;;  %v1290_v53 = vpop.permute.xlu0 %1289 }
 0x16e   :  { %v872_v39 = vmul.f32 %v8744_v47, %v6008_v58  ;;  %v942_v29 = vmul.f32 %v8746_v37, %v6008_v58  ;;  %v1013_v45 = vmul.f32 %v8748_v60, %v6008_v58  ;;  %v1086_v3 = vmul.f32 %v1078_v33, %v6005_v40  ;;  %v1148_v44 = vpop.permute.xlu1 %1147 }
 0x16f   :  { %890 = vrot.lane.b32.xlu1 %v871_v28, %s5032_s5  ;;  %v1085_v51 = vmul.f32 %v1074_v63, %v6008_v58  ;;  %v1088_v20 = vmul.f32 %v1078_v33, %v6014_v6  ;;  %v1150_v26 = vsel %vm1149_vm8, %v1146_v25, %v1148_v44  ;;  %v1153_v24 = vmul.f32 %v1146_v25, %v5990_v50 }
 0x170   :  { %888 = vrot.lane.b32.xlu0 %v870_v34, %s5032_s5  ;;  %v1154_v22 = vmul.f32 %v1150_v26, %v5987_v57  ;;  %v1156_v47 = vmul.f32 %v1150_v26, %v5995_v0  ;;  %v1155_v32 = vmul.f32 %v1146_v25, %v5999_v11  ;;  %v1158_v61 = vmul.f32 %v1150_v26, %v6005_v40 }
 0x171   :  { %v1157_v14 = vmul.f32 %v1146_v25, %v6008_v58  ;;  %v1160_v48 = vmul.f32 %v1150_v26, %v6014_v6  ;;  %v1225_v19 = vmul.f32 %v1218_v23, %v5990_v50  ;;  %v1362_v13 = vpop.permute.xlu0 %1361 }
 0x172   :  { %v1220_v1 = vpop.permute.xlu1 %1219  ;;  %v1371_v2 = vmul.f32 %v1362_v13, %v5999_v11 }
 0x173   :  { %894 = vrot.lane.b32.xlu1 %v873_v46, %s5032_s5  ;;  %v1222_v5 = vsel %vm1221_vm9, %v1218_v23, %v1220_v1  ;;  %v1227_v46 = vmul.f32 %v1218_v23, %v5999_v11 }
 0x174   :  { %892 = vrot.lane.b32.xlu0 %v872_v39, %s5032_s5  ;;  %v1226_v28 = vmul.f32 %v1222_v5, %v5987_v57  ;;  %v1228_v34 = vmul.f32 %v1222_v5, %v5995_v0  ;;  %v1230_v39 = vmul.f32 %v1222_v5, %v6005_v40  ;;  %v1232_v37 = vmul.f32 %v1222_v5, %v6014_v6 }
 0x177   :  { %898 = vrot.lane.b32.xlu1 %v875_v12, %s5032_s5  ;;  %v1229_v12 = vmul.f32 %v1218_v23, %v6008_v58 }
 0x178   :  { %896 = vrot.lane.b32.xlu0 %v874_v49, %s5032_s5  ;;  %v1292_v49 = vpop.permute.xlu1 %1291 }
 0x179   :  { %v1294_v36 = vsel %vm1293_vm10, %v1290_v53, %v1292_v49 }
 0x17a   :  { %v1304_v60 = vmul.f32 %v1294_v36, %v6014_v6 }
 0x17b   :  { %956 = vrot.lane.b32.xlu1 %v939_v35, %s5033_s22  ;;  %v1231_v35 = vmul.f32 %v1218_v23, %v6017_v7 }
 0x17c   :  { %954 = vrot.lane.b32.xlu0 %v938_v15, %s5033_s22  ;;  %v1298_v15 = vmul.f32 %v1294_v36, %v5987_v57 }
 0x17f   :  { %960 = vrot.lane.b32.xlu1 %v941_v16, %s5033_s22  ;;  %v1297_v16 = vmul.f32 %v1290_v53, %v5990_v50 }
 0x180   :  { %958 = vrot.lane.b32.xlu0 %v940_v41, %s5033_s22  ;;  %v1300_v41 = vmul.f32 %v1294_v36, %v5995_v0 }
 0x183   :  { %964 = vrot.lane.b32.xlu1 %v943_v55, %s5033_s22  ;;  %v1299_v55 = vmul.f32 %v1290_v53, %v5999_v11 }
 0x184   :  { %962 = vrot.lane.b32.xlu0 %v942_v29, %s5033_s22  ;;  %v1302_v29 = vmul.f32 %v1294_v36, %v6005_v40 }
 0x187   :  { %968 = vrot.lane.b32.xlu1 %v945_v59, %s5033_s22  ;;  %v1301_v59 = vmul.f32 %v1290_v53, %v6008_v58 }
 0x188   :  { %966 = vrot.lane.b32.xlu0 %v944_v31, %s5033_s22  ;;  %v1364_v31 = vpop.permute.xlu1 %1363 }
 0x189   :  { %v1366_v30 = vsel %vm1365_vm11, %v1362_v13, %v1364_v31 }
 0x18a   :  { %v1374_v63 = vmul.f32 %v1366_v30, %v6005_v40 }
 0x18b   :  { %1027 = vrot.lane.b32.xlu1 %v1010_v43, %s5039_s2  ;;  %v1303_v43 = vmul.f32 %v1290_v53, %v6017_v7 }
 0x18c   :  { %1025 = vrot.lane.b32.xlu0 %v1009_v18, %s5039_s2  ;;  %v1370_v18 = vmul.f32 %v1366_v30, %v5987_v57 }
 0x18f   :  { %1031 = vrot.lane.b32.xlu1 %v1012_v54, %s5039_s2  ;;  %v1369_v54 = vmul.f32 %v1362_v13, %v5990_v50 }
 0x190   :  { %1029 = vrot.lane.b32.xlu0 %v1011_v21, %s5039_s2  ;;  %v1372_v21 = vmul.f32 %v1366_v30, %v5995_v0 }
 0x193   :  { %1035 = vrot.lane.b32.xlu1 %v1014_v17, %s5039_s2 }
 0x194   :  { %1033 = vrot.lane.b32.xlu0 %v1013_v45, %s5039_s2 }
 0x197   :  { %1039 = vrot.lane.b32.xlu1 %v1016_v62, %s5039_s2 }
 0x198   :  { %1037 = vrot.lane.b32.xlu0 %v1015_v9, %s5039_s2  ;;  %v1373_v9 = vmul.f32 %v1362_v13, %v6008_v58 }
 0x19b   :  { %1099 = vrot.lane.b32.xlu1 %v1082_v42, %s5040_s30  ;;  %v4854_v42 = vld [vmem:[%s8509_s3 + $0x33] ss:$8 sm:$0x3] }
 0x19c   :  { %1097 = vrot.lane.b32.xlu0 %v1081_v8, %s5040_s30  ;;  %v1376_v8 = vmul.f32 %v1366_v30, %v6014_v6  ;;  %v1428_v44 = vrot.slane %v4854_v42, %v8737_v10 }
 0x19f   :  { %1103 = vrot.lane.b32.xlu1 %v1084_v52, %s5040_s30 }
 0x1a0   :  { %1101 = vrot.lane.b32.xlu0 %v1083_v27, %s5040_s30 }
 0x1a3   :  { %1107 = vrot.lane.b32.xlu1 %v1086_v3, %s5040_s30  ;;  %v1375_v3 = vmul.f32 %v1362_v13, %v6017_v7 }
 0x1a4   :  { %1105 = vrot.lane.b32.xlu0 %v1085_v51, %s5040_s30  ;;  %v1432_v51 = vrot.slane %v4854_v42, %v8735_v4 }
 0x1a7   :  { %1111 = vrot.lane.b32.xlu1 %v1088_v20, %s5040_s30 }
 0x1a8   :  { %1109 = vrot.lane.b32.xlu0 %v1087_v56, %s5040_s30 }
 0x1ab   :  { %1171 = vrot.lane.b32.xlu1 %v1154_v22, %s5041_s10 }
 0x1ac   :  { %1169 = vrot.lane.b32.xlu0 %v1153_v24, %s5041_s10 }
 0x1af   :  { %1175 = vrot.lane.b32.xlu1 %v1156_v47, %s5041_s10 }
 0x1b0   :  { %1173 = vrot.lane.b32.xlu0 %v1155_v32, %s5041_s10 }
 0x1b3   :  { %1179 = vrot.lane.b32.xlu1 %v1158_v61, %s5041_s10 }
 0x1b4   :  { %1177 = vrot.lane.b32.xlu0 %v1157_v14, %s5041_s10 }
 0x1b7   :  { %1183 = vrot.lane.b32.xlu1 %v1160_v48, %s5041_s10 }
 0x1b8   :  { %1181 = vrot.lane.b32.xlu0 %v1159_v38, %s5041_s10 }
 0x1bb   :  { %1243 = vrot.lane.b32.xlu1 %v1226_v28, %s5042_s12 }
 0x1bc   :  { %1241 = vrot.lane.b32.xlu0 %v1225_v19, %s5042_s12 }
 0x1bf   :  { %1247 = vrot.lane.b32.xlu1 %v1228_v34, %s5042_s12 }
 0x1c0   :  { %1245 = vrot.lane.b32.xlu0 %v1227_v46, %s5042_s12 }
 0x1c3   :  { %1251 = vrot.lane.b32.xlu1 %v1230_v39, %s5042_s12 }
 0x1c4   :  { %1249 = vrot.lane.b32.xlu0 %v1229_v12, %s5042_s12 }
 0x1c7   :  { %1255 = vrot.lane.b32.xlu1 %v1232_v37, %s5042_s12 }
 0x1c8   :  { %1253 = vrot.lane.b32.xlu0 %v1231_v35, %s5042_s12 }
 0x1cb   :  { %1315 = vrot.lane.b32.xlu1 %v1298_v15, %s5043_s13 }
 0x1cc   :  { %1313 = vrot.lane.b32.xlu0 %v1297_v16, %s5043_s13 }
 0x1cf   :  { %1319 = vrot.lane.b32.xlu1 %v1300_v41, %s5043_s13 }
 0x1d0   :  { %1317 = vrot.lane.b32.xlu0 %v1299_v55, %s5043_s13 }
 0x1d3   :  { %1323 = vrot.lane.b32.xlu1 %v1302_v29, %s5043_s13 }
 0x1d4   :  { %1321 = vrot.lane.b32.xlu0 %v1301_v59, %s5043_s13 }
 0x1d7   :  { %1327 = vrot.lane.b32.xlu1 %v1304_v60, %s5043_s13 }
 0x1d8   :  { %1325 = vrot.lane.b32.xlu0 %v1303_v43, %s5043_s13 }
 0x1db   :  { %1387 = vrot.lane.b32.xlu1 %v1370_v18, %s5044_s16 }
 0x1dc   :  { %1385 = vrot.lane.b32.xlu0 %v1369_v54, %s5044_s16 }
 0x1dd   :  { %v6148_v17 = vpop.permute.xlu1 %886 }
 0x1de   :  { %v6150_v45 = vpop.permute.xlu0 %884 }
 0x1df   :  { %1391 = vrot.lane.b32.xlu1 %v1372_v21, %s5044_s16 }
 0x1e0   :  { %1389 = vrot.lane.b32.xlu0 %v1371_v2, %s5044_s16 }
 0x1e1   :  { %v6156_v62 = vpop.permute.xlu1 %890 }
 0x1e2   :  { %v6158_v33 = vpop.permute.xlu0 %888 }
 0x1e3   :  { %1395 = vrot.lane.b32.xlu1 %v1374_v63, %s5044_s16 }
 0x1e4   :  { %1393 = vrot.lane.b32.xlu0 %v1373_v9, %s5044_s16 }
 0x1e5   :  { %v6167_v52 = vpop.permute.xlu1 %894 }
 0x1e6   :  { %v6169_v27 = vpop.permute.xlu0 %892 }
 0x1e7   :  { %1399 = vrot.lane.b32.xlu1 %v1376_v8, %s5044_s16 }
 0x1e8   :  { %1397 = vrot.lane.b32.xlu0 %v1375_v3, %s5044_s16 }
 0x1e9   :  { %v6176_v25 = vpop.permute.xlu1 %898 }
 0x1ea   :  { %v6178_v20 = vpop.permute.xlu0 %896 }
 0x1eb   :  { %1435 = vrot.lane.b32.xlu1 %v1432_v51, %s5045_s23 }
 0x1ec   :  { %1433 = vrot.lane.b32.xlu0 %v1428_v44, %s5045_s23 }
 0x1ed   :  { %v6182_v26 = vpop.permute.xlu1 %956 }
 0x1ee   :  { %v6184_v56 = vpop.permute.xlu0 %954 }
 0x1f1   :  { %v6186_v22 = vpop.permute.xlu1 %960 }
 0x1f2   :  { %v6188_v24 = vpop.permute.xlu0 %958 }
 0x1f5   :  { %v6190_v47 = vpop.permute.xlu1 %964 }
 0x1f6   :  { %v6192_v32 = vpop.permute.xlu0 %962 }
 0x1f9   :  { %v6194_v61 = vpop.permute.xlu1 %968 }
 0x1fa   :  { %v6196_v14 = vpop.permute.xlu0 %966 }
 0x1fd   :  { %v6198_v1 = vpop.permute.xlu1 %1027 }
 0x1fe   :  { %v6200_v23 = vpop.permute.xlu0 %1025 }
 0x1ff   :  { %8749 = vst [vmem:[#allocation59_spill] sm:$0xff] %v6200_v23 }
 0x201   :  { %v6202_v48 = vpop.permute.xlu1 %1031 }
 0x202   :  { %8750 = vst [vmem:[#allocation56_spill] sm:$0xff] %v6202_v48  ;;  %v6204_v5 = vpop.permute.xlu0 %1029 }
 0x203   :  { %8751 = vst [vmem:[#allocation61_spill] sm:$0xff] %v6204_v5 }
 0x205   :  { %v6206_v38 = vpop.permute.xlu1 %1035 }
 0x206   :  { %8752 = vst [vmem:[#allocation57_spill] sm:$0xff] %v6206_v38  ;;  %v6208_v28 = vpop.permute.xlu0 %1033 }
 0x207   :  { %8753 = vst [vmem:[#allocation64_spill] sm:$0xff] %v6208_v28 }
 0x209   :  { %v6210_v19 = vpop.permute.xlu1 %1039 }
 0x20a   :  { %8754 = vst [vmem:[#allocation60_spill] sm:$0xff] %v6210_v19  ;;  %v6212_v34 = vpop.permute.xlu0 %1037 }
 0x20b   :  { %8755 = vst [vmem:[#allocation63_spill] sm:$0xff] %v6212_v34 }
 0x20d   :  { %v6214_v46 = vpop.permute.xlu1 %1099 }
 0x20e   :  { %8756 = vst [vmem:[#allocation58_spill] sm:$0xff] %v6214_v46  ;;  %v6216_v39 = vpop.permute.xlu0 %1097 }
 0x20f   :  { %8757 = vst [vmem:[#allocation65_spill] sm:$0xff] %v6216_v39 }
 0x211   :  { %v6218_v12 = vpop.permute.xlu1 %1103 }
 0x212   :  { %8758 = vst [vmem:[#allocation62_spill] sm:$0xff] %v6218_v12  ;;  %v6220_v49 = vpop.permute.xlu0 %1101 }
 0x213   :  { %8759 = vst [vmem:[#allocation50_spill] sm:$0xff] %v6220_v49 }
 0x215   :  { %v6222_v53 = vpop.permute.xlu1 %1107 }
 0x216   :  { %8760 = vst [vmem:[#allocation51_spill] sm:$0xff] %v6222_v53  ;;  %v6224_v37 = vpop.permute.xlu0 %1105 }
 0x217   :  { %8761 = vst [vmem:[#allocation52_spill] sm:$0xff] %v6224_v37 }
 0x219   :  { %v6226_v36 = vpop.permute.xlu1 %1111 }
 0x21a   :  { %8762 = vst [vmem:[#allocation53_spill] sm:$0xff] %v6226_v36  ;;  %v6228_v35 = vpop.permute.xlu0 %1109 }
 0x21b   :  { %8763 = vst [vmem:[#allocation54_spill] sm:$0xff] %v6228_v35 }
 0x21d   :  { %v6230_v15 = vpop.permute.xlu1 %1171 }
 0x21e   :  { %8764 = vst [vmem:[#allocation55_spill] sm:$0xff] %v6230_v15  ;;  %v6232_v16 = vpop.permute.xlu0 %1169 }
 0x21f   :  { %8765 = vst [vmem:[#allocation66_spill] sm:$0xff] %v6232_v16 }
 0x221   :  { %v6234_v41 = vpop.permute.xlu1 %1175 }
 0x222   :  { %8766 = vst [vmem:[#allocation67_spill] sm:$0xff] %v6234_v41  ;;  %v6236_v55 = vpop.permute.xlu0 %1173 }
 0x223   :  { %8767 = vst [vmem:[#allocation68_spill] sm:$0xff] %v6236_v55 }
 0x225   :  { %v6238_v29 = vpop.permute.xlu1 %1179 }
 0x226   :  { %8768 = vst [vmem:[#allocation69_spill] sm:$0xff] %v6238_v29  ;;  %v6240_v59 = vpop.permute.xlu0 %1177 }
 0x227   :  { %8769 = vst [vmem:[#allocation70_spill] sm:$0xff] %v6240_v59 }
 0x229   :  { %v6242_v31 = vpop.permute.xlu1 %1183 }
 0x22a   :  { %8770 = vst [vmem:[#allocation71_spill] sm:$0xff] %v6242_v31  ;;  %v6244_v13 = vpop.permute.xlu0 %1181 }
 0x22b   :  { %8771 = vst [vmem:[#allocation72_spill] sm:$0xff] %v6244_v13 }
 0x22d   :  { %v6246_v60 = vpop.permute.xlu1 %1243 }
 0x22e   :  { %8772 = vst [vmem:[#allocation73_spill] sm:$0xff] %v6246_v60  ;;  %v6248_v30 = vpop.permute.xlu0 %1241 }
 0x22f   :  { %8773 = vst [vmem:[#allocation74_spill] sm:$0xff] %v6248_v30 }
 0x231   :  { %v6250_v43 = vpop.permute.xlu1 %1247 }
 0x232   :  { %8774 = vst [vmem:[#allocation75_spill] sm:$0xff] %v6250_v43  ;;  %v6252_v18 = vpop.permute.xlu0 %1245 }
 0x233   :  { %8775 = vst [vmem:[#allocation76_spill] sm:$0xff] %v6252_v18 }
 0x235   :  { %v6254_v54 = vpop.permute.xlu1 %1251 }
 0x236   :  { %8776 = vst [vmem:[#allocation77_spill] sm:$0xff] %v6254_v54  ;;  %v6256_v21 = vpop.permute.xlu0 %1249 }
 0x237   :  { %8777 = vst [vmem:[#allocation78_spill] sm:$0xff] %v6256_v21 }
 0x239   :  { %v6258_v2 = vpop.permute.xlu1 %1255 }
 0x23a   :  { %8778 = vst [vmem:[#allocation79_spill] sm:$0xff] %v6258_v2  ;;  %v6260_v63 = vpop.permute.xlu0 %1253 }
 0x23b   :  { %8779 = vst [vmem:[#allocation80_spill] sm:$0xff] %v6260_v63 }
 0x23d   :  { %v6262_v9 = vpop.permute.xlu1 %1315 }
 0x23e   :  { %8780 = vst [vmem:[#allocation81_spill] sm:$0xff] %v6262_v9  ;;  %v6264_v42 = vpop.permute.xlu0 %1313 }
 0x23f   :  { %8781 = vst [vmem:[#allocation82_spill] sm:$0xff] %v6264_v42 }
 0x241   :  { %v6266_v8 = vpop.permute.xlu1 %1319 }
 0x242   :  { %8782 = vst [vmem:[#allocation83_spill] sm:$0xff] %v6266_v8  ;;  %v6268_v3 = vpop.permute.xlu0 %1317 }
 0x243   :  { %8783 = vst [vmem:[#allocation84_spill] sm:$0xff] %v6268_v3 }
 0x245   :  { %v6270_v51 = vpop.permute.xlu1 %1323 }
 0x246   :  { %8784 = vst [vmem:[#allocation85_spill] sm:$0xff] %v6270_v51  ;;  %v6272_v44 = vpop.permute.xlu0 %1321 }
 0x247   :  { %8785 = vst [vmem:[#allocation86_spill] sm:$0xff] %v6272_v44 }
 0x249   :  { %v6274_v18 = vpop.permute.xlu1 %1327 }
 0x24a   :  { %8786 = vst [vmem:[#allocation87_spill] sm:$0xff] %v6274_v18  ;;  %v6276_v54 = vpop.permute.xlu0 %1325 }
 0x24b   :  { %8787 = vst [vmem:[#allocation88_spill] sm:$0xff] %v6276_v54 }
 0x24d   :  { %v6278_v21 = vpop.permute.xlu1 %1387 }
 0x24e   :  { %8788 = vst [vmem:[#allocation89_spill] sm:$0xff] %v6278_v21  ;;  %v6280_v2 = vpop.permute.xlu0 %1385 }
 0x24f   :  { %8789 = vst [vmem:[#allocation90_spill] sm:$0xff] %v6280_v2 }
 0x251   :  { %v6282_v63 = vpop.permute.xlu1 %1391 }
 0x252   :  { %8790 = vst [vmem:[#allocation91_spill] sm:$0xff] %v6282_v63  ;;  %v6284_v9 = vpop.permute.xlu0 %1389 }
 0x253   :  { %8791 = vst [vmem:[#allocation92_spill] sm:$0xff] %v6284_v9 }
 0x255   :  { %v6286_v42 = vpop.permute.xlu1 %1395 }
 0x256   :  { %8792 = vst [vmem:[#allocation93_spill] sm:$0xff] %v6286_v42  ;;  %v6288_v8 = vpop.permute.xlu0 %1393 }
 0x257   :  { %8793 = vst [vmem:[#allocation94_spill] sm:$0xff] %v6288_v8 }
 0x259   :  { %v6290_v3 = vpop.permute.xlu1 %1399 }
 0x25a   :  { %8794 = vst [vmem:[#allocation95_spill] sm:$0xff] %v6290_v3  ;;  %v6292_v51 = vpop.permute.xlu0 %1397 }
 0x25b   :  { %8795 = vst [vmem:[#allocation96_spill] sm:$0xff] %v6292_v51 }
 0x25d   :  { %v1436_v18 = vpop.permute.xlu1 %1435 }
 0x25e   :  { %v1434_v44 = vpop.permute.xlu0 %1433 }
 0x25f   :  { %v1441_v54 = vmul.f32 %v1434_v44, %v5990_v50  ;;  %v1438_v21 = vsel %vm1437_vm12, %v1434_v44, %v1436_v18  ;;  %v1443_v8 = vmul.f32 %v1434_v44, %v5999_v11  ;;  %v1445_v51 = vmul.f32 %v1434_v44, %v6008_v58  ;;  %v4855_v18 = vld [vmem:[%s8509_s3 + $0x34] ss:$8 sm:$0x3] }
 0x260   :  { %v1442_v2 = vmul.f32 %v1438_v21, %v5987_v57  ;;  %v1444_v3 = vmul.f32 %v1438_v21, %v5995_v0  ;;  %v1446_v42 = vmul.f32 %v1438_v21, %v6005_v40 }
 0x261   :  { %1457 = vrot.lane.b32.xlu0 %v1441_v54, %s5046_s24  ;;  %v1447_v54 = vmul.f32 %v1434_v44, %v6017_v7 }
 0x262   :  { %1459 = vrot.lane.b32.xlu1 %v1442_v2, %s5046_s24  ;;  %v1448_v2 = vmul.f32 %v1438_v21, %v6014_v6 }
 0x265   :  { %1461 = vrot.lane.b32.xlu0 %v1443_v8, %s5046_s24  ;;  %v1500_v8 = vrot.slane %v4855_v18, %v8737_v10 }
 0x266   :  { %1463 = vrot.lane.b32.xlu1 %v1444_v3, %s5046_s24  ;;  %v1504_v3 = vrot.slane %v4855_v18, %v8735_v4 }
 0x269   :  { %1465 = vrot.lane.b32.xlu0 %v1445_v51, %s5046_s24 }
 0x26a   :  { %1467 = vrot.lane.b32.xlu1 %v1446_v42, %s5046_s24 }
 0x26d   :  { %1469 = vrot.lane.b32.xlu0 %v1447_v54, %s5046_s24 }
 0x26e   :  { %1471 = vrot.lane.b32.xlu1 %v1448_v2, %s5046_s24 }
 0x271   :  { %1505 = vrot.lane.b32.xlu0 %v1500_v8, %s5047_s27 }
 0x272   :  { %1507 = vrot.lane.b32.xlu1 %v1504_v3, %s5047_s27 }
 0x2d3   :  { %v6318_v42 = vpop.permute.xlu0 %1457 }
 0x2d4   :  { %8796 = vst [vmem:[#allocation97_spill] sm:$0xff] %v6318_v42  ;;  %v6320_v51 = vpop.permute.xlu1 %1459 }
 0x2d5   :  { %8797 = vst [vmem:[#allocation98_spill] sm:$0xff] %v6320_v51 }
 0x2d7   :  { %v6322_v44 = vpop.permute.xlu0 %1461 }
 0x2d8   :  { %8798 = vst [vmem:[#allocation99_spill] sm:$0xff] %v6322_v44  ;;  %v6324_v21 = vpop.permute.xlu1 %1463 }
 0x2d9   :  { %8799 = vst [vmem:[#allocation100_spill] sm:$0xff] %v6324_v21 }
 0x2db   :  { %v6326_v54 = vpop.permute.xlu0 %1465 }
 0x2dc   :  { %8800 = vst [vmem:[#allocation101_spill] sm:$0xff] %v6326_v54  ;;  %v6328_v9 = vpop.permute.xlu1 %1467 }
 0x2dd   :  { %8801 = vst [vmem:[#allocation102_spill] sm:$0xff] %v6328_v9 }
 0x2df   :  { %v6330_v2 = vpop.permute.xlu0 %1469 }
 0x2e0   :  { %8802 = vst [vmem:[#allocation103_spill] sm:$0xff] %v6330_v2  ;;  %v6332_v18 = vpop.permute.xlu1 %1471 }
 0x2e1   :  { %8803 = vst [vmem:[#allocation104_spill] sm:$0xff] %v6332_v18 }
 0x2e3   :  { %v1506_v8 = vpop.permute.xlu0 %1505 }
 0x2e4   :  { %v1508_v63 = vpop.permute.xlu1 %1507  ;;  %v1513_v3 = vmul.f32 %v1506_v8, %v5990_v50  ;;  %v1515_v54 = vmul.f32 %v1506_v8, %v5999_v11  ;;  %v1517_v18 = vmul.f32 %v1506_v8, %v6008_v58 }
 0x2e5   :  { %v1510_v42 = vsel %vm1509_vm13, %v1506_v8, %v1508_v63  ;;  %v4856_v63 = vld [vmem:[%s8509_s3 + $0x35] ss:$8 sm:$0x3] }
 0x2e6   :  { %v1514_v51 = vmul.f32 %v1510_v42, %v5987_v57  ;;  %1529 = vrot.lane.b32.xlu0 %v1513_v3, %s5048_s1  ;;  %v1516_v2 = vmul.f32 %v1510_v42, %v5995_v0  ;;  %v1518_v9 = vmul.f32 %v1510_v42, %v6005_v40  ;;  %v1520_v3 = vmul.f32 %v1510_v42, %v6014_v6 }
 0x2e8   :  { %1531 = vrot.lane.b32.xlu1 %v1514_v51, %s5048_s1  ;;  %v1519_v51 = vmul.f32 %v1506_v8, %v6017_v7 }
 0x2ea   :  { %1533 = vrot.lane.b32.xlu0 %v1515_v54, %s5048_s1  ;;  %v1572_v54 = vrot.slane %v4856_v63, %v8737_v10 }
 0x2ec   :  { %1535 = vrot.lane.b32.xlu1 %v1516_v2, %s5048_s1  ;;  %v1576_v2 = vrot.slane %v4856_v63, %v8735_v4 }
 0x2ee   :  { %1537 = vrot.lane.b32.xlu0 %v1517_v18, %s5048_s1 }
 0x2f0   :  { %1539 = vrot.lane.b32.xlu1 %v1518_v9, %s5048_s1 }
 0x2f2   :  { %1541 = vrot.lane.b32.xlu0 %v1519_v51, %s5048_s1 }
 0x2f4   :  { %1543 = vrot.lane.b32.xlu1 %v1520_v3, %s5048_s1 }
 0x2f6   :  { %1577 = vrot.lane.b32.xlu0 %v1572_v54, %s5049_s21 }
 0x2f8   :  { %1579 = vrot.lane.b32.xlu1 %v1576_v2, %s5049_s21 }
 0x358   :  { %v6358_v18 = vpop.permute.xlu0 %1529 }
 0x359   :  { %8804 = vst [vmem:[#allocation105_spill] sm:$0xff] %v6358_v18 }
 0x35a   :  { %v6360_v9 = vpop.permute.xlu1 %1531 }
 0x35b   :  { %8805 = vst [vmem:[#allocation106_spill] sm:$0xff] %v6360_v9 }
 0x35c   :  { %v6362_v8 = vpop.permute.xlu0 %1533 }
 0x35d   :  { %8806 = vst [vmem:[#allocation107_spill] sm:$0xff] %v6362_v8 }
 0x35e   :  { %v6364_v42 = vpop.permute.xlu1 %1535 }
 0x35f   :  { %8807 = vst [vmem:[#allocation108_spill] sm:$0xff] %v6364_v42 }
 0x360   :  { %v6366_v51 = vpop.permute.xlu0 %1537 }
 0x361   :  { %8808 = vst [vmem:[#allocation109_spill] sm:$0xff] %v6366_v51 }
 0x362   :  { %v6368_v44 = vpop.permute.xlu1 %1539 }
 0x363   :  { %8809 = vst [vmem:[#allocation110_spill] sm:$0xff] %v6368_v44 }
 0x364   :  { %v6370_v3 = vpop.permute.xlu0 %1541 }
 0x365   :  { %8810 = vst [vmem:[#allocation111_spill] sm:$0xff] %v6370_v3 }
 0x366   :  { %v6372_v63 = vpop.permute.xlu1 %1543 }
 0x367   :  { %8811 = vst [vmem:[#allocation112_spill] sm:$0xff] %v6372_v63 }
 0x368   :  { %v1578_v21 = vpop.permute.xlu0 %1577 }
 0x369   :  { %v1585_v54 = vmul.f32 %v1578_v21, %v5990_v50  ;;  %v1587_v51 = vmul.f32 %v1578_v21, %v5999_v11  ;;  %v1589_v63 = vmul.f32 %v1578_v21, %v6008_v58  ;;  %v1591_v44 = vmul.f32 %v1578_v21, %v6017_v7 }
 0x36a   :  { %v1580_v2 = vpop.permute.xlu1 %1579 }
 0x36b   :  { %v1582_v18 = vsel %vm1581_vm14, %v1578_v21, %v1580_v2  ;;  %1601 = vrot.lane.b32.xlu0 %v1585_v54, %s5050_s0  ;;  %v4858_v54 = vld [vmem:[%s8509_s3 + $0x4] ss:$8 sm:$0x3] }
 0x36c   :  { %v1586_v8 = vmul.f32 %v1582_v18, %v5987_v57  ;;  %v1588_v3 = vmul.f32 %v1582_v18, %v5995_v0  ;;  %v1590_v2 = vmul.f32 %v1582_v18, %v6005_v40 }
 0x36e   :  { %1603 = vrot.lane.b32.xlu1 %v1586_v8, %s5050_s0  ;;  %v1701_v8 = vrot.slane %v4858_v54, %v8737_v10 }
 0x36f   :  { %1605 = vrot.lane.b32.xlu0 %v1587_v51, %s5050_s0  ;;  %v1592_v51 = vmul.f32 %v1582_v18, %v6014_v6 }
 0x372   :  { %1607 = vrot.lane.b32.xlu1 %v1588_v3, %s5050_s0  ;;  %v1705_v3 = vrot.slane %v4858_v54, %v8735_v4 }
 0x373   :  { %1609 = vrot.lane.b32.xlu0 %v1589_v63, %s5050_s0 }
 0x376   :  { %1611 = vrot.lane.b32.xlu1 %v1590_v2, %s5050_s0 }
 0x377   :  { %1613 = vrot.lane.b32.xlu0 %v1591_v44, %s5050_s0 }
 0x37a   :  { %1615 = vrot.lane.b32.xlu1 %v1592_v51, %s5050_s0 }
 0x37b   :  { %1706 = vrot.lane.b32.xlu0 %v1701_v8, %s5030_s11 }
 0x37e   :  { %1708 = vrot.lane.b32.xlu1 %v1705_v3, %s5030_s11 }
 0x3dd   :  { %v6398_v63 = vpop.permute.xlu0 %1601 }
 0x3de   :  { %8812 = vst [vmem:[#allocation113_spill] sm:$0xff] %v6398_v63 }
 0x3e0   :  { %v6400_v42 = vpop.permute.xlu1 %1603 }
 0x3e1   :  { %8813 = vst [vmem:[#allocation114_spill] sm:$0xff] %v6400_v42  ;;  %v6402_v21 = vpop.permute.xlu0 %1605 }
 0x3e2   :  { %8814 = vst [vmem:[#allocation115_spill] sm:$0xff] %v6402_v21 }
 0x3e4   :  { %v6404_v2 = vpop.permute.xlu1 %1607 }
 0x3e5   :  { %8815 = vst [vmem:[#allocation116_spill] sm:$0xff] %v6404_v2  ;;  %v6406_v44 = vpop.permute.xlu0 %1609 }
 0x3e6   :  { %8816 = vst [vmem:[#allocation117_spill] sm:$0xff] %v6406_v44 }
 0x3e8   :  { %v6408_v9 = vpop.permute.xlu1 %1611 }
 0x3e9   :  { %8817 = vst [vmem:[#allocation118_spill] sm:$0xff] %v6408_v9  ;;  %v6410_v18 = vpop.permute.xlu0 %1613 }
 0x3ea   :  { %8818 = vst [vmem:[#allocation119_spill] sm:$0xff] %v6410_v18 }
 0x3ec   :  { %v6412_v51 = vpop.permute.xlu1 %1615 }
 0x3ed   :  { %8819 = vst [vmem:[#allocation120_spill] sm:$0xff] %v6412_v51  ;;  %v1707_v54 = vpop.permute.xlu0 %1706 }
 0x3ee   :  { %v1713_v8 = vmul.f32 %v1707_v54, %v5990_v50  ;;  %v1715_v3 = vmul.f32 %v1707_v54, %v5999_v11  ;;  %v1717_v18 = vmul.f32 %v1707_v54, %v6008_v58  ;;  %v1719_v51 = vmul.f32 %v1707_v54, %v6017_v7 }
 0x3f0   :  { %v1709_v63 = vpop.permute.xlu1 %1708  ;;  %v1729_v43 = vrot.slane %v1713_v8, 1  ;;  %v1730_v42 = vrot.slane %v1715_v3, 1  ;;  %v1735_v3 = vrot.slane %v1717_v18, 1  ;;  %v1736_v31 = vrot.slane %v1719_v51, 1 }
 0x3f1   :  { %v1710_v21 = vsel %vm221_vm0, %v1707_v54, %v1709_v63 }
 0x3f2   :  { %v1714_v2 = vmul.f32 %v1710_v21, %v5987_v57  ;;  %v1716_v44 = vmul.f32 %v1710_v21, %v5995_v0  ;;  %v1731_v9 = vsel %vm379_vm2, %v1729_v43, %v1730_v42  ;;  %v1718_v13 = vmul.f32 %v1710_v21, %v6005_v40 }
 0x3f3   :  { %1741 = vrot.lane.b32.xlu0 %v1731_v9, %s5032_s5  ;;  %v1720_v8 = vmul.f32 %v1710_v21, %v6014_v6  ;;  %v1737_v54 = vsel %vm379_vm2, %v1735_v3, %v1736_v31  ;;  %v4859_v9 = vld [vmem:[%s8509_s3 + $0x5] ss:$8 sm:$0x3] }
 0x3f4   :  { %v1732_v30 = vrot.slane %v1714_v2, 1  ;;  %v1733_v60 = vrot.slane %v1716_v44, 1  ;;  %v1738_v43 = vrot.slane %v1718_v13, 1  ;;  %v1787_v13 = vrot.slane %v4859_v9, %v8735_v4 }
 0x3f5   :  { %v1739_v59 = vrot.slane %v1720_v8, 1 }
 0x3f6   :  { %v1734_v63 = vsel %vm379_vm2, %v1732_v30, %v1733_v60 }
 0x3f7   :  { %1743 = vrot.lane.b32.xlu1 %v1734_v63, %s5032_s5  ;;  %1745 = vrot.lane.b32.xlu0 %v1730_v42, %s5032_s5  ;;  %v1740_v30 = vsel %vm379_vm2, %v1738_v43, %v1739_v59  ;;  %v1783_v42 = vrot.slane %v4859_v9, %v8737_v10 }
 0x3fb   :  { %1747 = vrot.lane.b32.xlu1 %v1733_v60, %s5032_s5  ;;  %1749 = vrot.lane.b32.xlu0 %v1737_v54, %s5032_s5 }
 0x3ff   :  { %1751 = vrot.lane.b32.xlu1 %v1740_v30, %s5032_s5  ;;  %1753 = vrot.lane.b32.xlu0 %v1736_v31, %s5032_s5 }
 0x403   :  { %1755 = vrot.lane.b32.xlu1 %v1739_v59, %s5032_s5  ;;  %1788 = vrot.lane.b32.xlu0 %v1783_v42, %s5026_s18 }
 0x407   :  { %1790 = vrot.lane.b32.xlu1 %v1787_v13, %s5026_s18 }
 0x465   :  { %v6442_v60 = vpop.permute.xlu0 %1741 }
 0x466   :  { %8820 = vst [vmem:[#allocation121_spill] sm:$0xff] %v6442_v60 }
 0x469   :  { %v6444_v21 = vpop.permute.xlu1 %1743  ;;  %v6446_v2 = vpop.permute.xlu0 %1745 }
 0x46a   :  { %8821 = vst [vmem:[#allocation122_spill] sm:$0xff] %v6444_v21  ;;  %8822 = vst [vmem:[#allocation123_spill] sm:$0xff] %v6446_v2 }
 0x46d   :  { %v6448_v44 = vpop.permute.xlu1 %1747  ;;  %v6450_v18 = vpop.permute.xlu0 %1749 }
 0x46e   :  { %8823 = vst [vmem:[#allocation124_spill] sm:$0xff] %v6448_v44  ;;  %8824 = vst [vmem:[#allocation125_spill] sm:$0xff] %v6450_v18 }
 0x471   :  { %v6452_v31 = vpop.permute.xlu1 %1751  ;;  %v6454_v51 = vpop.permute.xlu0 %1753 }
 0x472   :  { %8825 = vst [vmem:[#allocation126_spill] sm:$0xff] %v6452_v31  ;;  %8826 = vst [vmem:[#allocation127_spill] sm:$0xff] %v6454_v51 }
 0x475   :  { %v6456_v59 = vpop.permute.xlu1 %1755  ;;  %v1789_v8 = vpop.permute.xlu0 %1788 }
 0x476   :  { %8827 = vst [vmem:[#allocation128_spill] sm:$0xff] %v6456_v59  ;;  %v1795_v63 = vmul.f32 %v1789_v8, %v5990_v50  ;;  %v1797_v3 = vmul.f32 %v1789_v8, %v5999_v11  ;;  %v1799_v51 = vmul.f32 %v1789_v8, %v6008_v58  ;;  %v1801_v59 = vmul.f32 %v1789_v8, %v6017_v7 }
 0x478   :  { %v1811_v54 = vrot.slane %v1795_v63, 1  ;;  %v1812_v9 = vrot.slane %v1797_v3, 1  ;;  %v1818_v60 = vrot.slane %v1801_v59, 1 }
 0x479   :  { %v1791_v43 = vpop.permute.xlu1 %1790 }
 0x47a   :  { %v1792_v30 = vsel %vm293_vm1, %v1789_v8, %v1791_v43  ;;  %v1813_v18 = vsel %vm379_vm2, %v1811_v54, %v1812_v9  ;;  %v1817_v43 = vrot.slane %v1799_v51, 1 }
 0x47b   :  { %v1796_v42 = vmul.f32 %v1792_v30, %v5987_v57  ;;  %v1798_v13 = vmul.f32 %v1792_v30, %v5995_v0  ;;  %1823 = vrot.lane.b32.xlu0 %v1813_v18, %s5033_s22  ;;  %v1800_v44 = vmul.f32 %v1792_v30, %v6005_v40  ;;  %v1802_v63 = vmul.f32 %v1792_v30, %v6014_v6  ;;  %v4860_v18 = vld [vmem:[%s8509_s3 + $0x14] ss:$8 sm:$0x3] }
 0x47c   :  { %v1819_v8 = vsel %vm379_vm2, %v1817_v43, %v1818_v60  ;;  %v1865_v51 = vrot.slane %v4860_v18, %v8737_v10 }
 0x47d   :  { %v1814_v31 = vrot.slane %v1796_v42, 1  ;;  %v1815_v2 = vrot.slane %v1798_v13, 1  ;;  %v1820_v54 = vrot.slane %v1800_v44, 1  ;;  %v1821_v21 = vrot.slane %v1802_v63, 1 }
 0x47e   :  { %v1869_v44 = vrot.slane %v4860_v18, %v8735_v4 }
 0x47f   :  { %v1816_v3 = vsel %vm379_vm2, %v1814_v31, %v1815_v2  ;;  %1827 = vrot.lane.b32.xlu0 %v1812_v9, %s5033_s22  ;;  %v1822_v31 = vsel %vm379_vm2, %v1820_v54, %v1821_v21 }
 0x480   :  { %1825 = vrot.lane.b32.xlu1 %v1816_v3, %s5033_s22 }
 0x483   :  { %1831 = vrot.lane.b32.xlu0 %v1819_v8, %s5033_s22 }
 0x484   :  { %1829 = vrot.lane.b32.xlu1 %v1815_v2, %s5033_s22 }
 0x487   :  { %1835 = vrot.lane.b32.xlu0 %v1818_v60, %s5033_s22 }
 0x488   :  { %1833 = vrot.lane.b32.xlu1 %v1822_v31, %s5033_s22 }
 0x48b   :  { %1870 = vrot.lane.b32.xlu0 %v1865_v51, %s5031_s26 }
 0x48c   :  { %1837 = vrot.lane.b32.xlu1 %v1821_v21, %s5033_s22 }
 0x490   :  { %1872 = vrot.lane.b32.xlu1 %v1869_v44, %s5031_s26 }
 0x4ed   :  { %v6486_v2 = vpop.permute.xlu0 %1823 }
 0x4ee   :  { %8828 = vst [vmem:[#allocation129_spill] sm:$0xff] %v6486_v2 }
 0x4f1   :  { %v6490_v9 = vpop.permute.xlu0 %1827 }
 0x4f2   :  { %v6488_v59 = vpop.permute.xlu1 %1825  ;;  %8830 = vst [vmem:[#allocation131_spill] sm:$0xff] %v6490_v9 }
 0x4f3   :  { %8829 = vst [vmem:[#allocation130_spill] sm:$0xff] %v6488_v59 }
 0x4f5   :  { %v6494_v42 = vpop.permute.xlu0 %1831 }
 0x4f6   :  { %v6492_v30 = vpop.permute.xlu1 %1829  ;;  %8832 = vst [vmem:[#allocation133_spill] sm:$0xff] %v6494_v42 }
 0x4f7   :  { %8831 = vst [vmem:[#allocation132_spill] sm:$0xff] %v6492_v30 }
 0x4f9   :  { %v6498_v13 = vpop.permute.xlu0 %1835 }
 0x4fa   :  { %v6496_v60 = vpop.permute.xlu1 %1833  ;;  %8834 = vst [vmem:[#allocation135_spill] sm:$0xff] %v6498_v13 }
 0x4fb   :  { %8833 = vst [vmem:[#allocation134_spill] sm:$0xff] %v6496_v60 }
 0x4fd   :  { %v1871_v63 = vpop.permute.xlu0 %1870 }
 0x4fe   :  { %v6500_v21 = vpop.permute.xlu1 %1837  ;;  %v1877_v3 = vmul.f32 %v1871_v63, %v5990_v50  ;;  %v1879_v43 = vmul.f32 %v1871_v63, %v5999_v11  ;;  %v1881_v13 = vmul.f32 %v1871_v63, %v6008_v58 }
 0x4ff   :  { %8835 = vst [vmem:[#allocation136_spill] sm:$0xff] %v6500_v21  ;;  %v1883_v21 = vmul.f32 %v1871_v63, %v6017_v7 }
 0x500   :  { %v1893_v8 = vrot.slane %v1877_v3, 1  ;;  %v1894_v18 = vrot.slane %v1879_v43, 1 }
 0x501   :  { %v1900_v2 = vrot.slane %v1883_v21, 1 }
 0x502   :  { %v1873_v54 = vpop.permute.xlu1 %1872  ;;  %v1895_v42 = vsel %vm379_vm2, %v1893_v8, %v1894_v18 }
 0x503   :  { %v1874_v31 = vsel %vm1005_vm6, %v1871_v63, %v1873_v54  ;;  %1905 = vrot.lane.b32.xlu0 %v1895_v42, %s5039_s2  ;;  %v1899_v54 = vrot.slane %v1881_v13, 1  ;;  %v4861_v42 = vld [vmem:[%s8509_s3 + $0x15] ss:$8 sm:$0x3] }
 0x504   :  { %v1878_v51 = vmul.f32 %v1874_v31, %v5987_v57  ;;  %v1880_v44 = vmul.f32 %v1874_v31, %v5995_v0  ;;  %v1882_v30 = vmul.f32 %v1874_v31, %v6005_v40  ;;  %v1884_v3 = vmul.f32 %v1874_v31, %v6014_v6 }
 0x505   :  { %v1901_v63 = vsel %vm379_vm2, %v1899_v54, %v1900_v2  ;;  %v1947_v13 = vrot.slane %v4861_v42, %v8737_v10 }
 0x506   :  { %v1896_v60 = vrot.slane %v1878_v51, 1  ;;  %v1897_v9 = vrot.slane %v1880_v44, 1  ;;  %v1902_v8 = vrot.slane %v1882_v30, 1  ;;  %v1903_v59 = vrot.slane %v1884_v3, 1 }
 0x507   :  { %1909 = vrot.lane.b32.xlu0 %v1894_v18, %s5039_s2  ;;  %v1951_v30 = vrot.slane %v4861_v42, %v8735_v4 }
 0x508   :  { %v1898_v43 = vsel %vm379_vm2, %v1896_v60, %v1897_v9  ;;  %v1904_v60 = vsel %vm379_vm2, %v1902_v8, %v1903_v59 }
 0x509   :  { %1907 = vrot.lane.b32.xlu1 %v1898_v43, %s5039_s2 }
 0x50b   :  { %1913 = vrot.lane.b32.xlu0 %v1901_v63, %s5039_s2 }
 0x50d   :  { %1911 = vrot.lane.b32.xlu1 %v1897_v9, %s5039_s2 }
 0x50f   :  { %1917 = vrot.lane.b32.xlu0 %v1900_v2, %s5039_s2 }
 0x511   :  { %1915 = vrot.lane.b32.xlu1 %v1904_v60, %s5039_s2 }
 0x513   :  { %1952 = vrot.lane.b32.xlu0 %v1947_v13, %s5034_s29 }
 0x515   :  { %1919 = vrot.lane.b32.xlu1 %v1903_v59, %s5039_s2 }
 0x519   :  { %1954 = vrot.lane.b32.xlu1 %v1951_v30, %s5034_s29 }
 0x575   :  { %v6530_v9 = vpop.permute.xlu0 %1905 }
 0x576   :  { %8836 = vst [vmem:[#allocation137_spill] sm:$0xff] %v6530_v9 }
 0x579   :  { %v6534_v18 = vpop.permute.xlu0 %1909 }
 0x57a   :  { %8838 = vst [vmem:[#allocation139_spill] sm:$0xff] %v6534_v18 }
 0x57b   :  { %v6532_v21 = vpop.permute.xlu1 %1907 }
 0x57c   :  { %8837 = vst [vmem:[#allocation138_spill] sm:$0xff] %v6532_v21 }
 0x57d   :  { %v6538_v51 = vpop.permute.xlu0 %1913 }
 0x57e   :  { %8840 = vst [vmem:[#allocation141_spill] sm:$0xff] %v6538_v51 }
 0x57f   :  { %v6536_v31 = vpop.permute.xlu1 %1911 }
 0x580   :  { %8839 = vst [vmem:[#allocation140_spill] sm:$0xff] %v6536_v31 }
 0x581   :  { %v6542_v44 = vpop.permute.xlu0 %1917 }
 0x582   :  { %8842 = vst [vmem:[#allocation143_spill] sm:$0xff] %v6542_v44 }
 0x583   :  { %v6540_v2 = vpop.permute.xlu1 %1915 }
 0x584   :  { %8841 = vst [vmem:[#allocation142_spill] sm:$0xff] %v6540_v2 }
 0x585   :  { %v1953_v3 = vpop.permute.xlu0 %1952 }
 0x586   :  { %v1959_v43 = vmul.f32 %v1953_v3, %v5990_v50  ;;  %v1961_v54 = vmul.f32 %v1953_v3, %v5999_v11  ;;  %v1963_v13 = vmul.f32 %v1953_v3, %v6008_v58 }
 0x587   :  { %v6544_v59 = vpop.permute.xlu1 %1919 }
 0x588   :  { %8843 = vst [vmem:[#allocation144_spill] sm:$0xff] %v6544_v59  ;;  %v1975_v8 = vrot.slane %v1959_v43, 1  ;;  %v1976_v63 = vrot.slane %v1961_v54, 1  ;;  %v1965_v59 = vmul.f32 %v1953_v3, %v6017_v7  ;;  %v1981_v31 = vrot.slane %v1963_v13, 1 }
 0x58a   :  { %v1977_v30 = vsel %vm379_vm2, %v1975_v8, %v1976_v63  ;;  %v1982_v9 = vrot.slane %v1965_v59, 1 }
 0x58b   :  { %v1955_v42 = vpop.permute.xlu1 %1954  ;;  %1987 = vrot.lane.b32.xlu0 %v1977_v30, %s5040_s30 }
 0x58c   :  { %v1956_v60 = vsel %vm1077_vm7, %v1953_v3, %v1955_v42  ;;  %v1983_v3 = vsel %vm379_vm2, %v1981_v31, %v1982_v9 }
 0x58d   :  { %v1960_v51 = vmul.f32 %v1956_v60, %v5987_v57  ;;  %v1962_v44 = vmul.f32 %v1956_v60, %v5995_v0  ;;  %v1964_v43 = vmul.f32 %v1956_v60, %v6005_v40  ;;  %v1966_v54 = vmul.f32 %v1956_v60, %v6014_v6 }
 0x58f   :  { %v1978_v2 = vrot.slane %v1960_v51, 1  ;;  %v1979_v18 = vrot.slane %v1962_v44, 1  ;;  %1991 = vrot.lane.b32.xlu0 %v1976_v63, %s5040_s30  ;;  %v1984_v8 = vrot.slane %v1964_v43, 1  ;;  %v1985_v21 = vrot.slane %v1966_v54, 1 }
 0x590   :  { %v4862_v51 = vld [vmem:[%s8509_s3 + $0x16] ss:$8 sm:$0x3] }
 0x591   :  { %v1980_v42 = vsel %vm379_vm2, %v1978_v2, %v1979_v18  ;;  %v1986_v44 = vsel %vm379_vm2, %v1984_v8, %v1985_v21  ;;  %v2029_v2 = vrot.slane %v4862_v51, %v8737_v10  ;;  %v2033_v31 = vrot.slane %v4862_v51, %v8735_v4 }
 0x592   :  { %1989 = vrot.lane.b32.xlu1 %v1980_v42, %s5040_s30 }
 0x593   :  { %1995 = vrot.lane.b32.xlu0 %v1983_v3, %s5040_s30 }
 0x596   :  { %1993 = vrot.lane.b32.xlu1 %v1979_v18, %s5040_s30 }
 0x597   :  { %1999 = vrot.lane.b32.xlu0 %v1982_v9, %s5040_s30 }
 0x59a   :  { %1997 = vrot.lane.b32.xlu1 %v1986_v44, %s5040_s30 }
 0x59b   :  { %2034 = vrot.lane.b32.xlu0 %v2029_v2, %s5035_s7 }
 0x59e   :  { %2001 = vrot.lane.b32.xlu1 %v1985_v21, %s5040_s30 }
 0x5a2   :  { %2036 = vrot.lane.b32.xlu1 %v2033_v31, %s5035_s7 }
 0x5fd   :  { %v6574_v18 = vpop.permute.xlu0 %1987 }
 0x5fe   :  { %8844 = vst [vmem:[#allocation145_spill] sm:$0xff] %v6574_v18 }
 0x601   :  { %v6576_v59 = vpop.permute.xlu0 %1991 }
 0x602   :  { %8845 = vst [vmem:[#allocation146_spill] sm:$0xff] %v6576_v59 }
 0x604   :  { %v6578_v63 = vpop.permute.xlu1 %1989 }
 0x605   :  { %8846 = vst [vmem:[#allocation147_spill] sm:$0xff] %v6578_v63  ;;  %v6580_v60 = vpop.permute.xlu0 %1995 }
 0x606   :  { %8847 = vst [vmem:[#allocation148_spill] sm:$0xff] %v6580_v60 }
 0x608   :  { %v6582_v9 = vpop.permute.xlu1 %1993 }
 0x609   :  { %8848 = vst [vmem:[#allocation149_spill] sm:$0xff] %v6582_v9  ;;  %v6584_v13 = vpop.permute.xlu0 %1999 }
 0x60a   :  { %8849 = vst [vmem:[#allocation150_spill] sm:$0xff] %v6584_v13 }
 0x60c   :  { %v6586_v30 = vpop.permute.xlu1 %1997 }
 0x60d   :  { %8850 = vst [vmem:[#allocation151_spill] sm:$0xff] %v6586_v30  ;;  %v2035_v43 = vpop.permute.xlu0 %2034 }
 0x60e   :  { %v2041_v54 = vmul.f32 %v2035_v43, %v5990_v50  ;;  %v2043_v42 = vmul.f32 %v2035_v43, %v5999_v11  ;;  %v2045_v31 = vmul.f32 %v2035_v43, %v6008_v58  ;;  %v2047_v13 = vmul.f32 %v2035_v43, %v6017_v7 }
 0x610   :  { %v6588_v21 = vpop.permute.xlu1 %2001  ;;  %v2057_v8 = vrot.slane %v2041_v54, 1  ;;  %v2058_v3 = vrot.slane %v2043_v42, 1  ;;  %v2063_v9 = vrot.slane %v2045_v31, 1  ;;  %v2064_v54 = vrot.slane %v2047_v13, 1 }
 0x611   :  { %8851 = vst [vmem:[#allocation152_spill] sm:$0xff] %v6588_v21 }
 0x612   :  { %v2059_v44 = vsel %vm379_vm2, %v2057_v8, %v2058_v3 }
 0x613   :  { %2069 = vrot.lane.b32.xlu0 %v2059_v44, %s5041_s10 }
 0x614   :  { %v2037_v51 = vpop.permute.xlu1 %2036 }
 0x615   :  { %v2038_v2 = vsel %vm1149_vm8, %v2035_v43, %v2037_v51  ;;  %v2065_v43 = vsel %vm379_vm2, %v2063_v9, %v2064_v54 }
 0x616   :  { %v2042_v60 = vmul.f32 %v2038_v2, %v5987_v57  ;;  %v2044_v21 = vmul.f32 %v2038_v2, %v5995_v0  ;;  %v2046_v42 = vmul.f32 %v2038_v2, %v6005_v40  ;;  %v2048_v8 = vmul.f32 %v2038_v2, %v6014_v6 }
 0x617   :  { %2073 = vrot.lane.b32.xlu0 %v2058_v3, %s5041_s10 }
 0x618   :  { %v2060_v30 = vrot.slane %v2042_v60, 1  ;;  %v2061_v59 = vrot.slane %v2044_v21, 1  ;;  %v2066_v44 = vrot.slane %v2046_v42, 1  ;;  %v2067_v18 = vrot.slane %v2048_v8, 1 }
 0x619   :  { %v4863_v60 = vld [vmem:[%s8509_s3 + $0x25] ss:$8 sm:$0x3] }
 0x61a   :  { %v2062_v51 = vsel %vm379_vm2, %v2060_v30, %v2061_v59  ;;  %v2111_v13 = vrot.slane %v4863_v60, %v8737_v10  ;;  %v2068_v30 = vsel %vm379_vm2, %v2066_v44, %v2067_v18  ;;  %v2115_v9 = vrot.slane %v4863_v60, %v8735_v4 }
 0x61b   :  { %2071 = vrot.lane.b32.xlu1 %v2062_v51, %s5041_s10  ;;  %2077 = vrot.lane.b32.xlu0 %v2065_v43, %s5041_s10 }
 0x61f   :  { %2075 = vrot.lane.b32.xlu1 %v2061_v59, %s5041_s10  ;;  %2081 = vrot.lane.b32.xlu0 %v2064_v54, %s5041_s10 }
 0x623   :  { %2079 = vrot.lane.b32.xlu1 %v2068_v30, %s5041_s10  ;;  %2116 = vrot.lane.b32.xlu0 %v2111_v13, %s5036_s15 }
 0x627   :  { %2083 = vrot.lane.b32.xlu1 %v2067_v18, %s5041_s10 }
 0x62b   :  { %2118 = vrot.lane.b32.xlu1 %v2115_v9, %s5036_s15 }
 0x685   :  { %v6618_v59 = vpop.permute.xlu0 %2069 }
 0x686   :  { %8852 = vst [vmem:[#allocation153_spill] sm:$0xff] %v6618_v59 }
 0x689   :  { %v6620_v21 = vpop.permute.xlu0 %2073 }
 0x68a   :  { %8853 = vst [vmem:[#allocation154_spill] sm:$0xff] %v6620_v21 }
 0x68d   :  { %v6622_v3 = vpop.permute.xlu1 %2071  ;;  %v6624_v2 = vpop.permute.xlu0 %2077 }
 0x68e   :  { %8854 = vst [vmem:[#allocation155_spill] sm:$0xff] %v6622_v3  ;;  %8855 = vst [vmem:[#allocation156_spill] sm:$0xff] %v6624_v2 }
 0x691   :  { %v6626_v31 = vpop.permute.xlu1 %2075  ;;  %v6628_v54 = vpop.permute.xlu0 %2081 }
 0x692   :  { %8856 = vst [vmem:[#allocation157_spill] sm:$0xff] %v6626_v31  ;;  %8857 = vst [vmem:[#allocation158_spill] sm:$0xff] %v6628_v54 }
 0x695   :  { %v6630_v42 = vpop.permute.xlu1 %2079  ;;  %v2117_v8 = vpop.permute.xlu0 %2116 }
 0x696   :  { %8858 = vst [vmem:[#allocation159_spill] sm:$0xff] %v6630_v42  ;;  %v2123_v51 = vmul.f32 %v2117_v8, %v5990_v50  ;;  %v2125_v43 = vmul.f32 %v2117_v8, %v5999_v11  ;;  %v2127_v9 = vmul.f32 %v2117_v8, %v6008_v58  ;;  %v2129_v2 = vmul.f32 %v2117_v8, %v6017_v7 }
 0x698   :  { %v2139_v44 = vrot.slane %v2123_v51, 1  ;;  %v2140_v60 = vrot.slane %v2125_v43, 1  ;;  %v2145_v59 = vrot.slane %v2127_v9, 1  ;;  %v2146_v51 = vrot.slane %v2129_v2, 1 }
 0x699   :  { %v6632_v18 = vpop.permute.xlu1 %2083  ;;  %v4864_v2 = vld [vmem:[%s8509_s3 + $0x26] ss:$8 sm:$0x3] }
 0x69a   :  { %8859 = vst [vmem:[#allocation160_spill] sm:$0xff] %v6632_v18  ;;  %v2141_v13 = vsel %vm379_vm2, %v2139_v44, %v2140_v60 }
 0x69b   :  { %2151 = vrot.lane.b32.xlu0 %v2141_v13, %s5042_s12 }
 0x69d   :  { %v2119_v30 = vpop.permute.xlu1 %2118 }
 0x69e   :  { %v2120_v54 = vsel %vm1221_vm9, %v2117_v8, %v2119_v30  ;;  %v2147_v8 = vsel %vm379_vm2, %v2145_v59, %v2146_v51  ;;  %v2197_v59 = vrot.slane %v4864_v2, %v8735_v4 }
 0x69f   :  { %v2124_v42 = vmul.f32 %v2120_v54, %v5987_v57  ;;  %v2126_v18 = vmul.f32 %v2120_v54, %v5995_v0  ;;  %2155 = vrot.lane.b32.xlu0 %v2140_v60, %s5042_s12  ;;  %v2128_v43 = vmul.f32 %v2120_v54, %v6005_v40  ;;  %v2130_v44 = vmul.f32 %v2120_v54, %v6014_v6 }
 0x6a0   :  { %v2193_v54 = vrot.slane %v4864_v2, %v8737_v10 }
 0x6a1   :  { %v2142_v21 = vrot.slane %v2124_v42, 1  ;;  %v2143_v31 = vrot.slane %v2126_v18, 1  ;;  %v2148_v13 = vrot.slane %v2128_v43, 1  ;;  %v2149_v30 = vrot.slane %v2130_v44, 1 }
 0x6a3   :  { %v2144_v3 = vsel %vm379_vm2, %v2142_v21, %v2143_v31  ;;  %2159 = vrot.lane.b32.xlu0 %v2147_v8, %s5042_s12  ;;  %v2150_v21 = vsel %vm379_vm2, %v2148_v13, %v2149_v30 }
 0x6a4   :  { %2153 = vrot.lane.b32.xlu1 %v2144_v3, %s5042_s12 }
 0x6a7   :  { %2163 = vrot.lane.b32.xlu0 %v2146_v51, %s5042_s12 }
 0x6a8   :  { %2157 = vrot.lane.b32.xlu1 %v2143_v31, %s5042_s12 }
 0x6ab   :  { %2198 = vrot.lane.b32.xlu0 %v2193_v54, %s5037_s19 }
 0x6ac   :  { %2161 = vrot.lane.b32.xlu1 %v2150_v21, %s5042_s12 }
 0x6b0   :  { %2165 = vrot.lane.b32.xlu1 %v2149_v30, %s5042_s12 }
 0x6b4   :  { %2200 = vrot.lane.b32.xlu1 %v2197_v59, %s5037_s19 }
 0x70d   :  { %v6662_v3 = vpop.permute.xlu0 %2151 }
 0x70e   :  { %8860 = vst [vmem:[#allocation161_spill] sm:$0xff] %v6662_v3 }
 0x711   :  { %v6664_v42 = vpop.permute.xlu0 %2155 }
 0x712   :  { %8861 = vst [vmem:[#allocation162_spill] sm:$0xff] %v6664_v42 }
 0x715   :  { %v6668_v18 = vpop.permute.xlu0 %2159 }
 0x716   :  { %v6666_v31 = vpop.permute.xlu1 %2153  ;;  %8863 = vst [vmem:[#allocation164_spill] sm:$0xff] %v6668_v18 }
 0x717   :  { %8862 = vst [vmem:[#allocation163_spill] sm:$0xff] %v6666_v31 }
 0x719   :  { %v6672_v9 = vpop.permute.xlu0 %2163 }
 0x71a   :  { %v6670_v60 = vpop.permute.xlu1 %2157  ;;  %8865 = vst [vmem:[#allocation166_spill] sm:$0xff] %v6672_v9 }
 0x71b   :  { %8864 = vst [vmem:[#allocation165_spill] sm:$0xff] %v6670_v60 }
 0x71d   :  { %v2199_v43 = vpop.permute.xlu0 %2198 }
 0x71e   :  { %v6674_v51 = vpop.permute.xlu1 %2161  ;;  %v2205_v44 = vmul.f32 %v2199_v43, %v5990_v50  ;;  %v2207_v8 = vmul.f32 %v2199_v43, %v5999_v11  ;;  %v2209_v21 = vmul.f32 %v2199_v43, %v6008_v58  ;;  %v2211_v59 = vmul.f32 %v2199_v43, %v6017_v7 }
 0x71f   :  { %8866 = vst [vmem:[#allocation167_spill] sm:$0xff] %v6674_v51 }
 0x720   :  { %v2221_v30 = vrot.slane %v2205_v44, 1  ;;  %v2222_v2 = vrot.slane %v2207_v8, 1  ;;  %v2227_v60 = vrot.slane %v2209_v21, 1  ;;  %v2228_v3 = vrot.slane %v2211_v59, 1 }
 0x722   :  { %v6678_v13 = vpop.permute.xlu1 %2165  ;;  %v2223_v54 = vsel %vm379_vm2, %v2221_v30, %v2222_v2 }
 0x723   :  { %8867 = vst [vmem:[#allocation168_spill] sm:$0xff] %v6678_v13  ;;  %2233 = vrot.lane.b32.xlu0 %v2223_v54, %s5043_s13  ;;  %v2229_v54 = vsel %vm379_vm2, %v2227_v60, %v2228_v3 }
 0x726   :  { %v2201_v9 = vpop.permute.xlu1 %2200 }
 0x727   :  { %v2202_v18 = vsel %vm1293_vm10, %v2199_v43, %v2201_v9  ;;  %2237 = vrot.lane.b32.xlu0 %v2222_v2, %s5043_s13  ;;  %v4865_v9 = vld [vmem:[%s8509_s3 + $0x27] ss:$8 sm:$0x3] }
 0x728   :  { %v2206_v51 = vmul.f32 %v2202_v18, %v5987_v57  ;;  %v2208_v42 = vmul.f32 %v2202_v18, %v5995_v0  ;;  %v2210_v8 = vmul.f32 %v2202_v18, %v6005_v40  ;;  %v2212_v30 = vmul.f32 %v2202_v18, %v6014_v6 }
 0x729   :  { %v2275_v18 = vrot.slane %v4865_v9, %v8737_v10 }
 0x72a   :  { %v2224_v13 = vrot.slane %v2206_v51, 1  ;;  %v2225_v44 = vrot.slane %v2208_v42, 1  ;;  %v2230_v51 = vrot.slane %v2210_v8, 1  ;;  %v2231_v42 = vrot.slane %v2212_v30, 1 }
 0x72b   :  { %2241 = vrot.lane.b32.xlu0 %v2229_v54, %s5043_s13 }
 0x72c   :  { %v2226_v31 = vsel %vm379_vm2, %v2224_v13, %v2225_v44  ;;  %v2232_v43 = vsel %vm379_vm2, %v2230_v51, %v2231_v42 }
 0x72d   :  { %2235 = vrot.lane.b32.xlu1 %v2226_v31, %s5043_s13  ;;  %v2279_v31 = vrot.slane %v4865_v9, %v8735_v4 }
 0x72f   :  { %2245 = vrot.lane.b32.xlu0 %v2228_v3, %s5043_s13 }
 0x731   :  { %2239 = vrot.lane.b32.xlu1 %v2225_v44, %s5043_s13 }
 0x733   :  { %2280 = vrot.lane.b32.xlu0 %v2275_v18, %s5038_s20 }
 0x735   :  { %2243 = vrot.lane.b32.xlu1 %v2232_v43, %s5043_s13 }
 0x739   :  { %2247 = vrot.lane.b32.xlu1 %v2231_v42, %s5043_s13 }
 0x73d   :  { %2282 = vrot.lane.b32.xlu1 %v2279_v31, %s5038_s20 }
 0x795   :  { %v6706_v60 = vpop.permute.xlu0 %2233 }
 0x796   :  { %8868 = vst [vmem:[#allocation169_spill] sm:$0xff] %v6706_v60 }
 0x799   :  { %v6708_v13 = vpop.permute.xlu0 %2237 }
 0x79a   :  { %8869 = vst [vmem:[#allocation170_spill] sm:$0xff] %v6708_v13 }
 0x79d   :  { %v6712_v3 = vpop.permute.xlu0 %2241 }
 0x79e   :  { %8871 = vst [vmem:[#allocation172_spill] sm:$0xff] %v6712_v3 }
 0x79f   :  { %v6710_v2 = vpop.permute.xlu1 %2235 }
 0x7a0   :  { %8870 = vst [vmem:[#allocation171_spill] sm:$0xff] %v6710_v2 }
 0x7a1   :  { %v6716_v59 = vpop.permute.xlu0 %2245 }
 0x7a2   :  { %8873 = vst [vmem:[#allocation174_spill] sm:$0xff] %v6716_v59 }
 0x7a3   :  { %v6714_v21 = vpop.permute.xlu1 %2239 }
 0x7a4   :  { %8872 = vst [vmem:[#allocation173_spill] sm:$0xff] %v6714_v21 }
 0x7a5   :  { %v2281_v8 = vpop.permute.xlu0 %2280 }
 0x7a6   :  { %v2287_v30 = vmul.f32 %v2281_v8, %v5990_v50  ;;  %v2289_v54 = vmul.f32 %v2281_v8, %v5999_v11  ;;  %v2291_v43 = vmul.f32 %v2281_v8, %v6008_v58  ;;  %v2293_v31 = vmul.f32 %v2281_v8, %v6017_v7 }
 0x7a7   :  { %v6718_v44 = vpop.permute.xlu1 %2243 }
 0x7a8   :  { %8874 = vst [vmem:[#allocation175_spill] sm:$0xff] %v6718_v44  ;;  %v2303_v9 = vrot.slane %v2287_v30, 1  ;;  %v2304_v51 = vrot.slane %v2289_v54, 1  ;;  %v2309_v21 = vrot.slane %v2291_v43, 1  ;;  %v2310_v30 = vrot.slane %v2293_v31, 1 }
 0x7aa   :  { %v2305_v18 = vsel %vm379_vm2, %v2303_v9, %v2304_v51  ;;  %v2311_v2 = vsel %vm379_vm2, %v2309_v21, %v2310_v30 }
 0x7ab   :  { %v6722_v42 = vpop.permute.xlu1 %2247  ;;  %2315 = vrot.lane.b32.xlu0 %v2305_v18, %s5044_s16 }
 0x7ac   :  { %8875 = vst [vmem:[#allocation176_spill] sm:$0xff] %v6722_v42 }
 0x7af   :  { %v2283_v59 = vpop.permute.xlu1 %2282  ;;  %2319 = vrot.lane.b32.xlu0 %v2304_v51, %s5044_s16 }
 0x7b0   :  { %v2284_v3 = vsel %vm1365_vm11, %v2281_v8, %v2283_v59  ;;  %v4866_v59 = vld [vmem:[%s8509_s3 + $0x36] ss:$8 sm:$0x3] }
 0x7b1   :  { %v2288_v44 = vmul.f32 %v2284_v3, %v5987_v57  ;;  %v2290_v13 = vmul.f32 %v2284_v3, %v5995_v0  ;;  %v2292_v9 = vmul.f32 %v2284_v3, %v6005_v40  ;;  %v2294_v60 = vmul.f32 %v2284_v3, %v6014_v6 }
 0x7b3   :  { %v2306_v54 = vrot.slane %v2288_v44, 1  ;;  %v2307_v42 = vrot.slane %v2290_v13, 1  ;;  %2323 = vrot.lane.b32.xlu0 %v2311_v2, %s5044_s16  ;;  %v2312_v8 = vrot.slane %v2292_v9, 1  ;;  %v2313_v51 = vrot.slane %v2294_v60, 1 }
 0x7b4   :  { %v2357_v13 = vrot.slane %v4866_v59, %v8737_v10  ;;  %v2361_v2 = vrot.slane %v4866_v59, %v8735_v4 }
 0x7b5   :  { %v2308_v18 = vsel %vm379_vm2, %v2306_v54, %v2307_v42  ;;  %v2314_v3 = vsel %vm379_vm2, %v2312_v8, %v2313_v51 }
 0x7b6   :  { %2317 = vrot.lane.b32.xlu1 %v2308_v18, %s5044_s16 }
 0x7b7   :  { %2327 = vrot.lane.b32.xlu0 %v2310_v30, %s5044_s16 }
 0x7ba   :  { %2321 = vrot.lane.b32.xlu1 %v2307_v42, %s5044_s16 }
 0x7bb   :  { %2362 = vrot.lane.b32.xlu0 %v2357_v13, %s5045_s23 }
 0x7be   :  { %2325 = vrot.lane.b32.xlu1 %v2314_v3, %s5044_s16  ;;  %v4867_v3 = vld [vmem:[%s8509_s3 + $0x37] ss:$8 sm:$0x3] }
 0x7c2   :  { %2329 = vrot.lane.b32.xlu1 %v2313_v51, %s5044_s16 }
 0x7c6   :  { %2364 = vrot.lane.b32.xlu1 %v2361_v2, %s5045_s23 }
 0x81d   :  { %v6750_v21 = vpop.permute.xlu0 %2315 }
 0x81e   :  { %8876 = vst [vmem:[#allocation177_spill] sm:$0xff] %v6750_v21 }
 0x821   :  { %v6752_v60 = vpop.permute.xlu0 %2319 }
 0x822   :  { %8877 = vst [vmem:[#allocation178_spill] sm:$0xff] %v6752_v60 }
 0x825   :  { %v6754_v44 = vpop.permute.xlu0 %2323 }
 0x826   :  { %8878 = vst [vmem:[#allocation179_spill] sm:$0xff] %v6754_v44 }
 0x828   :  { %v6756_v42 = vpop.permute.xlu1 %2317 }
 0x829   :  { %8879 = vst [vmem:[#allocation180_spill] sm:$0xff] %v6756_v42  ;;  %v6758_v43 = vpop.permute.xlu0 %2327 }
 0x82a   :  { %8880 = vst [vmem:[#allocation181_spill] sm:$0xff] %v6758_v43 }
 0x82c   :  { %v6760_v31 = vpop.permute.xlu1 %2321 }
 0x82d   :  { %8881 = vst [vmem:[#allocation182_spill] sm:$0xff] %v6760_v31  ;;  %v6762_v30 = vpop.permute.xlu0 %2362 }
 0x82e   :  { %v2369_v9 = vmul.f32 %v6762_v30, %v5990_v50  ;;  %v2371_v18 = vmul.f32 %v6762_v30, %v5999_v11 }
 0x830   :  { %v6764_v54 = vpop.permute.xlu1 %2325  ;;  %v2385_v59 = vrot.slane %v2369_v9, 1  ;;  %v2386_v8 = vrot.slane %v2371_v18, 1 }
 0x831   :  { %8882 = vst [vmem:[#allocation183_spill] sm:$0xff] %v6764_v54  ;;  %v4870_v54 = vld [vmem:[%s8509_s3 + $0x7] ss:$8 sm:$0x3] }
 0x832   :  { %v2387_v13 = vsel %vm379_vm2, %v2385_v59, %v2386_v8  ;;  %v2439_v59 = vrot.slane %v4867_v3, %v8737_v10  ;;  %v2660_v60 = vrot.slane %v4870_v54, %v8737_v10 }
 0x833   :  { %2397 = vrot.lane.b32.xlu0 %v2387_v13, %s5046_s24  ;;  %v4868_v13 = vld [vmem:[%s8509_s3 + $0x40] ss:$8 sm:$0x3] }
 0x834   :  { %v6770_v51 = vpop.permute.xlu1 %2329 }
 0x835   :  { %8883 = vst [vmem:[#allocation184_spill] sm:$0xff] %v6770_v51 }
 0x837   :  { %2401 = vrot.lane.b32.xlu0 %v2386_v8, %s5046_s24 }
 0x838   :  { %v2365_v2 = vpop.permute.xlu1 %2364 }
 0x839   :  { %v6779_v43 = vsel %vm1437_vm12, %v6762_v30, %v2365_v2  ;;  %v2521_v2 = vrot.slane %v4868_v13, %v8737_v10 }
 0x83a   :  { %v2370_v9 = vmul.f32 %v6779_v43, %v5987_v57  ;;  %v2372_v18 = vmul.f32 %v6779_v43, %v5995_v0 }
 0x83b   :  { %2444 = vrot.lane.b32.xlu0 %v2439_v59, %s5047_s27  ;;  %v4872_v59 = vld [vmem:[%s8509_s3 + $0x17] ss:$8 sm:$0x3] }
 0x83c   :  { %v2388_v51 = vrot.slane %v2370_v9, 1  ;;  %v2389_v44 = vrot.slane %v2372_v18, 1  ;;  %v4871_v9 = vld [vmem:[%s8509_s3 + $0x10] ss:$8 sm:$0x3]  ;;  %v2443_v18 = vrot.slane %v4867_v3, %v8735_v4  ;;  %v2664_v3 = vrot.slane %v4870_v54, %v8735_v4 }
 0x83d   :  { %v4875_v54 = vld [vmem:[%s8509_s3 + $0x30] ss:$8 sm:$0x3] }
 0x83e   :  { %v2390_v8 = vsel %vm379_vm2, %v2388_v51, %v2389_v44  ;;  %v2742_v51 = vrot.slane %v4871_v9, %v8737_v10 }
 0x83f   :  { %2399 = vrot.lane.b32.xlu1 %v2390_v8, %s5046_s24  ;;  %2526 = vrot.lane.b32.xlu0 %v2521_v2, %s5049_s21  ;;  %v2525_v2 = vrot.slane %v4868_v13, %v8735_v4  ;;  %v4874_v13 = vld [vmem:[%s8509_s3 + $0x21] ss:$8 sm:$0x3] }
 0x843   :  { %2403 = vrot.lane.b32.xlu1 %v2389_v44, %s5046_s24  ;;  %2665 = vrot.lane.b32.xlu0 %v2660_v60, %s5030_s11  ;;  %v2824_v44 = vrot.slane %v4872_v59, %v8737_v10  ;;  %v4873_v60 = vld [vmem:[%s8509_s3 + $0x20] ss:$8 sm:$0x3] }
 0x844   :  { %v2906_v8 = vrot.slane %v4873_v60, %v8737_v10 }
 0x847   :  { %2446 = vrot.lane.b32.xlu1 %v2443_v18, %s5047_s27  ;;  %2747 = vrot.lane.b32.xlu0 %v2742_v51, %s5026_s18  ;;  %v2746_v18 = vrot.slane %v4871_v9, %v8735_v4  ;;  %v2988_v51 = vrot.slane %v4874_v13, %v8737_v10  ;;  %v4876_v9 = vld [vmem:[%s8509_s3 + $0x31] ss:$8 sm:$0x3] }
 0x84b   :  { %2528 = vrot.lane.b32.xlu1 %v2525_v2, %s5049_s21  ;;  %2829 = vrot.lane.b32.xlu0 %v2824_v44, %s5031_s26  ;;  %v2828_v2 = vrot.slane %v4872_v59, %v8735_v4  ;;  %v3070_v44 = vrot.slane %v4875_v54, %v8737_v10  ;;  %v4877_v59 = vld [vmem:[%s8509_s3 + $0x32] ss:$8 sm:$0x3] }
 0x84f   :  { %2667 = vrot.lane.b32.xlu1 %v2664_v3, %s5030_s11  ;;  %2911 = vrot.lane.b32.xlu0 %v2906_v8, %s5034_s29  ;;  %v2910_v3 = vrot.slane %v4873_v60, %v8735_v4  ;;  %v3152_v8 = vrot.slane %v4876_v9, %v8737_v10  ;;  %v4878_v60 = vld [vmem:[%s8509_s3 + $0x41] ss:$8 sm:$0x3] }
 0x853   :  { %2749 = vrot.lane.b32.xlu1 %v2746_v18, %s5026_s18  ;;  %2993 = vrot.lane.b32.xlu0 %v2988_v51, %s5035_s7  ;;  %v2992_v18 = vrot.slane %v4874_v13, %v8735_v4  ;;  %v3234_v51 = vrot.slane %v4877_v59, %v8737_v10  ;;  %v4879_v13 = vld [vmem:[%s8509_s3 + $0x42] ss:$8 sm:$0x3] }
 0x857   :  { %2831 = vrot.lane.b32.xlu1 %v2828_v2, %s5031_s26  ;;  %3075 = vrot.lane.b32.xlu0 %v3070_v44, %s5036_s15  ;;  %v3074_v2 = vrot.slane %v4875_v54, %v8735_v4  ;;  %v3316_v44 = vrot.slane %v4878_v60, %v8737_v10  ;;  %v4880_v54 = vld [vmem:[%s8509_s3 + $0x43] ss:$8 sm:$0x3] }
 0x85b   :  { %2913 = vrot.lane.b32.xlu1 %v2910_v3, %s5034_s29  ;;  %3157 = vrot.lane.b32.xlu0 %v3152_v8, %s5037_s19  ;;  %v3156_v3 = vrot.slane %v4876_v9, %v8735_v4  ;;  %v3398_v8 = vrot.slane %v4879_v13, %v8737_v10  ;;  %v3480_v9 = vrot.slane %v4880_v54, %v8737_v10 }
 0x85f   :  { %2995 = vrot.lane.b32.xlu1 %v2992_v18, %s5035_s7  ;;  %3239 = vrot.lane.b32.xlu0 %v3234_v51, %s5038_s20  ;;  %v3238_v18 = vrot.slane %v4877_v59, %v8735_v4  ;;  %v2373_v51 = vmul.f32 %v6762_v30, %v6008_v58  ;;  %v3402_v59 = vrot.slane %v4879_v13, %v8735_v4 }
 0x863   :  { %3077 = vrot.lane.b32.xlu1 %v3074_v2, %s5036_s15  ;;  %3321 = vrot.lane.b32.xlu0 %v3316_v44, %s5045_s23  ;;  %v2375_v2 = vmul.f32 %v6762_v30, %v6017_v7  ;;  %v3320_v44 = vrot.slane %v4878_v60, %v8735_v4  ;;  %v2374_v30 = vmul.f32 %v6779_v43, %v6005_v40 }
 0x864   :  { %v3484_v60 = vrot.slane %v4880_v54, %v8735_v4 }
 0x865   :  { %v2392_v31 = vrot.slane %v2375_v2, 1 }
 0x867   :  { %3159 = vrot.lane.b32.xlu1 %v3156_v3, %s5037_s19  ;;  %3403 = vrot.lane.b32.xlu0 %v3398_v8, %s5047_s27  ;;  %v2391_v3 = vrot.slane %v2373_v51, 1  ;;  %v2376_v8 = vmul.f32 %v6779_v43, %v6014_v6 }
 0x869   :  { %v2393_v21 = vsel %vm379_vm2, %v2391_v3, %v2392_v31  ;;  %v2395_v51 = vrot.slane %v2376_v8, 1 }
 0x86b   :  { %3241 = vrot.lane.b32.xlu1 %v3238_v18, %s5038_s20  ;;  %3485 = vrot.lane.b32.xlu0 %v3480_v9, %s5049_s21  ;;  %v2394_v18 = vrot.slane %v2374_v30, 1 }
 0x86d   :  { %v2396_v13 = vsel %vm379_vm2, %v2394_v18, %v2395_v51 }
 0x86f   :  { %3323 = vrot.lane.b32.xlu1 %v3320_v44, %s5045_s23  ;;  %2405 = vrot.lane.b32.xlu0 %v2393_v21, %s5046_s24 }
 0x873   :  { %3405 = vrot.lane.b32.xlu1 %v3402_v59, %s5047_s27  ;;  %2409 = vrot.lane.b32.xlu0 %v2392_v31, %s5046_s24 }
 0x877   :  { %3487 = vrot.lane.b32.xlu1 %v3484_v60, %s5049_s21 }
 0x87b   :  { %2407 = vrot.lane.b32.xlu1 %v2396_v13, %s5046_s24 }
 0x87f   :  { %2411 = vrot.lane.b32.xlu1 %v2395_v51, %s5046_s24 }
 0x8a5   :  { %v6891_v2 = vpop.permute.xlu0 %2397 }
 0x8a6   :  { %8884 = vst [vmem:[#allocation185_spill] sm:$0xff] %v6891_v2 }
 0x8a9   :  { %v6893_v43 = vpop.permute.xlu0 %2401 }
 0x8aa   :  { %8885 = vst [vmem:[#allocation186_spill] sm:$0xff] %v6893_v43 }
 0x8ad   :  { %v2445_v21 = vpop.permute.xlu0 %2444 }
 0x8ae   :  { %v2451_v54 = vmul.f32 %v2445_v21, %v5990_v50  ;;  %v2453_v44 = vmul.f32 %v2445_v21, %v5999_v11  ;;  %v2455_v31 = vmul.f32 %v2445_v21, %v6008_v58  ;;  %v2457_v3 = vmul.f32 %v2445_v21, %v6017_v7 }
 0x8b0   :  { %v2467_v59 = vrot.slane %v2451_v54, 1  ;;  %v2468_v30 = vrot.slane %v2453_v44, 1  ;;  %v2473_v60 = vrot.slane %v2455_v31, 1  ;;  %v2474_v13 = vrot.slane %v2457_v3, 1 }
 0x8b1   :  { %v6895_v9 = vpop.permute.xlu1 %2399  ;;  %v2527_v8 = vpop.permute.xlu0 %2526 }
 0x8b2   :  { %8886 = vst [vmem:[#allocation187_spill] sm:$0xff] %v6895_v9  ;;  %v2469_v18 = vsel %vm379_vm2, %v2467_v59, %v2468_v30  ;;  %v2537_v43 = vmul.f32 %v2527_v8, %v6008_v58  ;;  %v2539_v2 = vmul.f32 %v2527_v8, %v6017_v7  ;;  %v2475_v9 = vsel %vm379_vm2, %v2473_v60, %v2474_v13 }
 0x8b3   :  { %2479 = vrot.lane.b32.xlu0 %v2469_v18, %s5048_s1 }
 0x8b4   :  { %v2555_v63 = vrot.slane %v2537_v43, 1  ;;  %v2556_v29 = vrot.slane %v2539_v2, 1  ;;  %v2535_v2 = vmul.f32 %v2527_v8, %v5999_v11 }
 0x8b5   :  { %v6902_v51 = vpop.permute.xlu1 %2403 }
 0x8b6   :  { %8887 = vst [vmem:[#allocation188_spill] sm:$0xff] %v6902_v51  ;;  %v2533_v51 = vmul.f32 %v2527_v8, %v5990_v50  ;;  %v2557_v60 = vsel %vm379_vm2, %v2555_v63, %v2556_v29 }
 0x8b7   :  { %2487 = vrot.lane.b32.xlu0 %v2475_v9, %s5048_s1 }
 0x8b9   :  { %v2447_v42 = vpop.permute.xlu1 %2446 }
 0x8ba   :  { %v2448_v54 = vsel %vm1509_vm13, %v2445_v21, %v2447_v42 }
 0x8bb   :  { %v2452_v44 = vmul.f32 %v2448_v54, %v5987_v57  ;;  %v2454_v31 = vmul.f32 %v2448_v54, %v5995_v0  ;;  %v2456_v3 = vmul.f32 %v2448_v54, %v6005_v40  ;;  %v2458_v59 = vmul.f32 %v2448_v54, %v6014_v6  ;;  %2569 = vrot.lane.b32.xlu0 %v2557_v60, %s5050_s0 }
 0x8bd   :  { %v2470_v18 = vrot.slane %v2452_v44, 1  ;;  %v2471_v55 = vrot.slane %v2454_v31, 1  ;;  %v2529_v43 = vpop.permute.xlu1 %2528  ;;  %v2476_v21 = vrot.slane %v2456_v3, 1  ;;  %v2477_v9 = vrot.slane %v2458_v59, 1  ;;  %v2666_v3 = vpop.permute.xlu0 %2665 }
 0x8be   :  { %v2530_v42 = vsel %vm1581_vm14, %v2527_v8, %v2529_v43  ;;  %v2549_v44 = vrot.slane %v2533_v51, 1  ;;  %v2550_v31 = vrot.slane %v2535_v2, 1 }
 0x8bf   :  { %v2538_v41 = vmul.f32 %v2530_v42, %v6005_v40  ;;  %v2540_v16 = vmul.f32 %v2530_v42, %v6014_v6  ;;  %v2472_v54 = vsel %vm379_vm2, %v2470_v18, %v2471_v55  ;;  %2491 = vrot.lane.b32.xlu0 %v2474_v13, %s5048_s1  ;;  %v2478_v60 = vsel %vm379_vm2, %v2476_v21, %v2477_v9 }
 0x8c0   :  { %2481 = vrot.lane.b32.xlu1 %v2472_v54, %s5048_s1  ;;  %v2551_v8 = vsel %vm379_vm2, %v2549_v44, %v2550_v31  ;;  %v2534_v59 = vmul.f32 %v2530_v42, %v5987_v57  ;;  %v2536_v18 = vmul.f32 %v2530_v42, %v5995_v0 }
 0x8c1   :  { %v2558_v63 = vrot.slane %v2538_v41, 1  ;;  %v2559_v15 = vrot.slane %v2540_v16, 1  ;;  %v2676_v41 = vmul.f32 %v2666_v3, %v6008_v58  ;;  %v2678_v16 = vmul.f32 %v2666_v3, %v6017_v7  ;;  %v2668_v54 = vpop.permute.xlu1 %2667 }
 0x8c2   :  { %v2552_v13 = vrot.slane %v2534_v59, 1  ;;  %v2553_v43 = vrot.slane %v2536_v18, 1  ;;  %v2669_v44 = vsel %vm221_vm0, %v2666_v3, %v2668_v54  ;;  %vm1113_vm0 = vcmask 908288  }
 0x8c3   :  { %2561 = vrot.lane.b32.xlu0 %v2551_v8, %s5050_s0  ;;  %v2560_v51 = vsel %vm379_vm2, %v2558_v63, %v2559_v15  ;;  %v2694_v2 = vrot.slane %v2676_v41, 2  ;;  %v2695_v21 = vrot.slane %v2678_v16, 2  ;;  %v2748_v8 = vpop.permute.xlu0 %2747 }
 0x8c4   :  { %2489 = vrot.lane.b32.xlu1 %v2478_v60, %s5048_s1  ;;  %v2554_v42 = vsel %vm379_vm2, %v2552_v13, %v2553_v43  ;;  %v2672_v60 = vmul.f32 %v2666_v3, %v5990_v50  ;;  %v6952_v41 = vmul.f32 %v2748_v8, %v6017_v7 }
 0x8c5   :  { %v2696_v63 = vsel %vm601_vm3, %v2694_v2, %v2695_v21 }
 0x8c6   :  { %v2688_v59 = vrot.slane %v2672_v60, 2  ;;  %v2777_v54 = vrot.slane %v6952_v41, 2 }
 0x8c7   :  { %2483 = vrot.lane.b32.xlu0 %v2468_v30, %s5048_s1  ;;  %v6943_v30 = vmul.f32 %v2666_v3, %v5999_v11 }
 0x8c8   :  { %2571 = vrot.lane.b32.xlu1 %v2560_v51, %s5050_s0  ;;  %v2758_v51 = vmul.f32 %v2748_v8, %v6008_v58 }
 0x8c9   :  { %v2689_v18 = vrot.slane %v6943_v30, 2 }
 0x8ca   :  { %v2776_v2 = vrot.slane %v2758_v51, 2 }
 0x8cb   :  { %2573 = vrot.lane.b32.xlu0 %v2556_v29, %s5050_s0  ;;  %v2679_v29 = vmul.f32 %v2669_v44, %v6014_v6  ;;  %v2690_v13 = vsel %vm601_vm3, %v2688_v59, %v2689_v18 }
 0x8cc   :  { %2493 = vrot.lane.b32.xlu1 %v2477_v9, %s5048_s1  ;;  %v2677_v9 = vmul.f32 %v2669_v44, %v6005_v40  ;;  %v2778_v30 = vsel %vm601_vm3, %v2776_v2, %v2777_v54 }
 0x8cd   :  { %v2698_v16 = vrot.slane %v2679_v29, 2  ;;  %v2830_v29 = vpop.permute.xlu0 %2829 }
 0x8ce   :  { %v2697_v3 = vrot.slane %v2677_v9, 2  ;;  %v6969_v9 = vmul.f32 %v2748_v8, %v5999_v11  ;;  %v2840_v2 = vmul.f32 %v2830_v29, %v6008_v58 }
 0x8cf   :  { %2708 = vrot.lane.b32.xlu0 %v2696_v63, %s5032_s5  ;;  %v6961_v63 = vmul.f32 %v2669_v44, %v5995_v0 }
 0x8d0   :  { %2563 = vrot.lane.b32.xlu1 %v2554_v42, %s5050_s0  ;;  %v2673_v42 = vmul.f32 %v2669_v44, %v5987_v57  ;;  %v2699_v60 = vsel %vm601_vm3, %v2697_v3, %v2698_v16 }
 0x8d1   :  { %v2692_v44 = vrot.slane %v6961_v63, 2 }
 0x8d2   :  { %v2691_v59 = vrot.slane %v2673_v42, 2 }
 0x8d3   :  { %2565 = vrot.lane.b32.xlu0 %v2550_v31, %s5050_s0 }
 0x8d4   :  { %2485 = vrot.lane.b32.xlu1 %v2471_v55, %s5048_s1  ;;  %v2750_v55 = vpop.permute.xlu1 %2749  ;;  %v2693_v63 = vsel %vm601_vm3, %v2691_v59, %v2692_v44 }
 0x8d5   :  { %v2751_v31 = vsel %vm293_vm1, %v2748_v8, %v2750_v55  ;;  %vm1185_vm1 = vcmask 900096  }
 0x8d6   :  { %v2759_v51 = vmul.f32 %v2751_v31, %v6005_v40  ;;  %v6975_v41 = vmul.f32 %v2751_v31, %v6014_v6  ;;  %v2755_v35 = vmul.f32 %v2751_v31, %v5987_v57 }
 0x8d7   :  { %2700 = vrot.lane.b32.xlu0 %v2690_v13, %s5032_s5  ;;  %v8610_v13 = vrot.slane %v6969_v9, 2 }
 0x8d8   :  { %2575 = vrot.lane.b32.xlu1 %v2559_v15, %s5050_s0  ;;  %v2754_v15 = vmul.f32 %v2748_v8, %v5990_v50  ;;  %v6981_v8 = vmul.f32 %v2830_v29, %v6017_v7  ;;  %v2779_v55 = vrot.slane %v2759_v51, 2  ;;  %v2780_v42 = vrot.slane %v6975_v41, 2 }
 0x8da   :  { %v2770_v3 = vrot.slane %v2754_v15, 2  ;;  %v2832_v15 = vpop.permute.xlu1 %2831  ;;  %v2781_v51 = vsel %vm601_vm3, %v2779_v55, %v2780_v42  ;;  %v2836_v55 = vmul.f32 %v2830_v29, %v5990_v50 }
 0x8db   :  { %2790 = vrot.lane.b32.xlu0 %v2778_v30, %s5033_s22  ;;  %v8608_v30 = vrot.slane %v6981_v8, 2  ;;  %v2833_v59 = vsel %vm1005_vm6, %v2830_v29, %v2832_v15  ;;  %vm1329_vm6 = vcmask 777216  }
 0x8dc   :  { %2710 = vrot.lane.b32.xlu1 %v2699_v60, %s5032_s5  ;;  %v2772_v60 = vsel %vm601_vm3, %v2770_v3, %v8610_v13  ;;  %v2773_v3 = vrot.slane %v2755_v35, 2  ;;  %v7038_v13 = vmul.f32 %v2833_v59, %v5995_v0 }
 0x8de   :  { %8888 = vst [vmem:[#allocation189_spill] sm:$0xff] %v7038_v13 }
 0x8df   :  { %2712 = vrot.lane.b32.xlu0 %v2695_v21, %s5032_s5  ;;  %v6994_v21 = vmul.f32 %v2751_v31, %v5995_v0  ;;  %v7006_v31 = vmul.f32 %v2833_v59, %v6014_v6 }
 0x8e0   :  { %2567 = vrot.lane.b32.xlu1 %v2553_v43, %s5050_s0  ;;  %v2858_v43 = vrot.slane %v2840_v2, 2 }
 0x8e1   :  { %v8609_v2 = vrot.slane %v6994_v21, 2  ;;  %v8614_v35 = vrot.slane %v7006_v31, 2 }
 0x8e2   :  { %v2860_v41 = vsel %vm601_vm3, %v2858_v43, %v8608_v30  ;;  %v2912_v43 = vpop.permute.xlu0 %2911 }
 0x8e3   :  { %2782 = vrot.lane.b32.xlu0 %v2772_v60, %s5033_s22  ;;  %v7011_v60 = vmul.f32 %v2830_v29, %v5999_v11  ;;  %v2922_v30 = vmul.f32 %v2912_v43, %v6008_v58  ;;  %v7022_v29 = vmul.f32 %v2912_v43, %v6017_v7 }
 0x8e4   :  { %2702 = vrot.lane.b32.xlu1 %v2693_v63, %s5032_s5  ;;  %v2841_v63 = vmul.f32 %v2833_v59, %v6005_v40 }
 0x8e6   :  { %v2861_v15 = vrot.slane %v2841_v63, 2 }
 0x8e7   :  { %2872 = vrot.lane.b32.xlu0 %v2860_v41, %s5039_s2  ;;  %v2852_v41 = vrot.slane %v2836_v55, 2  ;;  %v2940_v55 = vrot.slane %v2922_v30, 2  ;;  %v822_v30 = vld [vmem:[%s8509_s3] ss:$8 sm:$0x3] }
 0x8e8   :  { %2792 = vrot.lane.b32.xlu1 %v2781_v51, %s5033_s22  ;;  %v2775_v51 = vsel %vm601_vm3, %v2773_v3, %v8609_v2  ;;  %v2863_v63 = vsel %vm601_vm3, %v2861_v15, %v8614_v35  ;;  %v2914_v2 = vpop.permute.xlu1 %2913  ;;  %v8891_v35 = vrot.slane %v6969_v9, 2  ;;  %v7074_v37 = vrot.slane %v822_v30, %v8737_v10 }
 0x8e9   :  { %v2915_v36 = vsel %vm1077_vm7, %v2912_v43, %v2914_v2  ;;  %v831_v2 = vrot.slane %v822_v30, %v8735_v4  ;;  %vm1401_vm7 = vcmask 769024  }
 0x8ea   :  { %v7116_v30 = vmul.f32 %v7074_v37, %v5999_v11  ;;  %v7127_v46 = vmul.f32 %v7074_v37, %v6017_v7 }
 0x8eb   :  { %2704 = vrot.lane.b32.xlu0 %v2689_v18, %s5032_s5  ;;  %v7025_v18 = vpop.permute.xlu0 %2993  ;;  %v835_v23 = vmul.f32 %v831_v2, %v5987_v57 }
 0x8ec   :  { %2714 = vrot.lane.b32.xlu1 %v2698_v16, %s5032_s5  ;;  %v8613_v16 = vrot.slane %v7011_v60, 2  ;;  %v2996_v53 = vpop.permute.xlu1 %2995 }
 0x8ee   :  { %v2854_v3 = vsel %vm601_vm3, %v2852_v41, %v8613_v16 }
 0x8ef   :  { %2794 = vrot.lane.b32.xlu0 %v2777_v54, %s5033_s22  ;;  %v2837_v54 = vmul.f32 %v2833_v59, %v5987_v57  ;;  %v7045_v41 = vpop.permute.xlu0 %3075  ;;  %v4857_v59 = vld [vmem:[%s8509_s3 + $0x3] ss:$8 sm:$0x3] }
 0x8f0   :  { %2784 = vrot.lane.b32.xlu1 %v2775_v51, %s5033_s22  ;;  %v8612_v51 = vrot.slane %v7022_v29, 2  ;;  %v1648_v16 = vrot.slane %v4857_v59, %v8735_v4  ;;  %v7140_v28 = vpop.permute.xlu1 %3077 }
 0x8f1   :  { %8902 = vst [vmem:[#allocation199_spill] sm:$0xff] %v7140_v28  ;;  %v834_v28 = vmul.f32 %v7074_v37, %v5990_v50 }
 0x8f2   :  { %v2942_v15 = vsel %vm601_vm3, %v2940_v55, %v8612_v51  ;;  %v7057_v55 = vmul.f32 %v2915_v36, %v6014_v6  ;;  %v7065_v51 = vmul.f32 %v2912_v43, %v5999_v11 }
 0x8f3   :  { %2864 = vrot.lane.b32.xlu0 %v2854_v3, %s5039_s2  ;;  %v2923_v3 = vmul.f32 %v2915_v36, %v6005_v40  ;;  %v7079_v49 = vpop.permute.xlu0 %3157 }
 0x8f4   :  { %2874 = vrot.lane.b32.xlu1 %v2863_v63, %s5039_s2  ;;  %v2855_v63 = vrot.slane %v2837_v54, 2  ;;  %8889 = vst [vmem:[#allocation190_spill] sm:$0xff] %v7057_v55  ;;  %8890 = vst [vmem:[#allocation191_spill] sm:$0xff] %v7065_v51  ;;  %v1644_v54 = vrot.slane %v4857_v59, %v8737_v10  ;;  %v8893_v59 = vrot.slane %v7038_v13, 2  ;;  %v8903_v38 = vrot.slane %v7065_v51, 2 }
 0x8f5   :  { %8892 = vst [vmem:[#allocation192_spill] sm:$0xff] %v7079_v49  ;;  %v7164_v13 = vmul.f32 %v2915_v36, %v5995_v0 }
 0x8f6   :  { %v2857_v39 = vsel %vm601_vm3, %v2855_v63, %v8893_v59  ;;  %v7097_v12 = vmul.f32 %v1644_v54, %v5999_v11  ;;  %v7100_v63 = vmul.f32 %v1648_v16, %v5995_v0  ;;  %v7112_v59 = vmul.f32 %v831_v2, %v5995_v0 }
 0x8f7   :  { %2954 = vrot.lane.b32.xlu0 %v2942_v15, %s5040_s30  ;;  %v2918_v15 = vmul.f32 %v2912_v43, %v5990_v50  ;;  %v2943_v43 = vrot.slane %v2923_v3, 2  ;;  %v7094_v3 = vmul.f32 %v7025_v18, %v6017_v7  ;;  %v7155_v51 = vpop.permute.xlu0 %3239 }
 0x8f8   :  { %2706 = vrot.lane.b32.xlu1 %v2692_v44, %s5032_s5  ;;  %v4869_v44 = vld [vmem:[%s8509_s3 + $0x6] ss:$8 sm:$0x3]  ;;  %8895 = vst [vmem:[#allocation194_spill] sm:$0xff] %v7100_v63  ;;  %8905 = vst [vmem:[#allocation201_spill] sm:$0xff] %v7155_v51  ;;  %s5051_s3 = smov 24  }
 0x8f9   :  { %v7086_v9 = vrot.slane %v4869_v44, %v8737_v10  ;;  %8894 = vst [vmem:[#allocation193_spill] sm:$0xff] %v7094_v3  ;;  %v7119_v10 = vmul.f32 %v831_v2, %v6014_v6  ;;  %v8906_v51 = vrot.slane %v7094_v3, 2 }
 0x8fb   :  { %2786 = vrot.lane.b32.xlu0 %v8891_v35, %s5033_s22  ;;  %v2934_v35 = vrot.slane %v2918_v15, 2  ;;  %v8897_v15 = vrot.slane %v6981_v8, 2  ;;  %v7123_v49 = vmul.f32 %v7086_v9, %v6017_v7  ;;  %v8899_v8 = vrot.slane %v7057_v55, 2  ;;  %v7200_v3 = vpop.permute.xlu0 %3321 }
 0x8fc   :  { %2796 = vrot.lane.b32.xlu1 %v2780_v42, %s5033_s22  ;;  %v7077_v42 = vrot.slane %v4869_v44, %v8735_v4  ;;  %v3004_v4 = vmul.f32 %v7025_v18, %v6008_v58  ;;  %v7103_v44 = vmul.f32 %v1644_v54, %v6017_v7  ;;  %v7138_v19 = vmul.f32 %v7086_v9, %v5999_v11 }
 0x8fd   :  { %8898 = vst [vmem:[#allocation196_spill] sm:$0xff] %v7123_v49  ;;  %v2936_v5 = vsel %vm601_vm3, %v2934_v35, %v8903_v38  ;;  %v1652_v38 = vmul.f32 %v1648_v16, %v5987_v57  ;;  %v1655_v35 = vmul.f32 %v1644_v54, %v6008_v58  ;;  %v1656_v55 = vmul.f32 %v1648_v16, %v6005_v40 }
 0x8fe   :  { %8896 = vst [vmem:[#allocation195_spill] sm:$0xff] %v7103_v44  ;;  %v7134_v34 = vmul.f32 %v7077_v42, %v6014_v6  ;;  %8901 = vst [vmem:[#allocation198_spill] sm:$0xff] %v7138_v19  ;;  %v3022_v48 = vrot.slane %v3004_v4, 2  ;;  %v1651_v4 = vmul.f32 %v1644_v54, %v5990_v50  ;;  %v8911_v19 = vrot.slane %v7011_v60, 2 }
 0x8ff   :  { %2876 = vrot.lane.b32.xlu0 %v8897_v15, %s5039_s2  ;;  %v2945_v15 = vsel %vm601_vm3, %v2943_v43, %v8899_v8  ;;  %v7149_v43 = vmul.f32 %v7077_v42, %v5995_v0  ;;  %v2919_v8 = vmul.f32 %v2915_v36, %v5987_v57  ;;  %v7191_v36 = vpop.permute.xlu1 %3159  ;;  %8909 = vst [vmem:[#allocation203_spill] sm:$0xff] %v7200_v3 }
 0x900   :  { %2866 = vrot.lane.b32.xlu1 %v2857_v39, %s5039_s2  ;;  %v7106_v39 = vmul.f32 %v1648_v16, %v6014_v6  ;;  %8900 = vst [vmem:[#allocation197_spill] sm:$0xff] %v7134_v34  ;;  %v3024_v54 = vsel %vm601_vm3, %v3022_v48, %v8906_v51  ;;  %v7188_v16 = vmul.f32 %v7077_v42, %v6005_v40  ;;  %v1670_v51 = vrot.slane %v1652_v38, 1 }
 0x901   :  { %8904 = vst [vmem:[#allocation200_spill] sm:$0xff] %v7149_v43  ;;  %v839_v48 = vmul.f32 %v831_v2, %v6005_v40  ;;  %8908 = vst [vmem:[#allocation202_spill] sm:$0xff] %v7191_v36  ;;  %v2937_v43 = vrot.slane %v2919_v8, 2  ;;  %v838_v2 = vmul.f32 %v7074_v37, %v6008_v58  ;;  %v8910_v38 = vrot.slane %v7006_v31, 2 }
 0x902   :  { %v3000_v8 = vmul.f32 %v7025_v18, %v5990_v50  ;;  %v7219_v37 = vmul.f32 %v7086_v9, %v5990_v50  ;;  %v7223_v31 = vmul.f32 %v7077_v42, %v5987_v57  ;;  %v901_v42 = vsel %vm257_vm4, %v6158_v33, %v6156_v62 }
 0x903   :  { %2946 = vrot.lane.b32.xlu0 %v2936_v5, %s5040_s30  ;;  %v7171_v5 = vsel %vm1149_vm8, %v7025_v18, %v2996_v53  ;;  %v2614_v53 = vmul.f32 %v7086_v9, %v6008_v58  ;;  %v8914_v9 = vrot.slane %v7103_v44, 1  ;;  %v7258_v33 = vmul.f32 %v7045_v41, %v6017_v7 }
 0x904   :  { %2956 = vrot.lane.b32.xlu1 %v2945_v15, %s5040_s30  ;;  %v8907_v15 = vrot.slane %v6994_v21, 2  ;;  %v1667_v21 = vrot.slane %v1651_v4, 1  ;;  %v7198_v34 = vmul.f32 %v7171_v5, %v6014_v6  ;;  %v1676_v4 = vrot.slane %v1656_v55, 1 }
 0x905   :  { %v2632_v3 = vrot.slane %v2614_v53, 2  ;;  %v8912_v55 = vrot.slane %v7097_v12, 1  ;;  %v913_v36 = vadd.f32 %v6148_v17, %v835_v23  ;;  %vm1473_vm8 = vcmask 654336  }
 0x907   :  { %3036 = vrot.lane.b32.xlu0 %v3024_v54, %s5041_s10  ;;  %v3005_v54 = vmul.f32 %v7171_v5, %v6005_v40  ;;  %v7231_v60 = vsel %vm379_vm2, %v1667_v21, %v8912_v55  ;;  %v8915_v21 = vrot.slane %v7164_v13, 2 }
 0x908   :  { %2788 = vrot.lane.b32.xlu1 %v8907_v15, %s5033_s22  ;;  %v1673_v15 = vrot.slane %v1655_v35, 1  ;;  %v7211_v35 = vmul.f32 %v7025_v18, %v5999_v11  ;;  %v900_v18 = vsel %vm257_vm4, %v6150_v45, %v6148_v17  ;;  %v8920_v17 = vrot.slane %v7198_v34, 2  ;;  %s5052_s22 = smov 76  }
 0x909   :  { %v3025_v45 = vrot.slane %v3005_v54, 2  ;;  %v2939_v55 = vsel %vm601_vm3, %v2937_v43, %v8915_v21  ;;  %v8916_v54 = vrot.slane %v7106_v39, 1  ;;  %v7265_v43 = vpop.permute.xlu0 %3403  ;;  %v8918_v21 = vrot.slane %v7123_v49, 2  ;;  %v8951_v49 = vld [vmem:[#allocation68_spill] sm:$0xff] }
 0x90a   :  { %v912_v44 = vadd.f32 %v900_v18, %v834_v28  ;;  %v8921_v28 = vrot.slane %v7211_v35, 2 }
 0x90b   :  { %2868 = vrot.lane.b32.xlu0 %v8911_v19, %s5039_s2  ;;  %v8913_v19 = vrot.slane %v7100_v63, 1  ;;  %v7250_v63 = vpop.permute.xlu1 %3241  ;;  %v3027_v23 = vsel %vm601_vm3, %v3025_v45, %v8920_v17  ;;  %v972_v45 = vsel %vm329_vm5, %v6192_v32, %v6190_v47 }
 0x90c   :  { %2878 = vrot.lane.b32.xlu1 %v8910_v38, %s5039_s2  ;;  %v7241_v38 = vsel %vm379_vm2, %v1673_v15, %v8914_v9  ;;  %v3086_v15 = vmul.f32 %v7045_v41, %v6008_v58  ;;  %v7263_v9 = vsel %vm379_vm2, %v1676_v4, %v8916_v54  ;;  %v902_v4 = vsel %vm257_vm4, %v6169_v27, %v6167_v52 }
 0x90d   :  { %v7236_v53 = vsel %vm379_vm2, %v1670_v51, %v8913_v19  ;;  %v3016_v51 = vrot.slane %v3000_v8, 2  ;;  %v8917_v8 = vrot.slane %v7022_v29, 2  ;;  %v903_v54 = vsel %vm257_vm4, %v6178_v20, %v6176_v25  ;;  %v7324_v32 = vpop.permute.xlu0 %3485 }
 0x90e   :  { %v915_v29 = vadd.f32 %v6156_v62, %v7112_v59  ;;  %v917_v27 = vadd.f32 %v6167_v52, %v839_v48  ;;  %v3104_v62 = vrot.slane %v3086_v15, 2  ;;  %v916_v59 = vadd.f32 %v902_v4, %v838_v2 }
 0x90f   :  { %2958 = vrot.lane.b32.xlu0 %v8917_v8, %s5040_s30  ;;  %v914_v8 = vadd.f32 %v901_v42, %v7116_v30  ;;  %v3018_v20 = vsel %vm601_vm3, %v3016_v51, %v8921_v28  ;;  %v8639_v30 = vrot.slane %v7258_v33, 2  ;;  %v918_v18 = vadd.f32 %v903_v54, %v7127_v46  ;;  %v8922_v46 = vld [vmem:[#allocation59_spill] sm:$0xff]  ;;  %v8929_v28 = vld [vmem:[#allocation64_spill] sm:$0xff] }
 0x910   :  { %2948 = vrot.lane.b32.xlu1 %v2939_v55, %s5040_s30  ;;  %v7273_v55 = vsel %vm601_vm3, %v2632_v3, %v8918_v21  ;;  %v970_v3 = vsel %vm329_vm5, %v6184_v56, %v6182_v26  ;;  %v919_v56 = vadd.f32 %v6176_v25, %v7119_v10  ;;  %v971_v42 = vsel %vm329_vm5, %v6188_v24, %v6186_v22  ;;  %v7312_v10 = vpop.permute.xlu1 %3323  ;;  %v8923_v51 = vld [vmem:[#allocation199_spill] sm:$0xff]  ;;  %v8924_v21 = vld [vmem:[#allocation189_spill] sm:$0xff] }
 0x911   :  { %8919 = vst [vmem:[#allocation204_spill] sm:$0xff] %v7273_v55  ;;  %v983_v52 = vadd.f32 %v6182_v26, %v913_v36  ;;  %v982_v48 = vadd.f32 %v970_v3, %v912_v44  ;;  %v973_v2 = vsel %vm329_vm5, %v6196_v14, %v6194_v61  ;;  %v985_v25 = vadd.f32 %v6186_v22, %v915_v29  ;;  %v8927_v3 = vld [vmem:[#allocation61_spill] sm:$0xff]  ;;  %v8950_v55 = vld [vmem:[#allocation67_spill] sm:$0xff] }
 0x912   :  { %v1042_v24 = vsel %vm1041_vm15, %v8922_v46, %v6198_v1  ;;  %v3001_v26 = vmul.f32 %v7171_v5, %v5987_v57  ;;  %v7322_v44 = vmul.f32 %v7171_v5, %v5995_v0  ;;  %v984_v36 = vadd.f32 %v971_v42, %v914_v8  ;;  %v8926_v8 = vld [vmem:[#allocation56_spill] sm:$0xff]  ;;  %v8931_v42 = vld [vmem:[#allocation63_spill] sm:$0xff] }
 0x913   :  { %3028 = vrot.lane.b32.xlu0 %v3018_v20, %s5041_s10  ;;  %v987_v14 = vadd.f32 %v6190_v47, %v917_v27  ;;  %v7330_v22 = vsel %vm1221_vm9, %v7045_v41, %v8923_v51  ;;  %v3106_v15 = vsel %vm601_vm3, %v3104_v62, %v8639_v30  ;;  %v8925_v4 = vrot.slane %v8924_v21, 2  ;;  %v8928_v27 = vld [vmem:[#allocation57_spill] sm:$0xff]  ;;  %v8930_v62 = vld [vmem:[#allocation60_spill] sm:$0xff]  ;;  %v8948_v30 = vld [vmem:[#allocation55_spill] sm:$0xff] }
 0x914   :  { %3038 = vrot.lane.b32.xlu1 %v3027_v23, %s5041_s10  ;;  %v986_v5 = vadd.f32 %v972_v45, %v916_v59  ;;  %v989_v54 = vadd.f32 %v6194_v61, %v919_v56  ;;  %v988_v29 = vadd.f32 %v973_v2, %v918_v18  ;;  %v1043_v47 = vsel %vm1041_vm15, %v8927_v3, %v8926_v8  ;;  %v8932_v2 = vld [vmem:[#allocation190_spill] sm:$0xff] }
 0x915   :  { %v1055_v17 = vadd.f32 %v6198_v1, %v983_v52  ;;  %v1054_v23 = vadd.f32 %v1042_v24, %v982_v48  ;;  %v1044_v20 = vsel %vm1041_vm15, %v8929_v28, %v8928_v27  ;;  %v1045_v59 = vsel %vm1041_vm15, %v8931_v42, %v8930_v62  ;;  %v7358_v48 = vpop.permute.xlu1 %3405  ;;  %v8937_v3 = vld [vmem:[#allocation58_spill] sm:$0xff]  ;;  %v8938_v28 = vld [vmem:[#allocation65_spill] sm:$0xff] }
 0x916   :  { %vm1257_vm2 = vcmask 785408   ;;  %v3019_v61 = vrot.slane %v3001_v26, 2  ;;  %v8638_v56 = vrot.slane %v7322_v44, 2  ;;  %v3087_v18 = vmul.f32 %v7330_v22, %v6005_v40 }
 0x917   :  { %3118 = vrot.lane.b32.xlu0 %v3106_v15, %s5042_s12  ;;  %v7355_v45 = vmul.f32 %v7330_v22, %v6014_v6  ;;  %v1057_v1 = vadd.f32 %v8926_v8, %v985_v25  ;;  %v1056_v52 = vadd.f32 %v1043_v47, %v984_v36  ;;  %v8933_v46 = vrot.slane %v8932_v2, 2  ;;  %v7371_v36 = vpop.permute.xlu0 %2405  ;;  %v8940_v2 = vld [vmem:[#allocation50_spill] sm:$0xff] }
 0x918   :  { %2870 = vrot.lane.b32.xlu1 %v8925_v4, %s5039_s2  ;;  %v3082_v24 = vmul.f32 %v7045_v41, %v5990_v50  ;;  %v7367_v26 = vmul.f32 %v7045_v41, %v5999_v11  ;;  %v1059_v51 = vadd.f32 %v8928_v27, %v987_v14  ;;  %v1058_v15 = vadd.f32 %v1044_v20, %v986_v5  ;;  %v8935_v4 = vld [vmem:[#allocation191_spill] sm:$0xff]  ;;  %v8939_v41 = vld [vmem:[#allocation62_spill] sm:$0xff]  ;;  %v8942_v27 = vld [vmem:[#allocation52_spill] sm:$0xff] }
 0x919   :  { %v1061_v21 = vadd.f32 %v8930_v62, %v989_v54  ;;  %v1060_v25 = vadd.f32 %v1045_v59, %v988_v29  ;;  %8934 = vst [vmem:[#allocation59_spill] sm:$0xff] %v7371_v36  ;;  %v8936_v8 = vrot.slane %v8935_v4, 2  ;;  %v1127_v47 = vadd.f32 %v8937_v3, %v1055_v17  ;;  %v8941_v5 = vld [vmem:[#allocation51_spill] sm:$0xff]  ;;  %v8943_v29 = vld [vmem:[#allocation53_spill] sm:$0xff]  ;;  %v8944_v20 = vld [vmem:[#allocation54_spill] sm:$0xff] }
 0x91a   :  { %v1114_v42 = vsel %vm1113_vm0, %v8938_v28, %v8937_v3  ;;  %v1115_v14 = vsel %vm1113_vm0, %v8940_v2, %v8939_v41  ;;  %v1116_v54 = vsel %vm1113_vm0, %v8942_v27, %v8941_v5  ;;  %v1117_v62 = vsel %vm1113_vm0, %v8944_v20, %v8943_v29  ;;  %v8945_v3 = vld [vmem:[#allocation192_spill] sm:$0xff]  ;;  %v8960_v36 = vld [vmem:[#allocation74_spill] sm:$0xff] }
 0x91b   :  { %2950 = vrot.lane.b32.xlu0 %v8936_v8, %s5040_s30  ;;  %v3107_v59 = vrot.slane %v3087_v18, 2  ;;  %v3098_v4 = vrot.slane %v3082_v24, 2  ;;  %v3168_v28 = vmul.f32 %v8945_v3, %v6008_v58  ;;  %v7399_v2 = vmul.f32 %v8945_v3, %v6017_v7  ;;  %v8949_v8 = vld [vmem:[#allocation66_spill] sm:$0xff] }
 0x91c   :  { %2960 = vrot.lane.b32.xlu1 %v8933_v46, %s5040_s30  ;;  %v3021_v46 = vsel %vm601_vm3, %v3019_v61, %v8638_v56  ;;  %v1126_v27 = vadd.f32 %v1114_v42, %v1054_v23  ;;  %v1129_v18 = vadd.f32 %v8939_v41, %v1057_v1  ;;  %v1128_v20 = vadd.f32 %v1115_v14, %v1056_v52  ;;  %v8946_v61 = vld [vmem:[#allocation193_spill] sm:$0xff]  ;;  %v7413_v42 = vpop.permute.xlu1 %3487  ;;  %v8953_v41 = vld [vmem:[#allocation70_spill] sm:$0xff] }
 0x91d   :  { %v1131_v19 = vadd.f32 %v8941_v5, %v1059_v51  ;;  %v8947_v56 = vrot.slane %v8946_v61, 2  ;;  %v1130_v24 = vadd.f32 %v1116_v54, %v1058_v15  ;;  %v1186_v17 = vsel %vm1185_vm1, %v8949_v8, %v8948_v30  ;;  %v8952_v51 = vld [vmem:[#allocation69_spill] sm:$0xff]  ;;  %v7419_v15 = vpop.permute.xlu0 %2409  ;;  %v8956_v5 = vld [vmem:[#allocation71_spill] sm:$0xff]  ;;  %v8957_v54 = vld [vmem:[#allocation72_spill] sm:$0xff] }
 0x91e   :  { %v1187_v23 = vsel %vm1185_vm1, %v8951_v49, %v8950_v55  ;;  %v1132_v1 = vadd.f32 %v1117_v62, %v1060_v25  ;;  %v1199_v52 = vadd.f32 %v8948_v30, %v1127_v47  ;;  %8954 = vst [vmem:[#allocation199_spill] sm:$0xff] %v7419_v15  ;;  %v1189_v49 = vsel %vm1185_vm1, %v8957_v54, %v8956_v5  ;;  %v8994_v15 = vld [vmem:[#allocation95_spill] sm:$0xff] }
 0x91f   :  { %3040 = vrot.lane.b32.xlu0 %v8947_v56, %s5041_s10  ;;  %v1188_v56 = vsel %vm1185_vm1, %v8953_v41, %v8952_v51  ;;  %v3186_v30 = vrot.slane %v3168_v28, 2  ;;  %v1198_v62 = vadd.f32 %v1186_v17, %v1126_v27  ;;  %v1201_v8 = vadd.f32 %v8950_v55, %v1129_v18  ;;  %v8959_v41 = vld [vmem:[#allocation73_spill] sm:$0xff]  ;;  %v8964_v27 = vld [vmem:[#allocation78_spill] sm:$0xff] }
 0x920   :  { %3030 = vrot.lane.b32.xlu1 %v3021_v46, %s5041_s10  ;;  %v1133_v46 = vadd.f32 %v8943_v29, %v1061_v21  ;;  %v8955_v21 = vrot.slane %v7355_v45, 2  ;;  %v8958_v29 = vrot.slane %v7367_v26, 2  ;;  %v1200_v61 = vadd.f32 %v1187_v23, %v1128_v20  ;;  %v8963_v17 = vld [vmem:[#allocation77_spill] sm:$0xff] }
 0x921   :  { %v1202_v54 = vadd.f32 %v1188_v56, %v1130_v24  ;;  %v1204_v47 = vadd.f32 %v1189_v49, %v1132_v1  ;;  %v1260_v55 = vsel %vm1257_vm2, %v8964_v27, %v8963_v17  ;;  %v3083_v18 = vmul.f32 %v7330_v22, %v5987_v57  ;;  %v7459_v1 = vpop.permute.xlu1 %2407  ;;  %v8972_v27 = vld [vmem:[#allocation81_spill] sm:$0xff] }
 0x922   :  { %v3109_v14 = vsel %vm601_vm3, %v3107_v59, %v8955_v21  ;;  %v3100_v25 = vsel %vm601_vm3, %v3098_v4, %v8958_v29  ;;  %v1258_v59 = vsel %vm1257_vm2, %v8960_v36, %v8959_v41  ;;  %v1203_v21 = vadd.f32 %v8952_v51, %v1131_v19  ;;  %v8961_v29 = vld [vmem:[#allocation75_spill] sm:$0xff]  ;;  %8967 = vst [vmem:[#allocation56_spill] sm:$0xff] %v7459_v1 }
 0x923   :  { %3110 = vrot.lane.b32.xlu0 %v3100_v25, %s5042_s12  ;;  %v1205_v4 = vadd.f32 %v8956_v5, %v1133_v46  ;;  %v7449_v36 = vmul.f32 %v7330_v22, %v5995_v0  ;;  %v1271_v20 = vadd.f32 %v8959_v41, %v1199_v52  ;;  %v1270_v24 = vadd.f32 %v1258_v59, %v1198_v62  ;;  %v8966_v46 = vld [vmem:[#allocation202_spill] sm:$0xff]  ;;  %v8970_v25 = vld [vmem:[#allocation79_spill] sm:$0xff]  ;;  %v8971_v62 = vld [vmem:[#allocation80_spill] sm:$0xff] }
 0x924   :  { %3120 = vrot.lane.b32.xlu1 %v3109_v14, %s5042_s12  ;;  %v8962_v14 = vld [vmem:[#allocation76_spill] sm:$0xff]  ;;  %v7457_v23 = vsel %vm1293_vm10, %v8945_v3, %v8966_v46  ;;  %v8968_v51 = vrot.slane %v7399_v2, 2  ;;  %v8969_v22 = vrot.slane %v7164_v13, 2  ;;  %v1273_v5 = vadd.f32 %v8961_v29, %v1201_v8  ;;  %v8974_v13 = vld [vmem:[#allocation83_spill] sm:$0xff] }
 0x925   :  { %v1259_v28 = vsel %vm1257_vm2, %v8962_v14, %v8961_v29  ;;  %v7451_v19 = vpop.permute.xlu0 %2479  ;;  %v1275_v52 = vadd.f32 %v8963_v17, %v1203_v21  ;;  %v1261_v41 = vsel %vm1257_vm2, %v8971_v62, %v8970_v25  ;;  %v1274_v59 = vadd.f32 %v1260_v55, %v1202_v54  ;;  %v8984_v21 = vld [vmem:[#allocation90_spill] sm:$0xff] }
 0x926   :  { %8965 = vst [vmem:[#allocation189_spill] sm:$0xff] %v7451_v19  ;;  %v3188_v56 = vsel %vm601_vm3, %v3186_v30, %v8968_v51  ;;  %v1272_v49 = vadd.f32 %v1259_v28, %v1200_v61  ;;  %v1277_v14 = vadd.f32 %v8970_v25, %v1205_v4  ;;  %v8973_v30 = vld [vmem:[#allocation82_spill] sm:$0xff]  ;;  %v8975_v51 = vld [vmem:[#allocation84_spill] sm:$0xff]  ;;  %v3101_v61 = vrot.slane %v3083_v18, 2 }
 0x927   :  { %3200 = vrot.lane.b32.xlu0 %v3188_v56, %s5043_s13  ;;  %v1330_v46 = vsel %vm1329_vm6, %v8973_v30, %v8972_v27  ;;  %v1331_v8 = vsel %vm1329_vm6, %v8975_v51, %v8974_v13  ;;  %v3169_v29 = vmul.f32 %v7457_v23, %v6005_v40  ;;  %v7485_v28 = vmul.f32 %v7457_v23, %v6014_v6  ;;  %v8978_v30 = vld [vmem:[#allocation85_spill] sm:$0xff] }
 0x928   :  { %2952 = vrot.lane.b32.xlu1 %v8969_v22, %s5040_s30  ;;  %v1276_v4 = vadd.f32 %v1261_v41, %v1204_v47  ;;  %v1343_v17 = vadd.f32 %v8972_v27, %v1271_v20  ;;  %v8977_v55 = vrot.slane %v7198_v34, 2  ;;  %v3164_v18 = vmul.f32 %v8945_v3, %v5990_v50  ;;  %v8980_v34 = vld [vmem:[#allocation86_spill] sm:$0xff]  ;;  %v8981_v41 = vld [vmem:[#allocation87_spill] sm:$0xff]  ;;  %v8982_v27 = vld [vmem:[#allocation88_spill] sm:$0xff]  ;;  %s5053_s30 = smov 100  }
 0x929   :  { %v7487_v54 = vpop.permute.xlu0 %2487  ;;  %v7497_v56 = vmul.f32 %v8945_v3, %v5999_v11  ;;  %v1342_v22 = vadd.f32 %v1330_v46, %v1270_v24  ;;  %v1345_v25 = vadd.f32 %v8974_v13, %v1273_v5  ;;  %v1344_v62 = vadd.f32 %v1331_v8, %v1272_v49  ;;  %v8983_v3 = vld [vmem:[#allocation89_spill] sm:$0xff]  ;;  %v8985_v5 = vld [vmem:[#allocation91_spill] sm:$0xff]  ;;  %v8986_v49 = vld [vmem:[#allocation92_spill] sm:$0xff]  ;;  %v7516_v46 = vpop.permute.xlu1 %2411 }
 0x92a   :  { %8976 = vst [vmem:[#allocation61_spill] sm:$0xff] %v7487_v54  ;;  %v1347_v51 = vadd.f32 %v8978_v30, %v1275_v52  ;;  %v8979_v47 = vrot.slane %v7211_v35, 2  ;;  %v1332_v20 = vsel %vm1329_vm6, %v8980_v34, %v8978_v30  ;;  %v1402_v24 = vsel %vm1401_vm7, %v8984_v21, %v8983_v3  ;;  %8987 = vst [vmem:[#allocation57_spill] sm:$0xff] %v7516_v46  ;;  %v8993_v21 = vld [vmem:[#allocation94_spill] sm:$0xff]  ;;  %v8995_v46 = vld [vmem:[#allocation96_spill] sm:$0xff] }
 0x92b   :  { %v1403_v52 = vsel %vm1401_vm7, %v8986_v49, %v8985_v5  ;;  %v3189_v35 = vrot.slane %v3169_v29, 2  ;;  %v8989_v30 = vrot.slane %v7449_v36, 2  ;;  %v3180_v34 = vrot.slane %v3164_v18, 2 }
 0x92c   :  { %3042 = vrot.lane.b32.xlu1 %v8977_v55, %s5041_s10  ;;  %3032 = vrot.lane.b32.xlu0 %v8979_v47, %s5041_s10  ;;  %v1333_v55 = vsel %vm1329_vm6, %v8982_v27, %v8981_v41  ;;  %v8990_v27 = vld [vmem:[#allocation201_spill] sm:$0xff]  ;;  %v1346_v29 = vadd.f32 %v1332_v20, %v1274_v59  ;;  %v1349_v13 = vadd.f32 %v8981_v41, %v1277_v14  ;;  %vm1545_vm9 = vcmask 646144  }
 0x92d   :  { %v7519_v8 = vpop.permute.xlu0 %2569  ;;  %v3103_v47 = vsel %vm601_vm3, %v3101_v61, %v8989_v30  ;;  %v3250_v49 = vmul.f32 %v8990_v27, %v6008_v58  ;;  %v7530_v54 = vmul.f32 %v8990_v27, %v6017_v7  ;;  %v1415_v19 = vadd.f32 %v8983_v3, %v1343_v17  ;;  %v8997_v17 = vld [vmem:[#allocation98_spill] sm:$0xff]  ;;  %v8998_v41 = vld [vmem:[#allocation97_spill] sm:$0xff] }
 0x92e   :  { %8988 = vst [vmem:[#allocation64_spill] sm:$0xff] %v7519_v8  ;;  %v1348_v8 = vadd.f32 %v1333_v55, %v1276_v4  ;;  %v8991_v61 = vrot.slane %v7258_v33, 2  ;;  %v1414_v18 = vadd.f32 %v1402_v24, %v1342_v22  ;;  %v1417_v30 = vadd.f32 %v8985_v5, %v1345_v25 }
 0x92f   :  { %v1405_v59 = vsel %vm1401_vm7, %v8995_v46, %v8994_v15  ;;  %v1416_v14 = vadd.f32 %v1403_v52, %v1344_v62  ;;  %v1474_v33 = vsel %vm1473_vm8, %v8998_v41, %v8997_v17  ;;  %v9000_v25 = vrot.slane %v7485_v28, 2 }
 0x930   :  { %3112 = vrot.lane.b32.xlu1 %v3103_v47, %s5042_s12  ;;  %3122 = vrot.lane.b32.xlu0 %v8991_v61, %s5042_s12  ;;  %v8992_v47 = vld [vmem:[#allocation93_spill] sm:$0xff]  ;;  %v9001_v3 = vrot.slane %v7497_v56, 2  ;;  %v3268_v62 = vrot.slane %v3250_v49, 2  ;;  %v1421_v52 = vadd.f32 %v8994_v15, %v1349_v13  ;;  %v1420_v46 = vadd.f32 %v1405_v59, %v1348_v8  ;;  %v9003_v61 = vld [vmem:[#allocation99_spill] sm:$0xff]  ;;  %v9006_v49 = vld [vmem:[#allocation104_spill] sm:$0xff] }
 0x931   :  { %v1404_v1 = vsel %vm1401_vm7, %v8993_v21, %v8992_v47  ;;  %v1419_v4 = vadd.f32 %v8992_v47, %v1347_v51  ;;  %v7550_v22 = vpop.permute.xlu0 %2491  ;;  %v3191_v55 = vsel %vm601_vm3, %v3189_v35, %v9000_v25  ;;  %v8643_v51 = vrot.slane %v7530_v54, 2  ;;  %v9002_v21 = vld [vmem:[#allocation100_spill] sm:$0xff]  ;;  %v9004_v25 = vld [vmem:[#allocation102_spill] sm:$0xff]  ;;  %v9010_v8 = vld [vmem:[#allocation105_spill] sm:$0xff] }
 0x932   :  { %v7544_v20 = vpop.permute.xlu1 %2481  ;;  %8999 = vst [vmem:[#allocation63_spill] sm:$0xff] %v7550_v22  ;;  %v3182_v24 = vsel %vm601_vm3, %v3180_v34, %v9001_v3  ;;  %v1418_v5 = vadd.f32 %v1404_v1, %v1346_v29  ;;  %v1475_v47 = vsel %vm1473_vm8, %v9003_v61, %v9002_v21  ;;  %v1486_v35 = vadd.f32 %v1474_v33, %v1414_v18  ;;  %v9005_v34 = vld [vmem:[#allocation101_spill] sm:$0xff]  ;;  %v9007_v3 = vld [vmem:[#allocation103_spill] sm:$0xff]  ;;  %v9009_v13 = vld [vmem:[#allocation106_spill] sm:$0xff] }
 0x933   :  { %8996 = vst [vmem:[#allocation60_spill] sm:$0xff] %v7544_v20  ;;  %v1487_v41 = vadd.f32 %v8997_v17, %v1415_v19  ;;  %v1477_v1 = vsel %vm1473_vm8, %v9007_v3, %v9006_v49  ;;  %v1489_v15 = vadd.f32 %v9002_v21, %v1417_v30  ;;  %v1546_v59 = vsel %vm1545_vm9, %v9010_v8, %v9009_v13  ;;  %v9015_v8 = vld [vmem:[#allocation110_spill] sm:$0xff]  ;;  %v9036_v22 = vld [vmem:[#allocation197_spill] sm:$0xff] }
 0x934   :  { %3202 = vrot.lane.b32.xlu1 %v3191_v55, %s5043_s13  ;;  %3192 = vrot.lane.b32.xlu0 %v3182_v24, %s5043_s13  ;;  %v1476_v55 = vsel %vm1473_vm8, %v9005_v34, %v9004_v25  ;;  %v3165_v18 = vmul.f32 %v7457_v23, %v5987_v57  ;;  %v7582_v19 = vmul.f32 %v7457_v23, %v5995_v0  ;;  %v9012_v61 = vrot.slane %v7322_v44, 2 }
 0x935   :  { %v7584_v17 = vpop.permute.xlu0 %2561  ;;  %v1488_v33 = vadd.f32 %v1475_v47, %v1416_v14  ;;  %v1491_v24 = vadd.f32 %v9004_v25, %v1419_v4  ;;  %v7590_v30 = vsel %vm1365_vm11, %v8990_v27, %v7250_v63  ;;  %v3270_v21 = vsel %vm601_vm3, %v3268_v62, %v8643_v51  ;;  %v9013_v14 = vld [vmem:[#allocation108_spill] sm:$0xff]  ;;  %v9014_v47 = vld [vmem:[#allocation107_spill] sm:$0xff] }
 0x936   :  { %v7572_v29 = vpop.permute.xlu1 %2489  ;;  %9011 = vst [vmem:[#allocation191_spill] sm:$0xff] %v7584_v17  ;;  %v1490_v23 = vadd.f32 %v1476_v55, %v1418_v5  ;;  %v1492_v34 = vadd.f32 %v1477_v1, %v1420_v46  ;;  %v1493_v3 = vadd.f32 %v9006_v49, %v1421_v52  ;;  %v1547_v4 = vsel %vm1545_vm9, %v9014_v47, %v9013_v14  ;;  %v9016_v17 = vld [vmem:[#allocation109_spill] sm:$0xff] }
 0x937   :  { %9008 = vst [vmem:[#allocation190_spill] sm:$0xff] %v7572_v29  ;;  %v1558_v63 = vadd.f32 %v1546_v59, %v1486_v35  ;;  %v1559_v25 = vadd.f32 %v9009_v13, %v1487_v41  ;;  %v1548_v62 = vsel %vm1545_vm9, %v9016_v17, %v9015_v8  ;;  %vm1617_vm10 = vcmask 637952   ;;  %v9024_v47 = vld [vmem:[#allocation113_spill] sm:$0xff] }
 0x938   :  { %3034 = vrot.lane.b32.xlu1 %v9012_v61, %s5041_s10  ;;  %3282 = vrot.lane.b32.xlu0 %v3270_v21, %s5044_s16  ;;  %v3183_v5 = vrot.slane %v3165_v18, 2  ;;  %v3251_v52 = vmul.f32 %v7590_v30, %v6005_v40  ;;  %v7614_v55 = vmul.f32 %v7590_v30, %v6014_v6  ;;  %v1560_v41 = vadd.f32 %v1547_v4, %v1488_v33  ;;  %v9020_v21 = vld [vmem:[#allocation112_spill] sm:$0xff]  ;;  %v9021_v61 = vld [vmem:[#allocation111_spill] sm:$0xff] }
 0x939   :  { %v7616_v35 = vpop.permute.xlu0 %2483  ;;  %v1561_v49 = vadd.f32 %v9013_v14, %v1489_v15  ;;  %v9019_v1 = vrot.slane %v7355_v45, 2  ;;  %v3246_v13 = vmul.f32 %v8990_v27, %v5990_v50  ;;  %v7626_v59 = vmul.f32 %v8990_v27, %v5999_v11  ;;  %v9023_v14 = vld [vmem:[#allocation114_spill] sm:$0xff] }
 0x93a   :  { %v7607_v44 = vpop.permute.xlu1 %2571  ;;  %9018 = vst [vmem:[#allocation65_spill] sm:$0xff] %v7616_v35  ;;  %v1562_v18 = vadd.f32 %v1548_v62, %v1490_v23  ;;  %v1563_v17 = vadd.f32 %v9015_v8, %v1491_v24  ;;  %v1549_v33 = vsel %vm1545_vm9, %v9021_v61, %v9020_v21  ;;  %v1565_v15 = vadd.f32 %v9020_v21, %v1493_v3  ;;  %v9026_v23 = vld [vmem:[#allocation115_spill] sm:$0xff]  ;;  %v9027_v8 = vld [vmem:[#allocation118_spill] sm:$0xff]  ;;  %v9028_v62 = vld [vmem:[#allocation117_spill] sm:$0xff] }
 0x93b   :  { %9017 = vst [vmem:[#allocation58_spill] sm:$0xff] %v7607_v44  ;;  %v9022_v45 = vrot.slane %v7367_v26, 2  ;;  %v1618_v4 = vsel %vm1617_vm10, %v9024_v47, %v9023_v14  ;;  %v1631_v27 = vadd.f32 %v9023_v14, %v1559_v25  ;;  %v1620_v61 = vsel %vm1617_vm10, %v9028_v62, %v9027_v8  ;;  %v9030_v3 = vld [vmem:[#allocation120_spill] sm:$0xff]  ;;  %v9031_v21 = vld [vmem:[#allocation119_spill] sm:$0xff] }
 0x93c   :  { %3124 = vrot.lane.b32.xlu1 %v9019_v1, %s5042_s12  ;;  %v9025_v1 = vld [vmem:[#allocation116_spill] sm:$0xff]  ;;  %v1621_v26 = vsel %vm1617_vm10, %v9031_v21, %v9030_v3  ;;  %v9033_v25 = vrot.slane %v7582_v19, 2  ;;  %v9034_v44 = vld [vmem:[#allocation203_spill] sm:$0xff]  ;;  %v1630_v46 = vadd.f32 %v1618_v4, %v1558_v63  ;;  %v9038_v35 = vrot.slane %v7188_v16, 2 }
 0x93d   :  { %3114 = vrot.lane.b32.xlu0 %v9022_v45, %s5042_s12  ;;  %v1619_v24 = vsel %vm1617_vm10, %v9026_v23, %v9025_v1  ;;  %v3271_v45 = vrot.slane %v3251_v52, 2  ;;  %v7652_v47 = vpop.permute.xlu0 %2573  ;;  %v3262_v23 = vrot.slane %v3246_v13, 2  ;;  %v3332_v29 = vmul.f32 %v9034_v44, %v6008_v58 }
 0x93e   :  { %v7646_v51 = vpop.permute.xlu1 %2493  ;;  %9032 = vst [vmem:[#allocation50_spill] sm:$0xff] %v7652_v47  ;;  %v3185_v14 = vsel %vm601_vm3, %v3183_v5, %v9033_v25  ;;  %v7663_v21 = vmul.f32 %v9034_v44, %v6017_v7  ;;  %v1564_v52 = vadd.f32 %v1549_v33, %v1492_v34  ;;  %v1632_v20 = vadd.f32 %v1619_v24, %v1560_v41 }
 0x93f   :  { %9029 = vst [vmem:[#allocation62_spill] sm:$0xff] %v7646_v51  ;;  %v1633_v47 = vadd.f32 %v9025_v1, %v1561_v49  ;;  %v9035_v5 = vrot.slane %v7399_v2, 2  ;;  %v1634_v25 = vadd.f32 %v1620_v61, %v1562_v18  ;;  %v1635_v13 = vadd.f32 %v9027_v8, %v1563_v17  ;;  %v9041_v18 = vld [vmem:[#allocation198_spill] sm:$0xff] }
 0x940   :  { %3194 = vrot.lane.b32.xlu1 %v3185_v14, %s5043_s13  ;;  %v1637_v14 = vadd.f32 %v9030_v3, %v1565_v15  ;;  %v9037_v51 = vrot.slane %v9036_v22, 2  ;;  %v1636_v63 = vadd.f32 %v1621_v26, %v1564_v52  ;;  %v9040_v2 = vrot.slane %v7614_v55, 2  ;;  %v9045_v61 = vld [vmem:[#allocation122_spill] sm:$0xff] }
 0x941   :  { %3204 = vrot.lane.b32.xlu0 %v9035_v5, %s5043_s13  ;;  %v7680_v41 = vpop.permute.xlu0 %2708  ;;  %v9042_v17 = vrot.slane %v9041_v18, 2  ;;  %v9043_v33 = vrot.slane %v7219_v37, 2  ;;  %v1688_v16 = vadd.f32 %v7236_v53, %v1631_v27  ;;  %v3350_v1 = vrot.slane %v3332_v29, 2  ;;  %v9046_v37 = vld [vmem:[#allocation121_spill] sm:$0xff]  ;;  %v9048_v52 = vld [vmem:[#allocation194_spill] sm:$0xff]  ;;  %v9051_v5 = vld [vmem:[#allocation123_spill] sm:$0xff] }
 0x942   :  { %v7671_v62 = vpop.permute.xlu1 %2563  ;;  %v7678_v34 = vsel %vm601_vm3, %v9038_v35, %v9037_v51  ;;  %9039 = vst [vmem:[#allocation51_spill] sm:$0xff] %v7680_v41  ;;  %v3273_v49 = vsel %vm601_vm3, %v3271_v45, %v9040_v2  ;;  %v9044_v51 = vrot.slane %v7626_v59, 2  ;;  %v8648_v24 = vrot.slane %v7663_v21, 2 }
 0x943   :  { %v7690_v15 = vsel %vm601_vm3, %v9043_v33, %v9042_v17  ;;  %v1687_v8 = vadd.f32 %v7231_v60, %v1630_v46  ;;  %v1757_v3 = vsel %vm257_vm4, %v9046_v37, %v9045_v61  ;;  %v9047_v26 = vrot.slane %v7097_v12, 1  ;;  %v9053_v12 = vld [vmem:[#allocation126_spill] sm:$0xff] }
 0x944   :  { %v3264_v35 = vsel %vm601_vm3, %v3262_v23, %v9044_v51  ;;  %3284 = vrot.lane.b32.xlu1 %v3273_v49, %s5044_s16  ;;  %v9049_v53 = vrot.slane %v9048_v52, 1  ;;  %v9050_v23 = vld [vmem:[#allocation124_spill] sm:$0xff]  ;;  %v1691_v2 = vadd.f32 %v7241_v38, %v1634_v25  ;;  %v1692_v60 = vadd.f32 %v7263_v9, %v1635_v13 }
 0x945   :  { %v1689_v45 = vadd.f32 %v9047_v26, %v1632_v20  ;;  %3274 = vrot.lane.b32.xlu0 %v3264_v35, %s5044_s16  ;;  %v1758_v29 = vsel %vm257_vm4, %v9051_v5, %v9050_v23  ;;  %v9052_v46 = vrot.slane %v7106_v39, 1  ;;  %v9054_v20 = vld [vmem:[#allocation125_spill] sm:$0xff]  ;;  %v3247_v37 = vmul.f32 %v7590_v30, %v5987_v57  ;;  %v7728_v9 = vpop.permute.xlu0 %2565 }
 0x946   :  { %v1690_v27 = vadd.f32 %v9049_v53, %v1633_v47  ;;  %v7715_v17 = vpop.permute.xlu1 %2485  ;;  %v1759_v33 = vsel %vm257_vm4, %v9054_v20, %v9053_v12  ;;  %v9055_v47 = vld [vmem:[#allocation195_spill] sm:$0xff]  ;;  %v7726_v38 = vmul.f32 %v7590_v30, %v5995_v0  ;;  %v1769_v39 = vadd.f32 %v1757_v3, %v1687_v8  ;;  %v9058_v3 = vld [vmem:[#allocation128_spill] sm:$0xff]  ;;  %v9060_v53 = vld [vmem:[#allocation130_spill] sm:$0xff] }
 0x947   :  { %v1694_v49 = vadd.f32 %v9052_v46, %v1637_v14  ;;  %v9056_v51 = vrot.slane %v9055_v47, 1  ;;  %v1770_v25 = vadd.f32 %v9045_v61, %v1688_v16  ;;  %v7734_v13 = vsel %vm1437_vm12, %v9034_v44, %v7312_v10  ;;  %v9059_v16 = vld [vmem:[#allocation127_spill] sm:$0xff] }
 0x948   :  { %v3352_v14 = vsel %vm601_vm3, %v3350_v1, %v8648_v24  ;;  %v1771_v30 = vadd.f32 %v1758_v29, %v1689_v45  ;;  %v1772_v26 = vadd.f32 %v9050_v23, %v1690_v27  ;;  %v1774_v8 = vadd.f32 %v9053_v12, %v1692_v60  ;;  %v9061_v1 = vld [vmem:[#allocation129_spill] sm:$0xff]  ;;  %v9063_v46 = vld [vmem:[#allocation131_spill] sm:$0xff] }
 0x949   :  { %v1693_v35 = vadd.f32 %v9056_v51, %v1636_v63  ;;  %v9057_v63 = vrot.slane %v7449_v36, 2  ;;  %v1760_v61 = vsel %vm257_vm4, %v9059_v16, %v9058_v3  ;;  %3364 = vrot.lane.b32.xlu0 %v3352_v14, %s5046_s24  ;;  %v1773_v10 = vadd.f32 %v1759_v33, %v1691_v2  ;;  %v9062_v36 = vld [vmem:[#allocation132_spill] sm:$0xff]  ;;  %v9066_v16 = vld [vmem:[#allocation133_spill] sm:$0xff] }
 0x94a   :  { %v1776_v52 = vadd.f32 %v9058_v3, %v1694_v49  ;;  %v1839_v5 = vsel %vm329_vm5, %v9061_v1, %v9060_v53  ;;  %v1840_v45 = vsel %vm329_vm5, %v9063_v46, %v9062_v36  ;;  %v7755_v27 = vpop.permute.xlu1 %2575  ;;  %v3265_v23 = vrot.slane %v3247_v37, 2  ;;  %v7764_v49 = vpop.permute.xlu0 %2700  ;;  %v9065_v3 = vld [vmem:[#allocation134_spill] sm:$0xff]  ;;  %v9071_v46 = vld [vmem:[#allocation137_spill] sm:$0xff] }
 0x94b   :  { %3116 = vrot.lane.b32.xlu1 %v9057_v63, %s5042_s12  ;;  %v8649_v29 = vrot.slane %v7726_v38, 2  ;;  %v3333_v60 = vmul.f32 %v7734_v13, %v6005_v40  ;;  %v7762_v2 = vmul.f32 %v7734_v13, %v6014_v6  ;;  %v1775_v12 = vadd.f32 %v1760_v61, %v1693_v35  ;;  %v9068_v61 = vld [vmem:[#allocation136_spill] sm:$0xff] }
 0x94c   :  { %v1852_v20 = vadd.f32 %v9060_v53, %v1770_v25  ;;  %v9064_v33 = vrot.slane %v7485_v28, 2  ;;  %v3328_v47 = vmul.f32 %v9034_v44, %v5990_v50  ;;  %v7774_v51 = vmul.f32 %v9034_v44, %v5999_v11  ;;  %v9069_v53 = vld [vmem:[#allocation135_spill] sm:$0xff]  ;;  %v9070_v44 = vld [vmem:[#allocation138_spill] sm:$0xff] }
 0x94d   :  { %v1851_v37 = vadd.f32 %v1839_v5, %v1769_v39  ;;  %v1853_v14 = vadd.f32 %v1840_v45, %v1771_v30  ;;  %v1854_v63 = vadd.f32 %v9062_v36, %v1772_v26  ;;  %v1841_v35 = vsel %vm329_vm5, %v9066_v16, %v9065_v3  ;;  %v9072_v30 = vld [vmem:[#allocation140_spill] sm:$0xff]  ;;  %v9073_v26 = vld [vmem:[#allocation139_spill] sm:$0xff]  ;;  %v9075_v45 = vld [vmem:[#allocation142_spill] sm:$0xff] }
 0x94e   :  { %v9067_v25 = vrot.slane %v7497_v56, 2  ;;  %v1856_v28 = vadd.f32 %v9065_v3, %v1774_v8  ;;  %v1842_v1 = vsel %vm329_vm5, %v9069_v53, %v9068_v61  ;;  %v1921_v39 = vsel %vm1041_vm15, %v9071_v46, %v9070_v44  ;;  %v7793_v36 = vpop.permute.xlu1 %2710  ;;  %v7799_v3 = vpop.permute.xlu0 %2790  ;;  %v9079_v46 = vld [vmem:[#allocation144_spill] sm:$0xff] }
 0x94f   :  { %3206 = vrot.lane.b32.xlu1 %v9064_v33, %s5043_s13  ;;  %v1922_v5 = vsel %vm1041_vm15, %v9073_v26, %v9072_v30  ;;  %9074 = vst [vmem:[#allocation52_spill] sm:$0xff] %v7793_v36  ;;  %v9076_v33 = vld [vmem:[#allocation141_spill] sm:$0xff]  ;;  %v3353_v16 = vrot.slane %v3333_v60, 2  ;;  %9077 = vst [vmem:[#allocation53_spill] sm:$0xff] %v7799_v3  ;;  %v3344_v53 = vrot.slane %v3328_v47, 2  ;;  %v3414_v26 = vmul.f32 %v7265_v43, %v6008_v58  ;;  %v9080_v3 = vld [vmem:[#allocation143_spill] sm:$0xff] }
 0x950   :  { %3196 = vrot.lane.b32.xlu0 %v9067_v25, %s5043_s13  ;;  %v1923_v56 = vsel %vm1041_vm15, %v9076_v33, %v9075_v45  ;;  %v3267_v25 = vsel %vm601_vm3, %v3265_v23, %v8649_v29  ;;  %v7810_v33 = vmul.f32 %v7265_v43, %v6017_v7  ;;  %v1855_v60 = vadd.f32 %v1841_v35, %v1773_v10  ;;  %v9082_v35 = vld [vmem:[#allocation145_spill] sm:$0xff] }
 0x951   :  { %v1857_v4 = vadd.f32 %v1842_v1, %v1775_v12  ;;  %v1858_v24 = vadd.f32 %v9068_v61, %v1776_v52  ;;  %v1934_v8 = vadd.f32 %v9070_v44, %v1852_v20  ;;  %v9078_v23 = vrot.slane %v7530_v54, 2  ;;  %v9081_v52 = vld [vmem:[#allocation147_spill] sm:$0xff] }
 0x952   :  { %v1933_v47 = vadd.f32 %v1921_v39, %v1851_v37  ;;  %v1936_v29 = vadd.f32 %v9072_v30, %v1854_v63  ;;  %v1924_v41 = vsel %vm1041_vm15, %v9080_v3, %v9079_v46  ;;  %v7821_v36 = vpop.permute.xlu1 %2567  ;;  %v1937_v10 = vadd.f32 %v1923_v56, %v1855_v60  ;;  %v7827_v61 = vpop.permute.xlu0 %2712  ;;  %v9085_v63 = vld [vmem:[#allocation146_spill] sm:$0xff]  ;;  %v9087_v3 = vld [vmem:[#allocation151_spill] sm:$0xff] }
 0x953   :  { %3276 = vrot.lane.b32.xlu1 %v3267_v25, %s5044_s16  ;;  %v1935_v25 = vadd.f32 %v1922_v5, %v1853_v14  ;;  %v1938_v12 = vadd.f32 %v9075_v45, %v1856_v28  ;;  %v2003_v20 = vsel %vm1113_vm0, %v9082_v35, %v9081_v52  ;;  %v9083_v54 = vrot.slane %v7762_v2, 2  ;;  %v9084_v14 = vld [vmem:[#allocation149_spill] sm:$0xff] }
 0x954   :  { %3286 = vrot.lane.b32.xlu0 %v9078_v23, %s5044_s16  ;;  %v2004_v1 = vsel %vm1113_vm0, %v9085_v63, %v9084_v14  ;;  %v9086_v44 = vrot.slane %v7774_v51, 2  ;;  %v3432_v28 = vrot.slane %v3414_v26, 2  ;;  %v8651_v30 = vrot.slane %v7810_v33, 2  ;;  %v9092_v63 = vld [vmem:[#allocation153_spill] sm:$0xff] }
 0x955   :  { %v3355_v37 = vsel %vm601_vm3, %v3353_v16, %v9083_v54  ;;  %v1939_v5 = vadd.f32 %v1924_v41, %v1857_v4  ;;  %v1940_v45 = vadd.f32 %v9079_v46, %v1858_v24  ;;  %v2016_v56 = vadd.f32 %v9081_v52, %v1934_v8  ;;  %v9088_v16 = vld [vmem:[#allocation148_spill] sm:$0xff]  ;;  %v9090_v54 = vld [vmem:[#allocation150_spill] sm:$0xff] }
 0x956   :  { %v3346_v39 = vsel %vm601_vm3, %v3344_v53, %v9086_v44  ;;  %v2005_v60 = vsel %vm1113_vm0, %v9088_v16, %v9087_v3  ;;  %v2015_v23 = vadd.f32 %v2003_v20, %v1933_v47  ;;  %v2018_v35 = vadd.f32 %v9084_v14, %v1936_v29  ;;  %v9089_v53 = vld [vmem:[#allocation152_spill] sm:$0xff]  ;;  %v7853_v4 = vpop.permute.xlu1 %2702  ;;  %v7862_v29 = vpop.permute.xlu0 %2782 }
 0x957   :  { %3366 = vrot.lane.b32.xlu1 %v3355_v37, %s5046_s24  ;;  %v2006_v26 = vsel %vm1113_vm0, %v9090_v54, %v9089_v53  ;;  %v9091_v37 = vld [vmem:[#allocation155_spill] sm:$0xff]  ;;  %v2017_v24 = vadd.f32 %v2004_v1, %v1935_v25  ;;  %v2020_v8 = vadd.f32 %v9087_v3, %v1938_v12  ;;  %v3329_v46 = vmul.f32 %v7734_v13, %v5987_v57  ;;  %v9098_v16 = vld [vmem:[#allocation156_spill] sm:$0xff] }
 0x958   :  { %3356 = vrot.lane.b32.xlu0 %v3346_v39, %s5046_s24  ;;  %v2085_v41 = vsel %vm1185_vm1, %v9092_v63, %v9091_v37  ;;  %v7860_v47 = vmul.f32 %v7734_v13, %v5995_v0  ;;  %9093 = vst [vmem:[#allocation54_spill] sm:$0xff] %v7862_v29  ;;  %v2019_v52 = vadd.f32 %v2005_v60, %v1937_v10  ;;  %v9094_v12 = vrot.slane %v7582_v19, 2  ;;  %v9095_v10 = vld [vmem:[#allocation157_spill] sm:$0xff]  ;;  %v9096_v39 = vld [vmem:[#allocation154_spill] sm:$0xff]  ;;  %v9097_v3 = vld [vmem:[#allocation159_spill] sm:$0xff] }
 0x959   :  { %v2022_v20 = vadd.f32 %v9089_v53, %v1940_v45  ;;  %v7868_v14 = vsel %vm1509_vm13, %v7265_v43, %v7358_v48  ;;  %v3434_v25 = vsel %vm601_vm3, %v3432_v28, %v8651_v30  ;;  %v2021_v13 = vadd.f32 %v2006_v26, %v1939_v5  ;;  %v9099_v60 = vld [vmem:[#allocation160_spill] sm:$0xff]  ;;  %v9100_v53 = vld [vmem:[#allocation158_spill] sm:$0xff]  ;;  %v9101_v5 = vld [vmem:[#allocation163_spill] sm:$0xff] }
 0x95a   :  { %v2097_v1 = vadd.f32 %v2085_v41, %v2015_v23  ;;  %v2098_v44 = vadd.f32 %v9091_v37, %v2016_v56  ;;  %v2086_v45 = vsel %vm1185_vm1, %v9096_v39, %v9095_v10  ;;  %v2100_v48 = vadd.f32 %v9095_v10, %v2018_v35  ;;  %v9102_v23 = vld [vmem:[#allocation161_spill] sm:$0xff]  ;;  %v7891_v54 = vpop.permute.xlu1 %2792  ;;  %v7900_v41 = vpop.permute.xlu0 %2872  ;;  %v9110_v37 = vld [vmem:[#allocation164_spill] sm:$0xff] }
 0x95b   :  { %3198 = vrot.lane.b32.xlu1 %v9094_v12, %s5043_s13  ;;  %v2087_v28 = vsel %vm1185_vm1, %v9098_v16, %v9097_v3  ;;  %v2088_v19 = vsel %vm1185_vm1, %v9100_v53, %v9099_v60  ;;  %v2167_v56 = vsel %vm1257_vm2, %v9102_v23, %v9101_v5  ;;  %9103 = vst [vmem:[#allocation192_spill] sm:$0xff] %v7891_v54  ;;  %v3347_v26 = vrot.slane %v3329_v46, 2 }
 0x95c   :  { %3446 = vrot.lane.b32.xlu0 %v3434_v25, %s5048_s1  ;;  %v3415_v35 = vmul.f32 %v7868_v14, %v6005_v40  ;;  %v7898_v63 = vmul.f32 %v7868_v14, %v6014_v6  ;;  %9104 = vst [vmem:[#allocation193_spill] sm:$0xff] %v7900_v41  ;;  %v2099_v25 = vadd.f32 %v2086_v45, %v2017_v24  ;;  %v9105_v10 = vrot.slane %v7614_v55, 2  ;;  %v9107_v55 = vld [vmem:[#allocation165_spill] sm:$0xff]  ;;  %v9108_v45 = vld [vmem:[#allocation162_spill] sm:$0xff]  ;;  %v9111_v41 = vld [vmem:[#allocation168_spill] sm:$0xff] }
 0x95d   :  { %v2102_v12 = vadd.f32 %v9097_v3, %v2020_v8  ;;  %v3410_v46 = vmul.f32 %v7265_v43, %v5990_v50  ;;  %v7910_v39 = vmul.f32 %v7265_v43, %v5999_v11  ;;  %v2101_v16 = vadd.f32 %v2087_v28, %v2019_v52  ;;  %v9112_v52 = vld [vmem:[#allocation166_spill] sm:$0xff]  ;;  %v9114_v28 = vld [vmem:[#allocation169_spill] sm:$0xff] }
 0x95e   :  { %v2103_v53 = vadd.f32 %v2088_v19, %v2021_v13  ;;  %v2104_v23 = vadd.f32 %v9099_v60, %v2022_v20  ;;  %v2180_v30 = vadd.f32 %v9101_v5, %v2098_v44  ;;  %v9106_v24 = vrot.slane %v7626_v59, 2  ;;  %v7926_v20 = vpop.permute.xlu1 %2714  ;;  %v9113_v44 = vld [vmem:[#allocation171_spill] sm:$0xff]  ;;  %v2705_v19 = vpop.permute.xlu0 %2704 }
 0x95f   :  { %3288 = vrot.lane.b32.xlu1 %v9105_v10, %s5044_s16  ;;  %v2179_v8 = vadd.f32 %v2167_v56, %v2097_v1  ;;  %v2168_v3 = vsel %vm1257_vm2, %v9108_v45, %v9107_v55  ;;  %v9109_v10 = vld [vmem:[#allocation167_spill] sm:$0xff]  ;;  %v2170_v13 = vsel %vm1257_vm2, %v9112_v52, %v9111_v41  ;;  %v2249_v59 = vsel %vm1329_vm6, %v9114_v28, %v9113_v44 }
 0x960   :  { %3278 = vrot.lane.b32.xlu0 %v9106_v24, %s5044_s16  ;;  %v2169_v43 = vsel %vm1257_vm2, %v9110_v37, %v9109_v10  ;;  %v3435_v60 = vrot.slane %v3415_v35, 2  ;;  %v9115_v5 = vrot.slane %v7860_v47, 2  ;;  %v3426_v37 = vrot.slane %v3410_v46, 2  ;;  %v9118_v24 = vld [vmem:[#allocation170_spill] sm:$0xff] }
 0x961   :  { %v3496_v45 = vmul.f32 %v7324_v32, %v6008_v58  ;;  %v7941_v52 = vmul.f32 %v7324_v32, %v6017_v7  ;;  %v2181_v35 = vadd.f32 %v2168_v3, %v2099_v25  ;;  %v2182_v28 = vadd.f32 %v9107_v55, %v2100_v48  ;;  %v9117_v58 = vld [vmem:[#allocation173_spill] sm:$0xff]  ;;  %v9120_v48 = vld [vmem:[#allocation175_spill] sm:$0xff]  ;;  %v9122_v55 = vld [vmem:[#allocation176_spill] sm:$0xff] }
 0x962   :  { %v3349_v56 = vsel %vm601_vm3, %v3347_v26, %v9115_v5  ;;  %v2183_v1 = vadd.f32 %v2169_v43, %v2101_v16  ;;  %v2184_v54 = vadd.f32 %v9109_v10, %v2102_v12  ;;  %v9116_v26 = vrot.slane %v7663_v21, 2  ;;  %v7953_v29 = vpop.permute.xlu1 %2784  ;;  %v9121_v16 = vld [vmem:[#allocation172_spill] sm:$0xff]  ;;  %v9123_v3 = vld [vmem:[#allocation174_spill] sm:$0xff]  ;;  %v9126_v10 = vld [vmem:[#allocation177_spill] sm:$0xff] }
 0x963   :  { %3358 = vrot.lane.b32.xlu1 %v3349_v56, %s5046_s24  ;;  %v2185_v46 = vadd.f32 %v2170_v13, %v2103_v53  ;;  %v2186_v5 = vadd.f32 %v9111_v41, %v2104_v23  ;;  %v2262_v56 = vadd.f32 %v9113_v44, %v2180_v30  ;;  %v2250_v7 = vsel %vm1329_vm6, %v9118_v24, %v9117_v58  ;;  %v2795_v53 = vpop.permute.xlu0 %2794  ;;  %v9125_v23 = vld [vmem:[#allocation180_spill] sm:$0xff] }
 0x964   :  { %3368 = vrot.lane.b32.xlu0 %v9116_v26, %s5046_s24  ;;  %9119 = vst [vmem:[#allocation55_spill] sm:$0xff] %v7953_v29  ;;  %v2261_v25 = vadd.f32 %v2249_v59, %v2179_v8  ;;  %v2251_v12 = vsel %vm1329_vm6, %v9121_v16, %v9120_v48  ;;  %v2252_v21 = vsel %vm1329_vm6, %v9123_v3, %v9122_v55  ;;  %v9124_v41 = vrot.slane %v7898_v63, 2  ;;  %v9128_v3 = vld [vmem:[#allocation182_spill] sm:$0xff] }
 0x965   :  { %v2331_v43 = vsel %vm1401_vm7, %v9126_v10, %v9125_v23  ;;  %v9127_v13 = vrot.slane %v7910_v39, 2  ;;  %v3514_v44 = vrot.slane %v3496_v45, 2  ;;  %v3515_v59 = vrot.slane %v7941_v52, 2 }
 0x966   :  { %v3437_v30 = vsel %vm601_vm3, %v3435_v60, %v9124_v41  ;;  %v2263_v24 = vadd.f32 %v2250_v7, %v2181_v35  ;;  %v2264_v26 = vadd.f32 %v9117_v58, %v2182_v28  ;;  %v2266_v16 = vadd.f32 %v9120_v48, %v2184_v54  ;;  %v9129_v60 = vld [vmem:[#allocation178_spill] sm:$0xff]  ;;  %v7980_v45 = vpop.permute.xlu1 %2874  ;;  %v9130_v58 = vld [vmem:[#allocation183_spill] sm:$0xff] }
 0x967   :  { %v3428_v8 = vsel %vm601_vm3, %v3426_v37, %v9127_v13  ;;  %3448 = vrot.lane.b32.xlu1 %v3437_v30, %s5048_s1  ;;  %v2332_v41 = vsel %vm1401_vm7, %v9129_v60, %v9128_v3  ;;  %v2265_v10 = vadd.f32 %v2251_v12, %v2183_v1  ;;  %v2267_v29 = vadd.f32 %v2252_v21, %v2185_v46  ;;  %v2865_v1 = vpop.permute.xlu0 %2864  ;;  %v9133_v12 = vld [vmem:[#allocation184_spill] sm:$0xff]  ;;  %v9135_v21 = vld [vmem:[#allocation187_spill] sm:$0xff] }
 0x968   :  { %3438 = vrot.lane.b32.xlu0 %v3428_v8, %s5048_s1  ;;  %v2268_v37 = vadd.f32 %v9122_v55, %v2186_v5  ;;  %v2344_v30 = vadd.f32 %v9125_v23, %v2262_v56  ;;  %v2343_v13 = vadd.f32 %v2331_v43, %v2261_v25  ;;  %v3411_v35 = vmul.f32 %v7868_v14, %v5987_v57  ;;  %v9131_v56 = vld [vmem:[#allocation179_spill] sm:$0xff]  ;;  %v9136_v23 = vld [vmem:[#allocation185_spill] sm:$0xff]  ;;  %v9137_v8 = vld [vmem:[#allocation188_spill] sm:$0xff] }
 0x969   :  { %v7986_v54 = vmul.f32 %v7868_v14, %v5995_v0  ;;  %v3489_v28 = vsel %vm1581_vm14, %v7324_v32, %v7413_v42  ;;  %v2345_v46 = vadd.f32 %v2332_v41, %v2263_v24  ;;  %v2346_v5 = vadd.f32 %v9128_v3, %v2264_v26  ;;  %v9134_v42 = vld [vmem:[#allocation181_spill] sm:$0xff]  ;;  %v9138_v24 = vld [vmem:[#allocation186_spill] sm:$0xff] }
 0x96a   :  { %v2333_v7 = vsel %vm1401_vm7, %v9131_v56, %v9130_v58  ;;  %v3516_v25 = vsel %vm601_vm3, %v3514_v44, %v3515_v59  ;;  %v9132_v14 = vrot.slane %v7726_v38, 2  ;;  %v2348_v48 = vadd.f32 %v9130_v58, %v2266_v16  ;;  %v8022_v60 = vpop.permute.xlu1 %2706 }
 0x96b   :  { %v2334_v55 = vsel %vm1401_vm7, %v9134_v42, %v9133_v12  ;;  %v2413_v43 = vsel %vm1473_vm8, %v9136_v23, %v9135_v21  ;;  %v2414_v26 = vsel %vm1473_vm8, %v9138_v24, %v9137_v8  ;;  %v8013_v44 = vmul.f32 %v3489_v28, %v5987_v57  ;;  %v9145_v23 = vld [vmem:[#allocation59_spill] sm:$0xff] }
 0x96c   :  { %3280 = vrot.lane.b32.xlu1 %v9132_v14, %s5044_s16  ;;  %3528 = vrot.lane.b32.xlu0 %v3516_v25, %s5050_s0  ;;  %v8016_v38 = vmul.f32 %v3489_v28, %v5995_v0  ;;  %v3497_v16 = vmul.f32 %v3489_v28, %v6005_v40  ;;  %v8020_v3 = vmul.f32 %v3489_v28, %v6014_v6  ;;  %v3429_v58 = vrot.slane %v3411_v35, 2  ;;  %v2955_v14 = vpop.permute.xlu0 %2954 }
 0x96d   :  { %v2347_v41 = vadd.f32 %v2333_v7, %v2265_v10  ;;  %v3430_v56 = vrot.slane %v7986_v54, 2  ;;  %v8027_v25 = vsel %vm257_vm4, %v2705_v19, %v8022_v60  ;;  %v2349_v57 = vadd.f32 %v2334_v55, %v2267_v29 }
 0x96e   :  { %v2350_v0 = vadd.f32 %v9133_v12, %v2268_v37  ;;  %v9139_v40 = vrot.slane %v7762_v2, 2  ;;  %v3492_v6 = vmul.f32 %v7324_v32, %v5990_v50  ;;  %v8037_v10 = vmul.f32 %v7324_v32, %v5999_v11  ;;  %v8047_v42 = vpop.permute.xlu1 %2796  ;;  %v9141_v11 = vld [vmem:[#allocation57_spill] sm:$0xff]  ;;  %v9142_v32 = vld [vmem:[#allocation199_spill] sm:$0xff] }
 0x96f   :  { %v2425_v35 = vadd.f32 %v2413_v43, %v2343_v13  ;;  %v2426_v28 = vadd.f32 %v9135_v21, %v2344_v30  ;;  %v2427_v7 = vadd.f32 %v2414_v26, %v2345_v46  ;;  %v2428_v19 = vadd.f32 %v9137_v8, %v2346_v5  ;;  %v9143_v13 = vld [vmem:[#allocation65_spill] sm:$0xff]  ;;  %v9144_v21 = vld [vmem:[#allocation56_spill] sm:$0xff] }
 0x970   :  { %3370 = vrot.lane.b32.xlu1 %v9139_v40, %s5046_s24  ;;  %v9140_v29 = vrot.slane %v7774_v51, 2  ;;  %v3511_v2 = vrot.slane %v8013_v44, 2  ;;  %v3512_v37 = vrot.slane %v8016_v38, 2  ;;  %v3517_v12 = vrot.slane %v3497_v16, 2  ;;  %v2787_v5 = vpop.permute.xlu0 %2786  ;;  %v9146_v16 = vld [vmem:[#allocation62_spill] sm:$0xff] }
 0x971   :  { %v3518_v50 = vrot.slane %v8020_v3, 2  ;;  %v2416_v30 = vsel %vm1473_vm8, %v9142_v32, %v9141_v11  ;;  %v2496_v46 = vsel %vm1545_vm9, %v9143_v13, %v7715_v17  ;;  %v8057_v51 = vsel %vm329_vm5, %v2795_v53, %v8047_v42  ;;  %v9147_v53 = vld [vmem:[#allocation63_spill] sm:$0xff]  ;;  %v9150_v13 = vld [vmem:[#allocation189_spill] sm:$0xff] }
 0x972   :  { %3360 = vrot.lane.b32.xlu0 %v9140_v29, %s5046_s24  ;;  %v3431_v55 = vsel %vm601_vm3, %v3429_v58, %v3430_v56  ;;  %v2415_v43 = vsel %vm1473_vm8, %v9145_v23, %v9144_v21  ;;  %v2430_v8 = vadd.f32 %v9144_v21, %v2348_v48  ;;  %v3508_v24 = vrot.slane %v3492_v6, 2  ;;  %v9149_v6 = vld [vmem:[#allocation60_spill] sm:$0xff] }
 0x973   :  { %v3509_v26 = vrot.slane %v8037_v10, 2  ;;  %v2432_v44 = vadd.f32 %v9141_v11, %v2350_v0  ;;  %v2498_v40 = vsel %vm1545_vm9, %v9147_v53, %v9146_v16  ;;  %v2510_v29 = vadd.f32 %v7715_v17, %v2428_v19  ;;  %v8082_v11 = vpop.permute.xlu1 %2866  ;;  %v9153_v53 = vld [vmem:[#allocation61_spill] sm:$0xff] }
 0x974   :  { %3440 = vrot.lane.b32.xlu1 %v3431_v55, %s5048_s1  ;;  %v2578_v58 = vsel %vm1617_vm10, %v7728_v9, %v7821_v36  ;;  %v9148_v48 = vrot.slane %v7810_v33, 2  ;;  %v2431_v32 = vadd.f32 %v2416_v30, %v2349_v57  ;;  %v2495_v55 = vsel %vm1545_vm9, %v9150_v13, %v9149_v6  ;;  %v9151_v9 = vld [vmem:[#allocation50_spill] sm:$0xff]  ;;  %v2877_v57 = vpop.permute.xlu0 %2876  ;;  %v9157_v13 = vld [vmem:[#allocation200_spill] sm:$0xff] }
 0x975   :  { %v2509_v0 = vadd.f32 %v2496_v46, %v2427_v7  ;;  %v3519_v17 = vsel %vm601_vm3, %v3517_v12, %v3518_v50  ;;  %v2514_v19 = vadd.f32 %v9146_v16, %v2432_v44  ;;  %v2580_v21 = vsel %vm1617_vm10, %v9151_v9, %v7755_v27  ;;  %v9152_v16 = vld [vmem:[#allocation190_spill] sm:$0xff] }
 0x976   :  { %3450 = vrot.lane.b32.xlu0 %v9148_v48, %s5048_s1  ;;  %v2592_v33 = vadd.f32 %v7821_v36, %v2510_v29  ;;  %v8094_v30 = vsel %vm1041_vm15, %v2865_v1, %v8082_v11  ;;  %v2508_v7 = vadd.f32 %v9149_v6, %v2426_v28  ;;  %v2513_v46 = vadd.f32 %v2498_v40, %v2431_v32  ;;  %v9154_v29 = vld [vmem:[#allocation191_spill] sm:$0xff] }
 0x977   :  { %v2591_v23 = vadd.f32 %v2578_v58, %v2509_v0  ;;  %v3510_v12 = vsel %vm601_vm3, %v3508_v24, %v3509_v26  ;;  %v2429_v44 = vadd.f32 %v2415_v43, %v2347_v41  ;;  %v2497_v36 = vsel %vm1545_vm9, %v9153_v53, %v9152_v16  ;;  %v8111_v32 = vpop.permute.xlu1 %2956  ;;  %v9155_v41 = vld [vmem:[#allocation58_spill] sm:$0xff]  ;;  %v9156_v43 = vld [vmem:[#allocation64_spill] sm:$0xff] }
 0x978   :  { %3530 = vrot.lane.b32.xlu1 %v3519_v17, %s5050_s0  ;;  %v2577_v1 = vsel %vm1617_vm10, %v9154_v29, %v7671_v62  ;;  %v2596_v48 = vadd.f32 %v7755_v27, %v2514_v19  ;;  %v2507_v28 = vadd.f32 %v2495_v55, %v2425_v35  ;;  %v2512_v40 = vadd.f32 %v9152_v16, %v2430_v8  ;;  %v2947_v55 = vpop.permute.xlu0 %2946  ;;  %v9165_v53 = vld [vmem:[#allocation196_spill] sm:$0xff] }
 0x979   :  { %v2590_v24 = vadd.f32 %v7671_v62, %v2508_v7  ;;  %v2595_v58 = vadd.f32 %v2580_v21, %v2513_v46  ;;  %v2579_v6 = vsel %vm1617_vm10, %v9156_v43, %v9155_v41  ;;  %v9158_v0 = vrot.slane %v9157_v13, 2  ;;  %v9169_v43 = vld [vmem:[#allocation51_spill] sm:$0xff]  ;;  %v9171_v13 = vld [vmem:[#allocation54_spill] sm:$0xff] }
 0x97a   :  { %3520 = vrot.lane.b32.xlu0 %v3510_v12, %s5050_s0  ;;  %v9159_v17 = vrot.slane %v7223_v31, 2  ;;  %v2964_v62 = vsel %vm1113_vm0, %v2955_v14, %v8111_v32  ;;  %v2511_v8 = vadd.f32 %v2497_v36, %v2429_v44  ;;  %v2594_v9 = vadd.f32 %v9155_v41, %v2512_v40 }
 0x97b   :  { %v9160_v19 = vmov %v9158_v0  ;;  %v2589_v21 = vadd.f32 %v2577_v1, %v2507_v28  ;;  %v9161_v7 = vrot.slane %v9041_v18, 2  ;;  %v9162_v12 = vrot.slane %v7860_v47, 2  ;;  %v2789_v1 = vpop.permute.xlu1 %2788 }
 0x97c   :  { %v2631_v27 = vsel %vm601_vm3, %v9159_v17, %v9158_v0  ;;  %v2649_v35 = vadd.f32 %v9160_v19, %v2592_v33  ;;  %v9163_v31 = vrot.slane %v9036_v22, 2  ;;  %v2719_v33 = vsel %vm257_vm4, %v7827_v61, %v7926_v20 }
 0x97d   :  { %v2648_v46 = vadd.f32 %v9161_v7, %v2591_v23  ;;  %3362 = vrot.lane.b32.xlu1 %v9162_v12, %s5046_s24  ;;  %v9164_v44 = vrot.slane %v7910_v39, 2  ;;  %v3513_v18 = vsel %vm601_vm3, %v3511_v2, %v3512_v37  ;;  %v2593_v23 = vadd.f32 %v2579_v6, %v2511_v8  ;;  %v3037_v39 = vpop.permute.xlu0 %3036  ;;  %v9170_v6 = vld [vmem:[#allocation55_spill] sm:$0xff] }
 0x97e   :  { %v2653_v16 = vadd.f32 %v9163_v31, %v2596_v48  ;;  %v2731_v14 = vadd.f32 %v8022_v60, %v2649_v35  ;;  %v2647_v47 = vadd.f32 %v2631_v27, %v2590_v24  ;;  %v9166_v36 = vrot.slane %v9165_v53, 2  ;;  %v9173_v35 = vld [vmem:[#allocation192_spill] sm:$0xff] }
 0x97f   :  { %3442 = vrot.lane.b32.xlu0 %v9164_v44, %s5048_s1  ;;  %v2730_v29 = vadd.f32 %v8027_v25, %v2648_v46  ;;  %v2716_v61 = vsel %vm257_vm4, %v7764_v49, %v7853_v4  ;;  %v2799_v48 = vsel %vm329_vm5, %v2787_v5, %v2789_v1  ;;  %v2651_v2 = vadd.f32 %v7678_v34, %v2594_v9  ;;  %v2879_v19 = vpop.permute.xlu1 %2878 }
 0x980   :  { %v2652_v22 = vadd.f32 %v9166_v36, %v2595_v58  ;;  %v2735_v60 = vadd.f32 %v7926_v20, %v2653_v16  ;;  %v2813_v28 = vadd.f32 %v2789_v1, %v2731_v14  ;;  %v2646_v40 = vadd.f32 %v7690_v15, %v2589_v21  ;;  %v9168_v58 = vld [vmem:[#allocation52_spill] sm:$0xff] }
 0x981   :  { %v2812_v41 = vadd.f32 %v2799_v48, %v2730_v29  ;;  %v9167_v25 = vrot.slane %v7898_v63, 2  ;;  %v2718_v49 = vsel %vm257_vm4, %v9169_v43, %v9168_v58  ;;  %v2729_v20 = vadd.f32 %v7853_v4, %v2647_v47  ;;  %v9172_v15 = vld [vmem:[#allocation204_spill] sm:$0xff]  ;;  %v9174_v4 = vld [vmem:[#allocation53_spill] sm:$0xff]  ;;  %v2869_v21 = vpop.permute.xlu0 %2868 }
 0x982   :  { %v2734_v24 = vadd.f32 %v2719_v33, %v2652_v22  ;;  %v2798_v5 = vsel %vm329_vm5, %v9171_v13, %v9170_v6  ;;  %v2817_v34 = vadd.f32 %v8047_v42, %v2735_v60  ;;  %v2650_v0 = vadd.f32 %v9172_v15, %v2593_v23 }
 0x983   :  { %3452 = vrot.lane.b32.xlu1 %v9167_v25, %s5048_s1  ;;  %3532 = vrot.lane.b32.xlu0 %v3515_v59, %s5050_s0  ;;  %v2733_v63 = vadd.f32 %v9168_v58, %v2651_v2  ;;  %v2728_v17 = vadd.f32 %v2716_v61, %v2646_v40  ;;  %v2800_v8 = vsel %vm329_vm5, %v9174_v4, %v9173_v35  ;;  %v2949_v14 = vpop.permute.xlu1 %2948  ;;  %vm3556_vm3 = vcmask 97280  }
 0x984   :  { %v2816_v27 = vadd.f32 %v8057_v51, %v2734_v24  ;;  %v2811_v9 = vadd.f32 %v9170_v6, %v2729_v20  ;;  %v2883_v42 = vsel %vm1041_vm15, %v2877_v57, %v2879_v19  ;;  %v2899_v7 = vadd.f32 %v2879_v19, %v2817_v34  ;;  %v9175_v51 = vld [vmem:[#allocation193_spill] sm:$0xff] }
 0x985   :  { %v2732_v52 = vadd.f32 %v2718_v49, %v2650_v0  ;;  %v2810_v59 = vadd.f32 %v2798_v5, %v2728_v17  ;;  %v2815_v12 = vadd.f32 %v9173_v35, %v2733_v63  ;;  %v2882_v31 = vsel %vm1041_vm15, %v9175_v51, %v7980_v45  ;;  %v2959_v23 = vpop.permute.xlu0 %2958 }
 0x986   :  { %v2898_v46 = vadd.f32 %v2883_v42, %v2816_v27  ;;  %v2893_v16 = vadd.f32 %v8082_v11, %v2811_v9  ;;  %vm3558_vm4 = vcmask 93184   ;;  %vm3578_vm5 = vcmask 195680  }
 0x987   :  { %3522 = vrot.lane.b32.xlu1 %v3513_v18, %s5050_s0  ;;  %3524 = vrot.lane.b32.xlu0 %v3509_v26, %s5050_s0  ;;  %v2814_v33 = vadd.f32 %v2800_v8, %v2732_v52  ;;  %v2892_v57 = vadd.f32 %v8094_v30, %v2810_v59  ;;  %v2897_v44 = vadd.f32 %v7980_v45, %v2815_v12  ;;  %v3039_v26 = vpop.permute.xlu1 %3038  ;;  %vm3600_vm11 = vcmask 294080  }
 0x988   :  { %v2962_v18 = vsel %vm1113_vm0, %v2947_v55, %v2949_v14  ;;  %v2975_v47 = vadd.f32 %v2949_v14, %v2893_v16  ;;  %v3046_v30 = vsel %vm1185_vm1, %v3037_v39, %v3039_v26  ;;  %vm3618_vm12 = vcmask 392480  }
 0x989   :  { %v2896_v53 = vadd.f32 %v2882_v31, %v2814_v33  ;;  %v2974_v36 = vadd.f32 %v2962_v18, %v2892_v57  ;;  %v2979_v11 = vadd.f32 %v8111_v32, %v2897_v44  ;;  %v3029_v22 = vpop.permute.xlu0 %3028  ;;  %vm3580_vm13 = vcmask 191584  }
 0x98a   :  { %vm3602_vm14 = vcmask 289984  }
 0x98b   :  { %3444 = vrot.lane.b32.xlu1 %v3430_v56, %s5048_s1  ;;  %v2978_v10 = vadd.f32 %v2964_v62, %v2896_v53  ;;  %v3061_v29 = vadd.f32 %v3039_v26, %v2979_v11  ;;  %v2871_v45 = vpop.permute.xlu1 %2870 }
 0x98c   :  { %v2881_v61 = vsel %vm1041_vm15, %v2869_v21, %v2871_v45  ;;  %v2895_v60 = vadd.f32 %v2871_v45, %v2813_v28 }
 0x98d   :  { %v3060_v1 = vadd.f32 %v3046_v30, %v2978_v10  ;;  %v3119_v55 = vpop.permute.xlu0 %3118  ;;  %v2894_v54 = vadd.f32 %v2881_v61, %v2812_v41 }
 0x98f   :  { %3534 = vrot.lane.b32.xlu1 %v3518_v50, %s5050_s0  ;;  %v2961_v56 = vpop.permute.xlu1 %2960 }
 0x990   :  { %v2965_v62 = vsel %vm1113_vm0, %v2959_v23, %v2961_v56  ;;  %v2981_v39 = vadd.f32 %v2961_v56, %v2899_v7 }
 0x991   :  { %v2951_v32 = vpop.permute.xlu0 %2950  ;;  %v2980_v48 = vadd.f32 %v2965_v62, %v2898_v46 }
 0x993   :  { %3526 = vrot.lane.b32.xlu1 %v3512_v37, %s5050_s0  ;;  %v3031_v2 = vpop.permute.xlu1 %3030 }
 0x994   :  { %v3044_v3 = vsel %vm1185_vm1, %v3029_v22, %v3031_v2  ;;  %v3057_v50 = vadd.f32 %v3031_v2, %v2975_v47 }
 0x995   :  { %v3041_v40 = vpop.permute.xlu0 %3040  ;;  %v3056_v24 = vadd.f32 %v3044_v3, %v2974_v36 }
 0x997   :  { %v3121_v25 = vpop.permute.xlu1 %3120 }
 0x998   :  { %v3128_v28 = vsel %vm1257_vm2, %v3119_v55, %v3121_v25  ;;  %v3143_v41 = vadd.f32 %v3121_v25, %v3061_v29 }
 0x999   :  { %v3111_v58 = vpop.permute.xlu0 %3110  ;;  %v3142_v43 = vadd.f32 %v3128_v28, %v3060_v1 }
 0x99b   :  { %v2953_v38 = vpop.permute.xlu1 %2952 }
 0x99c   :  { %v2963_v49 = vsel %vm1113_vm0, %v2951_v32, %v2953_v38  ;;  %v2977_v20 = vadd.f32 %v2953_v38, %v2895_v60  ;;  %vm3620_vm0 = vcmask 388384  }
 0x99d   :  { %v3201_v37 = vpop.permute.xlu0 %3200  ;;  %v2976_v6 = vadd.f32 %v2963_v49, %v2894_v54 }
 0x99f   :  { %v3043_v13 = vpop.permute.xlu1 %3042 }
 0x9a0   :  { %v3047_v34 = vsel %vm1185_vm1, %v3041_v40, %v3043_v13  ;;  %v3063_v15 = vadd.f32 %v3043_v13, %v2981_v39 }
 0x9a1   :  { %v3033_v5 = vpop.permute.xlu0 %3032  ;;  %v3062_v0 = vadd.f32 %v3047_v34, %v2980_v48 }
 0x9a3   :  { %v3113_v63 = vpop.permute.xlu1 %3112 }
 0x9a4   :  { %v3126_v27 = vsel %vm1257_vm2, %v3111_v58, %v3113_v63  ;;  %v8205_v19 = vadd.f32 %v3113_v63, %v3057_v50 }
 0x9a5   :  { %v3123_v17 = vpop.permute.xlu0 %3122  ;;  %v8207_v35 = vadd.f32 %v3126_v27, %v3056_v24 }
 0x9a7   :  { %v3203_v4 = vpop.permute.xlu1 %3202 }
 0x9a8   :  { %v3210_v56 = vsel %vm1329_vm6, %v3201_v37, %v3203_v4  ;;  %v3225_v62 = vadd.f32 %v3203_v4, %v3143_v41 }
 0x9a9   :  { %v3193_v8 = vpop.permute.xlu0 %3192  ;;  %v3224_v48 = vadd.f32 %v3210_v56, %v3142_v43 }
 0x9ab   :  { %v3035_v9 = vpop.permute.xlu1 %3034 }
 0x9ac   :  { %v3045_v42 = vsel %vm1185_vm1, %v3033_v5, %v3035_v9  ;;  %v8210_v7 = vadd.f32 %v3035_v9, %v2977_v20  ;;  %vm3706_vm1 = vcmask 1041409  }
 0x9ad   :  { %v3283_v21 = vpop.permute.xlu0 %3282  ;;  %v8212_v52 = vadd.f32 %v3045_v42, %v2976_v6 }
 0x9af   :  { %v3125_v59 = vpop.permute.xlu1 %3124 }
 0x9b0   :  { %v3129_v12 = vsel %vm1257_vm2, %v3123_v17, %v3125_v59  ;;  %v8217_v51 = vadd.f32 %v3125_v59, %v3063_v15 }
 0x9b1   :  { %v8214_v46 = vpop.permute.xlu0 %3114  ;;  %v8219_v31 = vadd.f32 %v3129_v12, %v3062_v0 }
 0x9b3   :  { %v3195_v16 = vpop.permute.xlu1 %3194 }
 0x9b4   :  { %v3208_v43 = vsel %vm1329_vm6, %v3193_v8, %v3195_v16  ;;  %v3221_v8 = vadd.f32 %v3195_v16, %v8205_v19 }
 0x9b5   :  { %v3205_v33 = vpop.permute.xlu0 %3204  ;;  %v3220_v15 = vadd.f32 %v3208_v43, %v8207_v35 }
 0x9b7   :  { %v3285_v57 = vpop.permute.xlu1 %3284 }
 0x9b8   :  { %v3292_v39 = vsel %vm1401_vm7, %v3283_v21, %v3285_v57  ;;  %v3307_v40 = vadd.f32 %v3285_v57, %v3225_v62 }
 0x9b9   :  { %v3275_v14 = vpop.permute.xlu0 %3274  ;;  %v3306_v50 = vadd.f32 %v3292_v39, %v3224_v48 }
 0x9bd   :  { %v8221_v44 = vpop.permute.xlu1 %3116  ;;  %v3365_v23 = vpop.permute.xlu0 %3364 }
 0x9be   :  { %v3127_v57 = vsel %vm1257_vm2, %v8214_v46, %v8221_v44  ;;  %v3141_v56 = vadd.f32 %v8221_v44, %v8210_v7 }
 0x9c1   :  { %v8223_v18 = vpop.permute.xlu1 %3206 }
 0x9c2   :  { %v8225_v47 = vpop.permute.xlu0 %3196  ;;  %v3211_v21 = vsel %vm1329_vm6, %v3205_v33, %v8223_v18 }
 0x9c5   :  { %v3277_v53 = vpop.permute.xlu1 %3276 }
 0x9c6   :  { %v3287_v36 = vpop.permute.xlu0 %3286  ;;  %v3290_v34 = vsel %vm1401_vm7, %v3275_v14, %v3277_v53  ;;  %v3303_v42 = vadd.f32 %v3277_v53, %v3221_v8 }
 0x9c7   :  { %v3302_v17 = vadd.f32 %v3290_v34, %v3220_v15 }
 0x9c9   :  { %v3367_v11 = vpop.permute.xlu1 %3366 }
 0x9ca   :  { %v3357_v10 = vpop.permute.xlu0 %3356  ;;  %v3374_v3 = vsel %vm1473_vm8, %v3365_v23, %v3367_v11  ;;  %v3389_v25 = vadd.f32 %v3367_v11, %v3307_v40  ;;  %v3226_v11 = vadd.f32 %v3211_v21, %v8219_v31 }
 0x9cb   :  { %v3388_v28 = vadd.f32 %v3374_v3, %v3306_v50 }
 0x9cd   :  { %v8227_v26 = vpop.permute.xlu1 %3198 }
 0x9ce   :  { %v3447_v22 = vpop.permute.xlu0 %3446  ;;  %v3209_v33 = vsel %vm1329_vm6, %v8225_v47, %v8227_v26  ;;  %v3227_v47 = vadd.f32 %v8223_v18, %v8217_v51  ;;  %v3223_v18 = vadd.f32 %v8227_v26, %v3141_v56  ;;  %vm3724_vm6 = vcmask 385024  }
 0x9d1   :  { %v8229_v30 = vpop.permute.xlu1 %3288 }
 0x9d2   :  { %v8231_v29 = vpop.permute.xlu0 %3278  ;;  %v3293_v14 = vsel %vm1401_vm7, %v3287_v36, %v8229_v30  ;;  %v3309_v62 = vadd.f32 %v8229_v30, %v3227_v47 }
 0x9d5   :  { %v3359_v1 = vpop.permute.xlu1 %3358 }
 0x9d6   :  { %v3369_v45 = vpop.permute.xlu0 %3368  ;;  %v3372_v63 = vsel %vm1473_vm8, %v3357_v10, %v3359_v1  ;;  %v3385_v19 = vadd.f32 %v3359_v1, %v3303_v42  ;;  %v3140_v10 = vadd.f32 %v3127_v57, %v8212_v52  ;;  %v5055_v42 = vmov 1935823168  }
 0x9d7   :  { %v3384_v9 = vadd.f32 %v3372_v63, %v3302_v17  ;;  %v9176_v63 = vld [vmem:[#allocation47_spill] sm:$0xff] }
 0x9d8   :  { %v3222_v1 = vadd.f32 %v3209_v33, %v3140_v10 }
 0x9d9   :  { %v3449_v55 = vpop.permute.xlu1 %3448 }
 0x9da   :  { %v3439_v61 = vpop.permute.xlu0 %3438  ;;  %v3456_v58 = vsel %vm1545_vm9, %v3447_v22, %v3449_v55  ;;  %v3471_v38 = vadd.f32 %v3449_v55, %v3389_v25  ;;  %v3308_v22 = vadd.f32 %v3293_v14, %v3226_v11 }
 0x9db   :  { %v3470_v49 = vadd.f32 %v3456_v58, %v3388_v28 }
 0x9de   :  { %v8233_v60 = vpop.permute.xlu1 %3280  ;;  %v3529_v54 = vpop.permute.xlu0 %3528 }
 0x9df   :  { %v3291_v31 = vsel %vm1401_vm7, %v8231_v29, %v8233_v60  ;;  %v3305_v7 = vadd.f32 %v8233_v60, %v3223_v18  ;;  %vm3746_vm7 = vcmask 778624  }
 0x9e0   :  { %v3304_v39 = vadd.f32 %v3291_v31, %v3222_v1 }
 0x9e2   :  { %v8236_v32 = vpop.permute.xlu1 %3370 }
 0x9e3   :  { %v3375_v53 = vsel %vm1473_vm8, %v3369_v45, %v8236_v32  ;;  %v3391_v3 = vadd.f32 %v8236_v32, %v3309_v62 }
 0x9e4   :  { %v3361_v2 = vpop.permute.xlu0 %3360  ;;  %v3390_v45 = vadd.f32 %v3375_v53, %v3308_v22 }
 0x9e6   :  { %v3441_v24 = vpop.permute.xlu1 %3440 }
 0x9e7   :  { %v3454_v4 = vsel %vm1545_vm9, %v3439_v61, %v3441_v24  ;;  %v3467_v46 = vadd.f32 %v3441_v24, %v3385_v19 }
 0x9e8   :  { %v3451_v20 = vpop.permute.xlu0 %3450  ;;  %v3466_v59 = vadd.f32 %v3454_v4, %v3384_v9 }
 0x9ea   :  { %v3531_v37 = vpop.permute.xlu1 %3530 }
 0x9eb   :  { %v3538_v6 = vsel %vm1617_vm10, %v3529_v54, %v3531_v37  ;;  %v3553_v41 = vadd.f32 %v3531_v37, %v3471_v38 }
 0x9ec   :  { %v3552_v13 = vadd.f32 %v3538_v6, %v3470_v49  ;;  %v3521_v0 = vpop.permute.xlu0 %3520  ;;  %v5054_v6 = vmov 1966171168  }
 0x9ed   :  { %3592 = vrot.lane.b32.xlu1 %v3553_v41, %s5051_s3 }
 0x9ee   :  { %3570 = vrot.lane.b32.xlu0 %v3552_v13, %s5052_s22  ;;  %3560 = vst.msk [vmem:[#allocation4 + $0x10] sm:$0xff] %vm3556_vm3, %v3552_v13  ;;  %v8305_v13 = vld [vmem:[%s8510_s4] ss:$0 sm:$0xff]  ;;  %s9177_s4 = smov 64  }
 0x9ef   :  { %v8245_v5 = vpop.permute.xlu1 %3362 }
 0x9f0   :  { %v3373_v54 = vsel %vm1473_vm8, %v3361_v2, %v8245_v5  ;;  %v3387_v26 = vadd.f32 %v8245_v5, %v3305_v7  ;;  %vm3817_vm8 = vcmask 1041152  }
 0x9f1   :  { %3610 = vrot.lane.b32.xlu1 %v3553_v41, %s5053_s30  ;;  %v3443_v12 = vpop.permute.xlu0 %3442  ;;  %v3386_v2 = vadd.f32 %v3373_v54, %v3304_v39  ;;  %v3648_v41 = vunpack.c.l.s4 %v5054_v6 }
 0x9f3   :  { %v3649_v43 = vunpack.c.0.s8 %v3648_v41 }
 0x9f5   :  { %v3453_v27 = vpop.permute.xlu1 %3452  ;;  %v3533_v61 = vpop.permute.xlu0 %3532  ;;  %v8310_v17 = vsub.s32 %v3649_v43, %v9176_v63 }
 0x9f6   :  { %v3457_v36 = vsel %vm1545_vm9, %v3451_v20, %v3453_v27  ;;  %v3473_v44 = vadd.f32 %v3453_v27, %v3391_v3 }
 0x9f7   :  { %v3472_v48 = vadd.f32 %v3457_v36, %v3390_v45 }
 0x9f9   :  { %v3523_v35 = vpop.permute.xlu1 %3522  ;;  %v3525_v30 = vpop.permute.xlu0 %3524 }
 0x9fa   :  { %v3536_v23 = vsel %vm1617_vm10, %v3521_v0, %v3523_v35  ;;  %v3549_v52 = vadd.f32 %v3523_v35, %v3467_v46 }
 0x9fb   :  { %v3548_v16 = vadd.f32 %v3536_v23, %v3466_v59  ;;  %v3676_v59 = vunpack.c.l.s4 %v5055_v42 }
 0x9fd   :  { %v3445_v55 = vpop.permute.xlu1 %3444  ;;  %3566 = vrot.lane.b32.xlu0 %v3548_v16, %s5052_s22  ;;  %3557 = vst.msk [vmem:[#allocation4] sm:$0xff] %vm3556_vm3, %v3548_v16  ;;  %v3677_v14 = vunpack.c.0.s8 %v3676_v59  ;;  %vm3841_vm3 = vcmask 516224  }
 0x9fe   :  { %v3455_v40 = vsel %vm1545_vm9, %v3443_v12, %v3445_v55  ;;  %v3469_v38 = vadd.f32 %v3445_v55, %v3387_v26  ;;  %vm3818_vm9 = vcmask 123905  }
 0x9ff   :  { %v3468_v24 = vadd.f32 %v3455_v40, %v3386_v2  ;;  %v8318_v53 = vsub.s32 %v3677_v14, %v9176_v63 }
 0xa01   :  { %v3535_v29 = vpop.permute.xlu1 %3534  ;;  %3588 = vrot.lane.b32.xlu0 %v3549_v52, %s5051_s3 }
 0xa02   :  { %v3539_v51 = vsel %vm1617_vm10, %v3533_v61, %v3535_v29  ;;  %v3555_v28 = vadd.f32 %v3535_v29, %v3473_v44 }
 0xa03   :  { %v3554_v50 = vadd.f32 %v3539_v51, %v3472_v48 }
 0xa05   :  { %3572 = vrot.lane.b32.xlu1 %v3554_v50, %s5052_s22  ;;  %v3527_v25 = vpop.permute.xlu1 %3526  ;;  %3606 = vrot.lane.b32.xlu0 %v3549_v52, %s5053_s30  ;;  %3561 = vst.msk [vmem:[#allocation4 + $0x18] sm:$0xf] %vm3558_vm4, %v3554_v50 }
 0xa06   :  { %v3537_v58 = vsel %vm1617_vm10, %v3525_v30, %v3527_v25  ;;  %v3551_v60 = vadd.f32 %v3527_v25, %v3469_v38  ;;  %vm8411_vm10 = vmor %vm3818_vm9, %vm3817_vm8 }
 0xa07   :  { %v3550_v32 = vadd.f32 %v3537_v58, %v3468_v24 }
 0xa09   :  { %3594 = vrot.lane.b32.xlu1 %v3555_v28, %s5051_s3  ;;  %3568 = vrot.lane.b32.xlu0 %v3550_v32, %s5052_s22  ;;  %3559 = vst.msk [vmem:[#allocation4 + $0x8] sm:$0xf] %vm3558_vm4, %v3550_v32  ;;  %vm3920_vm4 = vcmask 1041280  }
 0xa0d   :  { %3612 = vrot.lane.b32.xlu1 %v3555_v28, %s5053_s30  ;;  %3590 = vrot.lane.b32.xlu0 %v3551_v60, %s5051_s3 }
 0xa11   :  { %3608 = vrot.lane.b32.xlu1 %v3551_v60, %s5053_s30 }
 0xa5f   :  { %v3593_v49 = vpop.permute.xlu1 %3592 }
 0xa60   :  { %v3571_v20 = vpop.permute.xlu0 %3570 }
 0xa61   :  { %3582 = vst.msk [vmem:[#allocation4 + $0x10] sm:$0xff] %vm3578_vm5, %v3571_v20 }
 0xa62   :  { %3604 = vst.msk [vmem:[#allocation4 + $0x10] sm:$0xff] %vm3600_vm11, %v3593_v49 }
 0xa63   :  { %v3611_v37 = vpop.permute.xlu1 %3610 }
 0xa64   :  { %3622 = vst.msk [vmem:[#allocation4 + $0x10] sm:$0xff] %vm3618_vm12, %v3611_v37 }
 0xa6b   :  { %v3626_v5 = vld [vmem:[#allocation4 + $0x10] sm:$0xff] }
 0xa6c   :  { %v3637_v15 = vadd.f32 %v8305_v13, %v3626_v5 }
 0xa6e   :  { %v3641_v0 = vmax.f32 %v3637_v15, 0.0 }
 0xa6f   :  { %v3567_v34 = vpop.permute.xlu0 %3566 }
 0xa70   :  { %3579 = vst.msk [vmem:[#allocation4] sm:$0xff] %vm3578_vm5, %v3567_v34  ;;  %v3644_v4 = vpack.c.bf16 %v3641_v0, %v3641_v0  ;;  %vm3921_vm5 = vcmask 254977  }
 0xa72   :  { %v3667_v8 = vrot.slane %v3644_v4, %v8310_v17 }
 0xa73   :  { %v3589_v27 = vpop.permute.xlu0 %3588 }
 0xa74   :  { %3601 = vst.msk [vmem:[#allocation4] sm:$0xff] %vm3600_vm11, %v3589_v27  ;;  %v3756_v12 = vcombine.high %v3667_v8, %v3667_v8  ;;  %v3674_v11 = vrot.slane %v3667_v8, %v8310_v17  ;;  %vm3895_vm11 = vcmask 909824  }
 0xa76   :  { %v3763_v23 = vrot.slane %v3756_v12, %v8310_v17  ;;  %v3844_v22 = vcombine.high %v3674_v11, %v3674_v11  ;;  %v3695_v47 = vrot.slane %v3674_v11, %v8318_v53 }
 0xa77   :  { %v3573_v9 = vpop.permute.xlu1 %3572  ;;  %v3607_v21 = vpop.permute.xlu0 %3606 }
 0xa78   :  { %3583 = vst.msk [vmem:[#allocation4 + $0x18] sm:$0xf] %vm3580_vm13, %v3573_v9  ;;  %v3925_v46 = vcombine.high %v3763_v23, %v3763_v23  ;;  %v3784_v36 = vrot.slane %v3763_v23, %v8318_v53  ;;  %v3865_v45 = vrot.slane %v3844_v22, %v8318_v53  ;;  %v3702_v56 = vrot.slane %v3695_v47, %v8318_v53 }
 0xa79   :  { %3619 = vst.msk [vmem:[#allocation4] sm:$0xff] %vm3618_vm12, %v3607_v21  ;;  %vm3922_vm12 = vmor %vm3921_vm5, %vm3920_vm4 }
 0xa7a   :  { %v3946_v61 = vrot.slane %v3925_v46, %v8318_v53  ;;  %v3791_v54 = vrot.slane %v3784_v36, %v8318_v53  ;;  %v3872_v40 = vrot.slane %v3865_v45, %v8318_v53  ;;  %v3704_v44 = vunpack.c.l.b16 %v3702_v56 }
 0xa7b   :  { %v3595_v35 = vpop.permute.xlu1 %3594  ;;  %v3569_v57 = vpop.permute.xlu0 %3568 }
 0xa7c   :  { %3605 = vst.msk [vmem:[#allocation4 + $0x18] sm:$0xf] %vm3602_vm14, %v3595_v35  ;;  %v3953_v51 = vrot.slane %v3946_v61, %v8318_v53  ;;  %v3793_v7 = vunpack.c.l.b16 %v3791_v54  ;;  %v3874_v28 = vunpack.c.l.b16 %v3872_v40  ;;  %v3705_v34 = vrot.slane %v3704_v44, 7 }
 0xa7d   :  { %3581 = vst.msk [vmem:[#allocation4 + $0x8] sm:$0xf] %vm3580_vm13, %v3569_v57  ;;  %vm3976_vm13 = vcmask 647424  }
 0xa7e   :  { %v8340_v60 = vunpack.c.l.b16 %v3953_v51  ;;  %v3794_v41 = vrot.slane %v3793_v7, 7  ;;  %v3875_v4 = vrot.slane %v3874_v28, 7 }
 0xa7f   :  { %v3613_v19 = vpop.permute.xlu1 %3612  ;;  %v3591_v16 = vpop.permute.xlu0 %3590 }
 0xa80   :  { %v3624_v33 = vld [vmem:[#allocation4] sm:$0xff]  ;;  %3623 = vst.msk [vmem:[#allocation4 + $0x18] sm:$0xf] %vm3620_vm0, %v3613_v19  ;;  %v3956_v21 = vrot.slane %v8340_v60, 7 }
 0xa81   :  { %3603 = vst.msk [vmem:[#allocation4 + $0x8] sm:$0xf] %vm3602_vm14, %v3591_v16  ;;  %v3635_v10 = vadd.f32 %v8305_v13, %v3624_v33  ;;  %vm3998_vm14 = vcmask 1041024  }
 0xa83   :  { %v3639_v55 = vmax.f32 %v3635_v10, 0.0  ;;  %v3609_v31 = vpop.permute.xlu1 %3608 }
 0xa84   :  { %3621 = vst.msk [vmem:[#allocation4 + $0x8] sm:$0xf] %vm3620_vm0, %v3609_v31 }
 0xa85   :  { %v3643_v1 = vpack.c.bf16 %v3639_v55, %v3639_v55 }
 0xa87   :  { %v3653_v52 = vrot.slane %v3643_v1, %v8310_v17  ;;  %v3627_v62 = vld [vmem:[#allocation4 + $0x18] sm:$0xf] }
 0xa88   :  { %v3638_v29 = vadd.f32 %v8305_v13, %v3627_v62 }
 0xa89   :  { %v3748_v39 = vcombine.high %v3653_v52, %v3653_v52  ;;  %v3660_v48 = vrot.slane %v3653_v52, %v8310_v17 }
 0xa8a   :  { %v3642_v50 = vmax.f32 %v3638_v29, 0.0 }
 0xa8b   :  { %v3755_v18 = vrot.slane %v3748_v39, %v8310_v17  ;;  %v3681_v3 = vrot.slane %v3660_v48, %v8318_v53  ;;  %v3843_v2 = vcombine.high %v3660_v48, %v3660_v48  ;;  %v3625_v30 = vld [vmem:[#allocation4 + $0x8] sm:$0xf] }
 0xa8c   :  { %v3636_v26 = vadd.f32 %v8305_v13, %v3625_v30  ;;  %v4001_v32 = vpack.c.bf16 %v3642_v50, %v3642_v50 }
 0xa8d   :  { %v3770_v24 = vrot.slane %v3755_v18, %v8318_v53  ;;  %v3688_v25 = vrot.slane %v3681_v3, %v8318_v53  ;;  %v3851_v58 = vrot.slane %v3843_v2, %v8318_v53  ;;  %v3924_v38 = vcombine.high %v3755_v18, %v3755_v18 }
 0xa8e   :  { %v3640_v6 = vmax.f32 %v3636_v26, 0.0  ;;  %v4024_v43 = vrot.slane %v4001_v32, %v8310_v17 }
 0xa8f   :  { %v3777_v49 = vrot.slane %v3770_v24, %v8318_v53  ;;  %v3703_v20 = vunpack.c.l.b16 %v3688_v25  ;;  %v3858_v37 = vrot.slane %v3851_v58, %v8318_v53  ;;  %v3932_v5 = vrot.slane %v3924_v38, %v8318_v53 }
 0xa90   :  { %v4000_v27 = vpack.c.bf16 %v3640_v6, %v3640_v6  ;;  %v4110_v8 = vcombine.high %v4024_v43, %v4024_v43  ;;  %v4031_v45 = vrot.slane %v4024_v43, %v8310_v17 }
 0xa91   :  { %v3792_v15 = vunpack.c.l.b16 %v3777_v49  ;;  %v3726_v0 = vrot.slane %v3703_v20, 1  ;;  %v3873_v13 = vunpack.c.l.b16 %v3858_v37  ;;  %v3939_v9 = vrot.slane %v3932_v5, %v8318_v53 }
 0xa92   :  { %v4010_v11 = vrot.slane %v4000_v27, %v8310_v17  ;;  %v4117_v10 = vrot.slane %v4110_v8, %v8310_v17  ;;  %v3707_v29 = vsel %vm3706_vm1, %v3705_v34, %v3703_v20  ;;  %v4052_v2 = vrot.slane %v4031_v45, %v8318_v53 }
 0xa93   :  { %v3795_v42 = vsel %vm3706_vm1, %v3794_v41, %v3792_v15  ;;  %v3727_v59 = vsel %vm3706_vm1, %v3704_v44, %v3726_v0  ;;  %v3897_v12 = vrot.slane %v3873_v13, 1  ;;  %v3821_v35 = vrot.slane %v3792_v15, 1 }
 0xa94   :  { %v3796_v57 = vpack.c.b16 %v3795_v42, %v3795_v42  ;;  %v3728_v14 = vpack.c.b16 %v3727_v59, %v3727_v59  ;;  %v3876_v23 = vsel %vm3706_vm1, %v3875_v4, %v3873_v13  ;;  %v4102_v36 = vcombine.high %v4010_v11, %v4010_v11 }
 0xa95   :  { %v3898_v19 = vsel %vm3706_vm1, %v3874_v28, %v3897_v12  ;;  %v3822_v16 = vsel %vm3706_vm1, %v3793_v7, %v3821_v35  ;;  %v3877_v33 = vpack.c.b16 %v3876_v23, %v3876_v23  ;;  %v4138_v47 = vrot.slane %v4117_v10, %v8318_v53 }
 0xa96   :  { %v3803_v22 = vrot.slane %v3796_v57, %v8310_v17  ;;  %v3735_v46 = vrot.slane %v3728_v14, %v8310_v17  ;;  %v3899_v55 = vpack.c.b16 %v3898_v19, %v3898_v19  ;;  %v3823_v31 = vpack.c.b16 %v3822_v16, %v3822_v16 }
 0xa97   :  { %v3954_v1 = vunpack.c.l.b16 %v3939_v9  ;;  %v4109_v62 = vrot.slane %v4102_v36, %v8310_v17  ;;  %v4145_v39 = vrot.slane %v4138_v47, %v8318_v53  ;;  %v3884_v40 = vrot.slane %v3877_v33, %v8310_v17 }
 0xa98   :  { %v3810_v61 = vrot.slane %v3803_v22, %v8310_v17  ;;  %v3742_v52 = vrot.slane %v3735_v46, %v8310_v17  ;;  %v3906_v54 = vrot.slane %v3899_v55, %v8310_v17  ;;  %v3830_v56 = vrot.slane %v3823_v31, %v8310_v17 }
 0xa99   :  { %v3957_v48 = vsel %vm3706_vm1, %v3956_v21, %v3954_v1  ;;  %v4124_v51 = vrot.slane %v4109_v62, %v8318_v53  ;;  %v4147_v18 = vunpack.c.l.b16 %v4145_v39  ;;  %v4017_v3 = vrot.slane %v4010_v11, %v8310_v17 }
 0xa9a   :  { %3811 = vrot.lane.b32.xlu0 %v3810_v61, %s5042_s12  ;;  %3743 = vrot.lane.b32.xlu1 %v3742_v52, %s5045_s23  ;;  %v3913_v50 = vrot.slane %v3906_v54, %v8310_v17  ;;  %v3837_v7 = vrot.slane %v3830_v56, %v8310_v17  ;;  %v3958_v44 = vpack.c.b16 %v3957_v48, %v3957_v48  ;;  %v3978_v26 = vrot.slane %v3954_v1, 1 }
 0xa9b   :  { %v3708_v30 = vpack.c.b16 %v3707_v29, %v3707_v29  ;;  %v4131_v24 = vrot.slane %v4124_v51, %v8318_v53  ;;  %v4038_v25 = vrot.slane %v4017_v3, %v8318_v53  ;;  %v4059_v58 = vrot.slane %v4052_v2, %v8318_v53 }
 0xa9c   :  { %v4148_v38 = vrot.slane %v4147_v18, 7  ;;  %v3891_v37 = vrot.slane %v3884_v40, %v8310_v17  ;;  %v3965_v6 = vrot.slane %v3958_v44, %v8310_v17  ;;  %v3979_v27 = vsel %vm3706_vm1, %v8340_v60, %v3978_v26 }
 0xa9d   :  { %v3715_v28 = vrot.slane %v3708_v30, %v8310_v17  ;;  %v4146_v32 = vunpack.c.l.b16 %v4131_v24  ;;  %v4045_v49 = vrot.slane %v4038_v25, %v8318_v53  ;;  %v4061_v20 = vunpack.c.l.b16 %v4059_v58 }
 0xa9e   :  { %3914 = vrot.lane.b32.xlu0 %v3913_v50, %s5039_s2  ;;  %3838 = vrot.lane.b32.xlu1 %v3837_v7, %s5031_s26  ;;  %v3972_v8 = vrot.slane %v3965_v6, %v8310_v17  ;;  %v3980_v14 = vpack.c.b16 %v3979_v27, %v3979_v27 }
 0xa9f   :  { %v3722_v41 = vrot.slane %v3715_v28, %v8310_v17  ;;  %v4149_v43 = vsel %vm3706_vm1, %v4148_v38, %v4146_v32  ;;  %v4060_v5 = vunpack.c.l.b16 %v4045_v49  ;;  %v4171_v34 = vrot.slane %v4146_v32, 1 }
 0xaa0   :  { %v4150_v15 = vpack.c.b16 %v4149_v43, %v4149_v43  ;;  %v4062_v0 = vrot.slane %v4061_v20, 7  ;;  %v3987_v33 = vrot.slane %v3980_v14, %v8310_v17 }
 0xaa1   :  { %3725 = vst.msk [vmem:[#allocation5] sm:$0x1] %vm3724_vm6, %v3722_v41  ;;  %v4081_v13 = vrot.slane %v4060_v5, 1  ;;  %v4172_v53 = vsel %vm3706_vm1, %v4147_v18, %v4171_v34 }
 0xaa2   :  { %3892 = vrot.lane.b32.xlu1 %v3891_v37, %s9177_s4  ;;  %v4157_v4 = vrot.slane %v4150_v15, %v8310_v17  ;;  %v4173_v9 = vpack.c.b16 %v4172_v53, %v4172_v53  ;;  %v4063_v21 = vsel %vm3706_vm1, %v4062_v0, %v4060_v5  ;;  %v3994_v10 = vrot.slane %v3987_v33, %v8310_v17 }
 0xaa3   :  { %v4082_v42 = vsel %vm3706_vm1, %v4061_v20, %v4081_v13  ;;  %v4064_v59 = vpack.c.b16 %v4063_v21, %v4063_v21 }
 0xaa4   :  { %v4164_v12 = vrot.slane %v4157_v4, %v8310_v17  ;;  %v4083_v35 = vpack.c.b16 %v4082_v42, %v4082_v42  ;;  %v4180_v57 = vrot.slane %v4173_v9, %v8310_v17 }
 0xaa5   :  { %v4071_v60 = vrot.slane %v4064_v59, %v8310_v17 }
 0xaa6   :  { %3973 = vrot.lane.b32.xlu1 %v3972_v8, %s5036_s15  ;;  %4165 = vrot.lane.b32.xlu0 %v4164_v12, %s5042_s12  ;;  %v4090_v23 = vrot.slane %v4083_v35, %v8310_v17  ;;  %v4187_v11 = vrot.slane %v4180_v57, %v8310_v17 }
 0xaa7   :  { %v4078_v19 = vrot.slane %v4071_v60, %v8310_v17 }
 0xaa8   :  { %v4097_v16 = vrot.slane %v4090_v23, %v8310_v17 }
 0xaa9   :  { %4080 = vst.msk [vmem:[#allocation5 + $0x3] sm:$0x1] %vm3724_vm6, %v4078_v19 }
 0xaaa   :  { %4188 = vrot.lane.b32.xlu1 %v4187_v11, %s5031_s26  ;;  %4098 = vrot.lane.b32.xlu0 %v4097_v16, %s5045_s23 }
 0xaae   :  { %3995 = vrot.lane.b32.xlu0 %v3994_v10, %s5046_s24 }
 0xb0c   :  { %v3812_v22 = vpop.permute.xlu0 %3811  ;;  %v3744_v46 = vpop.permute.xlu1 %3743 }
 0xb0d   :  { %v3813_v55 = vrot.slane %v3812_v22, 7  ;;  %3747 = vst.msk [vmem:[#allocation5] sm:$0x1] %vm3746_vm7, %v3744_v46 }
 0xb0f   :  { %v3815_v36 = vsel %vm1257_vm2, %v3813_v55, %v3812_v22 }
 0xb10   :  { %v3915_v47 = vpop.permute.xlu0 %3914  ;;  %v3839_v1 = vpop.permute.xlu1 %3838  ;;  %3820 = vst.msk [vmem:[#allocation5] sm:$0x3] %vm8411_vm10, %v3815_v36 }
 0xb11   :  { %v3916_v45 = vrot.slane %v3915_v47, 7  ;;  %3842 = vst.msk [vmem:[#allocation5 + $0x1] sm:$0x1] %vm3841_vm3, %v3839_v1 }
 0xb13   :  { %v3918_v52 = vsel %vm1041_vm15, %v3916_v45, %v3915_v47 }
 0xb14   :  { %v3893_v61 = vpop.permute.xlu1 %3892 }
 0xb15   :  { %3896 = vst.msk [vmem:[#allocation5 + $0x1] sm:$0x1] %vm3895_vm11, %v3893_v61 }
 0xb16   :  { %3923 = vst.msk [vmem:[#allocation5 + $0x1] sm:$0x3] %vm3922_vm12, %v3918_v52 }
 0xb18   :  { %v3974_v54 = vpop.permute.xlu1 %3973  ;;  %v4166_v56 = vpop.permute.xlu0 %4165 }
 0xb19   :  { %3977 = vst.msk [vmem:[#allocation5 + $0x2] sm:$0x1] %vm3976_vm13, %v3974_v54  ;;  %v4167_v62 = vrot.slane %v4166_v56, 7 }
 0xb1b   :  { %v4168_v48 = vsel %vm1257_vm2, %v4167_v62, %v4166_v56 }
 0xb1c   :  { %v4099_v39 = vpop.permute.xlu0 %4098  ;;  %v4189_v29 = vpop.permute.xlu1 %4188 }
 0xb1d   :  { %4101 = vst.msk [vmem:[#allocation5 + $0x3] sm:$0x1] %vm3746_vm7, %v4099_v39 }
 0xb1e   :  { %4170 = vst.msk [vmem:[#allocation5 + $0x3] sm:$0x3] %vm8411_vm10, %v4168_v48 }
 0xb1f   :  { %4191 = vst.msk [vmem:[#allocation5 + $0x4] sm:$0x1] %vm3841_vm3, %v4189_v29 }
 0xb20   :  { %v3996_v40 = vpop.permute.xlu0 %3995 }
 0xb21   :  { %3999 = vst.msk [vmem:[#allocation5 + $0x2] sm:$0x1] %vm3998_vm14, %v3996_v40 }
 0xb22   :  { %5015 = dma.done.wait [#allocation6], 18432 }
 0xb23   :  { %5016 = vsyncadd [#allocation6], 4294948864  ;;  %v4198_v51 = vld [vmem:[#allocation2 + $0x8] sm:$0xff]  ;;  %v4200_v18 = vld [vmem:[#allocation2 + $0x18] sm:$0xff]  ;;  %vm4407_vm15 = vcmask 523264  }
 0xb24   :  { %v4197_v3 = vld [vmem:[#allocation2] sm:$0xff]  ;;  %4411 = vmatprep.subr.bf16.mxu0 %v4198_v51  ;;  %4534 = vmatprep.subr.bf16.mxu1 %v4200_v18  ;;  %v4199_v2 = vld [vmem:[#allocation2 + $0x10] sm:$0xff]  ;;  %v4202_v50 = vld [vmem:[#allocation2 + $0x28] sm:$0xff] }
 0xb25   :  { %v4204_v7 = vld [vmem:[#allocation2 + $0x38] sm:$0xff]  ;;  %4412 = vmatpush1.bf16.msra.mxu0 %v4197_v3  ;;  %4535 = vmatpush1.bf16.msra.mxu1 %v4199_v2  ;;  %v4201_v44 = vld [vmem:[#allocation2 + $0x20] sm:$0xff]  ;;  %v4203_v30 = vld [vmem:[#allocation2 + $0x30] sm:$0xff] }
 0xb26   :  { %4413 = vmatprep.subr.bf16.mxu0 %v4202_v50  ;;  %4536 = vmatprep.subr.bf16.mxu1 %v4204_v7  ;;  %v4206_v24 = vld [vmem:[#allocation2 + $0x48] sm:$0xff]  ;;  %v4208_v25 = vld [vmem:[#allocation2 + $0x58] sm:$0xff]  ;;  %v4205_v58 = vld [vmem:[#allocation2 + $0x40] sm:$0xff] }
 0xb27   :  { %v4207_v26 = vld [vmem:[#allocation2 + $0x50] sm:$0xff]  ;;  %v4210_v28 = vld [vmem:[#allocation2 + $0x68] sm:$0xff]  ;;  %v4212_v32 = vld [vmem:[#allocation2 + $0x78] sm:$0xff] }
 0xb28   :  { %v4209_v38 = vld [vmem:[#allocation2 + $0x60] sm:$0xff]  ;;  %v4211_v49 = vld [vmem:[#allocation2 + $0x70] sm:$0xff]  ;;  %v4214_v20 = vld [vmem:[#allocation2 + $0x88] sm:$0xff] }
 0xb29   :  { %4414 = vmatpush1.bf16.msra.mxu0 %v4201_v44  ;;  %4537 = vmatpush1.bf16.msra.mxu1 %v4203_v30  ;;  %v4216_v37 = vld [vmem:[#allocation2 + $0x98] sm:$0xff]  ;;  %v4213_v6 = vld [vmem:[#allocation2 + $0x80] sm:$0xff]  ;;  %v4215_v41 = vld [vmem:[#allocation2 + $0x90] sm:$0xff] }
 0xb2a   :  { %4415 = vmatprep.subr.bf16.mxu0 %v4206_v24  ;;  %4538 = vmatprep.subr.bf16.mxu1 %v4208_v25  ;;  %v4218_v43 = vld [vmem:[#allocation2 + $0xa8] sm:$0xff]  ;;  %v4220_v5 = vld [vmem:[#allocation2 + $0xb8] sm:$0xff]  ;;  %v4217_v34 = vld [vmem:[#allocation2 + $0xa0] sm:$0xff] }
 0xb2b   :  { %v4219_v15 = vld [vmem:[#allocation2 + $0xb0] sm:$0xff]  ;;  %v4222_v0 = vld [vmem:[#allocation2 + $0xc8] sm:$0xff]  ;;  %v4224_v13 = vld [vmem:[#allocation2 + $0xd8] sm:$0xff] }
 0xb2c   :  { %v8425_v53 = vld [vmem:[#allocation5] sm:$0x1f]  ;;  %v4223_v8 = vld [vmem:[#allocation2 + $0xd0] sm:$0xff]  ;;  %v4226_v9 = vld [vmem:[#allocation2 + $0xe8] sm:$0xff] }
 0xb2d   :  { %4416 = vmatpush1.bf16.msra.mxu0 %v4205_v58  ;;  %4539 = vmatpush1.bf16.msra.mxu1 %v4207_v26  ;;  %v8429_v27 = vrot.slane %v8425_v53, %v8310_v17  ;;  %v4221_v4 = vld [vmem:[#allocation2 + $0xc0] sm:$0xff]  ;;  %v4228_v21 = vld [vmem:[#allocation2 + $0xf8] sm:$0xff]  ;;  %v4227_v35 = vld [vmem:[#allocation2 + $0xf0] sm:$0xff] }
 0xb2e   :  { %4417 = vmatprep.subr.bf16.mxu0 %v4210_v28  ;;  %4540 = vmatprep.subr.bf16.mxu1 %v4212_v32  ;;  %v4225_v12 = vld [vmem:[#allocation2 + $0xe0] sm:$0xff]  ;;  %v4230_v57 = vld [vmem:[#allocation2 + $0x108] sm:$0xff]  ;;  %v4232_v14 = vld [vmem:[#allocation2 + $0x118] sm:$0xff] }
 0xb2f   :  { %v4379_v42 = vcombine.high %v8429_v27, %v8429_v27  ;;  %v4229_v60 = vld [vmem:[#allocation2 + $0x100] sm:$0xff]  ;;  %v4231_v23 = vld [vmem:[#allocation2 + $0x110] sm:$0xff]  ;;  %v4234_v11 = vld [vmem:[#allocation2 + $0x128] sm:$0xff]  ;;  %v8440_v24 = vrot.slane %v8429_v27, %v8310_v17 }
 0xb30   :  { %v4236_v19 = vld [vmem:[#allocation2 + $0x138] sm:$0xff]  ;;  %v4233_v16 = vld [vmem:[#allocation2 + $0x120] sm:$0xff]  ;;  %v4235_v33 = vld [vmem:[#allocation2 + $0x130] sm:$0xff] }
 0xb31   :  { %4418 = vmatpush1.bf16.msra.mxu0 %v4209_v38  ;;  %4541 = vmatpush1.bf16.msra.mxu1 %v4211_v49  ;;  %v8434_v59 = vrot.slane %v4379_v42, %v8310_v17  ;;  %v4238_v10 = vld [vmem:[#allocation2 + $0x148] sm:$0xff]  ;;  %v4240_v22 = vld [vmem:[#allocation2 + $0x158] sm:$0xff]  ;;  %v4237_v46 = vld [vmem:[#allocation2 + $0x140] sm:$0xff] }
 0xb32   :  { %4419 = vmatprep.subr.bf16.mxu0 %v4214_v20  ;;  %4542 = vmatprep.subr.bf16.mxu1 %v4216_v37  ;;  %v4239_v55 = vld [vmem:[#allocation2 + $0x150] sm:$0xff]  ;;  %v4242_v31 = vld [vmem:[#allocation2 + $0x168] sm:$0xff]  ;;  %v4244_v36 = vld [vmem:[#allocation2 + $0x178] sm:$0xff] }
 0xb33   :  { %4443 = vmatprep.mubr.bf16.mxu0 %v8434_v59  ;;  %4566 = vmatprep.mubr.bf16.mxu1 %v8434_v59  ;;  %v4241_v47 = vld [vmem:[#allocation2 + $0x160] sm:$0xff]  ;;  %v4243_v1 = vld [vmem:[#allocation2 + $0x170] sm:$0xff]  ;;  %v4246_v45 = vld [vmem:[#allocation2 + $0x188] sm:$0xff]  ;;  %v4402_v32 = vcombine.high %v8434_v59, %v8434_v59 }
 0xb34   :  { %v4248_v61 = vld [vmem:[#allocation2 + $0x198] sm:$0xff]  ;;  %v4245_v52 = vld [vmem:[#allocation2 + $0x180] sm:$0xff]  ;;  %v4247_v54 = vld [vmem:[#allocation2 + $0x190] sm:$0xff] }
 0xb35   :  { %4420 = vmatpush1.bf16.msra.mxu0 %v4213_v6  ;;  %4543 = vmatpush1.bf16.msra.mxu1 %v4215_v41  ;;  %v4250_v56 = vld [vmem:[#allocation2 + $0x1a8] sm:$0xff]  ;;  %v4252_v62 = vld [vmem:[#allocation2 + $0x1b8] sm:$0xff]  ;;  %v4249_v39 = vld [vmem:[#allocation2 + $0x1a0] sm:$0xff] }
 0xb36   :  { %4421 = vmatprep.subr.bf16.mxu0 %v4218_v43  ;;  %4544 = vmatprep.subr.bf16.mxu1 %v4220_v5  ;;  %v4251_v48 = vld [vmem:[#allocation2 + $0x1b0] sm:$0xff]  ;;  %v4254_v29 = vld [vmem:[#allocation2 + $0x1c8] sm:$0xff]  ;;  %v4256_v40 = vld [vmem:[#allocation2 + $0x1d8] sm:$0xff] }
 0xb37   :  { %v4253_v51 = vld [vmem:[#allocation2 + $0x1c0] sm:$0xff]  ;;  %v4255_v18 = vld [vmem:[#allocation2 + $0x1d0] sm:$0xff]  ;;  %v4258_v3 = vld [vmem:[#allocation2 + $0x1e8] sm:$0xff] }
 0xb38   :  { %v4260_v2 = vld [vmem:[#allocation2 + $0x1f8] sm:$0xff]  ;;  %v4257_v50 = vld [vmem:[#allocation2 + $0x1e0] sm:$0xff]  ;;  %v4259_v7 = vld [vmem:[#allocation2 + $0x1f0] sm:$0xff] }
 0xb39   :  { %4422 = vmatpush1.bf16.msra.mxu0 %v4217_v34  ;;  %4545 = vmatpush1.bf16.msra.mxu1 %v4219_v15  ;;  %v4262_v44 = vld [vmem:[#allocation2 + $0x208] sm:$0xff]  ;;  %v4264_v30 = vld [vmem:[#allocation2 + $0x218] sm:$0xff]  ;;  %v4261_v25 = vld [vmem:[#allocation2 + $0x200] sm:$0xff] }
 0xb3a   :  { %4423 = vmatprep.subr.bf16.mxu0 %v4222_v0  ;;  %4546 = vmatprep.subr.bf16.mxu1 %v4224_v13  ;;  %v4263_v58 = vld [vmem:[#allocation2 + $0x210] sm:$0xff]  ;;  %v4266_v26 = vld [vmem:[#allocation2 + $0x228] sm:$0xff]  ;;  %v4268_v28 = vld [vmem:[#allocation2 + $0x238] sm:$0xff] }
 0xb3b   :  { %v4265_v38 = vld [vmem:[#allocation2 + $0x220] sm:$0xff]  ;;  %v4267_v49 = vld [vmem:[#allocation2 + $0x230] sm:$0xff]  ;;  %v4270_v20 = vld [vmem:[#allocation2 + $0x248] sm:$0xff] }
 0xb3c   :  { %v4272_v37 = vld [vmem:[#allocation2 + $0x258] sm:$0xff]  ;;  %v4269_v6 = vld [vmem:[#allocation2 + $0x240] sm:$0xff]  ;;  %v4271_v41 = vld [vmem:[#allocation2 + $0x250] sm:$0xff] }
 0xb3d   :  { %4424 = vmatpush1.bf16.msra.mxu0 %v4221_v4  ;;  %4547 = vmatpush1.bf16.msra.mxu1 %v4223_v8  ;;  %v4274_v43 = vld [vmem:[#allocation2 + $0x268] sm:$0xff]  ;;  %v4276_v5 = vld [vmem:[#allocation2 + $0x278] sm:$0xff]  ;;  %v4273_v34 = vld [vmem:[#allocation2 + $0x260] sm:$0xff] }
 0xb3e   :  { %4425 = vmatprep.subr.bf16.mxu0 %v4226_v9  ;;  %4548 = vmatprep.subr.bf16.mxu1 %v4228_v21  ;;  %v4275_v15 = vld [vmem:[#allocation2 + $0x270] sm:$0xff]  ;;  %v4278_v0 = vld [vmem:[#allocation2 + $0x288] sm:$0xff]  ;;  %v4280_v13 = vld [vmem:[#allocation2 + $0x298] sm:$0xff] }
 0xb3f   :  { %v4277_v27 = vld [vmem:[#allocation2 + $0x280] sm:$0xff]  ;;  %v4279_v4 = vld [vmem:[#allocation2 + $0x290] sm:$0xff]  ;;  %v4282_v8 = vld [vmem:[#allocation2 + $0x2a8] sm:$0xff] }
 0xb40   :  { %v4284_v9 = vld [vmem:[#allocation2 + $0x2b8] sm:$0xff]  ;;  %v4281_v21 = vld [vmem:[#allocation2 + $0x2a0] sm:$0xff]  ;;  %v4283_v42 = vld [vmem:[#allocation2 + $0x2b0] sm:$0xff] }
 0xb41   :  { %4426 = vmatpush1.bf16.msra.mxu0 %v4225_v12  ;;  %4549 = vmatpush1.bf16.msra.mxu1 %v4227_v35  ;;  %v4286_v59 = vld [vmem:[#allocation2 + $0x2c8] sm:$0xff]  ;;  %v4288_v12 = vld [vmem:[#allocation2 + $0x2d8] sm:$0xff]  ;;  %v4285_v35 = vld [vmem:[#allocation2 + $0x2c0] sm:$0xff] }
 0xb42   :  { %4427 = vmatprep.subr.bf16.mxu0 %v4230_v57  ;;  %4550 = vmatprep.subr.bf16.mxu1 %v4232_v14  ;;  %v4287_v57 = vld [vmem:[#allocation2 + $0x2d0] sm:$0xff]  ;;  %v4290_v14 = vld [vmem:[#allocation2 + $0x2e8] sm:$0xff] }
 0xb45   :  { %4428 = vmatpush1.bf16.msra.mxu0 %v4229_v60  ;;  %4551 = vmatpush1.bf16.msra.mxu1 %v4231_v23  ;;  %v4292_v60 = vld [vmem:[#allocation2 + $0x2f8] sm:$0xff]  ;;  %v4289_v23 = vld [vmem:[#allocation2 + $0x2e0] sm:$0xff] }
 0xb46   :  { %4429 = vmatprep.subr.bf16.mxu0 %v4234_v11  ;;  %4552 = vmatprep.subr.bf16.mxu1 %v4236_v19  ;;  %v4291_v11 = vld [vmem:[#allocation2 + $0x2f0] sm:$0xff]  ;;  %v4294_v19 = vld [vmem:[#allocation2 + $0x308] sm:$0xff] }
 0xb49   :  { %4430 = vmatpush1.bf16.msra.mxu0 %v4233_v16  ;;  %4553 = vmatpush1.bf16.msra.mxu1 %v4235_v33  ;;  %v4296_v16 = vld [vmem:[#allocation2 + $0x318] sm:$0xff]  ;;  %v4293_v33 = vld [vmem:[#allocation2 + $0x300] sm:$0xff] }
 0xb4a   :  { %4431 = vmatprep.subr.bf16.mxu0 %v4238_v10  ;;  %4554 = vmatprep.subr.bf16.mxu1 %v4240_v22  ;;  %v4295_v10 = vld [vmem:[#allocation2 + $0x310] sm:$0xff]  ;;  %v4298_v22 = vld [vmem:[#allocation2 + $0x328] sm:$0xff] }
 0xb4d   :  { %4432 = vmatpush1.bf16.msra.mxu0 %v4237_v46  ;;  %4555 = vmatpush1.bf16.msra.mxu1 %v4239_v55  ;;  %v4300_v46 = vld [vmem:[#allocation2 + $0x338] sm:$0xff]  ;;  %v4297_v55 = vld [vmem:[#allocation2 + $0x320] sm:$0xff] }
 0xb4e   :  { %4433 = vmatprep.subr.bf16.mxu0 %v4242_v31  ;;  %4556 = vmatprep.subr.bf16.mxu1 %v4244_v36  ;;  %v4299_v31 = vld [vmem:[#allocation2 + $0x330] sm:$0xff]  ;;  %v4302_v36 = vld [vmem:[#allocation2 + $0x348] sm:$0xff] }
 0xb51   :  { %4434 = vmatpush1.bf16.msra.mxu0 %v4241_v47  ;;  %4557 = vmatpush1.bf16.msra.mxu1 %v4243_v1  ;;  %v4304_v47 = vld [vmem:[#allocation2 + $0x358] sm:$0xff]  ;;  %v4301_v1 = vld [vmem:[#allocation2 + $0x340] sm:$0xff] }
 0xb52   :  { %4435 = vmatprep.subr.bf16.mxu0 %v4246_v45  ;;  %4558 = vmatprep.subr.bf16.mxu1 %v4248_v61  ;;  %v4303_v45 = vld [vmem:[#allocation2 + $0x350] sm:$0xff]  ;;  %v4306_v61 = vld [vmem:[#allocation2 + $0x368] sm:$0xff] }
 0xb55   :  { %4436 = vmatpush1.bf16.msra.mxu0 %v4245_v52  ;;  %4559 = vmatpush1.bf16.msra.mxu1 %v4247_v54  ;;  %v4308_v52 = vld [vmem:[#allocation2 + $0x378] sm:$0xff]  ;;  %v4305_v54 = vld [vmem:[#allocation2 + $0x360] sm:$0xff] }
 0xb56   :  { %4437 = vmatprep.subr.bf16.mxu0 %v4250_v56  ;;  %4560 = vmatprep.subr.bf16.mxu1 %v4252_v62  ;;  %v4307_v56 = vld [vmem:[#allocation2 + $0x370] sm:$0xff]  ;;  %v4310_v62 = vld [vmem:[#allocation2 + $0x388] sm:$0xff] }
 0xb59   :  { %4438 = vmatpush1.bf16.msra.mxu0 %v4249_v39  ;;  %4561 = vmatpush1.bf16.msra.mxu1 %v4251_v48  ;;  %v4312_v39 = vld [vmem:[#allocation2 + $0x398] sm:$0xff]  ;;  %v4309_v48 = vld [vmem:[#allocation2 + $0x380] sm:$0xff] }
 0xb5a   :  { %4439 = vmatprep.subr.bf16.mxu0 %v4254_v29  ;;  %4562 = vmatprep.subr.bf16.mxu1 %v4256_v40  ;;  %v4311_v29 = vld [vmem:[#allocation2 + $0x390] sm:$0xff]  ;;  %v4314_v40 = vld [vmem:[#allocation2 + $0x3a8] sm:$0xff] }
 0xb5d   :  { %4440 = vmatpush1.bf16.msra.mxu0 %v4253_v51  ;;  %4563 = vmatpush1.bf16.msra.mxu1 %v4255_v18  ;;  %v4316_v51 = vld [vmem:[#allocation2 + $0x3b8] sm:$0xff]  ;;  %v4313_v18 = vld [vmem:[#allocation2 + $0x3a0] sm:$0xff] }
 0xb5e   :  { %4441 = vmatprep.subr.bf16.mxu0 %v4258_v3  ;;  %4564 = vmatprep.subr.bf16.mxu1 %v4260_v2  ;;  %v4315_v3 = vld [vmem:[#allocation2 + $0x3b0] sm:$0xff]  ;;  %v4318_v2 = vld [vmem:[#allocation2 + $0x3c8] sm:$0xff] }
 0xb61   :  { %4442 = vmatpush1.bf16.msra.mxu0 %v4257_v50  ;;  %4565 = vmatpush1.bf16.msra.mxu1 %v4259_v7  ;;  %v4320_v50 = vld [vmem:[#allocation2 + $0x3d8] sm:$0xff]  ;;  %v4317_v7 = vld [vmem:[#allocation2 + $0x3c0] sm:$0xff] }
 0xb62   :  { %4452 = vmatprep.subr.bf16.mxu0 %v4262_v44  ;;  %4575 = vmatprep.subr.bf16.mxu1 %v4264_v30  ;;  %v4319_v44 = vld [vmem:[#allocation2 + $0x3d0] sm:$0xff]  ;;  %v4322_v30 = vld [vmem:[#allocation2 + $0x3e8] sm:$0xff] }
 0xb64   :  { %4444 = vmatmul.mubr.bf16.vlgmr.msra.gmra.mrb[0].mxu0 %v8440_v24  ;;  %4567 = vmatmul.mubr.bf16.vlgmr.msra.gmra.mrb[0].mxu1 %v8440_v24 }
 0xb65   :  { %4453 = vmatpush1.bf16.msra.mxu0 %v4261_v25  ;;  %4576 = vmatpush1.bf16.msra.mxu1 %v4263_v58  ;;  %v4324_v25 = vld [vmem:[#allocation2 + $0x3f8] sm:$0xff]  ;;  %v4321_v58 = vld [vmem:[#allocation2 + $0x3e0] sm:$0xff] }
 0xb66   :  { %4454 = vmatprep.subr.bf16.mxu0 %v4266_v26  ;;  %4577 = vmatprep.subr.bf16.mxu1 %v4268_v28  ;;  %v4323_v26 = vld [vmem:[#allocation2 + $0x3f0] sm:$0xff]  ;;  %v4326_v28 = vld [vmem:[#allocation2 + $0x408] sm:$0xff] }
 0xb67   :  { %4484 = vmatprep.mubr.bf16.mxu0 %v4402_v32  ;;  %4607 = vmatprep.mubr.bf16.mxu1 %v4402_v32  ;;  %v4328_v32 = vld [vmem:[#allocation2 + $0x418] sm:$0xff] }
 0xb69   :  { %4455 = vmatpush1.bf16.msra.mxu0 %v4265_v38  ;;  %4578 = vmatpush1.bf16.msra.mxu1 %v4267_v49  ;;  %v4401_v38 = vcombine.high %v8440_v24, %v8440_v24  ;;  %v4325_v49 = vld [vmem:[#allocation2 + $0x400] sm:$0xff]  ;;  %v4364_v24 = vcombine.high %v8425_v53, %v8425_v53  ;;  %v4353_v53 = vsub.s32 2, %v9176_v63 }
 0xb6a   :  { %4456 = vmatprep.subr.bf16.mxu0 %v4270_v20  ;;  %4579 = vmatprep.subr.bf16.mxu1 %v4272_v37  ;;  %v4327_v20 = vld [vmem:[#allocation2 + $0x410] sm:$0xff]  ;;  %v4330_v37 = vld [vmem:[#allocation2 + $0x428] sm:$0xff] }
 0xb6d   :  { %4457 = vmatpush1.bf16.msra.mxu0 %v4269_v6  ;;  %4580 = vmatpush1.bf16.msra.mxu1 %v4271_v41  ;;  %v4332_v6 = vld [vmem:[#allocation2 + $0x438] sm:$0xff]  ;;  %v4329_v41 = vld [vmem:[#allocation2 + $0x420] sm:$0xff] }
 0xb6e   :  { %4458 = vmatprep.subr.bf16.mxu0 %v4274_v43  ;;  %4581 = vmatprep.subr.bf16.mxu1 %v4276_v5  ;;  %v4331_v43 = vld [vmem:[#allocation2 + $0x430] sm:$0xff]  ;;  %v4334_v5 = vld [vmem:[#allocation2 + $0x448] sm:$0xff] }
 0xb71   :  { %4459 = vmatpush1.bf16.msra.mxu0 %v4273_v34  ;;  %4582 = vmatpush1.bf16.msra.mxu1 %v4275_v15  ;;  %v4336_v34 = vld [vmem:[#allocation2 + $0x458] sm:$0xff]  ;;  %v5056_v15 = vmov 0  }
 0xb72   :  { %4460 = vmatprep.subr.bf16.mxu0 %v4278_v0  ;;  %4583 = vmatprep.subr.bf16.mxu1 %v4280_v13  ;;  %v4333_v0 = vld [vmem:[#allocation2 + $0x440] sm:$0xff]  ;;  %v4335_v13 = vld [vmem:[#allocation2 + $0x450] sm:$0xff] }
 0xb75   :  { %4461 = vmatpush1.bf16.msra.mxu0 %v4277_v27  ;;  %4584 = vmatpush1.bf16.msra.mxu1 %v4279_v4  ;;  %v4338_v27 = vld [vmem:[#allocation2 + $0x468] sm:$0xff]  ;;  %v4340_v4 = vld [vmem:[#allocation2 + $0x478] sm:$0xff] }
 0xb76   :  { %4462 = vmatprep.subr.bf16.mxu0 %v4282_v8  ;;  %4585 = vmatprep.subr.bf16.mxu1 %v4284_v9  ;;  %v4378_v8 = vrot.slane %v4364_v24, %v8310_v17  ;;  %v4337_v9 = vld [vmem:[#allocation2 + $0x460] sm:$0xff] }
 0xb79   :  { %4463 = vmatpush1.bf16.msra.mxu0 %v4281_v21  ;;  %4586 = vmatpush1.bf16.msra.mxu1 %v4283_v42  ;;  %v4339_v21 = vld [vmem:[#allocation2 + $0x470] sm:$0xff]  ;;  %v4393_v42 = vrot.slane %v4378_v8, %v8310_v17 }
 0xb7a   :  { %4464 = vmatprep.subr.bf16.mxu0 %v4286_v59  ;;  %4587 = vmatprep.subr.bf16.mxu1 %v4288_v12  ;;  %v4341_v59 = vld [vmem:[%s8512_s6] sm:$0xf]  ;;  %v4357_v12 = vsub.s32 3, %v9176_v63 }
 0xb7d   :  { %4465 = vmatpush1.bf16.msra.mxu0 %v4285_v35  ;;  %4588 = vmatpush1.bf16.msra.mxu1 %v4287_v57  ;;  %v9180_v35 = vld [vmem:[#allocation48_spill] sm:$0xff] }
 0xb7e   :  { %4466 = vmatprep.subr.bf16.mxu0 %v4290_v14  ;;  %4589 = vmatprep.subr.bf16.mxu1 %v4292_v60  ;;  %v4346_v57 = vrot.slane %v4341_v59, %v9180_v35  ;;  %v4354_v14 = vrot.slane %v4341_v59, %v4353_v53  ;;  %v9181_v60 = vld [vmem:[#allocation49_spill] sm:$0xff] }
 0xb81   :  { %4467 = vmatpush1.bf16.msra.mxu0 %v4289_v23  ;;  %4590 = vmatpush1.bf16.msra.mxu1 %v4291_v11  ;;  %v4350_v23 = vrot.slane %v4341_v59, %v9181_v60  ;;  %v4358_v11 = vrot.slane %v4341_v59, %v4357_v12 }
 0xb82   :  { %4468 = vmatprep.subr.bf16.mxu0 %v4294_v19  ;;  %4591 = vmatprep.subr.bf16.mxu1 %v4296_v16 }
 0xb85   :  { %4469 = vmatpush1.bf16.msra.mxu0 %v4293_v33  ;;  %4592 = vmatpush1.bf16.msra.mxu1 %v4295_v10 }
 0xb86   :  { %4470 = vmatprep.subr.bf16.mxu0 %v4298_v22  ;;  %4593 = vmatprep.subr.bf16.mxu1 %v4300_v46 }
 0xb89   :  { %4471 = vmatpush1.bf16.msra.mxu0 %v4297_v55  ;;  %4594 = vmatpush1.bf16.msra.mxu1 %v4299_v31 }
 0xb8a   :  { %4472 = vmatprep.subr.bf16.mxu0 %v4302_v36  ;;  %4595 = vmatprep.subr.bf16.mxu1 %v4304_v47 }
 0xb8d   :  { %4473 = vmatpush1.bf16.msra.mxu0 %v4301_v1  ;;  %4596 = vmatpush1.bf16.msra.mxu1 %v4303_v45 }
 0xb8e   :  { %4474 = vmatprep.subr.bf16.mxu0 %v4306_v61  ;;  %4597 = vmatprep.subr.bf16.mxu1 %v4308_v52 }
 0xb91   :  { %4475 = vmatpush1.bf16.msra.mxu0 %v4305_v54  ;;  %4598 = vmatpush1.bf16.msra.mxu1 %v4307_v56  ;;  %v9182_v54 = vld [vmem:[#allocation23_spill] sm:$0xff] }
 0xb92   :  { %4476 = vmatprep.subr.bf16.mxu0 %v4310_v62  ;;  %4599 = vmatprep.subr.bf16.mxu1 %v4312_v39  ;;  %v9183_v56 = vld [vmem:[#allocation39_spill] sm:$0xff] }
 0xb95   :  { %4477 = vmatpush1.bf16.msra.mxu0 %v4309_v48  ;;  %4600 = vmatpush1.bf16.msra.mxu1 %v4311_v29 }
 0xb96   :  { %4478 = vmatprep.subr.bf16.mxu0 %v4314_v40  ;;  %4601 = vmatprep.subr.bf16.mxu1 %v4316_v51 }
 0xb99   :  { %4479 = vmatpush1.bf16.msra.mxu0 %v4313_v18  ;;  %4602 = vmatpush1.bf16.msra.mxu1 %v4315_v3 }
 0xb9a   :  { %4480 = vmatprep.subr.bf16.mxu0 %v4318_v2  ;;  %4603 = vmatprep.subr.bf16.mxu1 %v4320_v50 }
 0xb9d   :  { %4481 = vmatpush1.bf16.msra.mxu0 %v4317_v7  ;;  %4604 = vmatpush1.bf16.msra.mxu1 %v4319_v44 }
 0xb9e   :  { %4482 = vmatprep.subr.bf16.mxu0 %v4322_v30  ;;  %4605 = vmatprep.subr.bf16.mxu1 %v4324_v25 }
 0xba1   :  { %4483 = vmatpush1.bf16.msra.mxu0 %v4321_v58  ;;  %4606 = vmatpush1.bf16.msra.mxu1 %v4323_v26 }
 0xba2   :  { %4493 = vmatprep.subr.bf16.mxu0 %v4326_v28  ;;  %4616 = vmatprep.subr.bf16.mxu1 %v4328_v32 }
 0xba4   :  { %4485 = vmatmul.mubr.bf16.vlgmr.msra.gmra.mrb[0].mxu0 %v4401_v38  ;;  %4608 = vmatmul.mubr.bf16.vlgmr.msra.gmra.mrb[0].mxu1 %v4401_v38 }
 0xba5   :  { %4494 = vmatpush1.bf16.msra.mxu0 %v4325_v49  ;;  %4617 = vmatpush1.bf16.msra.mxu1 %v4327_v20 }
 0xba6   :  { %4495 = vmatprep.subr.bf16.mxu0 %v4330_v37  ;;  %4618 = vmatprep.subr.bf16.mxu1 %v4332_v6 }
 0xba7   :  { %4525 = vmatprep.mubr.bf16.mxu0 %v5056_v15  ;;  %4648 = vmatprep.mubr.bf16.mxu1 %v5056_v15 }
 0xba9   :  { %4496 = vmatpush1.bf16.msra.mxu0 %v4329_v41  ;;  %4619 = vmatpush1.bf16.msra.mxu1 %v4331_v43 }
 0xbaa   :  { %4497 = vmatprep.subr.bf16.mxu0 %v4334_v5  ;;  %4620 = vmatprep.subr.bf16.mxu1 %v4336_v34 }
 0xbad   :  { %4498 = vmatpush1.bf16.msra.mxu0 %v4333_v0  ;;  %4621 = vmatpush1.bf16.msra.mxu1 %v4335_v13 }
 0xbae   :  { %4499 = vmatprep.subr.bf16.mxu0 %v4338_v27  ;;  %4622 = vmatprep.subr.bf16.mxu1 %v4340_v4 }
 0xbb1   :  { %4500 = vmatpush1.bf16.msra.mxu0 %v4337_v9  ;;  %4623 = vmatpush1.bf16.msra.mxu1 %v4339_v21 }
 0xbb2   :  { %4887 = vmatprep.subr.bf16.mxu0 %v9182_v54  ;;  %4909 = vmatprep.subr.bf16.mxu1 %v9183_v56 }
 0xbb4   :  { %4882 = vmatmul.mubr.msk.bf16.vlgmr.msra.gmra.mrb[0].mxu0 %vm4407_vm15, %v4393_v42  ;;  %4883 = vmatmul.mubr.msk.bf16.vlgmr.msra.gmra.mrb[0].mxu1 %vm4407_vm15, %v4393_v42 }
 0xc87   :  { %v4527_v17 = vpop.f32.mrb[0].mxu0  ;;  %v4650_v19 = vpop.f32.mrb[0].mxu1 }
 0xc88   :  { %v4931_v16 = vadd.f32 %v4527_v17, %v4346_v57  ;;  %v4933_v33 = vadd.f32 %v4650_v19, %v4354_v14  ;;  %v4529_v10 = vpop.f32.mrb[1].mxu0  ;;  %v4652_v22 = vpop.f32.mrb[1].mxu1 }
 0xc89   :  { %v4932_v46 = vadd.f32 %v4529_v10, %v4350_v23  ;;  %v4934_v55 = vadd.f32 %v4652_v22, %v4358_v11  ;;  %v4531_v31 = vpop.f32.mrb[2].mxu0  ;;  %v4654_v36 = vpop.f32.mrb[2].mxu1 }
 0xc8a   :  { %v4657_v47 = vmax.f32 %v4931_v16, 0.0  ;;  %v4659_v1 = vmax.f32 %v4933_v33, 0.0  ;;  %v4532_v45 = vpop.f32.mrb[3].mxu0  ;;  %v4655_v63 = vpop.f32.mrb[3].mxu1 }
 0xc8b   :  { %v4658_v61 = vmax.f32 %v4932_v46, 0.0  ;;  %v4660_v52 = vmax.f32 %v4934_v55, 0.0 }
 0xc8d   :  { %v4666_v62 = vpack.c.bf16 %v4658_v61, %v4658_v61  ;;  %v4668_v39 = vpack.c.bf16 %v4660_v52, %v4660_v52 }
 0xc8e   :  { %5017 = dma.done.wait [#allocation6 + $0x1], 4096 }
 0xc8f   :  { %5018 = vsyncadd [#allocation6 + $0x1], 4294963200  ;;  %v9184_v48 = vld [vmem:[#allocation15_spill] sm:$0xff]  ;;  %v9186_v40 = vld [vmem:[#allocation24_spill] sm:$0xff]  ;;  %4740 = vmatprep.mubr.bf16.mxu0 %v4666_v62  ;;  %4780 = vmatprep.mubr.bf16.mxu1 %v4668_v39  ;;  %v4665_v13 = vpack.c.bf16 %v4657_v47, %v4657_v47  ;;  %v4667_v27 = vpack.c.bf16 %v4659_v1, %v4659_v1  ;;  %vm4788_vm2 = vcmask 1041408  }
 0xc90   :  { %4888 = vmatpush3.bf16.msra.mxu0 %v9184_v48  ;;  %v9185_v29 = vld [vmem:[#allocation31_spill] sm:$0xff]  ;;  %v9187_v51 = vld [vmem:[#allocation40_spill] sm:$0xff]  ;;  %v9190_v2 = vld [vmem:[#allocation25_spill] sm:$0xff] }
 0xc91   :  { %4910 = vmatpush3.bf16.msra.mxu1 %v9185_v29  ;;  %4889 = vmatprep.subr.bf16.mxu0 %v9186_v40  ;;  %v9188_v18 = vld [vmem:[#allocation16_spill] sm:$0xff]  ;;  %v9191_v50 = vld [vmem:[#allocation41_spill] sm:$0xff]  ;;  %v9194_v30 = vld [vmem:[#allocation26_spill] sm:$0xff] }
 0xc92   :  { %4911 = vmatprep.subr.bf16.mxu1 %v9187_v51  ;;  %v9189_v3 = vld [vmem:[#allocation32_spill] sm:$0xff]  ;;  %v9192_v7 = vld [vmem:[#allocation17_spill] sm:$0xff]  ;;  %v9195_v25 = vld [vmem:[#allocation42_spill] sm:$0xff] }
 0xc93   :  { %v9193_v44 = vld [vmem:[#allocation33_spill] sm:$0xff]  ;;  %v9196_v58 = vld [vmem:[#allocation18_spill] sm:$0xff]  ;;  %v9198_v28 = vld [vmem:[#allocation27_spill] sm:$0xff] }
 0xc94   :  { %4890 = vmatpush3.bf16.msra.mxu0 %v9188_v18  ;;  %v9197_v26 = vld [vmem:[#allocation34_spill] sm:$0xff]  ;;  %v9199_v32 = vld [vmem:[#allocation43_spill] sm:$0xff]  ;;  %v9202_v20 = vld [vmem:[#allocation28_spill] sm:$0xff] }
 0xc95   :  { %4912 = vmatpush3.bf16.msra.mxu1 %v9189_v3  ;;  %4891 = vmatprep.subr.bf16.mxu0 %v9190_v2  ;;  %v9200_v38 = vld [vmem:[#allocation19_spill] sm:$0xff]  ;;  %v9203_v37 = vld [vmem:[#allocation44_spill] sm:$0xff]  ;;  %v9206_v43 = vld [vmem:[#allocation29_spill] sm:$0xff] }
 0xc96   :  { %4913 = vmatprep.subr.bf16.mxu1 %v9191_v50  ;;  %v9201_v49 = vld [vmem:[#allocation35_spill] sm:$0xff]  ;;  %v9204_v6 = vld [vmem:[#allocation20_spill] sm:$0xff]  ;;  %v9207_v5 = vld [vmem:[#allocation45_spill] sm:$0xff] }
 0xc97   :  { %v9205_v41 = vld [vmem:[#allocation36_spill] sm:$0xff]  ;;  %v9208_v34 = vld [vmem:[#allocation21_spill] sm:$0xff]  ;;  %v9210_v24 = vld [vmem:[#allocation30_spill] sm:$0xff] }
 0xc98   :  { %4892 = vmatpush3.bf16.msra.mxu0 %v9192_v7  ;;  %v9209_v15 = vld [vmem:[#allocation37_spill] sm:$0xff]  ;;  %v9211_v0 = vld [vmem:[#allocation46_spill] sm:$0xff] }
 0xc99   :  { %4914 = vmatpush3.bf16.msra.mxu1 %v9193_v44  ;;  %4893 = vmatprep.subr.bf16.mxu0 %v9194_v30  ;;  %v9212_v4 = vld [vmem:[#allocation22_spill] sm:$0xff] }
 0xc9a   :  { %4915 = vmatprep.subr.bf16.mxu1 %v9195_v25  ;;  %v9213_v8 = vld [vmem:[#allocation38_spill] sm:$0xff] }
 0xc9b   :  { %v4884_v42 = vld [vmem:[%s8514_s8] ss:$0 sm:$0xff]  ;;  %s5057_s8 = smov [#allocation7]  }
 0xc9c   :  { %4894 = vmatpush3.bf16.msra.mxu0 %v9196_v58  ;;  %s4807_s12 = sshll.u32 %s5057_s8, 4  ;;  %s4808_s12 = int_to_ptr.vmem [resolvable:$true] %s4807_s12 }
 0xc9d   :  { %4916 = vmatpush3.bf16.msra.mxu1 %v9197_v26  ;;  %4895 = vmatprep.subr.bf16.mxu0 %v9198_v28  ;;  %s4993_s16 = scalar_lea.vmem %s4808_s12, 32  ;;  %p4998_p1 = scmp.lt.s32.totalorder %s4808_s12, %s4808_s12 }
 0xc9e   :  { %4917 = vmatprep.subr.bf16.mxu1 %v9199_v32  ;;  %p4994_p0 = scmp.ne.s32.totalorder %s4808_s12, %s4993_s16  ;;  %p4999_p2 = scmp.lt.s32.totalorder %s4993_s16, %s4993_s16 }
 0xca0   :  { %4896 = vmatpush3.bf16.msra.mxu0 %v9200_v38  ;;  %p5000_p3 = por %p4999_p2, %p4998_p1 }
 0xca1   :  { %4918 = vmatpush3.bf16.msra.mxu1 %v9201_v49  ;;  %4897 = vmatprep.subr.bf16.mxu0 %v9202_v20 }
 0xca2   :  { %4919 = vmatprep.subr.bf16.mxu1 %v9203_v37  ;;  %p5001_p4 = pnand %p5000_p3, %p4994_p0 }
 0xca4   :  { %4898 = vmatpush3.bf16.msra.mxu0 %v9204_v6 }
 0xca5   :  { %4920 = vmatpush3.bf16.msra.mxu1 %v9205_v41  ;;  %4899 = vmatprep.subr.bf16.mxu0 %v9206_v43 }
 0xca6   :  { %4921 = vmatprep.subr.bf16.mxu1 %v9207_v5 }
 0xca8   :  { %4900 = vmatpush3.bf16.msra.mxu0 %v9208_v34 }
 0xca9   :  { %4922 = vmatpush3.bf16.msra.mxu1 %v9209_v15  ;;  %4901 = vmatprep.subr.bf16.mxu0 %v9210_v24 }
 0xcaa   :  { %4923 = vmatprep.subr.bf16.mxu1 %v9211_v0 }
 0xcac   :  { %4902 = vmatpush3.bf16.msra.mxu0 %v9212_v4 }
 0xcad   :  { %4924 = vmatpush3.bf16.msra.mxu1 %v9213_v8 }
 0xcaf   :  { %4741 = vmatmul.mubr.bf16.vlgmr.msra.gmra.mrb[4].mxu0 %v4665_v13 }
 0xcb0   :  { %4781 = vmatmul.mubr.bf16.vlgmr.msra.gmra.mrb[4].mxu1 %v4667_v27 }
 0xd82   :  { %v4903_v9 = vpop.f32.mrb[4].mxu0 }
 0xd83   :  { %v4925_v21 = vpop.f32.mrb[4].mxu1  ;;  %v4904_v53 = vpop.f32.mrb[5].mxu0 }
 0xd84   :  { %v4926_v59 = vpop.f32.mrb[5].mxu1  ;;  %v4905_v12 = vadd.f32 %v4904_v53, %v4903_v9  ;;  %v4906_v57 = vpop.f32.mrb[6].mxu0 }
 0xd85   :  { %v4927_v35 = vadd.f32 %v4926_v59, %v4925_v21  ;;  %v4928_v14 = vpop.f32.mrb[6].mxu1  ;;  %v4907_v60 = vpop.f32.mrb[7].mxu0 }
 0xd86   :  { %v4929_v23 = vpop.f32.mrb[7].mxu1  ;;  %v4743_v11 = vadd.f32 %v4905_v12, %v4884_v42 }
 0xd88   :  { %v4783_v17 = vadd.f32 %v4927_v35, %v4743_v11 }
 0xd8a   :  { %v4789_v19 = vsel %vm4788_vm2, %v4783_v17, -inf }
 0xd8b   :  { %4790 = vmax.xlane.f32.xlu0 %v4789_v19 }
 0xe18   :  { %v4791_v16 = vpop.xlane.xlu0 %4790 }
 0xe19   :  { %v4792_v33 = vsub.f32 %v4783_v17, %v4791_v16 }
 0xe1b   :  { %v4793_v10 = vmul.f32 1.442695, %v4792_v33 }
 0xe1d   :  { %4989 = vpow2.f32 %v4793_v10 }
 0xe27   :  { %v4990_v22 = vpop.eup %4989 }
 0xe28   :  { %v4795_v46 = vsel %vm4788_vm2, %v4990_v22, 0.0 }
 0xe29   :  { %4796 = vadd.xlane.f32.xlu0 %v4795_v46 }
 0xeb6   :  { %v4797_v55 = vpop.xlane.xlu0 %4796 }
 0xeb7   :  { %4991 = vrcp.f32 %v4797_v55 }
 0xec1   :  { %v4992_v31 = vpop.eup %4991 }
 0xec2   :  { %v4799_v36 = vmul.f32 %v4992_v31, %v4990_v22 }
 0xec4   :  { %4800 = vst [vmem:[#allocation7] sm:$0x3] %v4799_v36 }
 0xec5   :  { %5004 = shalt.err (!%p5001_p4)
}
 0xec6   :  { %s5005_s1 = scalar_lea.hbm %s8515_s9, 32 }
 0xec7   :  { %p5006_p5 = scmp.ne.s32.totalorder %s8515_s9, %s5005_s1  ;;  %p5009_p6 = scmp.lt.u32.totalorder %s5005_s1, %s8515_s9 }
 0xec9   :  { %p5011_p7 = pnand %p5009_p6, %p5006_p5 }
 0xecb   :  { %5014 = shalt.err (!%p5011_p7)
}
 0xecc   :  { %4810 = dma.vmem_to_hbm [thread:$0]  %s4808_s12, 32, %s8515_s9, [#allocation8]  }
 0xecd   :  { %5019 = dma.done.wait [#allocation8], 32  }
 0xece   :  { %5020 = vsyncadd [#allocation8], 4294967264 }
 0xecf   :  { %4814 = vsyncpa [#allocation8], 1 }
 0xed0   :  { %4815 = vsyncmov [#allocation6] }
 0xed3   :  { %s4816_s7 = vpop.sfrf %4815 }
 0xed4   :  { %p4885_p8 = scmp.ne.s32.totalorder %s4816_s7, 0 }
 0xed6   :  { %4820 = shalt.err (%p4885_p8)  }
 0xed7   :  { %4822 = vsyncmov [#allocation6 + $0x1] }
 0xeda   :  { %s4823_s25 = vpop.sfrf %4822 }
 0xedb   :  { %p4886_p9 = scmp.ne.s32.totalorder %s4823_s25, 0 }
 0xedd   :  { %4827 = shalt.err (%p4886_p9)  }

</bundles_post_ra>
